<compile_context>
chip_gen: v5e
topology: v5e:2x2
jax: 0.10.0
libtpu: 0.0.40
codegen_flags: <defaults>
</compile_context>

<pallas_src>
import functools

import jax
import jax.numpy as jnp
from jax.experimental import pallas as pl
from jax.experimental.pallas import tpu as pltpu


# ----------------------------------------------------------------------------
# BatchNorm (training-mode, batch statistics) on [M, C] — f32, two-pass variance
# ----------------------------------------------------------------------------
def _bn_train(y, gamma, beta, eps):
    mean = jnp.mean(y, axis=0, keepdims=True)
    yc = y - mean
    var = jnp.mean(yc * yc, axis=0, keepdims=True)
    return yc * jax.lax.rsqrt(var + eps) * gamma + beta


# ----------------------------------------------------------------------------
# Fused BasicBlock kernel body
# ----------------------------------------------------------------------------
def _basic_block_kernel(*refs, n, ho, wo, cpad, has_down, eps):
    if has_down:
        (x1_ref, w1_ref, g1_ref, b1_ref, w2_ref, g2_ref, b2_ref,
         xid_ref, wd_ref, gd_ref, bd_ref, out_ref) = refs
    else:
        (x1_ref, w1_ref, g1_ref, b1_ref, w2_ref, g2_ref, b2_ref,
         idn_ref, out_ref) = refs

    m = n * ho * wo

    # ---- conv1 (3x3, stride folded into the slab): ONE matmul, K = 9*Cin ----
    acc1 = jnp.dot(x1_ref[...], w1_ref[...], preferred_element_type=jnp.float32)
    h1 = jnp.maximum(_bn_train(acc1, g1_ref[...], b1_ref[...], eps), 0.0)

    # ---- conv2 (3x3, stride 1): build [M, 9*Cpad] bf16 slab in VMEM (values,
    #      no scratch-ref stores), then ONE matmul, K = 9*Cpad ----------------
    h1r = h1.astype(jnp.bfloat16).reshape(n, ho, wo, cpad)
    zr = jnp.zeros((n, 1, wo, cpad), jnp.bfloat16)
    h1p = jnp.concatenate([zr, h1r, zr], axis=1)            # pad H (zero halo)
    zc = jnp.zeros((n, ho + 2, 1, cpad), jnp.bfloat16)
    h1p = jnp.concatenate([zc, h1p, zc], axis=2)            # pad W (zero halo)
    taps = [h1p[:, kh:kh + ho, kw:kw + wo, :]
            for kh in range(3) for kw in range(3)]
    slab2 = jnp.concatenate(taps, axis=-1).reshape(m, 9 * cpad)   # lane-exact

    acc2 = jnp.dot(slab2, w2_ref[...], preferred_element_type=jnp.float32)
    y = _bn_train(acc2, g2_ref[...], b2_ref[...], eps)

    # ---- identity / fused 1x1 downsample + BN, residual add, ReLU ----------
    if has_down:
        idn = jnp.dot(xid_ref[...], wd_ref[...],
                      preferred_element_type=jnp.float32)
        idn = _bn_train(idn, gd_ref[...], bd_ref[...], eps)
    else:
        idn = idn_ref[...]                                   # [M, Cpad] f32

    # single lane-dense (Cpad = multiple of 128) output store
    out_ref[...] = jnp.maximum(y + idn, 0.0).astype(out_ref.dtype)


# ----------------------------------------------------------------------------
# Wrapper (NCHW in / NCHW out like the PyTorch module)
# ----------------------------------------------------------------------------
def _full_spec(shape):
    nd = len(shape)
    return pl.BlockSpec(shape, lambda i, _nd=nd: (0,) * _nd)


def basic_block_forward(x_nchw, params, stride=1, planes=None, eps=1e-5):
    x = jnp.transpose(x_nchw, (0, 2, 3, 1)).astype(jnp.float32)     # NHWC f32
    n, h, w, cin = x.shape
    cpad = params['w1'].shape[-1]            # lane-padded output channels
    if planes is None:
        planes = cpad
    has_down = 'wd' in params
    if not has_down:
        assert stride == 1 and cin == planes, (
            "BasicBlock without downsample needs stride=1 and cin==planes")

    ho = (h + 2 - 3) // stride + 1
    wo = (w + 2 - 3) // stride + 1
    m = n * ho * wo

    # conv1 im2col slab (stride folded in), built once wrapper-side, bf16
    xp = jnp.pad(x, ((0, 0), (1, 1), (1, 1), (0, 0)))
    taps = [xp[:, kh:kh + stride * (ho - 1) + 1:stride,
               kw:kw + stride * (wo - 1) + 1:stride, :]
            for kh in range(3) for kw in range(3)]
    x1 = jnp.concatenate(taps, axis=-1).reshape(m, 9 * cin).astype(jnp.bfloat16)

    inputs = [x1, params['w1'], params['g1'], params['b1'],
              params['w2'], params['g2'], params['b2']]
    if has_down:
        xid = x[:, ::stride, ::stride, :].reshape(m, cin).astype(jnp.bfloat16)
        inputs += [xid, params['wd'], params['gd'], params['bd']]
    else:
        idn = x.reshape(m, cin)                                    # stride==1
        idn = jnp.pad(idn, ((0, 0), (0, cpad - cin)))              # lane pad
        inputs.append(idn)

    kernel = functools.partial(
        _basic_block_kernel, n=n, ho=ho, wo=wo, cpad=cpad,
        has_down=has_down, eps=eps)

    # VMEM budget from actual buffers (+ in-kernel value slabs), with headroom.
    in_bytes = sum(int(a.size) * a.dtype.itemsize for a in inputs)
    out_bytes = m * cpad * 4
    interm_bytes = (m * 9 * cpad * 2) * 3 + (m * cpad * 4) * 8
    vmem_limit = int(min(100 << 20,
                         max(32 << 20, 2 * (in_bytes + out_bytes) + interm_bytes)))

    out = pl.pallas_call(
        kernel,
        out_shape=jax.ShapeDtypeStruct((m, cpad), jnp.float32),
        grid=(1,),
        in_specs=[_full_spec(a.shape) for a in inputs],
        out_specs=_full_spec((m, cpad)),
        compiler_params=pltpu.CompilerParams(
            dimension_semantics=("arbitrary",),
            vmem_limit_bytes=vmem_limit),
    )(*inputs)

    out = out[:, :planes].reshape(n, ho, wo, planes)
    return jnp.transpose(out, (0, 3, 1, 2))                        # NCHW


# ----------------------------------------------------------------------------
# Deterministic params, stored in matmul-ready, lane-padded layout at init time
# ----------------------------------------------------------------------------
def _he_normal(key, shape, fan_in):
    return jax.random.normal(key, shape, jnp.float32) * (2.0 / fan_in) ** 0.5


def _conv3x3_to_matmul(w_oihw, cin_pad, cout_pad):
    """[Cout, Cin, 3, 3] -> [9*cin_pad, cout_pad] bf16 (row order kh, kw, cin)."""
    co, ci, _, _ = w_oihw.shape
    wt = jnp.transpose(w_oihw, (2, 3, 1, 0))                       # [3,3,Cin,Cout]
    wt = jnp.pad(wt, ((0, 0), (0, 0), (0, cin_pad - ci), (0, cout_pad - co)))
    return wt.reshape(9 * cin_pad, cout_pad).astype(jnp.bfloat16)


def init_basic_block_params(key, inplanes, planes, downsample=False, lane=128):
    cpad = ((planes + lane - 1) // lane) * lane
    k1, k2, k3 = jax.random.split(key, 3)
    p = {
        'w1': _conv3x3_to_matmul(
            _he_normal(k1, (planes, inplanes, 3, 3), inplanes * 9), inplanes, cpad),
        'g1': jnp.ones((1, cpad), jnp.float32),
        'b1': jnp.zeros((1, cpad), jnp.float32),
        'w2': _conv3x3_to_matmul(
            _he_normal(k2, (planes, planes, 3, 3), planes * 9), cpad, cpad),
        'g2': jnp.ones((1, cpad), jnp.float32),
        'b2': jnp.zeros((1, cpad), jnp.float32),
    }
    if downsample:
        wd = _he_normal(k3, (planes, inplanes, 1, 1), inplanes)[:, :, 0, 0]
        wd = jnp.transpose(wd, (1, 0))                              # [Cin, Cout]
        p['wd'] = jnp.pad(wd, ((0, 0), (0, cpad - planes))).astype(jnp.bfloat16)
        p['gd'] = jnp.ones((1, cpad), jnp.float32)
        p['bd'] = jnp.zeros((1, cpad), jnp.float32)
    return p


# ----------------------------------------------------------------------------
# Pure-JAX reference (same bf16 matmul operands) for numerical sanity check
# ----------------------------------------------------------------------------
def _reference_basic_block(x_nchw, params, stride=1, planes=None, eps=1e-5):
    x = jnp.transpose(x_nchw, (0, 2, 3, 1)).astype(jnp.float32)
    cin = x.shape[-1]
    cpad = params['w1'].shape[-1]
    if planes is None:
        planes = cpad

    def conv3x3(inp, w2d, ci, co, s):
        w = w2d.reshape(3, 3, -1, w2d.shape[-1])[:, :, :ci, :co]   # HWIO bf16
        return jax.lax.conv_general_dilated(
            inp.astype(jnp.bfloat16), w, window_strides=(s, s),
            padding=((1, 1), (1, 1)),
            dimension_numbers=('NHWC', 'HWIO', 'NHWC'),
            preferred_element_type=jnp.float32)

    def bn(y, g, b):
        c = y.shape[-1]
        g = g[0, :c].reshape(1, 1, 1, -1)
        b = b[0, :c].reshape(1, 1, 1, -1)
        mean = jnp.mean(y, axis=(0, 1, 2), keepdims=True)
        var = jnp.mean((y - mean) ** 2, axis=(0, 1, 2), keepdims=True)
        return (y - mean) * jax.lax.rsqrt(var + eps) * g + b

    out = jax.nn.relu(bn(conv3x3(x, params['w1'], cin, planes, stride),
                         params['g1'], params['b1']))
    out = bn(conv3x3(out, params['w2'], planes, planes, 1),
             params['g2'], params['b2'])
    if 'wd' in params:
        xs = x[:, ::stride, ::stride, :].astype(jnp.bfloat16)
        idn = bn(jnp.matmul(xs, params['wd'][:, :planes],
                            preferred_element_type=jnp.float32),
                 params['gd'], params['bd'])
    else:
        idn = x
    return jnp.transpose(jax.nn.relu(out + idn), (0, 3, 1, 2))


if __name__ == "__main__":
    key = jax.random.PRNGKey(0)
    kp1, kp2, kx = jax.random.split(key, 3)

    # layer1-style block: 64 -> 64, stride 1, no downsample
    params_a = init_basic_block_params(kp1, 64, 64, downsample=False)
    # layer2-style block: 64 -> 128, stride 2, conv1x1+BN downsample
    params_b = init_basic_block_params(kp2, 64, 128, downsample=True)

    x = jax.random.normal(kx, (2, 64, 16, 16), jnp.float32)     # NCHW like PyTorch

    fwd = jax.jit(basic_block_forward, static_argnames=("stride", "planes"))
    y_a = fwd(x, params_a, stride=1, planes=64)
    y_b = fwd(y_a, params_b, stride=2, planes=128)
    y_a, y_b = jax.block_until_ready((y_a, y_b))

    assert y_a.shape == (2, 64, 16, 16), y_a.shape
    assert y_b.shape == (2, 128, 8, 8), y_b.shape
    assert bool(jnp.isfinite(y_a).all()) and bool(jnp.isfinite(y_b).all())

    # numerical sanity vs plain-JAX reference (both use bf16 matmul operands)
    ref_a = _reference_basic_block(x, params_a, stride=1, planes=64)
    ref_b = _reference_basic_block(y_a, params_b, stride=2, planes=128)
    assert bool(jnp.allclose(y_a, ref_a, atol=5e-2, rtol=5e-2)), \
        float(jnp.max(jnp.abs(y_a - ref_a)))
    assert bool(jnp.allclose(y_b, ref_b, atol=5e-2, rtol=5e-2)), \
        float(jnp.max(jnp.abs(y_b - ref_b)))

    print("KERNEL_OK")
</pallas_src>

<mosaic_0001>
module attributes {stable_mosaic.version = 11 : i64} {
  func.func @_basic_block_kernel(%arg0: i32, %arg1: memref<512x576xbf16, #tpu.memory_space<vmem>>, %arg2: memref<576x128xbf16, #tpu.memory_space<vmem>>, %arg3: memref<1x128xf32, #tpu.memory_space<vmem>>, %arg4: memref<1x128xf32, #tpu.memory_space<vmem>>, %arg5: memref<1152x128xbf16, #tpu.memory_space<vmem>>, %arg6: memref<1x128xf32, #tpu.memory_space<vmem>>, %arg7: memref<1x128xf32, #tpu.memory_space<vmem>>, %arg8: memref<512x128xf32, #tpu.memory_space<vmem>>, %arg9: memref<512x128xf32, #tpu.memory_space<vmem>>) attributes {dimension_semantics = [#tpu.dimension_semantics<arbitrary>], iteration_bounds = array<i64: 1>, scalar_prefetch = 0 : i64, scratch_operands = 0 : i64, tpu.core_type = #tpu.core_type<tc>, window_params = [{pipeline_mode = #tpu.pipeline_mode<synchronous>, transform_indices = @transform_0, window_bounds = array<i64: 512, 576>}, {pipeline_mode = #tpu.pipeline_mode<synchronous>, transform_indices = @transform_1, window_bounds = array<i64: 576, 128>}, {pipeline_mode = #tpu.pipeline_mode<synchronous>, transform_indices = @transform_2, window_bounds = array<i64: 1, 128>}, {pipeline_mode = #tpu.pipeline_mode<synchronous>, transform_indices = @transform_3, window_bounds = array<i64: 1, 128>}, {pipeline_mode = #tpu.pipeline_mode<synchronous>, transform_indices = @transform_4, window_bounds = array<i64: 1152, 128>}, {pipeline_mode = #tpu.pipeline_mode<synchronous>, transform_indices = @transform_5, window_bounds = array<i64: 1, 128>}, {pipeline_mode = #tpu.pipeline_mode<synchronous>, transform_indices = @transform_6, window_bounds = array<i64: 1, 128>}, {pipeline_mode = #tpu.pipeline_mode<synchronous>, transform_indices = @transform_7, window_bounds = array<i64: 512, 128>}, {pipeline_mode = #tpu.pipeline_mode<synchronous>, transform_indices = @transform_8, window_bounds = array<i64: 512, 128>}]} {
    %c0 = arith.constant 0 : index
    %c0_0 = arith.constant 0 : index
    %0 = vector.load %arg1[%c0, %c0_0] : memref<512x576xbf16, #tpu.memory_space<vmem>>, vector<512x576xbf16>
    %c0_1 = arith.constant 0 : index
    %c0_2 = arith.constant 0 : index
    %1 = vector.load %arg2[%c0_1, %c0_2] : memref<576x128xbf16, #tpu.memory_space<vmem>>, vector<576x128xbf16>
    %cst = arith.constant dense<0.000000e+00> : vector<512x128xf32>
    %2 = tpu.matmul %0, %1, %cst {dimension_numbers = #tpu.dot_dimension_numbers<[1], [0], [0], [1], [0, 0, 1, 1], [], []>} : vector<512x576xbf16>, vector<576x128xbf16>, vector<512x128xf32> -> vector<512x128xf32>
    %c0_3 = arith.constant 0 : index
    %c0_4 = arith.constant 0 : index
    %3 = vector.load %arg3[%c0_3, %c0_4] : memref<1x128xf32, #tpu.memory_space<vmem>>, vector<1x128xf32>
    %c0_5 = arith.constant 0 : index
    %c0_6 = arith.constant 0 : index
    %4 = vector.load %arg4[%c0_5, %c0_6] : memref<1x128xf32, #tpu.memory_space<vmem>>, vector<1x128xf32>
    %cst_7 = arith.constant dense<0.000000e+00> : vector<128xf32>
    %5 = vector.multi_reduction <add>, %2, %cst_7 [0] : vector<512x128xf32> to vector<128xf32>
    %6 = vector.shape_cast %5 : vector<128xf32> to vector<1x128xf32>
    %cst_8 = arith.constant 5.120000e+02 : f32
    %7 = vector.broadcast %cst_8 : f32 to vector<1x128xf32>
    %8 = arith.divf %6, %7 : vector<1x128xf32>
    %9 = vector.broadcast %8 : vector<1x128xf32> to vector<512x128xf32>
    %10 = arith.subf %2, %9 : vector<512x128xf32>
    %11 = arith.mulf %10, %10 : vector<512x128xf32>
    %cst_9 = arith.constant dense<0.000000e+00> : vector<128xf32>
    %12 = vector.multi_reduction <add>, %11, %cst_9 [0] : vector<512x128xf32> to vector<128xf32>
    %13 = vector.shape_cast %12 : vector<128xf32> to vector<1x128xf32>
    %cst_10 = arith.constant 5.120000e+02 : f32
    %14 = vector.broadcast %cst_10 : f32 to vector<1x128xf32>
    %15 = arith.divf %13, %14 : vector<1x128xf32>
    %cst_11 = arith.constant 9.99999974E-6 : f32
    %16 = vector.broadcast %cst_11 : f32 to vector<1x128xf32>
    %17 = arith.addf %15, %16 : vector<1x128xf32>
    %18 = math.rsqrt %17 : vector<1x128xf32>
    %19 = vector.broadcast %18 : vector<1x128xf32> to vector<512x128xf32>
    %20 = arith.mulf %10, %19 : vector<512x128xf32>
    %21 = vector.broadcast %3 : vector<1x128xf32> to vector<512x128xf32>
    %22 = arith.mulf %20, %21 : vector<512x128xf32>
    %23 = vector.broadcast %4 : vector<1x128xf32> to vector<512x128xf32>
    %24 = arith.addf %22, %23 : vector<512x128xf32>
    %cst_12 = arith.constant 0.000000e+00 : f32
    %25 = vector.broadcast %cst_12 : f32 to vector<512x128xf32>
    %26 = arith.maximumf %24, %25 : vector<512x128xf32>
    %27 = arith.truncf %26 : vector<512x128xf32> to vector<512x128xbf16>
    %28 = vector.shape_cast %27 : vector<512x128xbf16> to vector<2x16x16x128xbf16>
    %cst_13 = arith.constant 0.000000e+00 : bf16
    %29 = vector.broadcast %cst_13 : bf16 to vector<2x1x16x128xbf16>
    %30 = tpu.concatenate %29, %28, %29 in 1 : vector<2x1x16x128xbf16>, vector<2x16x16x128xbf16>, vector<2x1x16x128xbf16> -> vector<2x18x16x128xbf16>
    %cst_14 = arith.constant 0.000000e+00 : bf16
    %31 = vector.broadcast %cst_14 : bf16 to vector<2x18x1x128xbf16>
    %32 = tpu.concatenate %31, %30, %31 in 2 : vector<2x18x1x128xbf16>, vector<2x18x16x128xbf16>, vector<2x18x1x128xbf16> -> vector<2x18x18x128xbf16>
    %33 = vector.extract_strided_slice %32 {offsets = [0, 0, 0, 0], sizes = [2, 16, 16, 128], strides = [1, 1, 1, 1]} : vector<2x18x18x128xbf16> to vector<2x16x16x128xbf16>
    %34 = vector.extract_strided_slice %32 {offsets = [0, 0, 1, 0], sizes = [2, 16, 16, 128], strides = [1, 1, 1, 1]} : vector<2x18x18x128xbf16> to vector<2x16x16x128xbf16>
    %35 = vector.extract_strided_slice %32 {offsets = [0, 0, 2, 0], sizes = [2, 16, 16, 128], strides = [1, 1, 1, 1]} : vector<2x18x18x128xbf16> to vector<2x16x16x128xbf16>
    %36 = vector.extract_strided_slice %32 {offsets = [0, 1, 0, 0], sizes = [2, 16, 16, 128], strides = [1, 1, 1, 1]} : vector<2x18x18x128xbf16> to vector<2x16x16x128xbf16>
    %37 = vector.extract_strided_slice %32 {offsets = [0, 1, 1, 0], sizes = [2, 16, 16, 128], strides = [1, 1, 1, 1]} : vector<2x18x18x128xbf16> to vector<2x16x16x128xbf16>
    %38 = vector.extract_strided_slice %32 {offsets = [0, 1, 2, 0], sizes = [2, 16, 16, 128], strides = [1, 1, 1, 1]} : vector<2x18x18x128xbf16> to vector<2x16x16x128xbf16>
    %39 = vector.extract_strided_slice %32 {offsets = [0, 2, 0, 0], sizes = [2, 16, 16, 128], strides = [1, 1, 1, 1]} : vector<2x18x18x128xbf16> to vector<2x16x16x128xbf16>
    %40 = vector.extract_strided_slice %32 {offsets = [0, 2, 1, 0], sizes = [2, 16, 16, 128], strides = [1, 1, 1, 1]} : vector<2x18x18x128xbf16> to vector<2x16x16x128xbf16>
    %41 = vector.extract_strided_slice %32 {offsets = [0, 2, 2, 0], sizes = [2, 16, 16, 128], strides = [1, 1, 1, 1]} : vector<2x18x18x128xbf16> to vector<2x16x16x128xbf16>
    %42 = tpu.concatenate %33, %34, %35, %36, %37, %38, %39, %40, %41 in 3 : vector<2x16x16x128xbf16>, vector<2x16x16x128xbf16>, vector<2x16x16x128xbf16>, vector<2x16x16x128xbf16>, vector<2x16x16x128xbf16>, vector<2x16x16x128xbf16>, vector<2x16x16x128xbf16>, vector<2x16x16x128xbf16>, vector<2x16x16x128xbf16> -> vector<2x16x16x1152xbf16>
    %43 = vector.shape_cast %42 : vector<2x16x16x1152xbf16> to vector<512x1152xbf16>
    %c0_15 = arith.constant 0 : index
    %c0_16 = arith.constant 0 : index
    %44 = vector.load %arg5[%c0_15, %c0_16] : memref<1152x128xbf16, #tpu.memory_space<vmem>>, vector<1152x128xbf16>
    %cst_17 = arith.constant dense<0.000000e+00> : vector<512x128xf32>
    %45 = tpu.matmul %43, %44, %cst_17 {dimension_numbers = #tpu.dot_dimension_numbers<[1], [0], [0], [1], [0, 0, 1, 1], [], []>} : vector<512x1152xbf16>, vector<1152x128xbf16>, vector<512x128xf32> -> vector<512x128xf32>
    %c0_18 = arith.constant 0 : index
    %c0_19 = arith.constant 0 : index
    %46 = vector.load %arg6[%c0_18, %c0_19] : memref<1x128xf32, #tpu.memory_space<vmem>>, vector<1x128xf32>
    %c0_20 = arith.constant 0 : index
    %c0_21 = arith.constant 0 : index
    %47 = vector.load %arg7[%c0_20, %c0_21] : memref<1x128xf32, #tpu.memory_space<vmem>>, vector<1x128xf32>
    %cst_22 = arith.constant dense<0.000000e+00> : vector<128xf32>
    %48 = vector.multi_reduction <add>, %45, %cst_22 [0] : vector<512x128xf32> to vector<128xf32>
    %49 = vector.shape_cast %48 : vector<128xf32> to vector<1x128xf32>
    %cst_23 = arith.constant 5.120000e+02 : f32
    %50 = vector.broadcast %cst_23 : f32 to vector<1x128xf32>
    %51 = arith.divf %49, %50 : vector<1x128xf32>
    %52 = vector.broadcast %51 : vector<1x128xf32> to vector<512x128xf32>
    %53 = arith.subf %45, %52 : vector<512x128xf32>
    %54 = arith.mulf %53, %53 : vector<512x128xf32>
    %cst_24 = arith.constant dense<0.000000e+00> : vector<128xf32>
    %55 = vector.multi_reduction <add>, %54, %cst_24 [0] : vector<512x128xf32> to vector<128xf32>
    %56 = vector.shape_cast %55 : vector<128xf32> to vector<1x128xf32>
    %cst_25 = arith.constant 5.120000e+02 : f32
    %57 = vector.broadcast %cst_25 : f32 to vector<1x128xf32>
    %58 = arith.divf %56, %57 : vector<1x128xf32>
    %cst_26 = arith.constant 9.99999974E-6 : f32
    %59 = vector.broadcast %cst_26 : f32 to vector<1x128xf32>
    %60 = arith.addf %58, %59 : vector<1x128xf32>
    %61 = math.rsqrt %60 : vector<1x128xf32>
    %62 = vector.broadcast %61 : vector<1x128xf32> to vector<512x128xf32>
    %63 = arith.mulf %53, %62 : vector<512x128xf32>
    %64 = vector.broadcast %46 : vector<1x128xf32> to vector<512x128xf32>
    %65 = arith.mulf %63, %64 : vector<512x128xf32>
    %66 = vector.broadcast %47 : vector<1x128xf32> to vector<512x128xf32>
    %67 = arith.addf %65, %66 : vector<512x128xf32>
    %c0_27 = arith.constant 0 : index
    %c0_28 = arith.constant 0 : index
    %68 = vector.load %arg8[%c0_27, %c0_28] : memref<512x128xf32, #tpu.memory_space<vmem>>, vector<512x128xf32>
    %69 = arith.addf %67, %68 : vector<512x128xf32>
    %cst_29 = arith.constant 0.000000e+00 : f32
    %70 = vector.broadcast %cst_29 : f32 to vector<512x128xf32>
    %71 = arith.maximumf %69, %70 : vector<512x128xf32>
    %c0_30 = arith.constant 0 : index
    %c0_31 = arith.constant 0 : index
    %72 = vector.load %arg9[%c0_30, %c0_31] : memref<512x128xf32, #tpu.memory_space<vmem>>, vector<512x128xf32>
    tpu.vector_store %arg9[%c0_30, %c0_31], %71 {strides = array<i32>} : memref<512x128xf32, #tpu.memory_space<vmem>>, vector<512x128xf32>,
    return
  }
  func.func @transform_0(%arg0: i32) -> (i32, i32) {
    %c0_i32 = arith.constant 0 : i32
    %c0_i32_0 = arith.constant 0 : i32
    %c0_i32_1 = arith.constant 0 : i32
    return %c0_i32, %c0_i32_0 : i32, i32
  }
  func.func @transform_1(%arg0: i32) -> (i32, i32) {
    %c0_i32 = arith.constant 0 : i32
    %c0_i32_0 = arith.constant 0 : i32
    %c0_i32_1 = arith.constant 0 : i32
    return %c0_i32, %c0_i32_0 : i32, i32
  }
  func.func @transform_2(%arg0: i32) -> (i32, i32) {
    %c0_i32 = arith.constant 0 : i32
    %c0_i32_0 = arith.constant 0 : i32
    %c0_i32_1 = arith.constant 0 : i32
    return %c0_i32, %c0_i32_0 : i32, i32
  }
  func.func @transform_3(%arg0: i32) -> (i32, i32) {
    %c0_i32 = arith.constant 0 : i32
    %c0_i32_0 = arith.constant 0 : i32
    %c0_i32_1 = arith.constant 0 : i32
    return %c0_i32, %c0_i32_0 : i32, i32
  }
  func.func @transform_4(%arg0: i32) -> (i32, i32) {
    %c0_i32 = arith.constant 0 : i32
    %c0_i32_0 = arith.constant 0 : i32
    %c0_i32_1 = arith.constant 0 : i32
    return %c0_i32, %c0_i32_0 : i32, i32
  }
  func.func @transform_5(%arg0: i32) -> (i32, i32) {
    %c0_i32 = arith.constant 0 : i32
    %c0_i32_0 = arith.constant 0 : i32
    %c0_i32_1 = arith.constant 0 : i32
    return %c0_i32, %c0_i32_0 : i32, i32
  }
  func.func @transform_6(%arg0: i32) -> (i32, i32) {
    %c0_i32 = arith.constant 0 : i32
    %c0_i32_0 = arith.constant 0 : i32
    %c0_i32_1 = arith.constant 0 : i32
    return %c0_i32, %c0_i32_0 : i32, i32
  }
  func.func @transform_7(%arg0: i32) -> (i32, i32) {
    %c0_i32 = arith.constant 0 : i32
    %c0_i32_0 = arith.constant 0 : i32
    %c0_i32_1 = arith.constant 0 : i32
    return %c0_i32, %c0_i32_0 : i32, i32
  }
  func.func @transform_8(%arg0: i32) -> (i32, i32) {
    %c0_i32 = arith.constant 0 : i32
    %c0_i32_0 = arith.constant 0 : i32
    %c0_i32_1 = arith.constant 0 : i32
    return %c0_i32, %c0_i32_0 : i32, i32
  }
}

</mosaic_0001>

<bundles_post_ra>
// kernel: basic_block_forward.1
= control target key start
LH: loop header
LB: loop body
LE: loop exit
PB: predicated region body
PF: predicated region fallthrough
CT: control target
= control target key end

     0   :  { %s13725_s0 = inlined_call_operand.vmem [shape: bf16[512,576], index: 0, kind: input, shape index: {}]   ;;  %s13726_s1 = inlined_call_operand.vmem [shape: bf16[576,128], index: 1, kind: input, shape index: {}]   ;;  %s13727_s2 = inlined_call_operand.vmem [shape: f32[1,128], index: 2, kind: input, shape index: {}]   ;;  %s13728_s3 = inlined_call_operand.vmem [shape: f32[1,128], index: 3, kind: input, shape index: {}]   ;;  %s13729_s4 = inlined_call_operand.vmem [shape: bf16[1152,128], index: 4, kind: input, shape index: {}]   ;;  %s13730_s5 = inlined_call_operand.vmem [shape: f32[1,128], index: 5, kind: input, shape index: {}]   ;;  %s13731_s6 = inlined_call_operand.vmem [shape: f32[1,128], index: 6, kind: input, shape index: {}]   ;;  %s13732_s7 = inlined_call_operand.vmem [shape: f32[512,128], index: 7, kind: input, shape index: {}]   ;;  %s13733_s8 = inlined_call_operand.hbm [shape: f32[512,128], index: 8, kind: output, shape index: {}]  }
   0x1   :  { %v8143_v0 = vld [vmem:[%s13726_s1 + $0x38] sm:$0xff]  ;;  %v8142_v2 = vld [vmem:[%s13726_s1 + $0x30] sm:$0xff]  ;;  %v8141_v4 = vld [vmem:[%s13726_s1 + $0x28] sm:$0xff] }
   0x2   :  { %v8151_v1 = vld [vmem:[%s13726_s1 + $0x78] sm:$0xff]  ;;  %8244 = vmatpush.bf16.msra.mxu2 %v8143_v0  ;;  %v8150_v3 = vld [vmem:[%s13726_s1 + $0x70] sm:$0xff]  ;;  %1408 = vmatpush.bf16.msra.mxu0 %v8143_v0  ;;  %v8149_v5 = vld [vmem:[%s13726_s1 + $0x68] sm:$0xff] }
   0x3   :  { %8252 = vmatpush.bf16.msra.mxu3 %v8151_v1  ;;  %1577 = vmatpush.bf16.msra.mxu1 %v8151_v1  ;;  %v8140_v6 = vld [vmem:[%s13726_s1 + $0x20] sm:$0xff] }
   0x4   :  { %v8148_v7 = vld [vmem:[%s13726_s1 + $0x60] sm:$0xff] }
   0x6   :  { %8245 = vmatpush.bf16.msra.mxu2 %v8142_v2  ;;  %1409 = vmatpush.bf16.msra.mxu0 %v8142_v2 }
   0x7   :  { %8253 = vmatpush.bf16.msra.mxu3 %v8150_v3  ;;  %1578 = vmatpush.bf16.msra.mxu1 %v8150_v3 }
   0xa   :  { %8246 = vmatpush.bf16.msra.mxu2 %v8141_v4  ;;  %1410 = vmatpush.bf16.msra.mxu0 %v8141_v4 }
   0xb   :  { %8254 = vmatpush.bf16.msra.mxu3 %v8149_v5  ;;  %1579 = vmatpush.bf16.msra.mxu1 %v8149_v5 }
   0xc   :  { %13 = vsyncpa [#allocation3], 0  ;;  %v8139_v8 = vld [vmem:[%s13726_s1 + $0x18] sm:$0xff]  ;;  %v8138_v10 = vld [vmem:[%s13726_s1 + $0x10] sm:$0xff]  ;;  %vm1311_vm0 = vcmask 523264   ;;  %vm3324_vm5 = vcmask 1040384  }
   0xd   :  { %v8147_v9 = vld [vmem:[%s13726_s1 + $0x58] sm:$0xff]  ;;  %v8146_v11 = vld [vmem:[%s13726_s1 + $0x50] sm:$0xff]  ;;  %v8137_v12 = vld [vmem:[%s13726_s1 + $0x8] sm:$0xff]  ;;  %vm3325_vm6 = vsmask.f32 256  ;;  %vm3859_vm8 = vcmask 1046528  }
   0xe   :  { %8247 = vmatpush.bf16.msra.mxu2 %v8140_v6  ;;  %1411 = vmatpush.bf16.msra.mxu0 %v8140_v6  ;;  %v8145_v13 = vld [vmem:[%s13726_s1 + $0x48] sm:$0xff]  ;;  %v8136_v14 = vld [vmem:[%s13726_s1] sm:$0xff]  ;;  %v8058_v17 = vld [vmem:[%s13725_s0 + $0x290] sm:$0xf0]  ;;  %vm3393_vm9 = vsmask.f32 7424 }
   0xf   :  { %8255 = vmatpush.bf16.msra.mxu3 %v8148_v7  ;;  %1580 = vmatpush.bf16.msra.mxu1 %v8148_v7  ;;  %v8144_v15 = vld [vmem:[%s13726_s1 + $0x40] sm:$0xff]  ;;  %v7196_v19 = vld [vmem:[%s13725_s0 + $0x294] sm:$0xf0]  ;;  %v7978_v21 = vld [vmem:[%s13725_s0 + $0x10] sm:$0xf0]  ;;  %s8305_s23 = smov 8  }
  0x10   :  { %v7194_v16 = vld [vmem:[%s13725_s0 + $0x280] sm:$0xf]  ;;  %v8056_v18 = vld [vmem:[%s13725_s0 + $0x284] sm:$0xf]  ;;  %v6876_v23 = vld [vmem:[%s13725_s0 + $0x14] sm:$0xf0] }
  0x11   :  { %v6874_v20 = vld [vmem:[%s13725_s0] sm:$0xf]  ;;  %v7976_v22 = vld [vmem:[%s13725_s0 + $0x4] sm:$0xf]  ;;  %v8159_v24 = vld [vmem:[%s13726_s1 + $0xb8] sm:$0xff]  ;;  %v7195_v26 = vor.u32 %v8058_v17, %v7194_v16  ;;  %v7199_v27 = vor.u32 %v8056_v18, %v7196_v19 }
  0x12   :  { %8248 = vmatpush.bf16.msra.mxu2 %v8139_v8  ;;  %1412 = vmatpush.bf16.msra.mxu0 %v8139_v8  ;;  %v8167_v25 = vld [vmem:[%s13726_s1 + $0xf8] sm:$0xff]  ;;  %v6875_v28 = vor.u32 %v7978_v21, %v6874_v20  ;;  %v6879_v29 = vor.u32 %v7976_v22, %v6876_v23  ;;  %v8158_v31 = vld [vmem:[%s13726_s1 + $0xb0] sm:$0xff]  ;;  %v7214_v33 = vld [vmem:[%s13725_s0 + $0x2a8] sm:$0xf] }
  0x13   :  { %8256 = vmatpush.bf16.msra.mxu3 %v8147_v9  ;;  %1581 = vmatpush.bf16.msra.mxu1 %v8147_v9  ;;  %v8171_v30 = vld [vmem:[%s13726_s1 + $0x118] sm:$0xff]  ;;  %v8166_v32 = vld [vmem:[%s13726_s1 + $0xf0] sm:$0xff]  ;;  %v8061_v35 = vld [vmem:[%s13725_s0 + $0x2ac] sm:$0xf] }
  0x14   :  { %v8063_v34 = vld [vmem:[%s13725_s0 + $0x2b8] sm:$0xf0]  ;;  %v7216_v36 = vld [vmem:[%s13725_s0 + $0x2bc] sm:$0xf0]  ;;  %v6894_v37 = vld [vmem:[%s13725_s0 + $0x28] sm:$0xf] }
  0x15   :  { %v7983_v38 = vld [vmem:[%s13725_s0 + $0x38] sm:$0xf0]  ;;  %v7981_v39 = vld [vmem:[%s13725_s0 + $0x2c] sm:$0xf]  ;;  %v6896_v40 = vld [vmem:[%s13725_s0 + $0x3c] sm:$0xf0]  ;;  %v7215_v41 = vor.u32 %v8063_v34, %v7214_v33  ;;  %v7219_v42 = vor.u32 %v8061_v35, %v7216_v36 }
  0x16   :  { %8249 = vmatpush.bf16.msra.mxu2 %v8138_v10  ;;  %1413 = vmatpush.bf16.msra.mxu0 %v8138_v10  ;;  %v6895_v43 = vor.u32 %v7983_v38, %v6894_v37  ;;  %v6899_v44 = vor.u32 %v7981_v39, %v6896_v40  ;;  %v7234_v45 = vld [vmem:[%s13725_s0 + $0x2d0] sm:$0xf]  ;;  %v8068_v46 = vld [vmem:[%s13725_s0 + $0x2e0] sm:$0xf0]  ;;  %v8066_v47 = vld [vmem:[%s13725_s0 + $0x2d4] sm:$0xf] }
  0x17   :  { %8257 = vmatpush.bf16.msra.mxu3 %v8146_v11  ;;  %1582 = vmatpush.bf16.msra.mxu1 %v8146_v11  ;;  %v7236_v48 = vld [vmem:[%s13725_s0 + $0x2e4] sm:$0xf0]  ;;  %v6914_v49 = vld [vmem:[%s13725_s0 + $0x50] sm:$0xf]  ;;  %v7988_v50 = vld [vmem:[%s13725_s0 + $0x60] sm:$0xf0]  ;;  %v7235_v53 = vor.u32 %v8068_v46, %v7234_v45 }
  0x18   :  { %v7986_v51 = vld [vmem:[%s13725_s0 + $0x54] sm:$0xf]  ;;  %v6916_v52 = vld [vmem:[%s13725_s0 + $0x64] sm:$0xf0]  ;;  %v7239_v54 = vor.u32 %v8066_v47, %v7236_v48  ;;  %v6915_v55 = vor.u32 %v7988_v50, %v6914_v49  ;;  %v7254_v60 = vld [vmem:[%s13725_s0 + $0x2f8] sm:$0xf] }
  0x19   :  { %v6919_v56 = vor.u32 %v7986_v51, %v6916_v52  ;;  %v8157_v57 = vld [vmem:[%s13726_s1 + $0xa8] sm:$0xff]  ;;  %v8170_v59 = vld [vmem:[%s13726_s1 + $0x110] sm:$0xff]  ;;  %v8071_v62 = vld [vmem:[%s13725_s0 + $0x2fc] sm:$0xf] }
  0x1a   :  { %8250 = vmatpush.bf16.msra.mxu2 %v8137_v12  ;;  %1414 = vmatpush.bf16.msra.mxu0 %v8137_v12  ;;  %v8165_v58 = vld [vmem:[%s13726_s1 + $0xe8] sm:$0xff]  ;;  %v7256_v63 = vld [vmem:[%s13725_s0 + $0x30c] sm:$0xf0]  ;;  %v6934_v0 = vld [vmem:[%s13725_s0 + $0x78] sm:$0xf] }
  0x1b   :  { %8258 = vmatpush.bf16.msra.mxu3 %v8145_v13  ;;  %1583 = vmatpush.bf16.msra.mxu1 %v8145_v13  ;;  %v8073_v61 = vld [vmem:[%s13725_s0 + $0x308] sm:$0xf0]  ;;  %v7991_v2 = vld [vmem:[%s13725_s0 + $0x7c] sm:$0xf]  ;;  %v6936_v3 = vld [vmem:[%s13725_s0 + $0x8c] sm:$0xf0]  ;;  %v7259_v5 = vor.u32 %v8071_v62, %v7256_v63 }
  0x1c   :  { %v7993_v1 = vld [vmem:[%s13725_s0 + $0x88] sm:$0xf0]  ;;  %v7255_v4 = vor.u32 %v8073_v61, %v7254_v60  ;;  %v6939_v7 = vor.u32 %v7991_v2, %v6936_v3  ;;  %v7274_v8 = vld [vmem:[%s13725_s0 + $0x320] sm:$0xf]  ;;  %v8078_v9 = vld [vmem:[%s13725_s0 + $0x330] sm:$0xf0] }
  0x1d   :  { %v6935_v6 = vor.u32 %v7993_v1, %v6934_v0  ;;  %v8076_v10 = vld [vmem:[%s13725_s0 + $0x324] sm:$0xf]  ;;  %v7276_v11 = vld [vmem:[%s13725_s0 + $0x334] sm:$0xf0]  ;;  %v6954_v12 = vld [vmem:[%s13725_s0 + $0xa0] sm:$0xf]  ;;  %v7275_v16 = vor.u32 %v8078_v9, %v7274_v8 }
  0x1e   :  { %8251 = vmatpush.bf16.msra.mxu2 %v8136_v14  ;;  %1415 = vmatpush.bf16.msra.mxu0 %v8136_v14  ;;  %v7998_v13 = vld [vmem:[%s13725_s0 + $0xb0] sm:$0xf0]  ;;  %v7996_v14 = vld [vmem:[%s13725_s0 + $0xa4] sm:$0xf]  ;;  %v7279_v17 = vor.u32 %v8076_v10, %v7276_v11  ;;  %v7294_v22 = vld [vmem:[%s13725_s0 + $0x348] sm:$0xf] }
  0x1f   :  { %8259 = vmatpush.bf16.msra.mxu3 %v8144_v15  ;;  %1584 = vmatpush.bf16.msra.mxu1 %v8144_v15  ;;  %v6956_v15 = vld [vmem:[%s13725_s0 + $0xb4] sm:$0xf0]  ;;  %v6955_v18 = vor.u32 %v7998_v13, %v6954_v12  ;;  %v8156_v20 = vld [vmem:[%s13726_s1 + $0xa0] sm:$0xff]  ;;  %v8083_v23 = vld [vmem:[%s13725_s0 + $0x358] sm:$0xf0] }
  0x20   :  { %v6959_v19 = vor.u32 %v7996_v14, %v6956_v15  ;;  %v8164_v21 = vld [vmem:[%s13726_s1 + $0xe0] sm:$0xff]  ;;  %v7314_v34 = vld [vmem:[%s13725_s0 + $0x370] sm:$0xf]  ;;  %v8086_v36 = vld [vmem:[%s13725_s0 + $0x374] sm:$0xf] }
  0x21   :  { %1496 = vmatmul.bf16.vlgmr.msra.gmra.mxu2 %v7195_v26  ;;  %1416 = vmatmul.bf16.vlgmr.msra.gmra.mxu0 %v6875_v28  ;;  %v6974_v26 = vld [vmem:[%s13725_s0 + $0xc8] sm:$0xf]  ;;  %v8001_v28 = vld [vmem:[%s13725_s0 + $0xcc] sm:$0xf]  ;;  %v8088_v35 = vld [vmem:[%s13725_s0 + $0x380] sm:$0xf0] }
  0x22   :  { %1746 = vmatpush.bf16.msrb.mxu2 %v8159_v24  ;;  %1665 = vmatmul.bf16.vlgmr.msra.gmra.mxu3 %v7199_v27  ;;  %v8081_v24 = vld [vmem:[%s13725_s0 + $0x34c] sm:$0xf]  ;;  %v8003_v27 = vld [vmem:[%s13725_s0 + $0xd8] sm:$0xf0]  ;;  %v7316_v37 = vld [vmem:[%s13725_s0 + $0x384] sm:$0xf0] }
  0x23   :  { %1915 = vmatpush.bf16.msrb.mxu3 %v8167_v25  ;;  %1585 = vmatmul.bf16.vlgmr.msra.gmra.mxu1 %v6879_v29  ;;  %v7296_v25 = vld [vmem:[%s13725_s0 + $0x35c] sm:$0xf0]  ;;  %v6994_v38 = vld [vmem:[%s13725_s0 + $0xf0] sm:$0xf]  ;;  %v8008_v39 = vld [vmem:[%s13725_s0 + $0x100] sm:$0xf0] }
  0x24   :  { %2088 = vmatpush.bf16.msrb.mxu0 %v8171_v30  ;;  %v6976_v29 = vld [vmem:[%s13725_s0 + $0xdc] sm:$0xf0]  ;;  %v7295_v30 = vor.u32 %v8083_v23, %v7294_v22  ;;  %v8006_v40 = vld [vmem:[%s13725_s0 + $0xf4] sm:$0xf]  ;;  %v8155_v46 = vld [vmem:[%s13726_s1 + $0x98] sm:$0xff] }
  0x25   :  { %v6979_v33 = vor.u32 %v8001_v28, %v6976_v29  ;;  %v8163_v47 = vld [vmem:[%s13726_s1 + $0xd8] sm:$0xff]  ;;  %v8169_v48 = vld [vmem:[%s13726_s1 + $0x108] sm:$0xff]  ;;  %v7336_v52 = vld [vmem:[%s13725_s0 + $0x3ac] sm:$0xf0] }
  0x26   :  { %1747 = vmatpush.bf16.msrb.mxu2 %v8158_v31  ;;  %v7299_v31 = vor.u32 %v8081_v24, %v7296_v25  ;;  %v7334_v49 = vld [vmem:[%s13725_s0 + $0x398] sm:$0xf]  ;;  %v8093_v50 = vld [vmem:[%s13725_s0 + $0x3a8] sm:$0xf0]  ;;  %v8091_v51 = vld [vmem:[%s13725_s0 + $0x39c] sm:$0xf] }
  0x27   :  { %1916 = vmatpush.bf16.msrb.mxu3 %v8166_v32  ;;  %v6975_v32 = vor.u32 %v8003_v27, %v6974_v26  ;;  %v7354_v61 = vld [vmem:[%s13725_s0 + $0x3c0] sm:$0xf]  ;;  %v8098_v62 = vld [vmem:[%s13725_s0 + $0x3d0] sm:$0xf0]  ;;  %v8096_v63 = vld [vmem:[%s13725_s0 + $0x3c4] sm:$0xf] }
  0x28   :  { %2089 = vmatpush.bf16.msrb.mxu0 %v8170_v59  ;;  %v7356_v0 = vld [vmem:[%s13725_s0 + $0x3d4] sm:$0xf0]  ;;  %v7034_v1 = vld [vmem:[%s13725_s0 + $0x140] sm:$0xf]  ;;  %v8018_v2 = vld [vmem:[%s13725_s0 + $0x150] sm:$0xf0] }
  0x29   :  { %v8016_v3 = vld [vmem:[%s13725_s0 + $0x144] sm:$0xf]  ;;  %v8154_v12 = vld [vmem:[%s13726_s1 + $0x90] sm:$0xff]  ;;  %v8101_v22 = vld [vmem:[%s13725_s0 + $0x3ec] sm:$0xf] }
  0x2a   :  { %1748 = vmatpush.bf16.msrb.mxu2 %v8157_v57  ;;  %v7335_v57 = vor.u32 %v8093_v50, %v7334_v49  ;;  %v8162_v13 = vld [vmem:[%s13726_s1 + $0xd0] sm:$0xff]  ;;  %v7376_v23 = vld [vmem:[%s13725_s0 + $0x3fc] sm:$0xf0]  ;;  %v7054_v24 = vld [vmem:[%s13725_s0 + $0x168] sm:$0xf] }
  0x2b   :  { %1917 = vmatpush.bf16.msrb.mxu3 %v8165_v58  ;;  %v7339_v58 = vor.u32 %v8091_v51, %v7336_v52  ;;  %v8023_v25 = vld [vmem:[%s13725_s0 + $0x178] sm:$0xf0]  ;;  %v8021_v26 = vld [vmem:[%s13725_s0 + $0x16c] sm:$0xf]  ;;  %v7056_v27 = vld [vmem:[%s13725_s0 + $0x17c] sm:$0xf0] }
  0x2c   :  { %2090 = vmatpush.bf16.msrb.mxu0 %v8169_v48  ;;  %v7074_v48 = vld [vmem:[%s13725_s0 + $0x190] sm:$0xf]  ;;  %v8028_v49 = vld [vmem:[%s13725_s0 + $0x1a0] sm:$0xf0]  ;;  %v8026_v50 = vld [vmem:[%s13725_s0 + $0x194] sm:$0xf] }
  0x2d   :  { %v7076_v51 = vld [vmem:[%s13725_s0 + $0x1a4] sm:$0xf0]  ;;  %vm11076_vm7 = vmand %vm3324_vm5, %vm3325_vm6 }
  0x2e   :  { %1749 = vmatpush.bf16.msrb.mxu2 %v8156_v20  ;;  %v7374_v20 = vld [vmem:[%s13725_s0 + $0x3e8] sm:$0xf] }
  0x2f   :  { %1918 = vmatpush.bf16.msrb.mxu3 %v8164_v21  ;;  %v8103_v21 = vld [vmem:[%s13725_s0 + $0x3f8] sm:$0xf0] }
  0x31   :  { %1501 = vmatmul.bf16.gmra.mxu2 %v7215_v41  ;;  %1421 = vmatmul.bf16.gmra.mxu0 %v6895_v43  ;;  %v6996_v41 = vld [vmem:[%s13725_s0 + $0x104] sm:$0xf0]  ;;  %v7319_v43 = vor.u32 %v8086_v36, %v7316_v37 }
  0x32   :  { %1670 = vmatmul.bf16.gmra.mxu3 %v7219_v42  ;;  %v7315_v42 = vor.u32 %v8088_v35, %v7314_v34  ;;  %v6999_v45 = vor.u32 %v8006_v40, %v6996_v41  ;;  %1750 = vmatpush.bf16.msrb.mxu2 %v8155_v46  ;;  %v7059_v34 = vor.u32 %v8021_v26, %v7056_v27  ;;  %v8106_v46 = vld [vmem:[%s13725_s0 + $0x414] sm:$0xf] }
  0x33   :  { %1590 = vmatmul.bf16.gmra.mxu1 %v6899_v44  ;;  %v6995_v44 = vor.u32 %v8008_v39, %v6994_v38  ;;  %1919 = vmatpush.bf16.msrb.mxu3 %v8163_v47  ;;  %v7396_v47 = vld [vmem:[%s13725_s0 + $0x424] sm:$0xf0] }
  0x36   :  { %1751 = vmatpush.bf16.msrb.mxu2 %v8154_v12  ;;  %v7094_v12 = vld [vmem:[%s13725_s0 + $0x1b8] sm:$0xf] }
  0x37   :  { %1920 = vmatpush.bf16.msrb.mxu3 %v8162_v13  ;;  %v8033_v13 = vld [vmem:[%s13725_s0 + $0x1c8] sm:$0xf0] }
  0x41   :  { %1506 = vmatmul.bf16.gmra.mxu2 %v7235_v53  ;;  %1426 = vmatmul.bf16.gmra.mxu0 %v6915_v55  ;;  %v7014_v53 = vld [vmem:[%s13725_s0 + $0x118] sm:$0xf]  ;;  %v8011_v55 = vld [vmem:[%s13725_s0 + $0x11c] sm:$0xf] }
  0x42   :  { %1675 = vmatmul.bf16.gmra.mxu3 %v7239_v54  ;;  %v8013_v54 = vld [vmem:[%s13725_s0 + $0x128] sm:$0xf0] }
  0x43   :  { %1595 = vmatmul.bf16.gmra.mxu1 %v6919_v56  ;;  %v7016_v56 = vld [vmem:[%s13725_s0 + $0x12c] sm:$0xf0]  ;;  %v7015_v59 = vor.u32 %v8013_v54, %v7014_v53 }
  0x44   :  { %v7019_v60 = vor.u32 %v8011_v55, %v7016_v56  ;;  %v7399_v56 = vor.u32 %v8106_v46, %v7396_v47 }
  0x51   :  { %1511 = vmatmul.bf16.gmra.mxu2 %v7255_v4  ;;  %1431 = vmatmul.bf16.gmra.mxu0 %v6935_v6  ;;  %v7036_v4 = vld [vmem:[%s13725_s0 + $0x154] sm:$0xf0]  ;;  %v7359_v6 = vor.u32 %v8096_v63, %v7356_v0  ;;  %v8161_v63 = vld [vmem:[%s13726_s1 + $0xc8] sm:$0xff] }
  0x52   :  { %1680 = vmatmul.bf16.gmra.mxu3 %v7259_v5  ;;  %v7355_v5 = vor.u32 %v8098_v62, %v7354_v61  ;;  %v7039_v8 = vor.u32 %v8016_v3, %v7036_v4  ;;  %v8153_v62 = vld [vmem:[%s13726_s1 + $0x88] sm:$0xff] }
  0x53   :  { %1600 = vmatmul.bf16.gmra.mxu1 %v6939_v7  ;;  %v7035_v7 = vor.u32 %v8018_v2, %v7034_v1  ;;  %1752 = vmatpush.bf16.msrb.mxu2 %v8153_v62 }
  0x54   :  { %1921 = vmatpush.bf16.msrb.mxu3 %v8161_v63 }
  0x61   :  { %1516 = vmatmul.bf16.gmra.mxu2 %v7275_v16  ;;  %1436 = vmatmul.bf16.gmra.mxu0 %v6955_v18 }
  0x62   :  { %1685 = vmatmul.bf16.gmra.mxu3 %v7279_v17 }
  0x63   :  { %1605 = vmatmul.bf16.gmra.mxu1 %v6959_v19 }
  0x71   :  { %1521 = vmatmul.bf16.gmra.mxu2 %v7295_v30  ;;  %1441 = vmatmul.bf16.gmra.mxu0 %v6975_v32  ;;  %v7379_v32 = vor.u32 %v8101_v22, %v7376_v23  ;;  %v7095_v23 = vor.u32 %v8033_v13, %v7094_v12 }
  0x72   :  { %1690 = vmatmul.bf16.gmra.mxu3 %v7299_v31  ;;  %v7375_v31 = vor.u32 %v8103_v21, %v7374_v20 }
  0x73   :  { %1610 = vmatmul.bf16.gmra.mxu1 %v6979_v33  ;;  %v7055_v33 = vor.u32 %v8023_v25, %v7054_v24 }
  0x81   :  { %1526 = vmatmul.bf16.gmra.mxu2 %v7315_v42  ;;  %1446 = vmatmul.bf16.gmra.mxu0 %v6995_v44  ;;  %v7394_v44 = vld [vmem:[%s13725_s0 + $0x410] sm:$0xf] }
  0x82   :  { %1695 = vmatmul.bf16.gmra.mxu3 %v7319_v43 }
  0x83   :  { %1615 = vmatmul.bf16.gmra.mxu1 %v6999_v45  ;;  %v8108_v45 = vld [vmem:[%s13725_s0 + $0x420] sm:$0xf0] }
  0x84   :  { %v7395_v55 = vor.u32 %v8108_v45, %v7394_v44  ;;  %v8036_v44 = vld [vmem:[%s13725_s0 + $0x1e4] sm:$0xf]  ;;  %v7116_v45 = vld [vmem:[%s13725_s0 + $0x1f4] sm:$0xf0] }
  0x91   :  { %1531 = vmatmul.bf16.gmra.mxu2 %v7335_v57  ;;  %1451 = vmatmul.bf16.gmra.mxu0 %v7015_v59  ;;  %v7075_v57 = vor.u32 %v8028_v49, %v7074_v48 }
  0x92   :  { %1700 = vmatmul.bf16.gmra.mxu3 %v7339_v58  ;;  %v7079_v58 = vor.u32 %v8026_v50, %v7076_v51 }
  0x93   :  { %1620 = vmatmul.bf16.gmra.mxu1 %v7019_v60 }
  0x9e   :  { %v1417_v9 = vpop.f32.mrf.mxu0 }
  0xa0   :  { %v1586_v10 = vpop.f32.mrf.mxu1 }
  0xa1   :  { %v8654_v11 = vadd.f32 %v1586_v10, %v1417_v9  ;;  %1536 = vmatmul.bf16.gmra.mxu2 %v7355_v5  ;;  %1456 = vmatmul.bf16.gmra.mxu0 %v7035_v7  ;;  %v7414_v7 = vld [vmem:[%s13725_s0 + $0x438] sm:$0xf]  ;;  %v8111_v9 = vld [vmem:[%s13725_s0 + $0x43c] sm:$0xf]  ;;  %v7416_v10 = vld [vmem:[%s13725_s0 + $0x44c] sm:$0xf0] }
  0xa2   :  { %1705 = vmatmul.bf16.gmra.mxu3 %v7359_v6  ;;  %v8168_v6 = vld [vmem:[%s13726_s1 + $0x100] sm:$0xff]  ;;  %v7419_v22 = vor.u32 %v8111_v9, %v7416_v10  ;;  %v8041_v9 = vld [vmem:[%s13725_s0 + $0x20c] sm:$0xf] }
  0xa3   :  { %1625 = vmatmul.bf16.gmra.mxu1 %v7039_v8  ;;  %v8113_v8 = vld [vmem:[%s13725_s0 + $0x448] sm:$0xf0]  ;;  %2091 = vmatpush.bf16.msrb.mxu0 %v8168_v6  ;;  %v7456_v6 = vld [vmem:[%s13725_s0 + $0x49c] sm:$0xf0] }
  0xa4   :  { %v1497_v14 = vpop.f32.mrf.mxu2  ;;  %v7415_v21 = vor.u32 %v8113_v8, %v7414_v7  ;;  %v7134_v7 = vld [vmem:[%s13725_s0 + $0x208] sm:$0xf]  ;;  %v8043_v8 = vld [vmem:[%s13725_s0 + $0x218] sm:$0xf0]  ;;  %v7136_v10 = vld [vmem:[%s13725_s0 + $0x21c] sm:$0xf0] }
  0xa5   :  { %v1666_v15 = vpop.f32.mrf.mxu3 }
  0xa6   :  { %v8662_v16 = vadd.f32 %v1666_v15, %v1497_v14  ;;  %v1419_v17 = vpop.f32.mrf.mxu0  ;;  %v8031_v14 = vld [vmem:[%s13725_s0 + $0x1bc] sm:$0xf]  ;;  %v7096_v15 = vld [vmem:[%s13725_s0 + $0x1cc] sm:$0xf0] }
  0xa7   :  { %v7099_v24 = vor.u32 %v8031_v14, %v7096_v15 }
  0xa8   :  { %v1588_v18 = vpop.f32.mrf.mxu1 }
  0xa9   :  { %v8664_v19 = vadd.f32 %v1588_v18, %v1419_v17 }
  0xac   :  { %v1499_v28 = vpop.f32.mrf.mxu2 }
  0xad   :  { %v1668_v29 = vpop.f32.mrf.mxu3 }
  0xae   :  { %v8690_v30 = vadd.f32 %v1668_v29, %v1499_v28  ;;  %v1422_v35 = vpop.f32.mrf.mxu0 }
  0xb0   :  { %v1591_v36 = vpop.f32.mrf.mxu1 }
  0xb1   :  { %v8692_v37 = vadd.f32 %v1591_v36, %v1422_v35  ;;  %1541 = vmatmul.bf16.gmra.mxu2 %v7375_v31  ;;  %1461 = vmatmul.bf16.gmra.mxu0 %v7055_v33  ;;  %v7434_v35 = vld [vmem:[%s13725_s0 + $0x460] sm:$0xf]  ;;  %v8118_v36 = vld [vmem:[%s13725_s0 + $0x470] sm:$0xf0] }
  0xb2   :  { %1710 = vmatmul.bf16.gmra.mxu3 %v7379_v32  ;;  %v7435_v49 = vor.u32 %v8118_v36, %v7434_v35  ;;  %v8128_v35 = vld [vmem:[%s13725_s0 + $0x4c0] sm:$0xf0]  ;;  %v8126_v36 = vld [vmem:[%s13725_s0 + $0x4b4] sm:$0xf] }
  0xb3   :  { %1630 = vmatmul.bf16.gmra.mxu1 %v7059_v34 }
  0xb4   :  { %v1502_v38 = vpop.f32.mrf.mxu2 }
  0xb5   :  { %v1671_v39 = vpop.f32.mrf.mxu3 }
  0xb6   :  { %v8694_v40 = vadd.f32 %v1671_v39, %v1502_v38  ;;  %v1424_v41 = vpop.f32.mrf.mxu0  ;;  %v8116_v38 = vld [vmem:[%s13725_s0 + $0x464] sm:$0xf]  ;;  %v7436_v39 = vld [vmem:[%s13725_s0 + $0x474] sm:$0xf0] }
  0xb7   :  { %v7439_v50 = vor.u32 %v8116_v38, %v7436_v39  ;;  %v7476_v38 = vld [vmem:[%s13725_s0 + $0x4c4] sm:$0xf0]  ;;  %v7154_v39 = vld [vmem:[%s13725_s0 + $0x230] sm:$0xf] }
  0xb8   :  { %v1593_v42 = vpop.f32.mrf.mxu1 }
  0xb9   :  { %v8696_v43 = vadd.f32 %v1593_v42, %v1424_v41  ;;  %v7114_v41 = vld [vmem:[%s13725_s0 + $0x1e0] sm:$0xf]  ;;  %v8038_v42 = vld [vmem:[%s13725_s0 + $0x1f0] sm:$0xf0] }
  0xba   :  { %v7115_v51 = vor.u32 %v8038_v42, %v7114_v41  ;;  %v8048_v41 = vld [vmem:[%s13725_s0 + $0x240] sm:$0xf0]  ;;  %v8046_v42 = vld [vmem:[%s13725_s0 + $0x234] sm:$0xf] }
  0xbc   :  { %v1504_v52 = vpop.f32.mrf.mxu2 }
  0xbd   :  { %v1673_v53 = vpop.f32.mrf.mxu3 }
  0xbe   :  { %v8722_v54 = vadd.f32 %v1673_v53, %v1504_v52  ;;  %v1427_v59 = vpop.f32.mrf.mxu0  ;;  %v7119_v52 = vor.u32 %v8036_v44, %v7116_v45  ;;  %v7156_v44 = vld [vmem:[%s13725_s0 + $0x244] sm:$0xf0] }
  0xc0   :  { %v1596_v60 = vpop.f32.mrf.mxu1 }
  0xc1   :  { %v8724_v61 = vadd.f32 %v1596_v60, %v1427_v59  ;;  %1546 = vmatmul.bf16.gmra.mxu2 %v7395_v55  ;;  %1466 = vmatmul.bf16.gmra.mxu0 %v7075_v57  ;;  %v8152_v57 = vld [vmem:[%s13726_s1 + $0x80] sm:$0xff] }
  0xc2   :  { %1715 = vmatmul.bf16.gmra.mxu3 %v7399_v56  ;;  %1753 = vmatpush.bf16.msrb.mxu2 %v8152_v57 }
  0xc3   :  { %1635 = vmatmul.bf16.gmra.mxu1 %v7079_v58  ;;  %v8160_v58 = vld [vmem:[%s13726_s1 + $0xc0] sm:$0xff] }
  0xc4   :  { %v1507_v0 = vpop.f32.mrf.mxu2  ;;  %1922 = vmatpush.bf16.msrb.mxu3 %v8160_v58 }
  0xc5   :  { %v1676_v1 = vpop.f32.mrf.mxu3 }
  0xc6   :  { %v8732_v2 = vadd.f32 %v1676_v1, %v1507_v0  ;;  %v1429_v3 = vpop.f32.mrf.mxu0  ;;  %v7454_v1 = vld [vmem:[%s13725_s0 + $0x488] sm:$0xf] }
  0xc8   :  { %v1598_v4 = vpop.f32.mrf.mxu1 }
  0xc9   :  { %v8734_v5 = vadd.f32 %v1598_v4, %v1429_v3  ;;  %v8123_v3 = vld [vmem:[%s13725_s0 + $0x498] sm:$0xf0]  ;;  %v8121_v4 = vld [vmem:[%s13725_s0 + $0x48c] sm:$0xf] }
  0xca   :  { %v7455_v15 = vor.u32 %v8123_v3, %v7454_v1 }
  0xcc   :  { %v1509_v17 = vpop.f32.mrf.mxu2 }
  0xcd   :  { %v1678_v18 = vpop.f32.mrf.mxu3 }
  0xce   :  { %v8763_v20 = vadd.f32 %v1678_v18, %v1509_v17  ;;  %v1432_v25 = vpop.f32.mrf.mxu0  ;;  %v7459_v17 = vor.u32 %v8121_v4, %v7456_v6  ;;  %v7135_v18 = vor.u32 %v8043_v8, %v7134_v7  ;;  %v7494_v4 = vld [vmem:[%s13725_s0 + $0x4d8] sm:$0xf]  ;;  %v8133_v6 = vld [vmem:[%s13725_s0 + $0x4e8] sm:$0xf0]  ;;  %v8131_v7 = vld [vmem:[%s13725_s0 + $0x4dc] sm:$0xf] }
  0xcf   :  { %v7496_v8 = vld [vmem:[%s13725_s0 + $0x4ec] sm:$0xf0] }
  0xd0   :  { %13941 = vst [vmem:[#allocation5_spill] sm:$0xff] %v8763_v20  ;;  %v1601_v26 = vpop.f32.mrf.mxu1 }
  0xd1   :  { %v8765_v27 = vadd.f32 %v1601_v26, %v1432_v25  ;;  %1551 = vmatmul.bf16.gmra.mxu2 %v7415_v21  ;;  %1471 = vmatmul.bf16.gmra.mxu0 %v7095_v23  ;;  %v7139_v21 = vor.u32 %v8041_v9, %v7136_v10  ;;  %v7174_v9 = vld [vmem:[%s13725_s0 + $0x258] sm:$0xf]  ;;  %v8053_v10 = vld [vmem:[%s13725_s0 + $0x268] sm:$0xf0] }
  0xd2   :  { %1720 = vmatmul.bf16.gmra.mxu3 %v7419_v22 }
  0xd3   :  { %1640 = vmatmul.bf16.gmra.mxu1 %v7099_v24 }
  0xd4   :  { %v1512_v28 = vpop.f32.mrf.mxu2 }
  0xd5   :  { %v1681_v29 = vpop.f32.mrf.mxu3 }
  0xd6   :  { %v8767_v31 = vadd.f32 %v1681_v29, %v1512_v28  ;;  %v1434_v32 = vpop.f32.mrf.mxu0 }
  0xd8   :  { %13942 = vst [vmem:[#allocation6_spill] sm:$0xff] %v8767_v31  ;;  %v1603_v33 = vpop.f32.mrf.mxu1 }
  0xd9   :  { %v8769_v34 = vadd.f32 %v1603_v33, %v1434_v32  ;;  %v7474_v33 = vld [vmem:[%s13725_s0 + $0x4b0] sm:$0xf] }
  0xdc   :  { %v1514_v46 = vpop.f32.mrf.mxu2 }
  0xdd   :  { %v1683_v47 = vpop.f32.mrf.mxu3 }
  0xde   :  { %v8795_v48 = vadd.f32 %v1683_v47, %v1514_v46  ;;  %v1437_v53 = vpop.f32.mrf.mxu0 }
  0xe0   :  { %13943 = vst [vmem:[#allocation7_spill] sm:$0xff] %v8795_v48  ;;  %v1606_v55 = vpop.f32.mrf.mxu1 }
  0xe1   :  { %v8797_v56 = vadd.f32 %v1606_v55, %v1437_v53  ;;  %1556 = vmatmul.bf16.gmra.mxu2 %v7435_v49  ;;  %1476 = vmatmul.bf16.gmra.mxu0 %v7115_v51  ;;  %v7475_v49 = vor.u32 %v8128_v35, %v7474_v33  ;;  %v7155_v51 = vor.u32 %v8048_v41, %v7154_v39 }
  0xe2   :  { %1725 = vmatmul.bf16.gmra.mxu3 %v7439_v50  ;;  %v7479_v50 = vor.u32 %v8126_v36, %v7476_v38 }
  0xe3   :  { %1645 = vmatmul.bf16.gmra.mxu1 %v7119_v52  ;;  %v7159_v52 = vor.u32 %v8046_v42, %v7156_v44  ;;  %v6882_v44 = vld [vmem:[%s13725_s0 + $0x8] sm:$0xf] }
  0xe4   :  { %v1517_v59 = vpop.f32.mrf.mxu2 }
  0xe5   :  { %v1686_v60 = vpop.f32.mrf.mxu3 }
  0xe6   :  { %v8805_v62 = vadd.f32 %v1686_v60, %v1517_v59  ;;  %v8807_v63 = vpop.f32.mrf.mxu0 }
  0xe8   :  { %13944 = vst [vmem:[#allocation8_spill] sm:$0xff] %v8805_v62  ;;  %v8809_v0 = vpop.f32.mrf.mxu1 }
  0xec   :  { %v1519_v12 = vpop.f32.mrf.mxu2 }
  0xed   :  { %v1688_v13 = vpop.f32.mrf.mxu3 }
  0xee   :  { %v8835_v14 = vadd.f32 %v1688_v13, %v1519_v12  ;;  %v1442_v22 = vpop.f32.mrf.mxu0  ;;  %v8051_v12 = vld [vmem:[%s13725_s0 + $0x25c] sm:$0xf]  ;;  %v7176_v13 = vld [vmem:[%s13725_s0 + $0x26c] sm:$0xf0] }
  0xf0   :  { %13945 = vst [vmem:[#allocation9_spill] sm:$0xff] %v8835_v14  ;;  %v1611_v23 = vpop.f32.mrf.mxu1 }
  0xf1   :  { %v8837_v24 = vadd.f32 %v1611_v23, %v1442_v22  ;;  %1561 = vmatmul.bf16.gmra.mxu2 %v7455_v15  ;;  %1481 = vmatmul.bf16.gmra.mxu0 %v7135_v18  ;;  %v7499_v22 = vor.u32 %v8131_v7, %v7496_v8  ;;  %v7175_v23 = vor.u32 %v8053_v10, %v7174_v9 }
  0xf2   :  { %1730 = vmatmul.bf16.gmra.mxu3 %v7459_v17 }
  0xf3   :  { %1650 = vmatmul.bf16.gmra.mxu1 %v7139_v21  ;;  %v7495_v21 = vor.u32 %v8133_v6, %v7494_v4 }
  0xf4   :  { %v1522_v25 = vpop.f32.mrf.mxu2 }
  0xf5   :  { %v1691_v26 = vpop.f32.mrf.mxu3 }
  0xf6   :  { %v8839_v28 = vadd.f32 %v1691_v26, %v1522_v25  ;;  %v8841_v29 = vpop.f32.mrf.mxu0  ;;  %v7179_v25 = vor.u32 %v8051_v12, %v7176_v13 }
  0xf8   :  { %13946 = vst [vmem:[#allocation10_spill] sm:$0xff] %v8839_v28  ;;  %v8843_v32 = vpop.f32.mrf.mxu1 }
  0xfc   :  { %v1524_v45 = vpop.f32.mrf.mxu2 }
  0xfd   :  { %v1693_v46 = vpop.f32.mrf.mxu3 }
  0xfe   :  { %v8869_v47 = vadd.f32 %v1693_v46, %v1524_v45  ;;  %v1447_v53 = vpop.f32.mrf.mxu0  ;;  %v7979_v45 = vld [vmem:[%s13725_s0 + $0x18] sm:$0xf0]  ;;  %v7977_v46 = vld [vmem:[%s13725_s0 + $0xc] sm:$0xf] }
 0x100   :  { %13947 = vst [vmem:[#allocation11_spill] sm:$0xff] %v8869_v47  ;;  %v1616_v55 = vpop.f32.mrf.mxu1 }
 0x101   :  { %v8871_v57 = vadd.f32 %v1616_v55, %v1447_v53  ;;  %1566 = vmatmul.bf16.gmra.mxu2 %v7475_v49  ;;  %1486 = vmatmul.bf16.gmra.mxu0 %v7155_v51  ;;  %v6884_v49 = vld [vmem:[%s13725_s0 + $0x1c] sm:$0xf0]  ;;  %v7980_v51 = vld [vmem:[%s13725_s0 + $0x20] sm:$0xf0] }
 0x102   :  { %1735 = vmatmul.bf16.gmra.mxu3 %v7479_v50  ;;  %v6890_v50 = vld [vmem:[%s13725_s0 + $0x10] sm:$0xf] }
 0x103   :  { %1655 = vmatmul.bf16.gmra.mxu1 %v7159_v52  ;;  %v6891_v4 = vor.u32 %v7980_v51, %v6890_v50 }
 0x104   :  { %v1527_v58 = vpop.f32.mrf.mxu2 }
 0x105   :  { %v1696_v59 = vpop.f32.mrf.mxu3 }
 0x106   :  { %v8873_v60 = vadd.f32 %v1696_v59, %v1527_v58  ;;  %v8875_v1 = vpop.f32.mrf.mxu0  ;;  %v6883_v58 = vor.u32 %v7979_v45, %v6882_v44  ;;  %v6887_v59 = vor.u32 %v7977_v46, %v6884_v49 }
 0x108   :  { %13948 = vst [vmem:[#allocation12_spill] sm:$0xff] %v8873_v60  ;;  %v8877_v3 = vpop.f32.mrf.mxu1 }
 0x10c   :  { %v1529_v15 = vpop.f32.mrf.mxu2 }
 0x10d   :  { %v1698_v17 = vpop.f32.mrf.mxu3 }
 0x10e   :  { %v8903_v18 = vadd.f32 %v1698_v17, %v1529_v15  ;;  %v1452_v26 = vpop.f32.mrf.mxu0  ;;  %v6902_v17 = vld [vmem:[%s13725_s0 + $0x30] sm:$0xf] }
 0x110   :  { %13949 = vst [vmem:[#allocation13_spill] sm:$0xff] %v8903_v18  ;;  %v1621_v33 = vpop.f32.mrf.mxu1 }
 0x111   :  { %v8905_v35 = vadd.f32 %v1621_v33, %v1452_v26  ;;  %1571 = vmatmul.bf16.gmra.mxu2 %v7495_v21  ;;  %1491 = vmatmul.bf16.gmra.mxu0 %v7175_v23  ;;  %v7984_v21 = vld [vmem:[%s13725_s0 + $0x40] sm:$0xf0]  ;;  %v6904_v23 = vld [vmem:[%s13725_s0 + $0x44] sm:$0xf0]  ;;  %v7985_v26 = vld [vmem:[%s13725_s0 + $0x48] sm:$0xf0] }
 0x112   :  { %1740 = vmatmul.bf16.gmra.mxu3 %v7499_v22  ;;  %v7982_v22 = vld [vmem:[%s13725_s0 + $0x34] sm:$0xf]  ;;  %v6903_v44 = vor.u32 %v7984_v21, %v6902_v17  ;;  %v6930_v17 = vld [vmem:[%s13725_s0 + $0x60] sm:$0xf] }
 0x113   :  { %1660 = vmatmul.bf16.gmra.mxu1 %v7179_v25  ;;  %v6910_v25 = vld [vmem:[%s13725_s0 + $0x38] sm:$0xf]  ;;  %v6907_v45 = vor.u32 %v7982_v22, %v6904_v23  ;;  %v7990_v21 = vld [vmem:[%s13725_s0 + $0x70] sm:$0xf0] }
 0x114   :  { %v1532_v36 = vpop.f32.mrf.mxu2  ;;  %v6911_v46 = vor.u32 %v7985_v26, %v6910_v25 }
 0x115   :  { %v1701_v38 = vpop.f32.mrf.mxu3 }
 0x116   :  { %v8907_v39 = vadd.f32 %v1701_v38, %v1532_v36  ;;  %v8909_v41 = vpop.f32.mrf.mxu0 }
 0x118   :  { %13950 = vst [vmem:[#allocation14_spill] sm:$0xff] %v8907_v39  ;;  %v8911_v42 = vpop.f32.mrf.mxu1 }
 0x11c   :  { %v1534_v52 = vpop.f32.mrf.mxu2 }
 0x11d   :  { %v1703_v53 = vpop.f32.mrf.mxu3 }
 0x11e   :  { %v8931_v55 = vadd.f32 %v1703_v53, %v1534_v52  ;;  %v1457_v6 = vpop.f32.mrf.mxu0 }
 0x120   :  { %13951 = vst [vmem:[#allocation15_spill] sm:$0xff] %v8931_v55  ;;  %v1626_v7 = vpop.f32.mrf.mxu1 }
 0x121   :  { %v8933_v8 = vadd.f32 %v1626_v7, %v1457_v6  ;;  %1754 = vmatmul.bf16.vlgmr.msrb.gmra.mxu2 %v6883_v58  ;;  %7656 = vmatmul.msk.bf16.vlgmr.msrb.gmra.mxu0 %vm1311_vm0, %v6891_v4  ;;  %v6922_v6 = vld [vmem:[%s13725_s0 + $0x58] sm:$0xf]  ;;  %v7989_v7 = vld [vmem:[%s13725_s0 + $0x68] sm:$0xf0] }
 0x122   :  { %1923 = vmatmul.bf16.vlgmr.msrb.gmra.mxu3 %v6887_v59  ;;  %v6923_v26 = vor.u32 %v7989_v7, %v6922_v6  ;;  %v6942_v6 = vld [vmem:[%s13725_s0 + $0x80] sm:$0xf]  ;;  %v7994_v7 = vld [vmem:[%s13725_s0 + $0x90] sm:$0xf0] }
 0x124   :  { %v1537_v9 = vpop.f32.mrf.mxu2 }
 0x125   :  { %v1706_v10 = vpop.f32.mrf.mxu3 }
 0x126   :  { %v8936_v12 = vadd.f32 %v1706_v10, %v1537_v9  ;;  %v8938_v13 = vpop.f32.mrf.mxu0  ;;  %v7987_v9 = vld [vmem:[%s13725_s0 + $0x5c] sm:$0xf]  ;;  %v6924_v10 = vld [vmem:[%s13725_s0 + $0x6c] sm:$0xf0] }
 0x128   :  { %13952 = vst [vmem:[#allocation16_spill] sm:$0xff] %v8936_v12  ;;  %v8940_v15 = vpop.f32.mrf.mxu1 }
 0x12c   :  { %v1539_v33 = vpop.f32.mrf.mxu2 }
 0x12d   :  { %v1708_v36 = vpop.f32.mrf.mxu3 }
 0x12e   :  { %v8960_v38 = vadd.f32 %v1708_v36, %v1539_v33  ;;  %v1462_v49 = vpop.f32.mrf.mxu0  ;;  %v6927_v33 = vor.u32 %v7987_v9, %v6924_v10  ;;  %v6931_v36 = vor.u32 %v7990_v21, %v6930_v17  ;;  %v7992_v9 = vld [vmem:[%s13725_s0 + $0x84] sm:$0xf]  ;;  %v6944_v10 = vld [vmem:[%s13725_s0 + $0x94] sm:$0xf0]  ;;  %v6950_v17 = vld [vmem:[%s13725_s0 + $0x88] sm:$0xf] }
 0x12f   :  { %v7995_v21 = vld [vmem:[%s13725_s0 + $0x98] sm:$0xf0] }
 0x130   :  { %13953 = vst [vmem:[#allocation17_spill] sm:$0xff] %v8960_v38  ;;  %v1631_v50 = vpop.f32.mrf.mxu1 }
 0x131   :  { %v8962_v51 = vadd.f32 %v1631_v50, %v1462_v49  ;;  %1759 = vmatmul.bf16.gmra.mxu2 %v6903_v44  ;;  %7657 = vmatmul.msk.bf16.gmra.mxu0 %vm1311_vm0, %v6911_v46 }
 0x132   :  { %1928 = vmatmul.bf16.gmra.mxu3 %v6907_v45 }
 0x134   :  { %v1542_v52 = vpop.f32.mrf.mxu2 }
 0x135   :  { %v1711_v53 = vpop.f32.mrf.mxu3 }
 0x136   :  { %v8965_v58 = vadd.f32 %v1711_v53, %v1542_v52  ;;  %v8967_v59 = vpop.f32.mrf.mxu0 }
 0x138   :  { %13954 = vst [vmem:[#allocation18_spill] sm:$0xff] %v8965_v58  ;;  %v8969_v4 = vpop.f32.mrf.mxu1 }
 0x13c   :  { %v1544_v22 = vpop.f32.mrf.mxu2 }
 0x13d   :  { %v1713_v23 = vpop.f32.mrf.mxu3 }
 0x13e   :  { %v8989_v25 = vadd.f32 %v1713_v23, %v1544_v22  ;;  %v1467_v44 = vpop.f32.mrf.mxu0 }
 0x140   :  { %13955 = vst [vmem:[#allocation19_spill] sm:$0xff] %v8989_v25  ;;  %v1636_v45 = vpop.f32.mrf.mxu1 }
 0x141   :  { %v8991_v46 = vadd.f32 %v1636_v45, %v1467_v44  ;;  %1764 = vmatmul.bf16.gmra.mxu2 %v6923_v26  ;;  %7658 = vmatmul.msk.bf16.gmra.mxu0 %vm1311_vm0, %v6931_v36  ;;  %v6947_v36 = vor.u32 %v7992_v9, %v6944_v10  ;;  %v6951_v44 = vor.u32 %v7995_v21, %v6950_v17  ;;  %v6964_v9 = vld [vmem:[%s13725_s0 + $0xbc] sm:$0xf0]  ;;  %v6970_v10 = vld [vmem:[%s13725_s0 + $0xb0] sm:$0xf]  ;;  %v8000_v17 = vld [vmem:[%s13725_s0 + $0xc0] sm:$0xf0] }
 0x142   :  { %1933 = vmatmul.bf16.gmra.mxu3 %v6927_v33  ;;  %v6943_v33 = vor.u32 %v7994_v7, %v6942_v6  ;;  %v7999_v6 = vld [vmem:[%s13725_s0 + $0xb8] sm:$0xf0]  ;;  %v7997_v7 = vld [vmem:[%s13725_s0 + $0xac] sm:$0xf] }
 0x144   :  { %v1547_v49 = vpop.f32.mrf.mxu2 }
 0x145   :  { %v1716_v50 = vpop.f32.mrf.mxu3 }
 0x146   :  { %v8994_v52 = vadd.f32 %v1716_v50, %v1547_v49  ;;  %v8996_v53 = vpop.f32.mrf.mxu0 }
 0x148   :  { %13956 = vst [vmem:[#allocation20_spill] sm:$0xff] %v8994_v52 }
 0x14c   :  { %v1549_v22 = vpop.f32.mrf.mxu2 }
 0x14d   :  { %v1718_v23 = vpop.f32.mrf.mxu3 }
 0x14e   :  { %v9016_v26 = vadd.f32 %v1718_v23, %v1549_v22  ;;  %v9018_v45 = vpop.f32.mrf.mxu0  ;;  %v6962_v22 = vld [vmem:[%s13725_s0 + $0xa8] sm:$0xf] }
 0x150   :  { %13957 = vst [vmem:[#allocation21_spill] sm:$0xff] %v9016_v26 }
 0x151   :  { %1769 = vmatmul.bf16.gmra.mxu2 %v6943_v33  ;;  %7659 = vmatmul.msk.bf16.gmra.mxu0 %vm1311_vm0, %v6951_v44  ;;  %v6967_v44 = vor.u32 %v7997_v7, %v6964_v9  ;;  %v6984_v7 = vld [vmem:[%s13725_s0 + $0xe4] sm:$0xf0] }
 0x152   :  { %1938 = vmatmul.bf16.gmra.mxu3 %v6947_v36  ;;  %v6963_v36 = vor.u32 %v7999_v6, %v6962_v22  ;;  %v8004_v22 = vld [vmem:[%s13725_s0 + $0xe0] sm:$0xf0]  ;;  %v8002_v6 = vld [vmem:[%s13725_s0 + $0xd4] sm:$0xf] }
 0x154   :  { %v1552_v49 = vpop.f32.mrf.mxu2 }
 0x155   :  { %v1721_v50 = vpop.f32.mrf.mxu3 }
 0x156   :  { %v9021_v25 = vadd.f32 %v1721_v50, %v1552_v49  ;;  %v9023_v38 = vpop.f32.mrf.mxu0  ;;  %v6971_v49 = vor.u32 %v8000_v17, %v6970_v10 }
 0x158   :  { %13958 = vst [vmem:[#allocation22_spill] sm:$0xff] %v9021_v25 }
 0x15c   :  { %v1554_v21 = vpop.f32.mrf.mxu2 }
 0x15d   :  { %v1723_v23 = vpop.f32.mrf.mxu3 }
 0x15e   :  { %v9043_v33 = vadd.f32 %v1723_v23, %v1554_v21  ;;  %v9045_v50 = vpop.f32.mrf.mxu0  ;;  %v6982_v21 = vld [vmem:[%s13725_s0 + $0xd0] sm:$0xf] }
 0x15f   :  { %v6983_v23 = vor.u32 %v8004_v22, %v6982_v21  ;;  %v8009_v21 = vld [vmem:[%s13725_s0 + $0x108] sm:$0xf0]  ;;  %v8007_v22 = vld [vmem:[%s13725_s0 + $0xfc] sm:$0xf] }
 0x160   :  { %13959 = vst [vmem:[#allocation23_spill] sm:$0xff] %v9043_v33 }
 0x161   :  { %1774 = vmatmul.bf16.gmra.mxu2 %v6963_v36  ;;  %7660 = vmatmul.msk.bf16.gmra.mxu0 %vm1311_vm0, %v6971_v49  ;;  %v6987_v36 = vor.u32 %v8002_v6, %v6984_v7  ;;  %v7004_v6 = vld [vmem:[%s13725_s0 + $0x10c] sm:$0xf0] }
 0x162   :  { %1943 = vmatmul.bf16.gmra.mxu3 %v6967_v44 }
 0x164   :  { %v1557_v25 = vpop.f32.mrf.mxu2 }
 0x165   :  { %v1726_v26 = vpop.f32.mrf.mxu3 }
 0x166   :  { %v9048_v55 = vadd.f32 %v1726_v26, %v1557_v25  ;;  %v9050_v18 = vpop.f32.mrf.mxu0  ;;  %v6990_v25 = vld [vmem:[%s13725_s0 + $0xd8] sm:$0xf]  ;;  %v8005_v26 = vld [vmem:[%s13725_s0 + $0xe8] sm:$0xf0] }
 0x167   :  { %v6991_v44 = vor.u32 %v8005_v26, %v6990_v25 }
 0x168   :  { %13960 = vst [vmem:[#allocation24_spill] sm:$0xff] %v9048_v55 }
 0x16c   :  { %v1559_v9 = vpop.f32.mrf.mxu2 }
 0x16d   :  { %v1728_v10 = vpop.f32.mrf.mxu3 }
 0x16e   :  { %v9070_v17 = vadd.f32 %v1728_v10, %v1559_v9  ;;  %v9072_v49 = vpop.f32.mrf.mxu0  ;;  %v7002_v9 = vld [vmem:[%s13725_s0 + $0xf8] sm:$0xf] }
 0x16f   :  { %v7003_v10 = vor.u32 %v8009_v21, %v7002_v9  ;;  %v8014_v9 = vld [vmem:[%s13725_s0 + $0x130] sm:$0xf0]  ;;  %v8012_v21 = vld [vmem:[%s13725_s0 + $0x124] sm:$0xf] }
 0x170   :  { %13961 = vst [vmem:[#allocation25_spill] sm:$0xff] %v9070_v17 }
 0x171   :  { %1779 = vmatmul.bf16.gmra.mxu2 %v6983_v23  ;;  %7661 = vmatmul.msk.bf16.gmra.mxu0 %vm1311_vm0, %v6991_v44  ;;  %v7007_v23 = vor.u32 %v8007_v22, %v7004_v6  ;;  %v7024_v22 = vld [vmem:[%s13725_s0 + $0x134] sm:$0xf0] }
 0x172   :  { %1948 = vmatmul.bf16.gmra.mxu3 %v6987_v36 }
 0x174   :  { %v1562_v55 = vpop.f32.mrf.mxu2 }
 0x175   :  { %v1731_v33 = vpop.f32.mrf.mxu3 }
 0x176   :  { %v9075_v47 = vadd.f32 %v1731_v33, %v1562_v55  ;;  %v9077_v14 = vpop.f32.mrf.mxu0  ;;  %v7010_v55 = vld [vmem:[%s13725_s0 + $0x100] sm:$0xf]  ;;  %v8010_v33 = vld [vmem:[%s13725_s0 + $0x110] sm:$0xf0] }
 0x177   :  { %v7011_v36 = vor.u32 %v8010_v33, %v7010_v55 }
 0x178   :  { %13962 = vst [vmem:[#allocation26_spill] sm:$0xff] %v9075_v47 }
 0x17c   :  { %v1564_v7 = vpop.f32.mrf.mxu2 }
 0x17d   :  { %v1733_v25 = vpop.f32.mrf.mxu3 }
 0x17e   :  { %v9097_v26 = vadd.f32 %v1733_v25, %v1564_v7  ;;  %v9099_v44 = vpop.f32.mrf.mxu0  ;;  %v7022_v7 = vld [vmem:[%s13725_s0 + $0x120] sm:$0xf] }
 0x17f   :  { %v7023_v25 = vor.u32 %v8014_v9, %v7022_v7  ;;  %v8019_v7 = vld [vmem:[%s13725_s0 + $0x158] sm:$0xf0]  ;;  %v8017_v9 = vld [vmem:[%s13725_s0 + $0x14c] sm:$0xf] }
 0x180   :  { %13963 = vst [vmem:[#allocation27_spill] sm:$0xff] %v9097_v26 }
 0x181   :  { %1784 = vmatmul.bf16.gmra.mxu2 %v7003_v10  ;;  %7662 = vmatmul.msk.bf16.gmra.mxu0 %vm1311_vm0, %v7011_v36  ;;  %v7027_v10 = vor.u32 %v8012_v21, %v7024_v22  ;;  %v7044_v21 = vld [vmem:[%s13725_s0 + $0x15c] sm:$0xf0] }
 0x182   :  { %1953 = vmatmul.bf16.gmra.mxu3 %v7007_v23 }
 0x184   :  { %v1567_v47 = vpop.f32.mrf.mxu2 }
 0x185   :  { %v1736_v17 = vpop.f32.mrf.mxu3 }
 0x186   :  { %v9102_v52 = vadd.f32 %v1736_v17, %v1567_v47  ;;  %v9104_v58 = vpop.f32.mrf.mxu0  ;;  %v7030_v47 = vld [vmem:[%s13725_s0 + $0x128] sm:$0xf]  ;;  %v8015_v17 = vld [vmem:[%s13725_s0 + $0x138] sm:$0xf0] }
 0x187   :  { %v7031_v23 = vor.u32 %v8015_v17, %v7030_v47 }
 0x188   :  { %13964 = vst [vmem:[#allocation28_spill] sm:$0xff] %v9102_v52 }
 0x18c   :  { %v1569_v6 = vpop.f32.mrf.mxu2 }
 0x18d   :  { %v1738_v55 = vpop.f32.mrf.mxu3 }
 0x18e   :  { %v9124_v33 = vadd.f32 %v1738_v55, %v1569_v6  ;;  %v9126_v36 = vpop.f32.mrf.mxu0  ;;  %v7042_v6 = vld [vmem:[%s13725_s0 + $0x148] sm:$0xf] }
 0x18f   :  { %v7043_v55 = vor.u32 %v8019_v7, %v7042_v6  ;;  %v8024_v6 = vld [vmem:[%s13725_s0 + $0x180] sm:$0xf0]  ;;  %v8022_v7 = vld [vmem:[%s13725_s0 + $0x174] sm:$0xf] }
 0x190   :  { %13965 = vst [vmem:[#allocation29_spill] sm:$0xff] %v9124_v33 }
 0x191   :  { %1789 = vmatmul.bf16.gmra.mxu2 %v7023_v25  ;;  %7663 = vmatmul.msk.bf16.gmra.mxu0 %vm1311_vm0, %v7031_v23  ;;  %v7047_v25 = vor.u32 %v8017_v9, %v7044_v21 }
 0x192   :  { %1958 = vmatmul.bf16.gmra.mxu3 %v7027_v10 }
 0x194   :  { %v1572_v52 = vpop.f32.mrf.mxu2 }
 0x195   :  { %v1741_v26 = vpop.f32.mrf.mxu3 }
 0x196   :  { %v9129_v12 = vadd.f32 %v1741_v26, %v1572_v52  ;;  %v9131_v39 = vpop.f32.mrf.mxu0  ;;  %v7050_v52 = vld [vmem:[%s13725_s0 + $0x150] sm:$0xf]  ;;  %v8020_v26 = vld [vmem:[%s13725_s0 + $0x160] sm:$0xf0] }
 0x197   :  { %v7051_v10 = vor.u32 %v8020_v26, %v7050_v52 }
 0x198   :  { %13966 = vst [vmem:[#allocation30_spill] sm:$0xff] %v9129_v12 }
 0x19c   :  { %v1574_v22 = vpop.f32.mrf.mxu2 }
 0x19d   :  { %v1743_v47 = vpop.f32.mrf.mxu3 }
 0x19e   :  { %v9151_v17 = vadd.f32 %v1743_v47, %v1574_v22  ;;  %v2093_v23 = vpop.f32.mrf.mxu0  ;;  %v7062_v22 = vld [vmem:[%s13725_s0 + $0x170] sm:$0xf] }
 0x19f   :  { %v7063_v21 = vor.u32 %v8024_v6, %v7062_v22  ;;  %v8027_v22 = vld [vmem:[%s13725_s0 + $0x19c] sm:$0xf] }
 0x1a0   :  { %13967 = vst [vmem:[#allocation31_spill] sm:$0xff] %v9151_v17 }
 0x1a1   :  { %1794 = vmatmul.bf16.gmra.mxu2 %v7043_v55  ;;  %7664 = vmatmul.msk.bf16.gmra.mxu0 %vm1311_vm0, %v7051_v10 }
 0x1a2   :  { %1963 = vmatmul.bf16.gmra.mxu3 %v7047_v25 }
 0x1a4   :  { %v1755_v12 = vpop.f32.mrf.mxu2 }
 0x1a5   :  { %v1924_v33 = vpop.f32.mrf.mxu3  ;;  %v1756_v60 = vadd.f32 %v1755_v12, %v8654_v11  ;;  %v7064_v11 = vld [vmem:[%s13725_s0 + $0x184] sm:$0xf0] }
 0x1a6   :  { %v2095_v62 = vpop.f32.mrf.mxu0  ;;  %v7067_v52 = vor.u32 %v8022_v7, %v7064_v11 }
 0x1a7   :  { %v1925_v28 = vadd.f32 %v1924_v33, %v1756_v60  ;;  %v8025_v60 = vld [vmem:[%s13725_s0 + $0x188] sm:$0xf0] }
 0x1a9   :  { %v9155_v48 = vadd.f32 %v2093_v23, %v1925_v28  ;;  %v7070_v28 = vld [vmem:[%s13725_s0 + $0x178] sm:$0xf] }
 0x1aa   :  { %v7071_v26 = vor.u32 %v8025_v60, %v7070_v28 }
 0x1ab   :  { %13968 = vst [vmem:[#allocation32_spill] sm:$0xff] %v9155_v48 }
 0x1ac   :  { %v1757_v12 = vpop.f32.mrf.mxu2 }
 0x1ad   :  { %v1926_v33 = vpop.f32.mrf.mxu3  ;;  %v1758_v9 = vadd.f32 %v1757_v12, %v8664_v19  ;;  %v7082_v19 = vld [vmem:[%s13725_s0 + $0x198] sm:$0xf] }
 0x1ae   :  { %v2098_v55 = vpop.f32.mrf.mxu0 }
 0x1af   :  { %v1927_v47 = vadd.f32 %v1926_v33, %v1758_v9 }
 0x1b1   :  { %v9176_v25 = vadd.f32 %v2095_v62, %v1927_v47  ;;  %1799 = vmatmul.bf16.gmra.mxu2 %v7063_v21  ;;  %7665 = vmatmul.msk.bf16.gmra.mxu0 %vm1311_vm0, %v7071_v26  ;;  %v8029_v62 = vld [vmem:[%s13725_s0 + $0x1a8] sm:$0xf0] }
 0x1b2   :  { %1968 = vmatmul.bf16.gmra.mxu3 %v7067_v52  ;;  %v7083_v28 = vor.u32 %v8029_v62, %v7082_v19  ;;  %v8032_v19 = vld [vmem:[%s13725_s0 + $0x1c4] sm:$0xf]  ;;  %v7110_v62 = vld [vmem:[%s13725_s0 + $0x1c8] sm:$0xf] }
 0x1b4   :  { %v1760_v10 = vpop.f32.mrf.mxu2 }
 0x1b5   :  { %v1929_v23 = vpop.f32.mrf.mxu3  ;;  %v1761_v17 = vadd.f32 %v1760_v10, %v8692_v37  ;;  %v7084_v37 = vld [vmem:[%s13725_s0 + $0x1ac] sm:$0xf0] }
 0x1b6   :  { %v2100_v31 = vpop.f32.mrf.mxu0  ;;  %v7087_v60 = vor.u32 %v8027_v22, %v7084_v37  ;;  %v8035_v22 = vld [vmem:[%s13725_s0 + $0x1d8] sm:$0xf0] }
 0x1b7   :  { %v1930_v48 = vadd.f32 %v1929_v23, %v1761_v17  ;;  %v8030_v17 = vld [vmem:[%s13725_s0 + $0x1b0] sm:$0xf0] }
 0x1b9   :  { %v9180_v20 = vadd.f32 %v2098_v55, %v1930_v48  ;;  %v7090_v48 = vld [vmem:[%s13725_s0 + $0x1a0] sm:$0xf] }
 0x1ba   :  { %v7091_v12 = vor.u32 %v8030_v17, %v7090_v48 }
 0x1bc   :  { %v1762_v6 = vpop.f32.mrf.mxu2 }
 0x1bd   :  { %v1931_v7 = vpop.f32.mrf.mxu3  ;;  %v1763_v11 = vadd.f32 %v1762_v6, %v8696_v43  ;;  %v7102_v43 = vld [vmem:[%s13725_s0 + $0x1c0] sm:$0xf] }
 0x1be   :  { %v2103_v9 = vpop.f32.mrf.mxu0 }
 0x1bf   :  { %v1932_v33 = vadd.f32 %v1931_v7, %v1763_v11  ;;  %v7111_v11 = vor.u32 %v8035_v22, %v7110_v62 }
 0x1c1   :  { %v9201_v21 = vadd.f32 %v2100_v31, %v1932_v33  ;;  %1804 = vmatmul.bf16.gmra.mxu2 %v7083_v28  ;;  %7666 = vmatmul.msk.bf16.gmra.mxu0 %vm1311_vm0, %v7091_v12  ;;  %v8034_v31 = vld [vmem:[%s13725_s0 + $0x1d0] sm:$0xf0] }
 0x1c2   :  { %1973 = vmatmul.bf16.gmra.mxu3 %v7087_v60  ;;  %v7103_v6 = vor.u32 %v8034_v31, %v7102_v43  ;;  %v8037_v43 = vld [vmem:[%s13725_s0 + $0x1ec] sm:$0xf]  ;;  %v7130_v31 = vld [vmem:[%s13725_s0 + $0x1f0] sm:$0xf] }
 0x1c4   :  { %v1765_v52 = vpop.f32.mrf.mxu2 }
 0x1c5   :  { %v1934_v26 = vpop.f32.mrf.mxu3  ;;  %v1766_v47 = vadd.f32 %v1765_v52, %v8724_v61  ;;  %v7104_v61 = vld [vmem:[%s13725_s0 + $0x1d4] sm:$0xf0] }
 0x1c6   :  { %v2105_v10 = vpop.f32.mrf.mxu0  ;;  %v7107_v7 = vor.u32 %v8032_v19, %v7104_v61  ;;  %v8040_v19 = vld [vmem:[%s13725_s0 + $0x200] sm:$0xf0] }
 0x1c7   :  { %v1935_v55 = vadd.f32 %v1934_v26, %v1766_v47 }
 0x1c9   :  { %v9205_v23 = vadd.f32 %v2103_v9, %v1935_v55 }
 0x1cc   :  { %v1767_v37 = vpop.f32.mrf.mxu2 }
 0x1cd   :  { %v1936_v48 = vpop.f32.mrf.mxu3  ;;  %v1768_v17 = vadd.f32 %v1767_v37, %v8734_v5  ;;  %v7122_v5 = vld [vmem:[%s13725_s0 + $0x1e8] sm:$0xf] }
 0x1ce   :  { %v2108_v60 = vpop.f32.mrf.mxu0 }
 0x1cf   :  { %v1937_v28 = vadd.f32 %v1936_v48, %v1768_v17  ;;  %v7131_v17 = vor.u32 %v8040_v19, %v7130_v31 }
 0x1d1   :  { %v9226_v12 = vadd.f32 %v2105_v10, %v1937_v28  ;;  %1809 = vmatmul.bf16.gmra.mxu2 %v7103_v6  ;;  %7667 = vmatmul.msk.bf16.gmra.mxu0 %vm1311_vm0, %v7111_v11  ;;  %v8039_v10 = vld [vmem:[%s13725_s0 + $0x1f8] sm:$0xf0] }
 0x1d2   :  { %1978 = vmatmul.bf16.gmra.mxu3 %v7107_v7  ;;  %v7123_v37 = vor.u32 %v8039_v10, %v7122_v5  ;;  %v8042_v5 = vld [vmem:[%s13725_s0 + $0x214] sm:$0xf]  ;;  %v1609_v10 = vadd.f32 %v8809_v0, %v8807_v63 }
 0x1d3   :  { %13969 = vst [vmem:[#allocation33_spill] sm:$0xff] %v9226_v12 }
 0x1d4   :  { %v1770_v33 = vpop.f32.mrf.mxu2 }
 0x1d5   :  { %v1939_v9 = vpop.f32.mrf.mxu3  ;;  %v1771_v52 = vadd.f32 %v1770_v33, %v8765_v27  ;;  %v7124_v27 = vld [vmem:[%s13725_s0 + $0x1fc] sm:$0xf0] }
 0x1d6   :  { %v2110_v47 = vpop.f32.mrf.mxu0  ;;  %v7127_v48 = vor.u32 %v8037_v43, %v7124_v27  ;;  %v7150_v43 = vld [vmem:[%s13725_s0 + $0x218] sm:$0xf]  ;;  %v8045_v27 = vld [vmem:[%s13725_s0 + $0x228] sm:$0xf0] }
 0x1d7   :  { %v1940_v26 = vadd.f32 %v1939_v9, %v1771_v52 }
 0x1d9   :  { %v9230_v55 = vadd.f32 %v2108_v60, %v1940_v26 }
 0x1dc   :  { %v1772_v61 = vpop.f32.mrf.mxu2 }
 0x1dd   :  { %v1941_v62 = vpop.f32.mrf.mxu3  ;;  %v1773_v22 = vadd.f32 %v1772_v61, %v8769_v34  ;;  %v7142_v34 = vld [vmem:[%s13725_s0 + $0x210] sm:$0xf] }
 0x1de   :  { %v2113_v7 = vpop.f32.mrf.mxu0 }
 0x1df   :  { %v1942_v6 = vadd.f32 %v1941_v62, %v1773_v22 }
 0x1e1   :  { %v9251_v11 = vadd.f32 %v2110_v47, %v1942_v6  ;;  %1814 = vmatmul.bf16.gmra.mxu2 %v7123_v37  ;;  %7668 = vmatmul.msk.bf16.gmra.mxu0 %vm1311_vm0, %v7131_v17  ;;  %v8044_v47 = vld [vmem:[%s13725_s0 + $0x220] sm:$0xf0]  ;;  %v7151_v37 = vor.u32 %v8045_v27, %v7150_v43 }
 0x1e2   :  { %1983 = vmatmul.bf16.gmra.mxu3 %v7127_v48  ;;  %v7143_v62 = vor.u32 %v8044_v47, %v7142_v34  ;;  %v8047_v34 = vld [vmem:[%s13725_s0 + $0x23c] sm:$0xf]  ;;  %v1614_v47 = vadd.f32 %v8843_v32, %v8841_v29 }
 0x1e4   :  { %v1775_v28 = vpop.f32.mrf.mxu2 }
 0x1e5   :  { %v1944_v60 = vpop.f32.mrf.mxu3  ;;  %v1776_v33 = vadd.f32 %v1775_v28, %v8797_v56  ;;  %v7144_v56 = vld [vmem:[%s13725_s0 + $0x224] sm:$0xf0] }
 0x1e6   :  { %v2115_v52 = vpop.f32.mrf.mxu0  ;;  %v7147_v22 = vor.u32 %v8042_v5, %v7144_v56  ;;  %v7170_v5 = vld [vmem:[%s13725_s0 + $0x240] sm:$0xf]  ;;  %v8050_v56 = vld [vmem:[%s13725_s0 + $0x250] sm:$0xf0] }
 0x1e7   :  { %v1945_v9 = vadd.f32 %v1944_v60, %v1776_v33 }
 0x1e9   :  { %v9255_v26 = vadd.f32 %v2113_v7, %v1945_v9  ;;  %v7162_v9 = vld [vmem:[%s13725_s0 + $0x238] sm:$0xf] }
 0x1eb   :  { %13970 = vst [vmem:[#allocation34_spill] sm:$0xff] %v9255_v26 }
 0x1ec   :  { %v1777_v31 = vpop.f32.mrf.mxu2 }
 0x1ed   :  { %v1946_v19 = vpop.f32.mrf.mxu3  ;;  %v1778_v61 = vadd.f32 %v1777_v31, %v1609_v10 }
 0x1ee   :  { %v2118_v17 = vpop.f32.mrf.mxu0 }
 0x1ef   :  { %v1947_v48 = vadd.f32 %v1946_v19, %v1778_v61  ;;  %v7171_v61 = vor.u32 %v8050_v56, %v7170_v5 }
 0x1f1   :  { %v9277_v6 = vadd.f32 %v2115_v52, %v1947_v48  ;;  %1819 = vmatmul.bf16.gmra.mxu2 %v7143_v62  ;;  %7669 = vmatmul.msk.bf16.gmra.mxu0 %vm1311_vm0, %v7151_v37  ;;  %v8049_v52 = vld [vmem:[%s13725_s0 + $0x248] sm:$0xf0] }
 0x1f2   :  { %1988 = vmatmul.bf16.gmra.mxu3 %v7147_v22  ;;  %v7163_v31 = vor.u32 %v8049_v52, %v7162_v9  ;;  %v1619_v9 = vadd.f32 %v8877_v3, %v8875_v1  ;;  %v7190_v52 = vld [vmem:[%s13725_s0 + $0x268] sm:$0xf] }
 0x1f4   :  { %v1780_v63 = vpop.f32.mrf.mxu2 }
 0x1f5   :  { %v1949_v0 = vpop.f32.mrf.mxu3  ;;  %v1781_v7 = vadd.f32 %v1780_v63, %v8837_v24  ;;  %v7164_v24 = vld [vmem:[%s13725_s0 + $0x24c] sm:$0xf0] }
 0x1f6   :  { %v2120_v60 = vpop.f32.mrf.mxu0  ;;  %v7167_v19 = vor.u32 %v8047_v34, %v7164_v24  ;;  %v8055_v34 = vld [vmem:[%s13725_s0 + $0x278] sm:$0xf0] }
 0x1f7   :  { %v1950_v28 = vadd.f32 %v1949_v0, %v1781_v7  ;;  %v7182_v7 = vld [vmem:[%s13725_s0 + $0x260] sm:$0xf] }
 0x1f9   :  { %v9281_v33 = vadd.f32 %v2118_v17, %v1950_v28  ;;  %v8054_v28 = vld [vmem:[%s13725_s0 + $0x270] sm:$0xf0] }
 0x1fa   :  { %v7183_v56 = vor.u32 %v8054_v28, %v7182_v7  ;;  %v7210_v7 = vld [vmem:[%s13725_s0 + $0x290] sm:$0xf]  ;;  %v8060_v28 = vld [vmem:[%s13725_s0 + $0x2a0] sm:$0xf0] }
 0x1fc   :  { %v1782_v10 = vpop.f32.mrf.mxu2 }
 0x1fd   :  { %v1951_v43 = vpop.f32.mrf.mxu3  ;;  %v1783_v27 = vadd.f32 %v1782_v10, %v1614_v47 }
 0x1fe   :  { %v2123_v22 = vpop.f32.mrf.mxu0 }
 0x1ff   :  { %v1952_v62 = vadd.f32 %v1951_v43, %v1783_v27  ;;  %v7191_v43 = vor.u32 %v8055_v34, %v7190_v52 }
 0x201   :  { %v9303_v37 = vadd.f32 %v2120_v60, %v1952_v62  ;;  %1824 = vmatmul.bf16.gmra.mxu2 %v7163_v31  ;;  %7670 = vmatmul.msk.bf16.gmra.mxu0 %vm1311_vm0, %v7171_v61  ;;  %v8052_v60 = vld [vmem:[%s13725_s0 + $0x264] sm:$0xf] }
 0x202   :  { %1993 = vmatmul.bf16.gmra.mxu3 %v7167_v19 }
 0x203   :  { %13971 = vst [vmem:[#allocation35_spill] sm:$0xff] %v9303_v37 }
 0x204   :  { %v1785_v29 = vpop.f32.mrf.mxu2 }
 0x205   :  { %v1954_v32 = vpop.f32.mrf.mxu3  ;;  %v1786_v48 = vadd.f32 %v1785_v29, %v8871_v57  ;;  %v7184_v57 = vld [vmem:[%s13725_s0 + $0x274] sm:$0xf0] }
 0x206   :  { %v2125_v63 = vpop.f32.mrf.mxu0  ;;  %v7187_v10 = vor.u32 %v8052_v60, %v7184_v57 }
 0x207   :  { %v1955_v17 = vadd.f32 %v1954_v32, %v1786_v48  ;;  %v7202_v32 = vld [vmem:[%s13725_s0 + $0x288] sm:$0xf]  ;;  %v8059_v48 = vld [vmem:[%s13725_s0 + $0x298] sm:$0xf0] }
 0x208   :  { %v7203_v52 = vor.u32 %v8059_v48, %v7202_v32  ;;  %v8065_v32 = vld [vmem:[%s13725_s0 + $0x2c8] sm:$0xf0] }
 0x209   :  { %v9307_v0 = vadd.f32 %v2123_v22, %v1955_v17  ;;  %v8057_v17 = vld [vmem:[%s13725_s0 + $0x28c] sm:$0xf] }
 0x20b   :  { %13972 = vst [vmem:[#allocation36_spill] sm:$0xff] %v9307_v0 }
 0x20c   :  { %v1787_v24 = vpop.f32.mrf.mxu2 }
 0x20d   :  { %v1956_v47 = vpop.f32.mrf.mxu3  ;;  %v1788_v5 = vadd.f32 %v1787_v24, %v1619_v9  ;;  %v7211_v24 = vor.u32 %v8060_v28, %v7210_v7 }
 0x20e   :  { %v2128_v31 = vpop.f32.mrf.mxu0 }
 0x20f   :  { %v1957_v27 = vadd.f32 %v1956_v47, %v1788_v5 }
 0x211   :  { %v9329_v19 = vadd.f32 %v2125_v63, %v1957_v27  ;;  %1829 = vmatmul.bf16.gmra.mxu2 %v7183_v56  ;;  %7671 = vmatmul.msk.bf16.gmra.mxu0 %vm1311_vm0, %v7191_v43  ;;  %v1624_v63 = vadd.f32 %v8911_v42, %v8909_v41 }
 0x212   :  { %1998 = vmatmul.bf16.gmra.mxu3 %v7187_v10 }
 0x213   :  { %13973 = vst [vmem:[#allocation37_spill] sm:$0xff] %v9329_v19 }
 0x214   :  { %v1790_v1 = vpop.f32.mrf.mxu2 }
 0x215   :  { %v1959_v3 = vpop.f32.mrf.mxu3  ;;  %v1791_v61 = vadd.f32 %v1790_v1, %v8905_v35  ;;  %v7204_v35 = vld [vmem:[%s13725_s0 + $0x29c] sm:$0xf0]  ;;  %v7222_v1 = vld [vmem:[%s13725_s0 + $0x2b0] sm:$0xf] }
 0x216   :  { %v2130_v22 = vpop.f32.mrf.mxu0  ;;  %v7207_v34 = vor.u32 %v8057_v17, %v7204_v35 }
 0x217   :  { %v1960_v62 = vadd.f32 %v1959_v3, %v1791_v61  ;;  %v8064_v3 = vld [vmem:[%s13725_s0 + $0x2c0] sm:$0xf0]  ;;  %v8062_v61 = vld [vmem:[%s13725_s0 + $0x2b4] sm:$0xf] }
 0x219   :  { %v9333_v29 = vadd.f32 %v2128_v31, %v1960_v62  ;;  %v1629_v62 = vadd.f32 %v8940_v15, %v8938_v13  ;;  %v1638_v13 = vpop.f32.mrf.mxu1 }
 0x21c   :  { %v1792_v60 = vpop.f32.mrf.mxu2 }
 0x21d   :  { %v1961_v57 = vpop.f32.mrf.mxu3  ;;  %v1793_v9 = vadd.f32 %v1792_v60, %v1624_v63  ;;  %v7223_v63 = vor.u32 %v8064_v3, %v7222_v1  ;;  %v8070_v1 = vld [vmem:[%s13725_s0 + $0x2f0] sm:$0xf0] }
 0x21e   :  { %v2133_v5 = vpop.f32.mrf.mxu0 }
 0x21f   :  { %v1962_v47 = vadd.f32 %v1961_v57, %v1793_v9 }
 0x221   :  { %v9355_v56 = vadd.f32 %v2130_v22, %v1962_v47  ;;  %1834 = vmatmul.bf16.gmra.mxu2 %v7203_v52  ;;  %7672 = vmatmul.msk.bf16.gmra.mxu0 %vm1311_vm0, %v7211_v24  ;;  %v7230_v22 = vld [vmem:[%s13725_s0 + $0x2b8] sm:$0xf] }
 0x222   :  { %2003 = vmatmul.bf16.gmra.mxu3 %v7207_v34  ;;  %v7231_v28 = vor.u32 %v8065_v32, %v7230_v22 }
 0x224   :  { %v1795_v41 = vpop.f32.mrf.mxu2 }
 0x225   :  { %v1964_v42 = vpop.f32.mrf.mxu3  ;;  %v1796_v10 = vadd.f32 %v1795_v41, %v8933_v8  ;;  %v7224_v8 = vld [vmem:[%s13725_s0 + $0x2c4] sm:$0xf0]  ;;  %v7242_v41 = vld [vmem:[%s13725_s0 + $0x2d8] sm:$0xf] }
 0x226   :  { %v2135_v27 = vpop.f32.mrf.mxu0  ;;  %v7227_v7 = vor.u32 %v8062_v61, %v7224_v8  ;;  %v1641_v8 = vpop.f32.mrf.mxu1 }
 0x227   :  { %v1965_v43 = vadd.f32 %v1964_v42, %v1796_v10  ;;  %v8069_v42 = vld [vmem:[%s13725_s0 + $0x2e8] sm:$0xf0]  ;;  %v8067_v10 = vld [vmem:[%s13725_s0 + $0x2dc] sm:$0xf] }
 0x228   :  { %v7243_v22 = vor.u32 %v8069_v42, %v7242_v41  ;;  %v7270_v41 = vld [vmem:[%s13725_s0 + $0x308] sm:$0xf]  ;;  %v8075_v42 = vld [vmem:[%s13725_s0 + $0x318] sm:$0xf0] }
 0x229   :  { %v9359_v31 = vadd.f32 %v2133_v5, %v1965_v43  ;;  %v1634_v43 = vadd.f32 %v8969_v4, %v8967_v59 }
 0x22b   :  { %13974 = vst [vmem:[#allocation38_spill] sm:$0xff] %v9359_v31 }
 0x22c   :  { %v1797_v48 = vpop.f32.mrf.mxu2 }
 0x22d   :  { %v1966_v17 = vpop.f32.mrf.mxu3  ;;  %v1798_v35 = vadd.f32 %v1797_v48, %v1629_v62 }
 0x22e   :  { %v2138_v57 = vpop.f32.mrf.mxu0 }
 0x22f   :  { %v1967_v60 = vadd.f32 %v1966_v17, %v1798_v35 }
 0x231   :  { %v9381_v9 = vadd.f32 %v2135_v27, %v1967_v60  ;;  %1839 = vmatmul.bf16.gmra.mxu2 %v7223_v63  ;;  %7673 = vmatmul.msk.bf16.gmra.mxu0 %vm1311_vm0, %v7231_v28  ;;  %v7250_v27 = vld [vmem:[%s13725_s0 + $0x2e0] sm:$0xf]  ;;  %v1643_v28 = vpop.f32.mrf.mxu1 }
 0x232   :  { %2008 = vmatmul.bf16.gmra.mxu3 %v7227_v7  ;;  %v7251_v48 = vor.u32 %v8070_v1, %v7250_v27 }
 0x234   :  { %v1800_v15 = vpop.f32.mrf.mxu2 }
 0x235   :  { %v1969_v52 = vpop.f32.mrf.mxu3  ;;  %v1801_v34 = vadd.f32 %v1800_v15, %v8962_v51  ;;  %v7244_v51 = vld [vmem:[%s13725_s0 + $0x2ec] sm:$0xf0] }
 0x236   :  { %v2140_v47 = vpop.f32.mrf.mxu0  ;;  %v7247_v32 = vor.u32 %v8067_v10, %v7244_v51 }
 0x237   :  { %v1970_v24 = vadd.f32 %v1969_v52, %v1801_v34  ;;  %v7262_v52 = vld [vmem:[%s13725_s0 + $0x300] sm:$0xf]  ;;  %v8074_v34 = vld [vmem:[%s13725_s0 + $0x310] sm:$0xf0] }
 0x238   :  { %v7263_v27 = vor.u32 %v8074_v34, %v7262_v52  ;;  %v7290_v34 = vld [vmem:[%s13725_s0 + $0x330] sm:$0xf] }
 0x239   :  { %v9385_v5 = vadd.f32 %v2138_v57, %v1970_v24  ;;  %v8072_v24 = vld [vmem:[%s13725_s0 + $0x304] sm:$0xf] }
 0x23c   :  { %v1802_v3 = vpop.f32.mrf.mxu2 }
 0x23d   :  { %v1971_v61 = vpop.f32.mrf.mxu3  ;;  %v1803_v62 = vadd.f32 %v1802_v3, %v1634_v43  ;;  %v7271_v3 = vor.u32 %v8075_v42, %v7270_v41 }
 0x23e   :  { %v2143_v35 = vpop.f32.mrf.mxu0 }
 0x23f   :  { %v1972_v17 = vadd.f32 %v1971_v61, %v1803_v62 }
 0x241   :  { %v9407_v63 = vadd.f32 %v2140_v47, %v1972_v17  ;;  %1844 = vmatmul.bf16.gmra.mxu2 %v7243_v22  ;;  %7674 = vmatmul.msk.bf16.gmra.mxu0 %vm1311_vm0, %v7251_v48  ;;  %v1639_v47 = vadd.f32 %v1638_v13, %v8996_v53  ;;  %v1646_v22 = vpop.f32.mrf.mxu1  ;;  %v1642_v53 = vadd.f32 %v1641_v8, %v9018_v45  ;;  %v7284_v45 = vld [vmem:[%s13725_s0 + $0x33c] sm:$0xf0] }
 0x242   :  { %2013 = vmatmul.bf16.gmra.mxu3 %v7247_v32  ;;  %v1644_v8 = vadd.f32 %v1643_v28, %v9023_v38  ;;  %v1647_v38 = vadd.f32 %v1646_v22, %v9045_v50  ;;  %v8082_v50 = vld [vmem:[%s13725_s0 + $0x354] sm:$0xf]  ;;  %v7304_v22 = vld [vmem:[%s13725_s0 + $0x364] sm:$0xf0] }
 0x244   :  { %v1805_v59 = vpop.f32.mrf.mxu2 }
 0x245   :  { %v1974_v4 = vpop.f32.mrf.mxu3  ;;  %v1806_v7 = vadd.f32 %v1805_v59, %v8991_v46  ;;  %v7264_v46 = vld [vmem:[%s13725_s0 + $0x314] sm:$0xf0] }
 0x246   :  { %v2145_v57 = vpop.f32.mrf.mxu0  ;;  %v7267_v1 = vor.u32 %v8072_v24, %v7264_v46  ;;  %v8080_v24 = vld [vmem:[%s13725_s0 + $0x340] sm:$0xf0] }
 0x247   :  { %v1975_v60 = vadd.f32 %v1974_v4, %v1806_v7  ;;  %v7282_v7 = vld [vmem:[%s13725_s0 + $0x328] sm:$0xf] }
 0x249   :  { %v9411_v15 = vadd.f32 %v2143_v35, %v1975_v60  ;;  %v8079_v60 = vld [vmem:[%s13725_s0 + $0x338] sm:$0xf0]  ;;  %v1648_v52 = vpop.f32.mrf.mxu1 }
 0x24a   :  { %v7283_v42 = vor.u32 %v8079_v60, %v7282_v7  ;;  %v7310_v7 = vld [vmem:[%s13725_s0 + $0x358] sm:$0xf]  ;;  %v8085_v60 = vld [vmem:[%s13725_s0 + $0x368] sm:$0xf0] }
 0x24b   :  { %13975 = vst [vmem:[#allocation39_spill] sm:$0xff] %v9411_v15 }
 0x24c   :  { %v1807_v10 = vpop.f32.mrf.mxu2 }
 0x24d   :  { %v1976_v51 = vpop.f32.mrf.mxu3  ;;  %v1808_v43 = vadd.f32 %v1807_v10, %v1639_v47 }
 0x24e   :  { %v2148_v62 = vpop.f32.mrf.mxu0 }
 0x24f   :  { %v1977_v61 = vadd.f32 %v1976_v51, %v1808_v43  ;;  %v7291_v51 = vor.u32 %v8080_v24, %v7290_v34  ;;  %v7307_v24 = vor.u32 %v8082_v50, %v7304_v22 }
 0x251   :  { %v9432_v32 = vadd.f32 %v2145_v57, %v1977_v61  ;;  %1849 = vmatmul.bf16.gmra.mxu2 %v7263_v27  ;;  %7675 = vmatmul.msk.bf16.gmra.mxu0 %vm1311_vm0, %v7271_v3  ;;  %v8077_v57 = vld [vmem:[%s13725_s0 + $0x32c] sm:$0xf]  ;;  %v1651_v61 = vpop.f32.mrf.mxu1 }
 0x252   :  { %2018 = vmatmul.bf16.gmra.mxu3 %v7267_v1  ;;  %v7287_v10 = vor.u32 %v8077_v57, %v7284_v45 }
 0x253   :  { %13976 = vst [vmem:[#allocation40_spill] sm:$0xff] %v9432_v32 }
 0x254   :  { %v1810_v13 = vpop.f32.mrf.mxu2 }
 0x255   :  { %v1979_v48 = vpop.f32.mrf.mxu3  ;;  %v1811_v17 = vadd.f32 %v1810_v13, %v1642_v53 }
 0x256   :  { %v2150_v59 = vpop.f32.mrf.mxu0 }
 0x257   :  { %v1980_v35 = vadd.f32 %v1979_v48, %v1811_v17  ;;  %v7302_v17 = vld [vmem:[%s13725_s0 + $0x350] sm:$0xf] }
 0x259   :  { %v9436_v4 = vadd.f32 %v2148_v62, %v1980_v35  ;;  %v8084_v35 = vld [vmem:[%s13725_s0 + $0x360] sm:$0xf0] }
 0x25a   :  { %v7303_v34 = vor.u32 %v8084_v35, %v7302_v17  ;;  %v7330_v17 = vld [vmem:[%s13725_s0 + $0x380] sm:$0xf]  ;;  %v8090_v35 = vld [vmem:[%s13725_s0 + $0x390] sm:$0xf0] }
 0x25b   :  { %13977 = vst [vmem:[#allocation41_spill] sm:$0xff] %v9436_v4 }
 0x25c   :  { %v1812_v46 = vpop.f32.mrf.mxu2 }
 0x25d   :  { %v1981_v47 = vpop.f32.mrf.mxu3  ;;  %v1813_v41 = vadd.f32 %v1812_v46, %v1644_v8  ;;  %v7311_v46 = vor.u32 %v8085_v60, %v7310_v7 }
 0x25e   :  { %v2153_v27 = vpop.f32.mrf.mxu0 }
 0x25f   :  { %v1982_v43 = vadd.f32 %v1981_v47, %v1813_v41  ;;  %v1653_v47 = vpop.f32.mrf.mxu1 }
 0x261   :  { %v9457_v1 = vadd.f32 %v2150_v59, %v1982_v43  ;;  %1854 = vmatmul.bf16.gmra.mxu2 %v7283_v42  ;;  %7676 = vmatmul.msk.bf16.gmra.mxu0 %vm1311_vm0, %v7291_v51  ;;  %v1649_v59 = vadd.f32 %v1648_v52, %v9050_v18  ;;  %v1652_v18 = vadd.f32 %v1651_v61, %v9072_v49  ;;  %v8087_v49 = vld [vmem:[%s13725_s0 + $0x37c] sm:$0xf]  ;;  %v7324_v61 = vld [vmem:[%s13725_s0 + $0x38c] sm:$0xf0] }
 0x262   :  { %2023 = vmatmul.bf16.gmra.mxu3 %v7287_v10  ;;  %v7327_v60 = vor.u32 %v8087_v49, %v7324_v61 }
 0x263   :  { %13978 = vst [vmem:[#allocation42_spill] sm:$0xff] %v9457_v1 }
 0x264   :  { %v1815_v28 = vpop.f32.mrf.mxu2 }
 0x265   :  { %v1984_v3 = vpop.f32.mrf.mxu3  ;;  %v1816_v62 = vadd.f32 %v1815_v28, %v1647_v38 }
 0x266   :  { %v2155_v13 = vpop.f32.mrf.mxu0 }
 0x267   :  { %v1985_v53 = vadd.f32 %v1984_v3, %v1816_v62  ;;  %v1656_v28 = vpop.f32.mrf.mxu1  ;;  %v7322_v62 = vld [vmem:[%s13725_s0 + $0x378] sm:$0xf] }
 0x269   :  { %v9461_v48 = vadd.f32 %v2153_v27, %v1985_v53  ;;  %v8089_v53 = vld [vmem:[%s13725_s0 + $0x388] sm:$0xf0] }
 0x26a   :  { %v7323_v7 = vor.u32 %v8089_v53, %v7322_v62  ;;  %v8095_v62 = vld [vmem:[%s13725_s0 + $0x3b8] sm:$0xf0] }
 0x26b   :  { %13979 = vst [vmem:[#allocation43_spill] sm:$0xff] %v9461_v48 }
 0x26c   :  { %v1817_v57 = vpop.f32.mrf.mxu2 }
 0x26d   :  { %v1986_v45 = vpop.f32.mrf.mxu3  ;;  %v1818_v8 = vadd.f32 %v1817_v57, %v1649_v59  ;;  %v7331_v57 = vor.u32 %v8090_v35, %v7330_v17 }
 0x26e   :  { %v2158_v42 = vpop.f32.mrf.mxu0 }
 0x26f   :  { %v1987_v41 = vadd.f32 %v1986_v45, %v1818_v8 }
 0x271   :  { %v9482_v10 = vadd.f32 %v2155_v13, %v1987_v41  ;;  %1859 = vmatmul.bf16.gmra.mxu2 %v7303_v34  ;;  %7677 = vmatmul.msk.bf16.gmra.mxu0 %vm1311_vm0, %v7311_v46  ;;  %v1654_v13 = vadd.f32 %v1653_v47, %v9077_v14  ;;  %v1657_v14 = vadd.f32 %v1656_v28, %v9099_v44  ;;  %v8092_v44 = vld [vmem:[%s13725_s0 + $0x3a4] sm:$0xf]  ;;  %v7350_v28 = vld [vmem:[%s13725_s0 + $0x3a8] sm:$0xf] }
 0x272   :  { %2028 = vmatmul.bf16.gmra.mxu3 %v7307_v24  ;;  %v1658_v24 = vpop.f32.mrf.mxu1 }
 0x273   :  { %13980 = vst [vmem:[#allocation44_spill] sm:$0xff] %v9482_v10 }
 0x274   :  { %v1820_v52 = vpop.f32.mrf.mxu2 }
 0x275   :  { %v1989_v51 = vpop.f32.mrf.mxu3  ;;  %v1821_v43 = vadd.f32 %v1820_v52, %v1652_v18 }
 0x276   :  { %v2160_v38 = vpop.f32.mrf.mxu0 }
 0x277   :  { %v1990_v27 = vadd.f32 %v1989_v51, %v1821_v43  ;;  %v7342_v51 = vld [vmem:[%s13725_s0 + $0x3a0] sm:$0xf]  ;;  %v8094_v43 = vld [vmem:[%s13725_s0 + $0x3b0] sm:$0xf0] }
 0x279   :  { %v9486_v3 = vadd.f32 %v2158_v42, %v1990_v27  ;;  %v7344_v27 = vld [vmem:[%s13725_s0 + $0x3b4] sm:$0xf0] }
 0x27a   :  { %v7347_v17 = vor.u32 %v8092_v44, %v7344_v27  ;;  %v1661_v35 = vpop.f32.mrf.mxu1 }
 0x27c   :  { %v1822_v50 = vpop.f32.mrf.mxu2 }
 0x27d   :  { %v1991_v22 = vpop.f32.mrf.mxu3  ;;  %v1823_v59 = vadd.f32 %v1822_v50, %v1654_v13  ;;  %v7343_v13 = vor.u32 %v8094_v43, %v7342_v51  ;;  %v7351_v50 = vor.u32 %v8095_v62, %v7350_v28  ;;  %v7370_v51 = vld [vmem:[%s13725_s0 + $0x3d0] sm:$0xf]  ;;  %v8100_v43 = vld [vmem:[%s13725_s0 + $0x3e0] sm:$0xf0] }
 0x27e   :  { %v2163_v8 = vpop.f32.mrf.mxu0 }
 0x27f   :  { %v1992_v45 = vadd.f32 %v1991_v22, %v1823_v59 }
 0x281   :  { %v9507_v34 = vadd.f32 %v2160_v38, %v1992_v45  ;;  %1864 = vmatmul.bf16.gmra.mxu2 %v7323_v7  ;;  %7678 = vmatmul.msk.bf16.gmra.mxu0 %vm1311_vm0, %v7331_v57  ;;  %v1659_v38 = vadd.f32 %v1658_v24, %v9104_v58  ;;  %v1662_v58 = vadd.f32 %v1661_v35, %v9126_v36  ;;  %v8097_v36 = vld [vmem:[%s13725_s0 + $0x3cc] sm:$0xf] }
 0x282   :  { %2033 = vmatmul.bf16.gmra.mxu3 %v7327_v60  ;;  %v1663_v24 = vpop.f32.mrf.mxu1 }
 0x284   :  { %v1825_v46 = vpop.f32.mrf.mxu2 }
 0x285   :  { %v1994_v47 = vpop.f32.mrf.mxu3  ;;  %v1826_v41 = vadd.f32 %v1825_v46, %v1657_v14 }
 0x286   :  { %v2165_v18 = vpop.f32.mrf.mxu0 }
 0x287   :  { %v1995_v42 = vadd.f32 %v1994_v47, %v1826_v41  ;;  %v7362_v47 = vld [vmem:[%s13725_s0 + $0x3c8] sm:$0xf]  ;;  %v8099_v41 = vld [vmem:[%s13725_s0 + $0x3d8] sm:$0xf0] }
 0x288   :  { %v7363_v28 = vor.u32 %v8099_v41, %v7362_v47 }
 0x289   :  { %v9511_v52 = vadd.f32 %v2163_v8, %v1995_v42  ;;  %v7364_v42 = vld [vmem:[%s13725_s0 + $0x3dc] sm:$0xf0] }
 0x28a   :  { %v7367_v62 = vor.u32 %v8097_v36, %v7364_v42 }
 0x28c   :  { %v1827_v53 = vpop.f32.mrf.mxu2 }
 0x28d   :  { %v1996_v49 = vpop.f32.mrf.mxu3  ;;  %v1828_v61 = vadd.f32 %v1827_v53, %v1659_v38  ;;  %v7371_v53 = vor.u32 %v8100_v43, %v7370_v51 }
 0x28e   :  { %v2168_v59 = vpop.f32.mrf.mxu0 }
 0x28f   :  { %v1997_v22 = vadd.f32 %v1996_v49, %v1828_v61 }
 0x291   :  { %v9532_v7 = vadd.f32 %v2165_v18, %v1997_v22  ;;  %1869 = vmatmul.bf16.gmra.mxu2 %v7343_v13  ;;  %7679 = vmatmul.msk.bf16.gmra.mxu0 %vm1311_vm0, %v7351_v50  ;;  %v1664_v18 = vadd.f32 %v1663_v24, %v9131_v39 }
 0x292   :  { %2038 = vmatmul.bf16.gmra.mxu3 %v7347_v17 }
 0x294   :  { %v1830_v60 = vpop.f32.mrf.mxu2 }
 0x295   :  { %v1999_v57 = vpop.f32.mrf.mxu3  ;;  %v1831_v45 = vadd.f32 %v1830_v60, %v1662_v58  ;;  %v7382_v58 = vld [vmem:[%s13725_s0 + $0x3f0] sm:$0xf]  ;;  %v8104_v60 = vld [vmem:[%s13725_s0 + $0x400] sm:$0xf0] }
 0x296   :  { %v2170_v14 = vpop.f32.mrf.mxu0  ;;  %v7383_v41 = vor.u32 %v8104_v60, %v7382_v58 }
 0x297   :  { %v2000_v8 = vadd.f32 %v1999_v57, %v1831_v45  ;;  %v8102_v57 = vld [vmem:[%s13725_s0 + $0x3f4] sm:$0xf]  ;;  %v7390_v45 = vld [vmem:[%s13725_s0 + $0x3f8] sm:$0xf] }
 0x299   :  { %v9536_v46 = vadd.f32 %v2168_v59, %v2000_v8  ;;  %v8105_v8 = vld [vmem:[%s13725_s0 + $0x408] sm:$0xf0] }
 0x29a   :  { %v7391_v42 = vor.u32 %v8105_v8, %v7390_v45 }
 0x29b   :  { %13981 = vst [vmem:[#allocation45_spill] sm:$0xff] %v9536_v46 }
 0x29c   :  { %v1832_v44 = vpop.f32.mrf.mxu2 }
 0x29d   :  { %v2001_v27 = vpop.f32.mrf.mxu3  ;;  %v1833_v38 = vadd.f32 %v1832_v44, %v1664_v18 }
 0x29e   :  { %v2173_v61 = vpop.f32.mrf.mxu0 }
 0x29f   :  { %v2002_v49 = vadd.f32 %v2001_v27, %v1833_v38 }
 0x2a1   :  { %v9557_v13 = vadd.f32 %v2170_v14, %v2002_v49  ;;  %1874 = vmatmul.bf16.gmra.mxu2 %v7363_v28  ;;  %7680 = vmatmul.msk.bf16.gmra.mxu0 %vm1311_vm0, %v7371_v53  ;;  %v8109_v49 = vld [vmem:[%s13725_s0 + $0x428] sm:$0xf0] }
 0x2a2   :  { %2043 = vmatmul.bf16.gmra.mxu3 %v7367_v62 }
 0x2a4   :  { %v1835_v39 = vpop.f32.mrf.mxu2 }
 0x2a5   :  { %v2004_v17 = vpop.f32.mrf.mxu3  ;;  %v1836_v35 = vadd.f32 %v1835_v39, %v8662_v16  ;;  %v7384_v16 = vld [vmem:[%s13725_s0 + $0x404] sm:$0xf0]  ;;  %v7410_v39 = vld [vmem:[%s13725_s0 + $0x420] sm:$0xf] }
 0x2a6   :  { %v2175_v22 = vpop.f32.mrf.mxu0  ;;  %v7387_v36 = vor.u32 %v8102_v57, %v7384_v16 }
 0x2a7   :  { %v2005_v50 = vadd.f32 %v2004_v17, %v1836_v35  ;;  %v8110_v17 = vld [vmem:[%s13725_s0 + $0x430] sm:$0xf0] }
 0x2a8   :  { %v7411_v57 = vor.u32 %v8110_v17, %v7410_v39 }
 0x2a9   :  { %v9561_v59 = vadd.f32 %v2173_v61, %v2005_v50  ;;  %v8107_v61 = vld [vmem:[%s13725_s0 + $0x41c] sm:$0xf] }
 0x2ab   :  { %13982 = vst [vmem:[#allocation46_spill] sm:$0xff] %v9561_v59 }
 0x2ac   :  { %v1837_v14 = vpop.f32.mrf.mxu2 }
 0x2ad   :  { %v2006_v24 = vpop.f32.mrf.mxu3  ;;  %v1838_v47 = vadd.f32 %v1837_v14, %v8690_v30  ;;  %v7402_v30 = vld [vmem:[%s13725_s0 + $0x418] sm:$0xf] }
 0x2ae   :  { %v2178_v51 = vpop.f32.mrf.mxu0  ;;  %v7403_v58 = vor.u32 %v8109_v49, %v7402_v30 }
 0x2af   :  { %v2007_v18 = vadd.f32 %v2006_v24, %v1838_v47 }
 0x2b1   :  { %v9582_v43 = vadd.f32 %v2175_v22, %v2007_v18  ;;  %1879 = vmatmul.bf16.gmra.mxu2 %v7383_v41  ;;  %7681 = vmatmul.msk.bf16.gmra.mxu0 %vm1311_vm0, %v7391_v42  ;;  %v8114_v18 = vld [vmem:[%s13725_s0 + $0x450] sm:$0xf0] }
 0x2b2   :  { %2048 = vmatmul.bf16.gmra.mxu3 %v7387_v36 }
 0x2b3   :  { %13983 = vst [vmem:[#allocation47_spill] sm:$0xff] %v9582_v43 }
 0x2b4   :  { %v1840_v44 = vpop.f32.mrf.mxu2 }
 0x2b5   :  { %v2009_v27 = vpop.f32.mrf.mxu3  ;;  %v1841_v38 = vadd.f32 %v1840_v44, %v8694_v40  ;;  %v7404_v40 = vld [vmem:[%s13725_s0 + $0x42c] sm:$0xf0]  ;;  %v7430_v44 = vld [vmem:[%s13725_s0 + $0x448] sm:$0xf] }
 0x2b6   :  { %v2180_v62 = vpop.f32.mrf.mxu0  ;;  %v7407_v60 = vor.u32 %v8107_v61, %v7404_v40 }
 0x2b7   :  { %v2010_v28 = vadd.f32 %v2009_v27, %v1841_v38  ;;  %v8115_v27 = vld [vmem:[%s13725_s0 + $0x458] sm:$0xf0] }
 0x2b8   :  { %v7431_v40 = vor.u32 %v8115_v27, %v7430_v44 }
 0x2b9   :  { %v9586_v53 = vadd.f32 %v2178_v51, %v2010_v28  ;;  %v8112_v51 = vld [vmem:[%s13725_s0 + $0x444] sm:$0xf] }
 0x2bb   :  { %13984 = vst [vmem:[#allocation48_spill] sm:$0xff] %v9586_v53 }
 0x2bc   :  { %v1842_v35 = vpop.f32.mrf.mxu2 }
 0x2bd   :  { %v2011_v50 = vpop.f32.mrf.mxu3  ;;  %v1843_v22 = vadd.f32 %v1842_v35, %v8722_v54  ;;  %v7422_v54 = vld [vmem:[%s13725_s0 + $0x440] sm:$0xf] }
 0x2be   :  { %v2183_v45 = vpop.f32.mrf.mxu0  ;;  %v7423_v49 = vor.u32 %v8114_v18, %v7422_v54  ;;  %v8120_v54 = vld [vmem:[%s13725_s0 + $0x480] sm:$0xf0] }
 0x2bf   :  { %v2012_v16 = vadd.f32 %v2011_v50, %v1843_v22 }
 0x2c1   :  { %v9607_v8 = vadd.f32 %v2180_v62, %v2012_v16  ;;  %1884 = vmatmul.bf16.gmra.mxu2 %v7403_v58  ;;  %7682 = vmatmul.msk.bf16.gmra.mxu0 %vm1311_vm0, %v7411_v57  ;;  %v13987_v62 = vld [vmem:[#allocation5_spill] sm:$0xff]  ;;  %v13988_v58 = vld [vmem:[#allocation6_spill] sm:$0xff] }
 0x2c2   :  { %2053 = vmatmul.bf16.gmra.mxu3 %v7407_v60 }
 0x2c3   :  { %13985 = vst [vmem:[#allocation49_spill] sm:$0xff] %v9607_v8 }
 0x2c4   :  { %v1845_v14 = vpop.f32.mrf.mxu2 }
 0x2c5   :  { %v2014_v24 = vpop.f32.mrf.mxu3  ;;  %v1846_v47 = vadd.f32 %v1845_v14, %v8732_v2  ;;  %v7424_v2 = vld [vmem:[%s13725_s0 + $0x454] sm:$0xf0]  ;;  %v7442_v14 = vld [vmem:[%s13725_s0 + $0x468] sm:$0xf] }
 0x2c6   :  { %v2185_v36 = vpop.f32.mrf.mxu0  ;;  %v7427_v61 = vor.u32 %v8112_v51, %v7424_v2  ;;  %v13990_v2 = vld [vmem:[#allocation7_spill] sm:$0xff] }
 0x2c7   :  { %v2015_v41 = vadd.f32 %v2014_v24, %v1846_v47  ;;  %v8119_v24 = vld [vmem:[%s13725_s0 + $0x478] sm:$0xf0]  ;;  %v8117_v47 = vld [vmem:[%s13725_s0 + $0x46c] sm:$0xf] }
 0x2c8   :  { %v7443_v27 = vor.u32 %v8119_v24, %v7442_v14  ;;  %v7464_v14 = vld [vmem:[%s13725_s0 + $0x4a4] sm:$0xf0]  ;;  %v7470_v24 = vld [vmem:[%s13725_s0 + $0x498] sm:$0xf] }
 0x2c9   :  { %v9611_v42 = vadd.f32 %v2183_v45, %v2015_v41  ;;  %v7444_v41 = vld [vmem:[%s13725_s0 + $0x47c] sm:$0xf0] }
 0x2cb   :  { %13986 = vst [vmem:[#allocation50_spill] sm:$0xff] %v9611_v42 }
 0x2cc   :  { %v1847_v38 = vpop.f32.mrf.mxu2 }
 0x2cd   :  { %v2016_v28 = vpop.f32.mrf.mxu3  ;;  %v1848_v30 = vadd.f32 %v1847_v38, %v13987_v62  ;;  %v7447_v38 = vor.u32 %v8117_v47, %v7444_v41  ;;  %v8125_v47 = vld [vmem:[%s13725_s0 + $0x4a8] sm:$0xf0] }
 0x2ce   :  { %v2188_v17 = vpop.f32.mrf.mxu0 }
 0x2cf   :  { %v2017_v39 = vadd.f32 %v2016_v28, %v1848_v30 }
 0x2d1   :  { %v9632_v35 = vadd.f32 %v2185_v36, %v2017_v39  ;;  %1889 = vmatmul.bf16.gmra.mxu2 %v7423_v49  ;;  %7683 = vmatmul.msk.bf16.gmra.mxu0 %vm1311_vm0, %v7431_v40  ;;  %v7450_v36 = vld [vmem:[%s13725_s0 + $0x470] sm:$0xf]  ;;  %v13992_v39 = vld [vmem:[#allocation8_spill] sm:$0xff] }
 0x2d2   :  { %2058 = vmatmul.bf16.gmra.mxu3 %v7427_v61  ;;  %v7451_v28 = vor.u32 %v8120_v54, %v7450_v36 }
 0x2d4   :  { %v1850_v50 = vpop.f32.mrf.mxu2 }
 0x2d5   :  { %v2019_v22 = vpop.f32.mrf.mxu3  ;;  %v1851_v60 = vadd.f32 %v1850_v50, %v13988_v58 }
 0x2d6   :  { %v2190_v16 = vpop.f32.mrf.mxu0 }
 0x2d7   :  { %v2020_v57 = vadd.f32 %v2019_v22, %v1851_v60  ;;  %v7462_v60 = vld [vmem:[%s13725_s0 + $0x490] sm:$0xf] }
 0x2d9   :  { %v9636_v45 = vadd.f32 %v2188_v17, %v2020_v57  ;;  %v8124_v57 = vld [vmem:[%s13725_s0 + $0x4a0] sm:$0xf0] }
 0x2da   :  { %v7463_v54 = vor.u32 %v8124_v57, %v7462_v60  ;;  %v7490_v60 = vld [vmem:[%s13725_s0 + $0x4c0] sm:$0xf]  ;;  %v8130_v57 = vld [vmem:[%s13725_s0 + $0x4d0] sm:$0xf0] }
 0x2db   :  { %13989 = vst [vmem:[#allocation5_spill] sm:$0xff] %v9636_v45 }
 0x2dc   :  { %v1852_v18 = vpop.f32.mrf.mxu2 }
 0x2dd   :  { %v2021_v51 = vpop.f32.mrf.mxu3  ;;  %v1853_v44 = vadd.f32 %v1852_v18, %v13990_v2 }
 0x2de   :  { %v2193_v30 = vpop.f32.mrf.mxu0 }
 0x2df   :  { %v2022_v62 = vadd.f32 %v2021_v51, %v1853_v44  ;;  %v7471_v51 = vor.u32 %v8125_v47, %v7470_v24 }
 0x2e1   :  { %v9657_v49 = vadd.f32 %v2190_v16, %v2022_v62  ;;  %1894 = vmatmul.bf16.gmra.mxu2 %v7443_v27  ;;  %7684 = vmatmul.msk.bf16.gmra.mxu0 %vm1311_vm0, %v7451_v28  ;;  %v8122_v16 = vld [vmem:[%s13725_s0 + $0x494] sm:$0xf] }
 0x2e2   :  { %2063 = vmatmul.bf16.gmra.mxu3 %v7447_v38  ;;  %v7467_v18 = vor.u32 %v8122_v16, %v7464_v14  ;;  %v13994_v38 = vld [vmem:[#allocation10_spill] sm:$0xff] }
 0x2e3   :  { %13991 = vst [vmem:[#allocation6_spill] sm:$0xff] %v9657_v49 }
 0x2e4   :  { %v1855_v61 = vpop.f32.mrf.mxu2 }
 0x2e5   :  { %v2024_v40 = vpop.f32.mrf.mxu3  ;;  %v1856_v17 = vadd.f32 %v1855_v61, %v13992_v39  ;;  %v8129_v39 = vld [vmem:[%s13725_s0 + $0x4c8] sm:$0xf0] }
 0x2e6   :  { %v9661_v22 = vpop.f32.mrf.mxu0 }
 0x2e7   :  { %v2025_v50 = vadd.f32 %v2024_v40, %v1856_v17  ;;  %v7482_v40 = vld [vmem:[%s13725_s0 + $0x4b8] sm:$0xf]  ;;  %v8127_v17 = vld [vmem:[%s13725_s0 + $0x4bc] sm:$0xf] }
 0x2e8   :  { %v7483_v24 = vor.u32 %v8129_v39, %v7482_v40  ;;  %v7502_v40 = vld [vmem:[%s13725_s0 + $0x4e0] sm:$0xf]  ;;  %v8134_v39 = vld [vmem:[%s13725_s0 + $0x4f0] sm:$0xf0] }
 0x2e9   :  { %v9663_v58 = vadd.f32 %v2193_v30, %v2025_v50  ;;  %v7484_v50 = vld [vmem:[%s13725_s0 + $0x4cc] sm:$0xf0] }
 0x2ea   :  { %v7487_v47 = vor.u32 %v8127_v17, %v7484_v50  ;;  %v8132_v17 = vld [vmem:[%s13725_s0 + $0x4e4] sm:$0xf]  ;;  %v7504_v50 = vld [vmem:[%s13725_s0 + $0x4f4] sm:$0xf0] }
 0x2eb   :  { %13993 = vst [vmem:[#allocation7_spill] sm:$0xff] %v9663_v58 }
 0x2ec   :  { %v9683_v41 = vpop.f32.mrf.mxu2 }
 0x2ed   :  { %v9685_v36 = vpop.f32.mrf.mxu3 }
 0x2ee   :  { %v2198_v2 = vpop.f32.mrf.mxu0 }
 0x2f1   :  { %1899 = vmatmul.bf16.gmra.mxu2 %v7463_v54  ;;  %7685 = vmatmul.msk.bf16.gmra.mxu0 %vm1311_vm0, %v7471_v51  ;;  %v7491_v54 = vor.u32 %v8130_v57, %v7490_v60  ;;  %v7510_v60 = vld [vmem:[%s13725_s0 + $0x4e8] sm:$0xf]  ;;  %v8135_v57 = vld [vmem:[%s13725_s0 + $0x4f8] sm:$0xf0] }
 0x2f2   :  { %2068 = vmatmul.bf16.gmra.mxu3 %v7467_v18 }
 0x2f4   :  { %v1860_v44 = vpop.f32.mrf.mxu2 }
 0x2f5   :  { %v2029_v27 = vpop.f32.mrf.mxu3  ;;  %v1861_v28 = vadd.f32 %v1860_v44, %v13994_v38  ;;  %v13997_v44 = vld [vmem:[#allocation12_spill] sm:$0xff] }
 0x2f6   :  { %v9689_v30 = vpop.f32.mrf.mxu0 }
 0x2f7   :  { %v2030_v62 = vadd.f32 %v2029_v27, %v1861_v28  ;;  %13995 = vst [vmem:[#allocation8_spill] sm:$0xff] %v9689_v30 }
 0x2f9   :  { %v9691_v61 = vadd.f32 %v2198_v2, %v2030_v62 }
 0x2fb   :  { %13996 = vst [vmem:[#allocation10_spill] sm:$0xff] %v9691_v61 }
 0x2fc   :  { %v9711_v16 = vpop.f32.mrf.mxu2 }
 0x2fd   :  { %v9713_v14 = vpop.f32.mrf.mxu3 }
 0x2fe   :  { %v2203_v18 = vpop.f32.mrf.mxu0 }
 0x301   :  { %1904 = vmatmul.bf16.gmra.mxu2 %v7483_v24  ;;  %7686 = vmatmul.msk.bf16.gmra.mxu0 %vm1311_vm0, %v7491_v54  ;;  %v7503_v54 = vor.u32 %v8134_v39, %v7502_v40 }
 0x302   :  { %2073 = vmatmul.bf16.gmra.mxu3 %v7487_v47 }
 0x304   :  { %v1865_v51 = vpop.f32.mrf.mxu2 }
 0x305   :  { %v2034_v2 = vpop.f32.mrf.mxu3  ;;  %v1866_v27 = vadd.f32 %v1865_v51, %v13997_v44  ;;  %v7511_v51 = vor.u32 %v8135_v57, %v7510_v60 }
 0x306   :  { %v9717_v28 = vpop.f32.mrf.mxu0 }
 0x307   :  { %v2035_v38 = vadd.f32 %v2034_v2, %v1866_v27  ;;  %13998 = vst [vmem:[#allocation12_spill] sm:$0xff] %v9717_v28  ;;  %v14002_v28 = vld [vmem:[#allocation14_spill] sm:$0xff] }
 0x309   :  { %v9719_v62 = vadd.f32 %v2203_v18, %v2035_v38  ;;  %v7507_v18 = vor.u32 %v8132_v17, %v7504_v50  ;;  %v14001_v38 = vld [vmem:[#allocation32_spill] sm:$0xff] }
 0x30b   :  { %13999 = vst [vmem:[#allocation51_spill] sm:$0xff] %v9719_v62  ;;  %v2255_v62 = vadd.f32 %v9176_v25, %v14001_v38 }
 0x30c   :  { %v9739_v24 = vpop.f32.mrf.mxu2 }
 0x30d   :  { %14000 = vst [vmem:[#allocation52_spill] sm:$0xff] %v9739_v24  ;;  %v9741_v47 = vpop.f32.mrf.mxu3  ;;  %v2256_v30 = vadd.f32 %v2255_v62, %v9180_v20 }
 0x30e   :  { %v2208_v2 = vpop.f32.mrf.mxu0 }
 0x30f   :  { %v2257_v40 = vadd.f32 %v2256_v30, %v9201_v21  ;;  %v14003_v30 = vld [vmem:[#allocation16_spill] sm:$0xff] }
 0x311   :  { %1909 = vmatmul.bf16.gmra.mxu2 %v7503_v54  ;;  %7687 = vmatmul.msk.bf16.gmra.mxu0 %vm1311_vm0, %v7511_v51  ;;  %v2258_v17 = vadd.f32 %v2257_v40, %v9205_v23 }
 0x312   :  { %2078 = vmatmul.bf16.gmra.mxu3 %v7507_v18 }
 0x313   :  { %v2259_v57 = vadd.f32 %v2258_v17, %v9226_v12 }
 0x314   :  { %v1870_v44 = vpop.f32.mrf.mxu2 }
 0x315   :  { %v2039_v27 = vpop.f32.mrf.mxu3  ;;  %v1871_v61 = vadd.f32 %v1870_v44, %v14002_v28  ;;  %v2260_v54 = vadd.f32 %v2259_v57, %v9230_v55 }
 0x316   :  { %v9748_v24 = vpop.f32.mrf.mxu0 }
 0x317   :  { %v2040_v58 = vadd.f32 %v2039_v27, %v1871_v61  ;;  %v2261_v62 = vadd.f32 %v2260_v54, %v9251_v11 }
 0x319   :  { %v9751_v39 = vadd.f32 %v2208_v2, %v2040_v58  ;;  %v2262_v61 = vadd.f32 %v2261_v62, %v9255_v26 }
 0x31b   :  { %v2263_v58 = vadd.f32 %v2262_v61, %v9277_v6 }
 0x31c   :  { %v9754_v50 = vpop.f32.mrf.mxu2 }
 0x31d   :  { %v9756_v60 = vpop.f32.mrf.mxu3  ;;  %v2264_v44 = vadd.f32 %v2263_v58, %v9281_v33 }
 0x31e   :  { %v2213_v28 = vpop.f32.mrf.mxu0 }
 0x31f   :  { %v2265_v17 = vadd.f32 %v2264_v44, %v9303_v37  ;;  %v14004_v44 = vld [vmem:[#allocation18_spill] sm:$0xff] }
 0x321   :  { %v2266_v57 = vadd.f32 %v2265_v17, %v9307_v0 }
 0x323   :  { %v2267_v26 = vadd.f32 %v2266_v57, %v9329_v19 }
 0x324   :  { %v1875_v18 = vpop.f32.mrf.mxu2 }
 0x325   :  { %v2044_v51 = vpop.f32.mrf.mxu3  ;;  %v1876_v2 = vadd.f32 %v1875_v18, %v14003_v30  ;;  %v2268_v61 = vadd.f32 %v2267_v26, %v9333_v29 }
 0x326   :  { %v9765_v40 = vpop.f32.mrf.mxu0 }
 0x327   :  { %v2045_v27 = vadd.f32 %v2044_v51, %v1876_v2  ;;  %v2269_v58 = vadd.f32 %v2268_v61, %v9355_v56 }
 0x329   :  { %v9768_v12 = vadd.f32 %v2213_v28, %v2045_v27  ;;  %v2270_v51 = vadd.f32 %v2269_v58, %v9359_v31 }
 0x32b   :  { %v2271_v28 = vadd.f32 %v2270_v51, %v9381_v9 }
 0x32c   :  { %v9771_v54 = vpop.f32.mrf.mxu2 }
 0x32d   :  { %v9773_v62 = vpop.f32.mrf.mxu3  ;;  %v2272_v17 = vadd.f32 %v2271_v28, %v9385_v5 }
 0x32e   :  { %v2218_v18 = vpop.f32.mrf.mxu0 }
 0x32f   :  { %v2273_v57 = vadd.f32 %v2272_v17, %v9407_v63  ;;  %v14005_v17 = vld [vmem:[#allocation20_spill] sm:$0xff] }
 0x331   :  { %v2274_v26 = vadd.f32 %v2273_v57, %v9411_v15 }
 0x333   :  { %v2275_v31 = vadd.f32 %v2274_v26, %v9432_v32 }
 0x334   :  { %v1880_v30 = vpop.f32.mrf.mxu2 }
 0x335   :  { %v2049_v2 = vpop.f32.mrf.mxu3  ;;  %v1881_v27 = vadd.f32 %v1880_v30, %v14004_v44  ;;  %v2276_v51 = vadd.f32 %v2275_v31, %v9436_v4 }
 0x336   :  { %v9782_v37 = vpop.f32.mrf.mxu0 }
 0x337   :  { %v2050_v0 = vadd.f32 %v2049_v2, %v1881_v27  ;;  %v2277_v28 = vadd.f32 %v2276_v51, %v9457_v1 }
 0x339   :  { %v9785_v19 = vadd.f32 %v2218_v18, %v2050_v0  ;;  %v2278_v2 = vadd.f32 %v2277_v28, %v9461_v48  ;;  %v8179_v0 = vld [vmem:[%s13729_s4 + $0x38] sm:$0xff] }
 0x33a   :  { %4598 = vmatpush.bf16.msrb.mxu1 %v8179_v0 }
 0x33b   :  { %v2279_v27 = vadd.f32 %v2278_v2, %v9482_v10 }
 0x33c   :  { %v9788_v61 = vpop.f32.mrf.mxu2 }
 0x33d   :  { %v9790_v58 = vpop.f32.mrf.mxu3  ;;  %v2280_v26 = vadd.f32 %v2279_v27, %v9486_v3 }
 0x33e   :  { %v2223_v30 = vpop.f32.mrf.mxu0 }
 0x33f   :  { %v2281_v51 = vadd.f32 %v2280_v26, %v9507_v34  ;;  %v14006_v26 = vld [vmem:[#allocation9_spill] sm:$0xff] }
 0x341   :  { %v2282_v28 = vadd.f32 %v2281_v51, %v9511_v52  ;;  %v1858_v51 = vadd.f32 %v9683_v41, %v14006_v26  ;;  %v14010_v26 = vld [vmem:[#allocation52_spill] sm:$0xff] }
 0x343   :  { %v2283_v15 = vadd.f32 %v2282_v28, %v9532_v7 }
 0x344   :  { %v1885_v18 = vpop.f32.mrf.mxu2 }
 0x345   :  { %v2054_v44 = vpop.f32.mrf.mxu3  ;;  %v1886_v57 = vadd.f32 %v1885_v18, %v14005_v17  ;;  %v2284_v2 = vadd.f32 %v2283_v15, %v9536_v46 }
 0x346   :  { %v9802_v31 = vpop.f32.mrf.mxu0 }
 0x347   :  { %v2055_v32 = vadd.f32 %v2054_v44, %v1886_v57  ;;  %v2285_v0 = vadd.f32 %v2284_v2, %v9557_v13 }
 0x349   :  { %v9805_v1 = vadd.f32 %v2223_v30, %v2055_v32  ;;  %v2286_v18 = vadd.f32 %v2285_v0, %v9561_v59  ;;  %v2027_v0 = vadd.f32 %v9685_v36, %v1858_v51  ;;  %v14007_v59 = vld [vmem:[#allocation11_spill] sm:$0xff] }
 0x34a   :  { %v8178_v36 = vld [vmem:[%s13729_s4 + $0x30] sm:$0xff] }
 0x34b   :  { %v2287_v17 = vadd.f32 %v2286_v18, %v9582_v43  ;;  %v1863_v18 = vadd.f32 %v9711_v16, %v14007_v59  ;;  %4599 = vmatpush.bf16.msrb.mxu1 %v8178_v36 }
 0x34c   :  { %v1887_v48 = vpop.f32.mrf.mxu2 }
 0x34d   :  { %v2056_v4 = vpop.f32.mrf.mxu3  ;;  %v2288_v32 = vadd.f32 %v2287_v17, %v9586_v53  ;;  %v2032_v41 = vadd.f32 %v9713_v14, %v1863_v18  ;;  %v14014_v18 = vld [vmem:[#allocation10_spill] sm:$0xff] }
 0x34e   :  { %v9810_v10 = vpop.f32.mrf.mxu0 }
 0x34f   :  { %v2289_v57 = vadd.f32 %v2288_v32, %v9607_v8  ;;  %v9829_v32 = vadd.f32 %v9661_v22, %v2027_v0  ;;  %v14011_v8 = vld [vmem:[#allocation7_spill] sm:$0xff] }
 0x350   :  { %v14013_v0 = vld [vmem:[#allocation15_spill] sm:$0xff] }
 0x351   :  { %v2290_v15 = vadd.f32 %v2289_v57, %v9611_v42  ;;  %14008 = vst [vmem:[#allocation32_spill] sm:$0xff] %v9829_v32  ;;  %v14009_v57 = vld [vmem:[#allocation13_spill] sm:$0xff]  ;;  %v1873_v14 = vadd.f32 %v9754_v50, %v14013_v0  ;;  %v14019_v0 = vld [vmem:[#allocation19_spill] sm:$0xff] }
 0x352   :  { %v1868_v42 = vadd.f32 %v14010_v26, %v14009_v57 }
 0x353   :  { %v2291_v2 = vadd.f32 %v2290_v15, %v9632_v35 }
 0x354   :  { %v1890_v44 = vpop.f32.mrf.mxu2  ;;  %v2037_v22 = vadd.f32 %v9741_v47, %v1868_v42 }
 0x355   :  { %v2059_v27 = vpop.f32.mrf.mxu3  ;;  %v2292_v17 = vadd.f32 %v2291_v2, %v9636_v45  ;;  %v14012_v2 = vld [vmem:[#allocation8_spill] sm:$0xff]  ;;  %v2042_v45 = vadd.f32 %v9756_v60, %v1873_v14 }
 0x356   :  { %v9816_v30 = vpop.f32.mrf.mxu0 }
 0x357   :  { %v2293_v43 = vadd.f32 %v2292_v17, %v9657_v49  ;;  %v9840_v17 = vadd.f32 %v14012_v2, %v2032_v41  ;;  %v14017_v2 = vld [vmem:[#allocation51_spill] sm:$0xff]  ;;  %v9856_v36 = vadd.f32 %v9748_v24, %v2042_v45  ;;  %v14021_v24 = vld [vmem:[#allocation22_spill] sm:$0xff] }
 0x359   :  { %v2294_v15 = vadd.f32 %v2293_v43, %v14011_v8  ;;  %v14015_v8 = vld [vmem:[#allocation12_spill] sm:$0xff]  ;;  %14018 = vst [vmem:[#allocation14_spill] sm:$0xff] %v9856_v36 }
 0x35a   :  { %v9848_v49 = vadd.f32 %v14015_v8, %v2037_v22  ;;  %v1883_v8 = vadd.f32 %v9788_v61, %v14019_v0 }
 0x35b   :  { %v2295_v51 = vadd.f32 %v2294_v15, %v9829_v32  ;;  %v14016_v15 = vld [vmem:[#allocation17_spill] sm:$0xff] }
 0x35c   :  { %v1892_v28 = vpop.f32.mrf.mxu2  ;;  %v1878_v41 = vadd.f32 %v9771_v54, %v14016_v15  ;;  %v1891_v15 = vadd.f32 %v1890_v44, %v14021_v24  ;;  %v14024_v24 = vld [vmem:[#allocation25_spill] sm:$0xff] }
 0x35d   :  { %v2061_v46 = vpop.f32.mrf.mxu3  ;;  %v2296_v57 = vadd.f32 %v2295_v51, %v14014_v18 }
 0x35e   :  { %v2233_v53 = vpop.f32.mrf.mxu0  ;;  %v2047_v51 = vadd.f32 %v9773_v62, %v1878_v41 }
 0x35f   :  { %v2297_v26 = vadd.f32 %v2296_v57, %v9840_v17  ;;  %v2052_v57 = vadd.f32 %v9790_v58, %v1883_v8  ;;  %v14023_v58 = vld [vmem:[#allocation24_spill] sm:$0xff] }
 0x360   :  { %v9864_v54 = vadd.f32 %v9765_v40, %v2047_v51  ;;  %v2060_v51 = vadd.f32 %v2059_v27, %v1891_v15 }
 0x361   :  { %v2298_v32 = vadd.f32 %v2297_v26, %v14017_v2  ;;  %v14020_v26 = vld [vmem:[#allocation21_spill] sm:$0xff] }
 0x363   :  { %v2299_v50 = vadd.f32 %v2298_v32, %v9848_v49  ;;  %v1888_v32 = vadd.f32 %v1887_v48, %v14020_v26 }
 0x364   :  { %v1895_v59 = vpop.f32.mrf.mxu2 }
 0x365   :  { %v2064_v16 = vpop.f32.mrf.mxu3  ;;  %v2300_v22 = vadd.f32 %v2299_v50, %v9751_v39  ;;  %v9872_v50 = vadd.f32 %v9782_v37, %v2052_v57  ;;  %v2057_v0 = vadd.f32 %v2056_v4, %v1888_v32  ;;  %v1896_v8 = vadd.f32 %v1895_v59, %v14023_v58  ;;  %v14025_v57 = vld [vmem:[#allocation26_spill] sm:$0xff] }
 0x366   :  { %v2235_v43 = vpop.f32.mrf.mxu0  ;;  %v9884_v4 = vadd.f32 %v9810_v10, %v2060_v51 }
 0x367   :  { %v2301_v14 = vadd.f32 %v2300_v22, %v9856_v36  ;;  %v14022_v22 = vld [vmem:[#allocation23_spill] sm:$0xff]  ;;  %v9879_v44 = vadd.f32 %v9802_v31, %v2057_v0 }
 0x368   :  { %v1893_v36 = vadd.f32 %v1892_v28, %v14022_v22  ;;  %v2065_v28 = vadd.f32 %v2064_v16, %v1896_v8  ;;  %v14026_v0 = vld [vmem:[#allocation27_spill] sm:$0xff] }
 0x369   :  { %v2302_v45 = vadd.f32 %v2301_v14, %v9768_v12 }
 0x36a   :  { %v2062_v26 = vadd.f32 %v2061_v46, %v1893_v36  ;;  %v9893_v36 = vadd.f32 %v2233_v53, %v2065_v28 }
 0x36b   :  { %v2303_v61 = vadd.f32 %v2302_v45, %v9864_v54 }
 0x36c   :  { %v1897_v42 = vpop.f32.mrf.mxu2 }
 0x36d   :  { %v2066_v47 = vpop.f32.mrf.mxu3  ;;  %v2304_v40 = vadd.f32 %v2303_v61, %v9785_v19  ;;  %v1898_v45 = vadd.f32 %v1897_v42, %v14024_v24  ;;  %v9889_v61 = vadd.f32 %v9816_v30, %v2062_v26  ;;  %v14027_v26 = vld [vmem:[#allocation28_spill] sm:$0xff] }
 0x36e   :  { %v2238_v60 = vpop.f32.mrf.mxu0 }
 0x36f   :  { %v2305_v14 = vadd.f32 %v2304_v40, %v9872_v50  ;;  %v2067_v31 = vadd.f32 %v2066_v47, %v1898_v45 }
 0x371   :  { %v2306_v37 = vadd.f32 %v2305_v14, %v9805_v1  ;;  %v9896_v16 = vadd.f32 %v2235_v43, %v2067_v31 }
 0x373   :  { %v2307_v59 = vadd.f32 %v2306_v37, %v9879_v44 }
 0x374   :  { %v1900_v62 = vpop.f32.mrf.mxu2 }
 0x375   :  { %v2069_v41 = vpop.f32.mrf.mxu3  ;;  %v1901_v32 = vadd.f32 %v1900_v62, %v14025_v57  ;;  %v2308_v42 = vadd.f32 %v2307_v59, %v9884_v4 }
 0x376   :  { %v2240_v48 = vpop.f32.mrf.mxu0 }
 0x377   :  { %v2070_v22 = vadd.f32 %v2069_v41, %v1901_v32  ;;  %v2309_v10 = vadd.f32 %v2308_v42, %v9889_v61  ;;  %v14029_v42 = vld [vmem:[#allocation30_spill] sm:$0xff] }
 0x379   :  { %v2310_v51 = vadd.f32 %v2309_v10, %v9893_v36  ;;  %v9899_v58 = vadd.f32 %v2238_v60, %v2070_v22 }
 0x37b   :  { %v2311_v47 = vadd.f32 %v2310_v51, %v9896_v16 }
 0x37c   :  { %v1902_v27 = vpop.f32.mrf.mxu2 }
 0x37d   :  { %v2071_v15 = vpop.f32.mrf.mxu3  ;;  %v1903_v46 = vadd.f32 %v1902_v27, %v14026_v0  ;;  %v2312_v53 = vadd.f32 %v2311_v47, %v9899_v58  ;;  %v14028_v27 = vld [vmem:[#allocation29_spill] sm:$0xff] }
 0x37e   :  { %v2243_v40 = vpop.f32.mrf.mxu0 }
 0x37f   :  { %v2072_v62 = vadd.f32 %v2071_v15, %v1903_v46 }
 0x381   :  { %v2241_v14 = vadd.f32 %v2240_v48, %v2072_v62 }
 0x383   :  { %v2313_v45 = vadd.f32 %v2312_v53, %v2241_v14 }
 0x384   :  { %v1905_v30 = vpop.f32.mrf.mxu2 }
 0x385   :  { %v2074_v8 = vpop.f32.mrf.mxu3  ;;  %v1906_v24 = vadd.f32 %v1905_v30, %v14027_v26 }
 0x386   :  { %v2245_v28 = vpop.f32.mrf.mxu0 }
 0x387   :  { %v2075_v41 = vadd.f32 %v2074_v8, %v1906_v24  ;;  %v14030_v8 = vld [vmem:[#allocation31_spill] sm:$0xff] }
 0x389   :  { %v2244_v37 = vadd.f32 %v2243_v40, %v2075_v41  ;;  %v8301_v41 = vmov 512.0  }
 0x38a   :  { %8269 = vrcp.f32 %v8301_v41 }
 0x38b   :  { %v2314_v43 = vadd.f32 %v2313_v45, %v2244_v37 }
 0x38c   :  { %v1907_v57 = vpop.f32.mrf.mxu2 }
 0x38d   :  { %v2076_v32 = vpop.f32.mrf.mxu3  ;;  %v1908_v15 = vadd.f32 %v1907_v57, %v14028_v27 }
 0x38e   :  { %v2248_v22 = vpop.f32.mrf.mxu0 }
 0x38f   :  { %v2077_v60 = vadd.f32 %v2076_v32, %v1908_v15 }
 0x391   :  { %v2246_v59 = vadd.f32 %v2245_v28, %v2077_v60 }
 0x393   :  { %v2315_v31 = vadd.f32 %v2314_v43, %v2246_v59  ;;  %v8270_v43 = vpop.eup %8269 }
 0x394   :  { %v1910_v0 = vpop.f32.mrf.mxu2  ;;  %v2325_v32 = vmul.f32 512.0, %v8270_v43  ;;  %vm2329_vm1 = vweird.f32 %v8270_v43 }
 0x395   :  { %v2079_v46 = vpop.f32.mrf.mxu3  ;;  %v1911_v48 = vadd.f32 %v1910_v0, %v14029_v42 }
 0x396   :  { %v2250_v24 = vpop.f32.mrf.mxu0  ;;  %v2326_v15 = vsub.f32 1.0, %v2325_v32 }
 0x397   :  { %v2080_v10 = vadd.f32 %v2079_v46, %v1911_v48 }
 0x398   :  { %v2327_v0 = vmul.f32 %v8270_v43, %v2326_v15 }
 0x399   :  { %v2249_v62 = vadd.f32 %v2248_v22, %v2080_v10 }
 0x39b   :  { %v2316_v51 = vadd.f32 %v2315_v31, %v2249_v62  ;;  %v2328_v31 = vadd.f32 %v8270_v43, %v2327_v0 }
 0x39c   :  { %v1912_v30 = vpop.f32.mrf.mxu2 }
 0x39d   :  { %v1913_v40 = vadd.f32 %v1912_v30, %v14030_v8  ;;  %v2081_v47 = vpop.f32.mrf.mxu3  ;;  %v9907_v48 = vsel %vm2329_vm1, %v8270_v43, %v2328_v31 }
 0x39e   :  { %14031 = vst [vmem:[#allocation16_spill] sm:$0xff] %v9907_v48 }
 0x39f   :  { %v2082_v26 = vadd.f32 %v2081_v47, %v1913_v40 }
 0x3a1   :  { %v2251_v53 = vadd.f32 %v2250_v24, %v2082_v26 }
 0x3a3   :  { %v2317_v45 = vadd.f32 %v2316_v51, %v2251_v53 }
 0x3a5   :  { %v2318_v28 = vrot.slane %v2317_v45, 4 }
 0x3a7   :  { %v2319_v57 = vadd.f32 %v2318_v28, %v2317_v45 }
 0x3a9   :  { %v2320_v27 = vrot.slane %v2319_v57, 2 }
 0x3ab   :  { %v2321_v60 = vadd.f32 %v2320_v27, %v2319_v57  ;;  %v14045_v27 = vld [vmem:[#allocation34_spill] sm:$0xff] }
 0x3ad   :  { %v2322_v46 = vrot.slane %v2321_v60, 1 }
 0x3af   :  { %v2323_v42 = vadd.f32 %v2322_v46, %v2321_v60 }
 0x3b1   :  { %v9910_v22 = vmul.f32 %v9907_v48, %v2323_v42 }
 0x3b3   :  { %v9913_v10 = vsub.f32 %v2241_v14, %v9910_v22  ;;  %v9916_v51 = vsub.f32 %v2244_v37, %v9910_v22  ;;  %v9919_v30 = vsub.f32 %v2246_v59, %v9910_v22  ;;  %v9922_v8 = vsub.f32 %v2249_v62, %v9910_v22 }
 0x3b4   :  { %v9925_v40 = vsub.f32 %v2251_v53, %v9910_v22  ;;  %v9929_v47 = vsub.f32 %v14001_v38, %v9910_v22  ;;  %v9933_v14 = vsub.f32 %v9176_v25, %v9910_v22  ;;  %v9937_v37 = vsub.f32 %v9180_v20, %v9910_v22  ;;  %v14041_v20 = vld [vmem:[#allocation33_spill] sm:$0xff] }
 0x3b5   :  { %14032 = vst [vmem:[#allocation18_spill] sm:$0xff] %v9913_v10  ;;  %v9945_v26 = vsub.f32 %v9201_v21, %v9910_v22  ;;  %v9949_v38 = vsub.f32 %v9205_v23, %v9910_v22  ;;  %v9955_v53 = vsub.f32 %v14041_v20, %v9910_v22  ;;  %v9961_v21 = vsub.f32 %v9230_v55, %v9910_v22  ;;  %v14047_v20 = vld [vmem:[#allocation36_spill] sm:$0xff] }
 0x3b6   :  { %14033 = vst [vmem:[#allocation20_spill] sm:$0xff] %v9916_v51  ;;  %v2396_v59 = vmul.f32 %v9929_v47, %v9929_v47  ;;  %v2397_v62 = vmul.f32 %v9933_v14, %v9933_v14  ;;  %v2398_v25 = vmul.f32 %v9937_v37, %v9937_v37  ;;  %v9967_v43 = vsub.f32 %v9251_v11, %v9910_v22 }
 0x3b7   :  { %14034 = vst [vmem:[#allocation9_spill] sm:$0xff] %v9919_v30  ;;  %v2399_v41 = vmul.f32 %v9945_v26, %v9945_v26  ;;  %v2400_v23 = vmul.f32 %v9949_v38, %v9949_v38  ;;  %v2401_v57 = vmul.f32 %v9955_v53, %v9955_v53  ;;  %v9973_v15 = vsub.f32 %v14045_v27, %v9910_v22 }
 0x3b8   :  { %14035 = vst [vmem:[#allocation11_spill] sm:$0xff] %v9922_v8  ;;  %v2460_v24 = vadd.f32 %v2397_v62, %v2396_v59  ;;  %v2402_v55 = vmul.f32 %v9961_v21, %v9961_v21  ;;  %v9979_v0 = vsub.f32 %v9277_v6, %v9910_v22  ;;  %v2403_v11 = vmul.f32 %v9967_v43, %v9967_v43  ;;  %v14046_v62 = vld [vmem:[#allocation35_spill] sm:$0xff] }
 0x3b9   :  { %14036 = vst [vmem:[#allocation13_spill] sm:$0xff] %v9929_v47  ;;  %v9985_v31 = vsub.f32 %v9281_v33, %v9910_v22  ;;  %v2404_v42 = vmul.f32 %v9973_v15, %v9973_v15  ;;  %v10009_v27 = vsub.f32 %v9333_v29, %v9910_v22 }
 0x3ba   :  { %14037 = vst [vmem:[#allocation52_spill] sm:$0xff] %v9933_v14  ;;  %v2461_v45 = vadd.f32 %v2460_v24, %v2398_v25  ;;  %v9991_v25 = vsub.f32 %v14046_v62, %v9910_v22  ;;  %v2405_v6 = vmul.f32 %v9979_v0, %v9979_v0 }
 0x3bb   :  { %14038 = vst [vmem:[#allocation8_spill] sm:$0xff] %v9937_v37  ;;  %v2406_v33 = vmul.f32 %v9985_v31, %v9985_v31  ;;  %v2410_v29 = vmul.f32 %v10009_v27, %v10009_v27 }
 0x3bc   :  { %14039 = vst [vmem:[#allocation15_spill] sm:$0xff] %v9945_v26  ;;  %v2462_v28 = vadd.f32 %v2461_v45, %v2399_v41  ;;  %v9997_v41 = vsub.f32 %v14047_v20, %v9910_v22 }
 0x3bd   :  { %14040 = vst [vmem:[#allocation10_spill] sm:$0xff] %v9949_v38 }
 0x3be   :  { %14042 = vst [vmem:[#allocation12_spill] sm:$0xff] %v9955_v53  ;;  %v2463_v32 = vadd.f32 %v2462_v28, %v2400_v23  ;;  %v14048_v23 = vld [vmem:[#allocation37_spill] sm:$0xff] }
 0x3bf   :  { %14043 = vst [vmem:[#allocation17_spill] sm:$0xff] %v9961_v21  ;;  %v10003_v28 = vsub.f32 %v14048_v23, %v9910_v22 }
 0x3c0   :  { %14044 = vst [vmem:[#allocation51_spill] sm:$0xff] %v9967_v43  ;;  %v2464_v60 = vadd.f32 %v2463_v32, %v2401_v57  ;;  %v2407_v57 = vmul.f32 %v9991_v25, %v9991_v25 }
 0x3c2   :  { %v2465_v46 = vadd.f32 %v2464_v60, %v2402_v55  ;;  %v2408_v55 = vmul.f32 %v9997_v41, %v9997_v41 }
 0x3c4   :  { %v2466_v59 = vadd.f32 %v2465_v46, %v2403_v11  ;;  %v10015_v11 = vsub.f32 %v9355_v56, %v9910_v22  ;;  %v2409_v46 = vmul.f32 %v10003_v28, %v10003_v28 }
 0x3c6   :  { %v2467_v24 = vadd.f32 %v2466_v59, %v2404_v42  ;;  %v14049_v59 = vld [vmem:[#allocation38_spill] sm:$0xff]  ;;  %v2411_v56 = vmul.f32 %v10015_v11, %v10015_v11 }
 0x3c7   :  { %v10021_v62 = vsub.f32 %v14049_v59, %v9910_v22 }
 0x3c8   :  { %v2468_v45 = vadd.f32 %v2467_v24, %v2405_v6  ;;  %v10027_v24 = vsub.f32 %v9381_v9, %v9910_v22 }
 0x3ca   :  { %v2469_v32 = vadd.f32 %v2468_v45, %v2406_v33  ;;  %v10033_v33 = vsub.f32 %v9385_v5, %v9910_v22  ;;  %v2412_v45 = vmul.f32 %v10021_v62, %v10021_v62  ;;  %v2413_v9 = vmul.f32 %v10027_v24, %v10027_v24 }
 0x3cc   :  { %v2470_v60 = vadd.f32 %v2469_v32, %v2407_v57  ;;  %v10039_v57 = vsub.f32 %v9407_v63, %v9910_v22  ;;  %v2414_v5 = vmul.f32 %v10033_v33, %v10033_v33 }
 0x3ce   :  { %v2471_v42 = vadd.f32 %v2470_v60, %v2408_v55  ;;  %v14050_v55 = vld [vmem:[#allocation39_spill] sm:$0xff]  ;;  %v2415_v63 = vmul.f32 %v10039_v57, %v10039_v57 }
 0x3cf   :  { %v10045_v60 = vsub.f32 %v14050_v55, %v9910_v22 }
 0x3d0   :  { %v2472_v6 = vadd.f32 %v2471_v42, %v2409_v46  ;;  %v14051_v42 = vld [vmem:[#allocation40_spill] sm:$0xff] }
 0x3d1   :  { %v10051_v59 = vsub.f32 %v14051_v42, %v9910_v22  ;;  %v14054_v42 = vld [vmem:[#allocation43_spill] sm:$0xff] }
 0x3d2   :  { %v2473_v20 = vadd.f32 %v2472_v6, %v2410_v29  ;;  %v14052_v6 = vld [vmem:[#allocation41_spill] sm:$0xff]  ;;  %v10069_v43 = vsub.f32 %v14054_v42, %v9910_v22  ;;  %v10087_v42 = vsub.f32 %v9507_v34, %v9910_v22 }
 0x3d4   :  { %v2474_v23 = vadd.f32 %v2473_v20, %v2411_v56  ;;  %v10057_v56 = vsub.f32 %v14052_v6, %v9910_v22  ;;  %v2416_v20 = vmul.f32 %v10045_v60, %v10045_v60  ;;  %v14055_v6 = vld [vmem:[#allocation44_spill] sm:$0xff]  ;;  %v2423_v34 = vmul.f32 %v10087_v42, %v10087_v42 }
 0x3d5   :  { %v10075_v21 = vsub.f32 %v14055_v6, %v9910_v22  ;;  %v10093_v6 = vsub.f32 %v9511_v52, %v9910_v22 }
 0x3d6   :  { %v2475_v32 = vadd.f32 %v2474_v23, %v2412_v45  ;;  %v14053_v23 = vld [vmem:[#allocation42_spill] sm:$0xff] }
 0x3d7   :  { %v10063_v55 = vsub.f32 %v14053_v23, %v9910_v22  ;;  %v10081_v23 = vsub.f32 %v9486_v3, %v9910_v22  ;;  %v2424_v52 = vmul.f32 %v10093_v6, %v10093_v6 }
 0x3d8   :  { %v2476_v46 = vadd.f32 %v2475_v32, %v2413_v9  ;;  %v2417_v9 = vmul.f32 %v10051_v59, %v10051_v59 }
 0x3d9   :  { %v2422_v3 = vmul.f32 %v10081_v23, %v10081_v23 }
 0x3da   :  { %v2477_v29 = vadd.f32 %v2476_v46, %v2414_v5  ;;  %v2418_v5 = vmul.f32 %v10057_v56, %v10057_v56 }
 0x3dc   :  { %v2478_v45 = vadd.f32 %v2477_v29, %v2415_v63  ;;  %v2419_v63 = vmul.f32 %v10063_v55, %v10063_v55 }
 0x3de   :  { %v2479_v32 = vadd.f32 %v2478_v45, %v2416_v20  ;;  %v2420_v20 = vmul.f32 %v10069_v43, %v10069_v43 }
 0x3e0   :  { %v2480_v46 = vadd.f32 %v2479_v32, %v2417_v9  ;;  %v2421_v9 = vmul.f32 %v10075_v21, %v10075_v21 }
 0x3e2   :  { %v2481_v29 = vadd.f32 %v2480_v46, %v2418_v5  ;;  %v10099_v46 = vsub.f32 %v9532_v7, %v9910_v22 }
 0x3e4   :  { %v2482_v45 = vadd.f32 %v2481_v29, %v2419_v63  ;;  %v14056_v29 = vld [vmem:[#allocation45_spill] sm:$0xff]  ;;  %v2425_v7 = vmul.f32 %v10099_v46, %v10099_v46 }
 0x3e5   :  { %v10105_v53 = vsub.f32 %v14056_v29, %v9910_v22  ;;  %v14058_v29 = vld [vmem:[#allocation47_spill] sm:$0xff] }
 0x3e6   :  { %v2483_v32 = vadd.f32 %v2482_v45, %v2420_v20  ;;  %v10111_v45 = vsub.f32 %v9557_v13, %v9910_v22  ;;  %v10123_v26 = vsub.f32 %v14058_v29, %v9910_v22  ;;  %v14064_v29 = vld [vmem:[#allocation50_spill] sm:$0xff] }
 0x3e7   :  { %v10141_v47 = vsub.f32 %v14064_v29, %v9910_v22  ;;  %v14067_v29 = vld [vmem:[#allocation6_spill] sm:$0xff] }
 0x3e8   :  { %v2484_v5 = vadd.f32 %v2483_v32, %v2421_v9  ;;  %v14057_v32 = vld [vmem:[#allocation46_spill] sm:$0xff]  ;;  %14059 = vst [vmem:[#allocation19_spill] sm:$0xff] %v10123_v26  ;;  %v2427_v13 = vmul.f32 %v10111_v45, %v10111_v45 }
 0x3e9   :  { %v10117_v38 = vsub.f32 %v14057_v32, %v9910_v22  ;;  %v14062_v32 = vld [vmem:[#allocation49_spill] sm:$0xff]  ;;  %14065 = vst [vmem:[#allocation23_spill] sm:$0xff] %v10141_v47 }
 0x3ea   :  { %v2485_v63 = vadd.f32 %v2484_v5, %v2422_v3  ;;  %v2426_v3 = vmul.f32 %v10105_v53, %v10105_v53  ;;  %v10135_v14 = vsub.f32 %v14062_v32, %v9910_v22  ;;  %v14066_v32 = vld [vmem:[#allocation5_spill] sm:$0xff] }
 0x3ec   :  { %v2486_v20 = vadd.f32 %v2485_v63, %v2423_v34  ;;  %v14060_v63 = vld [vmem:[#allocation48_spill] sm:$0xff]  ;;  %14063 = vst [vmem:[#allocation22_spill] sm:$0xff] %v10135_v14 }
 0x3ed   :  { %v10129_v37 = vsub.f32 %v14060_v63, %v9910_v22  ;;  %v10147_v63 = vsub.f32 %v9632_v35, %v9910_v22 }
 0x3ee   :  { %v2487_v9 = vadd.f32 %v2486_v20, %v2424_v52  ;;  %v2428_v52 = vmul.f32 %v10117_v38, %v10117_v38 }
 0x3ef   :  { %14061 = vst [vmem:[#allocation21_spill] sm:$0xff] %v10129_v37  ;;  %v2433_v35 = vmul.f32 %v10147_v63, %v10147_v63 }
 0x3f0   :  { %v2488_v5 = vadd.f32 %v2487_v9, %v2425_v7  ;;  %v2429_v7 = vmul.f32 %v10123_v26, %v10123_v26  ;;  %v10153_v26 = vsub.f32 %v14066_v32, %v9910_v22  ;;  %v14069_v32 = vld [vmem:[#allocation32_spill] sm:$0xff] }
 0x3f2   :  { %v2489_v34 = vadd.f32 %v2488_v5, %v2426_v3  ;;  %v2430_v3 = vmul.f32 %v10129_v37, %v10129_v37  ;;  %v10159_v37 = vsub.f32 %v14067_v29, %v9910_v22  ;;  %v10177_v29 = vsub.f32 %v14014_v18, %v9910_v22 }
 0x3f4   :  { %v2490_v20 = vadd.f32 %v2489_v34, %v2427_v13  ;;  %v2431_v13 = vmul.f32 %v10135_v14, %v10135_v14  ;;  %14070 = vst [vmem:[#allocation24_spill] sm:$0xff] %v10177_v29  ;;  %v2438_v18 = vmul.f32 %v10177_v29, %v10177_v29 }
 0x3f6   :  { %v2491_v9 = vadd.f32 %v2490_v20, %v2428_v52  ;;  %v2432_v52 = vmul.f32 %v10141_v47, %v10141_v47  ;;  %v10171_v47 = vsub.f32 %v14069_v32, %v9910_v22  ;;  %v10189_v32 = vsub.f32 %v14017_v2, %v9910_v22 }
 0x3f8   :  { %v2492_v5 = vadd.f32 %v2491_v9, %v2429_v7  ;;  %v14068_v9 = vld [vmem:[#allocation7_spill] sm:$0xff]  ;;  %v2440_v2 = vmul.f32 %v10189_v32, %v10189_v32 }
 0x3f9   :  { %v10165_v14 = vsub.f32 %v14068_v9, %v9910_v22  ;;  %v10183_v9 = vsub.f32 %v9840_v17, %v9910_v22 }
 0x3fa   :  { %v2493_v34 = vadd.f32 %v2492_v5, %v2430_v3  ;;  %v2434_v3 = vmul.f32 %v10153_v26, %v10153_v26 }
 0x3fb   :  { %v2439_v17 = vmul.f32 %v10183_v9, %v10183_v9 }
 0x3fc   :  { %v2494_v20 = vadd.f32 %v2493_v34, %v2431_v13  ;;  %v2435_v13 = vmul.f32 %v10159_v37, %v10159_v37 }
 0x3fe   :  { %v2495_v7 = vadd.f32 %v2494_v20, %v2432_v52  ;;  %v2436_v52 = vmul.f32 %v10165_v14, %v10165_v14 }
 0x400   :  { %v2496_v5 = vadd.f32 %v2495_v7, %v2433_v35  ;;  %v2437_v35 = vmul.f32 %v10171_v47, %v10171_v47 }
 0x402   :  { %v2497_v34 = vadd.f32 %v2496_v5, %v2434_v3  ;;  %v10195_v5 = vsub.f32 %v9848_v49, %v9910_v22 }
 0x404   :  { %v2498_v20 = vadd.f32 %v2497_v34, %v2435_v13  ;;  %v10201_v34 = vsub.f32 %v9751_v39, %v9910_v22  ;;  %v2441_v49 = vmul.f32 %v10195_v5, %v10195_v5 }
 0x406   :  { %v2499_v7 = vadd.f32 %v2498_v20, %v2436_v52  ;;  %v14071_v20 = vld [vmem:[#allocation14_spill] sm:$0xff]  ;;  %v2442_v39 = vmul.f32 %v10201_v34, %v10201_v34 }
 0x407   :  { %v10207_v29 = vsub.f32 %v14071_v20, %v9910_v22  ;;  %v10225_v20 = vsub.f32 %v9785_v19, %v9910_v22 }
 0x408   :  { %v2500_v3 = vadd.f32 %v2499_v7, %v2437_v35  ;;  %v10213_v7 = vsub.f32 %v9768_v12, %v9910_v22 }
 0x409   :  { %v2446_v19 = vmul.f32 %v10225_v20, %v10225_v20 }
 0x40a   :  { %v2501_v13 = vadd.f32 %v2500_v3, %v2438_v18  ;;  %v10219_v3 = vsub.f32 %v9864_v54, %v9910_v22  ;;  %v2444_v12 = vmul.f32 %v10213_v7, %v10213_v7 }
 0x40c   :  { %v2502_v52 = vadd.f32 %v2501_v13, %v2439_v17  ;;  %v2443_v17 = vmul.f32 %v10207_v29, %v10207_v29  ;;  %v2445_v54 = vmul.f32 %v10219_v3, %v10219_v3 }
 0x40e   :  { %v2503_v35 = vadd.f32 %v2502_v52, %v2440_v2  ;;  %v10231_v52 = vsub.f32 %v9872_v50, %v9910_v22 }
 0x410   :  { %v2504_v18 = vadd.f32 %v2503_v35, %v2441_v49  ;;  %v10237_v35 = vsub.f32 %v9805_v1, %v9910_v22  ;;  %v2447_v50 = vmul.f32 %v10231_v52, %v10231_v52 }
 0x412   :  { %v2505_v13 = vadd.f32 %v2504_v18, %v2442_v39  ;;  %v10243_v18 = vsub.f32 %v9879_v44, %v9910_v22  ;;  %v2448_v1 = vmul.f32 %v10237_v35, %v10237_v35 }
 0x414   :  { %v2506_v2 = vadd.f32 %v2505_v13, %v2443_v17  ;;  %v10249_v13 = vsub.f32 %v9884_v4, %v9910_v22  ;;  %v2449_v44 = vmul.f32 %v10243_v18, %v10243_v18 }
 0x416   :  { %v2507_v49 = vadd.f32 %v2506_v2, %v2444_v12  ;;  %v10255_v2 = vsub.f32 %v9889_v61, %v9910_v22  ;;  %v2450_v4 = vmul.f32 %v10249_v13, %v10249_v13 }
 0x418   :  { %v2508_v39 = vadd.f32 %v2507_v49, %v2445_v54  ;;  %14072 = vst [vmem:[#allocation25_spill] sm:$0xff] %v10255_v2  ;;  %v10261_v49 = vsub.f32 %v9893_v36, %v9910_v22  ;;  %v2451_v61 = vmul.f32 %v10255_v2, %v10255_v2  ;;  %v2455_v2 = vmul.f32 %v9913_v10, %v9913_v10 }
 0x41a   :  { %v2509_v17 = vadd.f32 %v2508_v39, %v2446_v19  ;;  %v10267_v39 = vsub.f32 %v9896_v16, %v9910_v22  ;;  %v2452_v36 = vmul.f32 %v10261_v49, %v10261_v49 }
 0x41c   :  { %v2510_v12 = vadd.f32 %v2509_v17, %v2447_v50  ;;  %14073 = vst [vmem:[#allocation26_spill] sm:$0xff] %v10267_v39  ;;  %v10273_v17 = vsub.f32 %v9899_v58, %v9910_v22  ;;  %v2456_v58 = vmul.f32 %v9916_v51, %v9916_v51 }
 0x41e   :  { %v2511_v54 = vadd.f32 %v2510_v12, %v2448_v1  ;;  %14074 = vst [vmem:[#allocation27_spill] sm:$0xff] %v10273_v17  ;;  %v2453_v12 = vmul.f32 %v10267_v39, %v10267_v39  ;;  %v2454_v16 = vmul.f32 %v10273_v17, %v10273_v17 }
 0x420   :  { %v2512_v19 = vadd.f32 %v2511_v54, %v2449_v44 }
 0x422   :  { %v2513_v50 = vadd.f32 %v2512_v19, %v2450_v4  ;;  %v2457_v19 = vmul.f32 %v9919_v30, %v9919_v30 }
 0x424   :  { %v2514_v1 = vadd.f32 %v2513_v50, %v2451_v61  ;;  %v2458_v50 = vmul.f32 %v9922_v8, %v9922_v8 }
 0x426   :  { %v2515_v44 = vadd.f32 %v2514_v1, %v2452_v36  ;;  %v2459_v1 = vmul.f32 %v9925_v40, %v9925_v40 }
 0x428   :  { %v2516_v54 = vadd.f32 %v2515_v44, %v2453_v12 }
 0x42a   :  { %v2517_v4 = vadd.f32 %v2516_v54, %v2454_v16 }
 0x42c   :  { %v2518_v22 = vadd.f32 %v2517_v4, %v2455_v2 }
 0x42e   :  { %v2519_v61 = vadd.f32 %v2518_v22, %v2456_v58 }
 0x430   :  { %v2520_v36 = vadd.f32 %v2519_v61, %v2457_v19 }
 0x432   :  { %v2521_v12 = vadd.f32 %v2520_v36, %v2458_v50 }
 0x434   :  { %v2522_v44 = vadd.f32 %v2521_v12, %v2459_v1 }
 0x436   :  { %v2523_v17 = vrot.slane %v2522_v44, 4 }
 0x438   :  { %v2524_v10 = vadd.f32 %v2523_v17, %v2522_v44  ;;  %v10295_v17 = vld [vmem:[%s13727_s2] ss:$0 sm:$0xff]  ;;  %s6860_s2 = sshll.u32 %s13733_s8, 4  ;;  %s6861_s2 = int_to_ptr.hbm [resolvable:$true] %s6860_s2 }
 0x43a   :  { %v2525_v16 = vrot.slane %v2524_v10, 2 }
 0x43c   :  { %v2526_v54 = vadd.f32 %v2525_v16, %v2524_v10  ;;  %v14079_v16 = vld [vmem:[#allocation21_spill] sm:$0xff] }
 0x43e   :  { %v2527_v39 = vrot.slane %v2526_v54, 1 }
 0x440   :  { %v2528_v51 = vadd.f32 %v2527_v39, %v2526_v54  ;;  %v14080_v54 = vld [vmem:[#allocation22_spill] sm:$0xff] }
 0x442   :  { %v2529_v2 = vmul.f32 %v2528_v51, %v9907_v48  ;;  %v10302_v51 = vld [vmem:[%s13728_s3] ss:$0 sm:$0xff]  ;;  %s8304_s3 = smov 128  }
 0x443   :  { %14076 = vst [vmem:[#allocation29_spill] sm:$0xff] %v10302_v51  ;;  %v14088_v48 = vld [vmem:[#allocation9_spill] sm:$0xff] }
 0x444   :  { %v2530_v4 = vadd.f32 1e-05, %v2529_v2  ;;  %v14081_v2 = vld [vmem:[#allocation23_spill] sm:$0xff] }
 0x446   :  { %8271 = vrsqrt.f32 %v2530_v4  ;;  %vm2537_vm3 = vweird.f32 %v2530_v4 }
 0x44c   :  { %v8272_v58 = vpop.eup %8271 }
 0x44d   :  { %v2532_v22 = vmul.f32 %v8272_v58, %v2530_v4  ;;  %vm2538_vm2 = vweird.f32 %v8272_v58 }
 0x44e   :  { %vm2539_vm4 = vmor %vm2537_vm3, %vm2538_vm2 }
 0x44f   :  { %v2533_v30 = vmul.f32 %v8272_v58, %v2532_v22 }
 0x451   :  { %v2534_v8 = vmul.f32 0.5, %v2533_v30 }
 0x453   :  { %v2535_v19 = vsub.f32 1.5, %v2534_v8 }
 0x455   :  { %v2536_v61 = vmul.f32 %v8272_v58, %v2535_v19 }
 0x457   :  { %v10297_v10 = vsel %vm2539_vm4, %v8272_v58, %v2536_v61 }
 0x458   :  { %14075 = vst [vmem:[#allocation28_spill] sm:$0xff] %v10297_v10  ;;  %v2604_v30 = vmul.f32 %v10297_v10, %v9925_v40  ;;  %v2549_v50 = vmul.f32 %v10297_v10, %v9973_v15  ;;  %v2550_v36 = vmul.f32 %v10297_v10, %v9979_v0  ;;  %v2551_v1 = vmul.f32 %v10297_v10, %v9985_v31 }
 0x459   :  { %v10318_v12 = vmul.f32 %v10297_v10, %v9991_v25  ;;  %v10322_v40 = vmul.f32 %v10297_v10, %v9997_v41  ;;  %v10326_v44 = vmul.f32 %v10297_v10, %v10003_v28  ;;  %v10330_v15 = vmul.f32 %v10297_v10, %v10009_v27 }
 0x45a   :  { %v2671_v8 = vmul.f32 %v10295_v17, %v2604_v30  ;;  %v10334_v0 = vmul.f32 %v10297_v10, %v10015_v11  ;;  %v10338_v31 = vmul.f32 %v10297_v10, %v10021_v62  ;;  %v10342_v25 = vmul.f32 %v10297_v10, %v10027_v24  ;;  %v14082_v30 = vld [vmem:[#allocation24_spill] sm:$0xff] }
 0x45b   :  { %v10346_v41 = vmul.f32 %v10297_v10, %v10033_v33  ;;  %v10350_v28 = vmul.f32 %v10297_v10, %v10039_v57  ;;  %v10354_v27 = vmul.f32 %v10297_v10, %v10045_v60  ;;  %v10358_v11 = vmul.f32 %v10297_v10, %v10051_v59 }
 0x45c   :  { %v10308_v39 = vadd.f32 %v10302_v51, %v2671_v8  ;;  %v10362_v62 = vmul.f32 %v10297_v10, %v10057_v56  ;;  %v10366_v24 = vmul.f32 %v10297_v10, %v10063_v55  ;;  %v10370_v33 = vmul.f32 %v10297_v10, %v10069_v43 }
 0x45d   :  { %v10374_v57 = vmul.f32 %v10297_v10, %v10075_v21  ;;  %v10378_v60 = vmul.f32 %v10297_v10, %v10081_v23  ;;  %v10382_v59 = vmul.f32 %v10297_v10, %v10087_v42  ;;  %v10386_v56 = vmul.f32 %v10297_v10, %v10093_v6  ;;  %v14078_v42 = vld [vmem:[#allocation19_spill] sm:$0xff] }
 0x45e   :  { %14077 = vst [vmem:[#allocation30_spill] sm:$0xff] %v10308_v39  ;;  %v10390_v43 = vmul.f32 %v10297_v10, %v10099_v46  ;;  %v10394_v21 = vmul.f32 %v10297_v10, %v10105_v53  ;;  %v10398_v55 = vmul.f32 %v10297_v10, %v10111_v45  ;;  %v10402_v23 = vmul.f32 %v10297_v10, %v10117_v38  ;;  %v8187_v46 = vld [vmem:[%s13729_s4 + $0x78] sm:$0xff] }
 0x45f   :  { %v10406_v6 = vmul.f32 %v10297_v10, %v14078_v42  ;;  %v10413_v53 = vmul.f32 %v10297_v10, %v14079_v16  ;;  %v10417_v45 = vmul.f32 %v10297_v10, %v14080_v54  ;;  %v10421_v38 = vmul.f32 %v10297_v10, %v14081_v2  ;;  %4767 = vmatpush.bf16.msra.mxu2 %v8187_v46  ;;  %v14083_v16 = vld [vmem:[#allocation25_spill] sm:$0xff]  ;;  %v14084_v54 = vld [vmem:[#allocation26_spill] sm:$0xff]  ;;  %v14085_v2 = vld [vmem:[#allocation27_spill] sm:$0xff] }
 0x460   :  { %v10425_v4 = vmul.f32 %v10297_v10, %v10147_v63  ;;  %v10429_v58 = vmul.f32 %v10297_v10, %v10153_v26  ;;  %v10433_v22 = vmul.f32 %v10297_v10, %v10159_v37  ;;  %v10437_v19 = vmul.f32 %v10297_v10, %v10165_v14  ;;  %v8195_v63 = vld [vmem:[%s13729_s4 + $0xb8] sm:$0xff] }
 0x461   :  { %v10441_v61 = vmul.f32 %v10297_v10, %v10171_v47  ;;  %v10448_v26 = vmul.f32 %v10297_v10, %v14082_v30  ;;  %v10452_v37 = vmul.f32 %v10297_v10, %v10183_v9  ;;  %v10456_v14 = vmul.f32 %v10297_v10, %v10189_v32  ;;  %4936 = vmatpush.bf16.msra.mxu3 %v8195_v63  ;;  %v14086_v63 = vld [vmem:[#allocation18_spill] sm:$0xff] }
 0x462   :  { %v10460_v47 = vmul.f32 %v10297_v10, %v10195_v5  ;;  %v10464_v8 = vmul.f32 %v10297_v10, %v10201_v34  ;;  %v10468_v42 = vmul.f32 %v10297_v10, %v10207_v29  ;;  %v10472_v9 = vmul.f32 %v10297_v10, %v10213_v7  ;;  %v8186_v5 = vld [vmem:[%s13729_s4 + $0x70] sm:$0xff] }
 0x463   :  { %v10476_v32 = vmul.f32 %v10297_v10, %v10219_v3  ;;  %v10483_v34 = vmul.f32 %v10297_v10, %v10225_v20  ;;  %v10487_v29 = vmul.f32 %v10297_v10, %v10231_v52  ;;  %v10491_v7 = vmul.f32 %v10297_v10, %v10237_v35  ;;  %4768 = vmatpush.bf16.msra.mxu2 %v8186_v5  ;;  %v14089_v5 = vld [vmem:[#allocation11_spill] sm:$0xff] }
 0x464   :  { %v10495_v3 = vmul.f32 %v10297_v10, %v10243_v18  ;;  %v10499_v46 = vmul.f32 %v10297_v10, %v10249_v13  ;;  %v10503_v20 = vmul.f32 %v10297_v10, %v14083_v16  ;;  %v10507_v52 = vmul.f32 %v10297_v10, %v10261_v49  ;;  %v8194_v18 = vld [vmem:[%s13729_s4 + $0xb0] sm:$0xff]  ;;  %v14087_v16 = vld [vmem:[#allocation20_spill] sm:$0xff] }
 0x465   :  { %v10511_v35 = vmul.f32 %v10297_v10, %v14084_v54  ;;  %v10518_v13 = vmul.f32 %v10297_v10, %v14085_v2  ;;  %v10522_v30 = vmul.f32 %v10297_v10, %v14086_v63  ;;  %v10526_v49 = vmul.f32 %v10297_v10, %v14087_v16  ;;  %4937 = vmatpush.bf16.msra.mxu3 %v8194_v18  ;;  %v8185_v16 = vld [vmem:[%s13729_s4 + $0x68] sm:$0xff] }
 0x466   :  { %v10530_v54 = vmul.f32 %v10297_v10, %v14088_v48  ;;  %v10534_v39 = vmul.f32 %v10297_v10, %v14089_v5  ;;  %v10537_v51 = vmul.f32 %v10295_v17, %v2549_v50  ;;  %v10540_v2 = vmul.f32 %v10295_v17, %v2550_v36 }
 0x467   :  { %v10543_v63 = vmul.f32 %v10295_v17, %v2551_v1  ;;  %v10550_v48 = vmul.f32 %v10295_v17, %v10318_v12  ;;  %v10554_v5 = vmul.f32 %v10295_v17, %v10322_v40  ;;  %v10558_v50 = vmul.f32 %v10295_v17, %v10326_v44  ;;  %4769 = vmatpush.bf16.msra.mxu2 %v8185_v16 }
 0x468   :  { %v10562_v36 = vmul.f32 %v10295_v17, %v10330_v15  ;;  %v10566_v1 = vmul.f32 %v10295_v17, %v10334_v0  ;;  %v10570_v12 = vmul.f32 %v10295_v17, %v10338_v31  ;;  %v10574_v40 = vmul.f32 %v10295_v17, %v10342_v25  ;;  %v8193_v15 = vld [vmem:[%s13729_s4 + $0xa8] sm:$0xff] }
 0x469   :  { %v10578_v44 = vmul.f32 %v10295_v17, %v10346_v41  ;;  %v10585_v0 = vmul.f32 %v10295_v17, %v10350_v28  ;;  %v10589_v31 = vmul.f32 %v10295_v17, %v10354_v27  ;;  %v10593_v25 = vmul.f32 %v10295_v17, %v10358_v11  ;;  %4938 = vmatpush.bf16.msra.mxu3 %v8193_v15 }
 0x46a   :  { %v10597_v41 = vmul.f32 %v10295_v17, %v10362_v62  ;;  %v10601_v18 = vmul.f32 %v10295_v17, %v10366_v24  ;;  %v10605_v28 = vmul.f32 %v10295_v17, %v10370_v33  ;;  %v10609_v27 = vmul.f32 %v10295_v17, %v10374_v57  ;;  %v8184_v62 = vld [vmem:[%s13729_s4 + $0x60] sm:$0xff] }
 0x46b   :  { %v10613_v11 = vmul.f32 %v10295_v17, %v10378_v60  ;;  %v10620_v24 = vmul.f32 %v10295_v17, %v10382_v59  ;;  %v10624_v33 = vmul.f32 %v10295_v17, %v10386_v56  ;;  %v10628_v57 = vmul.f32 %v10295_v17, %v10390_v43  ;;  %4770 = vmatpush.bf16.msra.mxu2 %v8184_v62 }
 0x46c   :  { %v10632_v60 = vmul.f32 %v10295_v17, %v10394_v21  ;;  %v10636_v16 = vmul.f32 %v10295_v17, %v10398_v55  ;;  %v10640_v59 = vmul.f32 %v10295_v17, %v10402_v23  ;;  %v10644_v56 = vmul.f32 %v10295_v17, %v10406_v6  ;;  %v8177_v21 = vld [vmem:[%s13729_s4 + $0x28] sm:$0xff]  ;;  %v8192_v55 = vld [vmem:[%s13729_s4 + $0xa0] sm:$0xff] }
 0x46d   :  { %v10648_v43 = vmul.f32 %v10295_v17, %v10413_v53  ;;  %v10658_v23 = vmul.f32 %v10295_v17, %v10417_v45  ;;  %v10662_v6 = vmul.f32 %v10295_v17, %v10421_v38  ;;  %v10666_v53 = vmul.f32 %v10295_v17, %v10425_v4  ;;  %4600 = vmatpush.bf16.msrb.mxu1 %v8177_v21 }
 0x46e   :  { %v10670_v15 = vmul.f32 %v10295_v17, %v10429_v58  ;;  %v10674_v62 = vmul.f32 %v10295_v17, %v10433_v22  ;;  %v10678_v45 = vmul.f32 %v10295_v17, %v10437_v19  ;;  %v10682_v38 = vmul.f32 %v10295_v17, %v10441_v61  ;;  %v8183_v58 = vld [vmem:[%s13729_s4 + $0x58] sm:$0xff]  ;;  %4939 = vmatpush.bf16.msra.mxu3 %v8192_v55 }
 0x46f   :  { %v10686_v4 = vmul.f32 %v10295_v17, %v10448_v26  ;;  %v10693_v22 = vmul.f32 %v10295_v17, %v10452_v37  ;;  %v10697_v19 = vmul.f32 %v10295_v17, %v10456_v14  ;;  %v10701_v61 = vmul.f32 %v10295_v17, %v10460_v47  ;;  %4771 = vmatpush.bf16.msra.mxu2 %v8183_v58 }
 0x470   :  { %v10705_v26 = vmul.f32 %v10295_v17, %v10464_v8  ;;  %v10709_v21 = vmul.f32 %v10295_v17, %v10468_v42  ;;  %v10713_v37 = vmul.f32 %v10295_v17, %v10472_v9  ;;  %v10717_v14 = vmul.f32 %v10295_v17, %v10476_v32  ;;  %v8176_v8 = vld [vmem:[%s13729_s4 + $0x20] sm:$0xff]  ;;  %v8191_v42 = vld [vmem:[%s13729_s4 + $0x98] sm:$0xff] }
 0x471   :  { %v10721_v47 = vmul.f32 %v10295_v17, %v10483_v34  ;;  %v10731_v9 = vmul.f32 %v10295_v17, %v10487_v29  ;;  %v10735_v32 = vmul.f32 %v10295_v17, %v10491_v7  ;;  %v10739_v34 = vmul.f32 %v10295_v17, %v10495_v3  ;;  %4601 = vmatpush.bf16.msrb.mxu1 %v8176_v8  ;;  %v8175_v8 = vld [vmem:[%s13729_s4 + $0x18] sm:$0xff] }
 0x472   :  { %v10743_v55 = vmul.f32 %v10295_v17, %v10499_v46  ;;  %v10747_v58 = vmul.f32 %v10295_v17, %v10503_v20  ;;  %v10751_v29 = vmul.f32 %v10295_v17, %v10507_v52  ;;  %v10755_v7 = vmul.f32 %v10295_v17, %v10511_v35  ;;  %v8182_v46 = vld [vmem:[%s13729_s4 + $0x50] sm:$0xff]  ;;  %4940 = vmatpush.bf16.msra.mxu3 %v8191_v42 }
 0x473   :  { %v10759_v3 = vmul.f32 %v10295_v17, %v10518_v13  ;;  %v10766_v20 = vmul.f32 %v10295_v17, %v10522_v30  ;;  %v10770_v52 = vmul.f32 %v10295_v17, %v10526_v49  ;;  %v10774_v35 = vmul.f32 %v10295_v17, %v10530_v54  ;;  %4772 = vmatpush.bf16.msra.mxu2 %v8182_v46  ;;  %v8190_v30 = vld [vmem:[%s13729_s4 + $0x90] sm:$0xff]  ;;  %v14090_v49 = vld [vmem:[#allocation29_spill] sm:$0xff]  ;;  %v8181_v46 = vld [vmem:[%s13729_s4 + $0x48] sm:$0xff] }
 0x474   :  { %v10778_v13 = vmul.f32 %v10295_v17, %v10534_v39  ;;  %v10788_v10 = vadd.f32 %v14090_v49, %v10537_v51  ;;  %v10792_v54 = vadd.f32 %v14090_v49, %v10540_v2  ;;  %v10796_v39 = vadd.f32 %v14090_v49, %v10543_v63 }
 0x475   :  { %v10800_v42 = vadd.f32 %v14090_v49, %v10550_v48  ;;  %4602 = vmatpush.bf16.msrb.mxu1 %v8175_v8  ;;  %v10807_v51 = vadd.f32 %v14090_v49, %v10554_v5  ;;  %v10811_v2 = vadd.f32 %v14090_v49, %v10558_v50  ;;  %v10815_v63 = vadd.f32 %v14090_v49, %v10562_v36 }
 0x476   :  { %v10819_v48 = vadd.f32 %v14090_v49, %v10566_v1  ;;  %4941 = vmatpush.bf16.msra.mxu3 %v8190_v30  ;;  %v10823_v8 = vadd.f32 %v14090_v49, %v10570_v12  ;;  %v10827_v5 = vadd.f32 %v14090_v49, %v10574_v40  ;;  %v10831_v50 = vadd.f32 %v14090_v49, %v10578_v44  ;;  %v8174_v1 = vld [vmem:[%s13729_s4 + $0x10] sm:$0xff]  ;;  %v8189_v12 = vld [vmem:[%s13729_s4 + $0x88] sm:$0xff] }
 0x477   :  { %v10835_v36 = vadd.f32 %v14090_v49, %v10585_v0  ;;  %4773 = vmatpush.bf16.msra.mxu2 %v8181_v46  ;;  %v10845_v40 = vadd.f32 %v14090_v49, %v10589_v31  ;;  %v10849_v44 = vadd.f32 %v14090_v49, %v10593_v25  ;;  %v10853_v0 = vadd.f32 %v14090_v49, %v10597_v41 }
 0x478   :  { %v10857_v30 = vadd.f32 %v14090_v49, %v10601_v18  ;;  %v10861_v46 = vadd.f32 %v14090_v49, %v10605_v28  ;;  %v10865_v31 = vadd.f32 %v14090_v49, %v10609_v27  ;;  %v10869_v25 = vadd.f32 %v14090_v49, %v10613_v11  ;;  %v8180_v18 = vld [vmem:[%s13729_s4 + $0x40] sm:$0xff] }
 0x479   :  { %v10873_v41 = vadd.f32 %v14090_v49, %v10620_v24  ;;  %4603 = vmatpush.bf16.msrb.mxu1 %v8174_v1  ;;  %v10880_v28 = vadd.f32 %v14090_v49, %v10624_v33  ;;  %v10884_v27 = vadd.f32 %v14090_v49, %v10628_v57  ;;  %v10888_v11 = vadd.f32 %v14090_v49, %v10632_v60 }
 0x47a   :  { %v10892_v24 = vadd.f32 %v14090_v49, %v10636_v16  ;;  %4942 = vmatpush.bf16.msra.mxu3 %v8189_v12  ;;  %v10896_v1 = vadd.f32 %v14090_v49, %v10640_v59  ;;  %v10900_v33 = vadd.f32 %v14090_v49, %v10644_v56  ;;  %v10904_v57 = vadd.f32 %v14090_v49, %v10648_v43  ;;  %v8173_v16 = vld [vmem:[%s13729_s4 + $0x8] sm:$0xff]  ;;  %v8188_v59 = vld [vmem:[%s13729_s4 + $0x80] sm:$0xff]  ;;  %v8203_v56 = vld [vmem:[%s13729_s4 + $0xf8] sm:$0xff] }
 0x47b   :  { %v10908_v60 = vadd.f32 %v14090_v49, %v10658_v23  ;;  %4774 = vmatpush.bf16.msra.mxu2 %v8180_v18  ;;  %v10921_v43 = vadd.f32 %v14090_v49, %v10662_v6  ;;  %v10925_v23 = vadd.f32 %v14090_v49, %v10666_v53  ;;  %v10929_v12 = vadd.f32 %v14090_v49, %v10670_v15 }
 0x47c   :  { %v10933_v18 = vadd.f32 %v14090_v49, %v10674_v62  ;;  %v10941_v6 = vadd.f32 %v14090_v49, %v10682_v38  ;;  %v10945_v53 = vadd.f32 %v14090_v49, %v10686_v4  ;;  %v10949_v15 = vadd.f32 %v14090_v49, %v10693_v22  ;;  %5105 = vmatpush.bf16.msra.mxu0 %v8203_v56 }
 0x47d   :  { %14091 = vst [vmem:[#allocation31_spill] sm:$0xff] %v10908_v60  ;;  %v10937_v60 = vadd.f32 %v14090_v49, %v10678_v45  ;;  %4604 = vmatpush.bf16.msrb.mxu1 %v8173_v16  ;;  %v10953_v62 = vadd.f32 %v14090_v49, %v10697_v19  ;;  %v10957_v45 = vadd.f32 %v14090_v49, %v10701_v61 }
 0x47e   :  { %v10961_v38 = vadd.f32 %v14090_v49, %v10705_v26  ;;  %v10965_v4 = vadd.f32 %v14090_v49, %v10709_v21  ;;  %4943 = vmatpush.bf16.msra.mxu3 %v8188_v59  ;;  %v10969_v22 = vadd.f32 %v14090_v49, %v10713_v37  ;;  %v10973_v19 = vadd.f32 %v14090_v49, %v10717_v14  ;;  %v8172_v21 = vld [vmem:[%s13729_s4] sm:$0xff] }
 0x47f   :  { %v10977_v61 = vadd.f32 %v14090_v49, %v10721_v47  ;;  %v10981_v26 = vadd.f32 %v14090_v49, %v10731_v9  ;;  %v10988_v37 = vadd.f32 %v14090_v49, %v10735_v32  ;;  %v10992_v14 = vadd.f32 %v14090_v49, %v10739_v34  ;;  %v14109_v59 = vld [vmem:[#allocation13_spill] sm:$0xff] }
 0x480   :  { %14092 = vst [vmem:[#allocation33_spill] sm:$0xff] %v10961_v38  ;;  %v10996_v47 = vadd.f32 %v14090_v49, %v10743_v55  ;;  %v11000_v9 = vadd.f32 %v14090_v49, %v10747_v58  ;;  %v11004_v16 = vadd.f32 %v14090_v49, %v10751_v29  ;;  %v11008_v32 = vadd.f32 %v14090_v49, %v10755_v7 }
 0x481   :  { %14093 = vst [vmem:[#allocation34_spill] sm:$0xff] %v10965_v4  ;;  %v11012_v34 = vadd.f32 %v14090_v49, %v10759_v3  ;;  %v11016_v55 = vadd.f32 %v14090_v49, %v10766_v20  ;;  %4605 = vmatpush.bf16.msrb.mxu1 %v8172_v21  ;;  %v11020_v58 = vadd.f32 %v14090_v49, %v10770_v52  ;;  %v14110_v3 = vld [vmem:[#allocation28_spill] sm:$0xff]  ;;  %v8202_v21 = vld [vmem:[%s13729_s4 + $0xf0] sm:$0xff] }
 0x482   :  { %14094 = vst [vmem:[#allocation35_spill] sm:$0xff] %v10969_v22  ;;  %v11024_v29 = vadd.f32 %v14090_v49, %v10774_v35  ;;  %v11028_v7 = vadd.f32 %v14090_v49, %v10778_v13  ;;  %v2541_v56 = vmul.f32 %v14110_v3, %v14109_v59  ;;  %v8211_v52 = vld [vmem:[%s13729_s4 + $0x138] sm:$0xff]  ;;  %5106 = vmatpush.bf16.msra.mxu0 %v8202_v21  ;;  %v14113_v59 = vld [vmem:[#allocation15_spill] sm:$0xff] }
 0x483   :  { %14095 = vst [vmem:[#allocation36_spill] sm:$0xff] %v10973_v19  ;;  %v14112_v35 = vld [vmem:[#allocation8_spill] sm:$0xff] }
 0x484   :  { %14096 = vst [vmem:[#allocation37_spill] sm:$0xff] %v10977_v61  ;;  %v2608_v13 = vmul.f32 %v10295_v17, %v2541_v56  ;;  %v8200_v56 = vld [vmem:[%s13729_s4 + $0xe0] sm:$0xff]  ;;  %v8302_v61 = vmov 0  }
 0x485   :  { %14097 = vst [vmem:[#allocation38_spill] sm:$0xff] %v10981_v26  ;;  %5274 = vmatpush.bf16.msra.mxu1 %v8211_v52 }
 0x486   :  { %14098 = vst [vmem:[#allocation39_spill] sm:$0xff] %v10988_v37  ;;  %v14114_v37 = vld [vmem:[#allocation10_spill] sm:$0xff] }
 0x487   :  { %14099 = vst [vmem:[#allocation40_spill] sm:$0xff] %v10992_v14 }
 0x488   :  { %14100 = vst [vmem:[#allocation41_spill] sm:$0xff] %v10996_v47 }
 0x489   :  { %14101 = vst [vmem:[#allocation42_spill] sm:$0xff] %v11000_v9 }
 0x48a   :  { %14102 = vst [vmem:[#allocation43_spill] sm:$0xff] %v11004_v16 }
 0x48b   :  { %14103 = vst [vmem:[#allocation44_spill] sm:$0xff] %v11008_v32  ;;  %v2675_v32 = vadd.f32 %v14090_v49, %v2608_v13  ;;  %v2747_v13 = vmax.f32 %v10788_v10, 0.0 }
 0x48c   :  { %14104 = vst [vmem:[#allocation45_spill] sm:$0xff] %v11012_v34  ;;  %v14111_v34 = vld [vmem:[#allocation52_spill] sm:$0xff] }
 0x48d   :  { %14105 = vst [vmem:[#allocation46_spill] sm:$0xff] %v11016_v55  ;;  %v2542_v20 = vmul.f32 %v14110_v3, %v14111_v34  ;;  %v8201_v34 = vld [vmem:[%s13729_s4 + $0xe8] sm:$0xff] }
 0x48e   :  { %14106 = vst [vmem:[#allocation47_spill] sm:$0xff] %v11020_v58  ;;  %v2544_v58 = vmul.f32 %v14110_v3, %v14113_v59  ;;  %5107 = vmatpush.bf16.msra.mxu0 %v8201_v34  ;;  %v2749_v34 = vmax.f32 %v10796_v39, 0.0  ;;  %v2750_v59 = vmax.f32 %v10800_v42, 0.0  ;;  %v14115_v39 = vld [vmem:[#allocation12_spill] sm:$0xff] }
 0x48f   :  { %14107 = vst [vmem:[#allocation48_spill] sm:$0xff] %v11024_v29  ;;  %v2543_v29 = vmul.f32 %v14110_v3, %v14112_v35  ;;  %v2739_v35 = vmax.f32 %v2675_v32, 0.0  ;;  %v2811_v32 = vpack.c.bf16 %v2747_v13, %v2747_v13  ;;  %v2546_v42 = vmul.f32 %v14110_v3, %v14115_v39 }
 0x490   :  { %14108 = vst [vmem:[#allocation49_spill] sm:$0xff] %v11028_v7  ;;  %v2609_v7 = vmul.f32 %v10295_v17, %v2542_v20  ;;  %v2611_v20 = vmul.f32 %v10295_v17, %v2544_v58  ;;  %v2813_v14 = vpack.c.bf16 %v2749_v34, %v2749_v34  ;;  %v2814_v10 = vpack.c.bf16 %v2750_v59, %v2750_v59 }
 0x491   :  { %v2610_v55 = vmul.f32 %v10295_v17, %v2543_v29  ;;  %v8199_v29 = vld [vmem:[%s13729_s4 + $0xd8] sm:$0xff]  ;;  %v2803_v47 = vpack.c.bf16 %v2739_v35, %v2739_v35  ;;  %v3030_v39 = vrot.slane %v8302_v61, 7 }
 0x492   :  { %v2676_v16 = vadd.f32 %v14090_v49, %v2609_v7  ;;  %5108 = vmatpush.bf16.msra.mxu0 %v8200_v56  ;;  %v2748_v7 = vmax.f32 %v10792_v54, 0.0  ;;  %v2678_v9 = vadd.f32 %v14090_v49, %v2611_v20  ;;  %v2545_v54 = vmul.f32 %v14110_v3, %v14114_v37 }
 0x493   :  { %v2677_v21 = vadd.f32 %v14090_v49, %v2610_v55  ;;  %v2942_v34 = vunpack.c.l.b16 %v2814_v10  ;;  %v11090_v61 = vsel %vm11076_vm7, 0, %v3030_v39 }
 0x494   :  { %v2740_v52 = vmax.f32 %v2676_v16, 0.0  ;;  %v8198_v16 = vld [vmem:[%s13729_s4 + $0xd0] sm:$0xff]  ;;  %v2812_v56 = vpack.c.bf16 %v2748_v7, %v2748_v7  ;;  %v2742_v26 = vmax.f32 %v2678_v9, 0.0  ;;  %v2941_v7 = vunpack.c.l.b16 %v2813_v14  ;;  %14119 = vst [vmem:[#allocation5_spill] sm:$0xff] %v11090_v61  ;;  %4606 = vmatmul.bf16.vlgmr.msrb.gmra.mxu1 %v11090_v61 }
 0x495   :  { %v2741_v58 = vmax.f32 %v2677_v21, 0.0  ;;  %v2931_v21 = vunpack.c.l.b16 %v2803_v47  ;;  %v2612_v37 = vmul.f32 %v10295_v17, %v2545_v54  ;;  %v8196_v47 = vld [vmem:[%s13729_s4 + $0xc0] sm:$0xff]  ;;  %v2613_v14 = vmul.f32 %v10295_v17, %v2546_v42 }
 0x496   :  { %v2804_v55 = vpack.c.bf16 %v2740_v52, %v2740_v52  ;;  %5109 = vmatpush.bf16.msra.mxu0 %v8199_v29  ;;  %v8197_v52 = vld [vmem:[%s13729_s4 + $0xc8] sm:$0xff]  ;;  %v2939_v29 = vunpack.c.l.b16 %v2811_v32  ;;  %v2940_v13 = vunpack.c.l.b16 %v2812_v56  ;;  %v2806_v59 = vpack.c.bf16 %v2742_v26, %v2742_v26 }
 0x497   :  { %v2805_v20 = vpack.c.bf16 %v2741_v58, %v2741_v58  ;;  %v11086_v32 = vpack.c.b16 %v2942_v34, %v2941_v7  ;;  %v3360_v26 = vsel %vm11076_vm7, %v3030_v39, 0  ;;  %v3395_v10 = vshrl.u32 %v11090_v61, 16 }
 0x498   :  { %v2932_v35 = vunpack.c.l.b16 %v2804_v55  ;;  %v3397_v54 = vshll.u32 %v11090_v61, 16  ;;  %v3860_v42 = vrot.slane %v11090_v61, 1  ;;  %v2679_v22 = vadd.f32 %v14090_v49, %v2612_v37 }
 0x499   :  { %v2933_v55 = vunpack.c.l.b16 %v2805_v20  ;;  %14118 = vst [vmem:[#allocation50_spill] sm:$0xff] %v11086_v32  ;;  %v2934_v20 = vunpack.c.l.b16 %v2806_v59  ;;  %v2680_v32 = vadd.f32 %v14090_v49, %v2613_v14 }
 0x49a   :  { %5110 = vmatpush.bf16.msra.mxu0 %v8198_v16  ;;  %v2995_v58 = vpack.c.b16 %v2932_v35, %v2931_v21  ;;  %v11084_v16 = vpack.c.b16 %v2940_v13, %v2939_v29  ;;  %v3402_v21 = vshll.u32 %v3360_v26, 16  ;;  %v3861_v35 = vrot.slane %v3360_v26, 1 }
 0x49b   :  { %v3399_v13 = vrot.slane %v3397_v54, 1  ;;  %v2752_v26 = vmax.f32 %v10811_v2, 0.0  ;;  %v2754_v54 = vmax.f32 %v10819_v48, 0.0  ;;  %v2743_v14 = vmax.f32 %v2679_v22, 0.0 }
 0x49c   :  { %v3035_v56 = vshrl.u32 %v2995_v58, 16  ;;  %v3038_v29 = vshll.u32 %v2995_v58, 16  ;;  %v3404_v7 = vrot.slane %v3402_v21, 1  ;;  %v11099_v34 = vsel %vm3859_vm8, %v3860_v42, %v3861_v35 }
 0x49d   :  { %14120 = vst [vmem:[#allocation6_spill] sm:$0xff] %v11099_v34  ;;  %v3400_v19 = vor.u32 %v3399_v13, %v3395_v10  ;;  %4944 = vmatmul.bf16.vlgmr.msra.gmra.mxu3 %v11099_v34  ;;  %v2751_v58 = vmax.f32 %v10807_v51, 0.0  ;;  %v2753_v10 = vmax.f32 %v10815_v63, 0.0  ;;  %v2744_v21 = vmax.f32 %v2680_v32, 0.0  ;;  %v14123_v13 = vld [vmem:[#allocation51_spill] sm:$0xff] }
 0x49e   :  { %5111 = vmatpush.bf16.msra.mxu0 %v8197_v52  ;;  %v3037_v52 = vrot.slane %v3035_v56, 7  ;;  %v2548_v63 = vmul.f32 %v14110_v3, %v14123_v13  ;;  %v2755_v48 = vmax.f32 %v10823_v8, 0.0  ;;  %v2807_v32 = vpack.c.bf16 %v2743_v14, %v2743_v14 }
 0x49f   :  { %v11109_v56 = vsel %vm3393_vm9, %v3400_v19, %v3404_v7  ;;  %v2815_v35 = vpack.c.bf16 %v2751_v58, %v2751_v58  ;;  %v2817_v2 = vpack.c.bf16 %v2753_v10, %v2753_v10  ;;  %v2756_v7 = vmax.f32 %v10827_v5, 0.0 }
 0x4a0   :  { %v3040_v39 = vor.u32 %v3038_v29, %v3037_v52  ;;  %14121 = vst [vmem:[#allocation7_spill] sm:$0xff] %v11109_v56  ;;  %4775 = vmatmul.bf16.vlgmr.msra.gmra.mxu2 %v11109_v56  ;;  %v2818_v29 = vpack.c.bf16 %v2754_v54, %v2754_v54  ;;  %v3361_v19 = vsel %vm11076_vm7, %v3037_v52, 0  ;;  %v2935_v5 = vunpack.c.l.b16 %v2807_v32 }
 0x4a1   :  { %v2943_v56 = vunpack.c.l.b16 %v2815_v35  ;;  %v3414_v10 = vshll.u32 %v3361_v19, 16  ;;  %v2945_v54 = vunpack.c.l.b16 %v2817_v2  ;;  %v3864_v4 = vrot.slane %v3361_v19, 1 }
 0x4a2   :  { %5112 = vmatpush.bf16.msra.mxu0 %v8196_v47  ;;  %v3328_v59 = vsel %vm11076_vm7, 0, %v3040_v39  ;;  %v2996_v47 = vpack.c.b16 %v2934_v20, %v2933_v55  ;;  %v2816_v55 = vpack.c.bf16 %v2752_v26, %v2752_v26  ;;  %v14122_v20 = vld [vmem:[#allocation17_spill] sm:$0xff]  ;;  %v2808_v39 = vpack.c.bf16 %v2744_v21, %v2744_v21 }
 0x4a3   :  { %v3409_v37 = vshll.u32 %v3328_v59, 16  ;;  %v2547_v51 = vmul.f32 %v14110_v3, %v14122_v20  ;;  %v3863_v58 = vrot.slane %v3328_v59, 1  ;;  %v3407_v20 = vshrl.u32 %v3328_v59, 16 }
 0x4a4   :  { %v3042_v42 = vshrl.u32 %v2996_v47, 16  ;;  %v2944_v34 = vunpack.c.l.b16 %v2816_v55  ;;  %v2946_v61 = vunpack.c.l.b16 %v2818_v29  ;;  %v3045_v52 = vshll.u32 %v2996_v47, 16  ;;  %4611 = vmatmul.bf16.gmra.mxu1 %v3328_v59 }
 0x4a5   :  { %5113 = vmatmul.bf16.vlgmr.msra.gmra.mxu0 %v3328_v59  ;;  %v3411_v22 = vrot.slane %v3409_v37, 1  ;;  %v2614_v38 = vmul.f32 %v10295_v17, %v2547_v51  ;;  %v2615_v3 = vmul.f32 %v10295_v17, %v2548_v63  ;;  %v2936_v37 = vunpack.c.l.b16 %v2808_v39 }
 0x4a6   :  { %v3044_v26 = vrot.slane %v3042_v42, 7  ;;  %v11125_v14 = vsel %vm3859_vm8, %v3863_v58, %v3864_v4  ;;  %v2819_v42 = vpack.c.bf16 %v2755_v48, %v2755_v48  ;;  %v2820_v35 = vpack.c.bf16 %v2756_v7, %v2756_v7 }
 0x4a7   :  { %v3412_v8 = vor.u32 %v3411_v22, %v3407_v20  ;;  %v3416_v55 = vrot.slane %v3414_v10, 1  ;;  %v11127_v13 = vpack.c.b16 %v2944_v34, %v2943_v56  ;;  %v11129_v2 = vpack.c.b16 %v2946_v61, %v2945_v54 }
 0x4a8   :  { %v3047_v21 = vor.u32 %v3045_v52, %v3044_v26  ;;  %v2681_v47 = vadd.f32 %v14090_v49, %v2614_v38  ;;  %v2682_v51 = vadd.f32 %v14090_v49, %v2615_v3  ;;  %v2757_v4 = vmax.f32 %v10831_v50, 0.0 }
 0x4a9   :  { %v11135_v17 = vsel %vm3393_vm9, %v3412_v8, %v3416_v55  ;;  %v2758_v59 = vmax.f32 %v10835_v36, 0.0  ;;  %v2997_v34 = vpack.c.b16 %v2936_v37, %v2935_v5  ;;  %v2759_v61 = vmax.f32 %v10845_v40, 0.0 }
 0x4aa   :  { %v11141_v29 = vsel %vm11076_vm7, 0, %v3047_v21  ;;  %v2760_v38 = vmax.f32 %v10849_v44, 0.0  ;;  %v2947_v56 = vunpack.c.l.b16 %v2819_v42  ;;  %v2948_v49 = vunpack.c.l.b16 %v2820_v35 }
 0x4ab   :  { %v2761_v19 = vmax.f32 %v10853_v0, 0.0  ;;  %v2762_v63 = vmax.f32 %v10857_v30, 0.0  ;;  %v2745_v50 = vmax.f32 %v2681_v47, 0.0  ;;  %v2746_v36 = vmax.f32 %v2682_v51, 0.0 }
 0x4ac   :  { %v2821_v48 = vpack.c.bf16 %v2757_v4, %v2757_v4  ;;  %v2822_v7 = vpack.c.bf16 %v2758_v59, %v2758_v59  ;;  %v3049_v22 = vshrl.u32 %v2997_v34, 16  ;;  %v2823_v32 = vpack.c.bf16 %v2759_v61, %v2759_v61  ;;  %v8210_v4 = vld [vmem:[%s13729_s4 + $0x130] sm:$0xff] }
 0x4ad   :  { %4949 = vmatmul.bf16.gmra.mxu3 %v11125_v14  ;;  %v2824_v39 = vpack.c.bf16 %v2760_v38, %v2760_v38  ;;  %v3421_v40 = vshll.u32 %v11141_v29, 16  ;;  %v11150_v44 = vpack.c.b16 %v2948_v49, %v2947_v56  ;;  %v2825_v58 = vpack.c.bf16 %v2761_v19, %v2761_v19  ;;  %5275 = vmatpush.bf16.msra.mxu1 %v8210_v4 }
 0x4ae   :  { %v2826_v20 = vpack.c.bf16 %v2762_v63, %v2762_v63  ;;  %v2809_v10 = vpack.c.bf16 %v2745_v50, %v2745_v50  ;;  %v2810_v54 = vpack.c.bf16 %v2746_v36, %v2746_v36  ;;  %v2949_v0 = vunpack.c.l.b16 %v2821_v48 }
 0x4af   :  { %v3362_v30 = vsel %vm11076_vm7, %v3044_v26, 0  ;;  %v3051_v52 = vrot.slane %v3049_v22, 7  ;;  %v2950_v3 = vunpack.c.l.b16 %v2822_v7  ;;  %v2951_v8 = vunpack.c.l.b16 %v2823_v32 }
 0x4b0   :  { %4780 = vmatmul.bf16.gmra.mxu2 %v11135_v17  ;;  %v2952_v5 = vunpack.c.l.b16 %v2824_v39  ;;  %v3423_v37 = vrot.slane %v3421_v40, 1  ;;  %v2953_v21 = vunpack.c.l.b16 %v2825_v58  ;;  %v2954_v42 = vunpack.c.l.b16 %v2826_v20 }
 0x4b1   :  { %v3866_v35 = vrot.slane %v11141_v29, 1  ;;  %v3052_v55 = vshll.u32 %v2997_v34, 16  ;;  %v3419_v47 = vshrl.u32 %v11141_v29, 16  ;;  %v3426_v51 = vshll.u32 %v3362_v30, 16 }
 0x4b2   :  { %v2937_v26 = vunpack.c.l.b16 %v2809_v10  ;;  %v2938_v59 = vunpack.c.l.b16 %v2810_v54  ;;  %v3867_v61 = vrot.slane %v3362_v30, 1  ;;  %v11160_v49 = vpack.c.b16 %v2950_v3, %v2949_v0 }
 0x4b3   :  { %v3054_v38 = vor.u32 %v3052_v55, %v3051_v52  ;;  %v3424_v56 = vor.u32 %v3423_v37, %v3419_v47  ;;  %v11162_v19 = vpack.c.b16 %v2952_v5, %v2951_v8  ;;  %v2763_v34 = vmax.f32 %v10861_v46, 0.0 }
 0x4b4   :  { %4616 = vmatmul.bf16.gmra.mxu1 %v11141_v29  ;;  %v2764_v63 = vmax.f32 %v10865_v31, 0.0  ;;  %v11167_v50 = vsel %vm3859_vm8, %v3866_v35, %v3867_v61  ;;  %v11169_v36 = vpack.c.b16 %v2954_v42, %v2953_v21  ;;  %v3428_v48 = vrot.slane %v3426_v51, 1 }
 0x4b5   :  { %5118 = vmatmul.bf16.gmra.mxu0 %v11141_v29  ;;  %v2765_v7 = vmax.f32 %v10869_v25, 0.0  ;;  %v2766_v22 = vmax.f32 %v10873_v41, 0.0  ;;  %v11176_v32 = vsel %vm11076_vm7, 0, %v3054_v38  ;;  %v2998_v39 = vpack.c.b16 %v2938_v59, %v2937_v26 }
 0x4b6   :  { %v2767_v46 = vmax.f32 %v10880_v28, 0.0  ;;  %v2768_v31 = vmax.f32 %v10884_v27, 0.0  ;;  %v2769_v40 = vmax.f32 %v10888_v11, 0.0  ;;  %v11182_v58 = vsel %vm3393_vm9, %v3424_v56, %v3428_v48  ;;  %v14124_v27 = vld [vmem:[#allocation31_spill] sm:$0xff] }
 0x4b7   :  { %v2770_v25 = vmax.f32 %v10892_v24, 0.0  ;;  %v2827_v20 = vpack.c.bf16 %v2763_v34, %v2763_v34  ;;  %v2828_v41 = vpack.c.bf16 %v2764_v63, %v2764_v63  ;;  %v2771_v10 = vmax.f32 %v10896_v1, 0.0 }
 0x4b8   :  { %v2772_v54 = vmax.f32 %v10900_v33, 0.0  ;;  %v2773_v28 = vmax.f32 %v10904_v57, 0.0  ;;  %v2774_v0 = vmax.f32 %v14124_v27, 0.0  ;;  %v2829_v11 = vpack.c.bf16 %v2765_v7, %v2765_v7 }
 0x4b9   :  { %v2830_v30 = vpack.c.bf16 %v2766_v22, %v2766_v22  ;;  %v3056_v3 = vshrl.u32 %v2998_v39, 16  ;;  %v2831_v8 = vpack.c.bf16 %v2767_v46, %v2767_v46  ;;  %v2832_v5 = vpack.c.bf16 %v2768_v31, %v2768_v31 }
 0x4ba   :  { %v2833_v37 = vpack.c.bf16 %v2769_v40, %v2769_v40  ;;  %v3433_v24 = vshll.u32 %v11176_v32, 16  ;;  %v2834_v21 = vpack.c.bf16 %v2770_v25, %v2770_v25  ;;  %v2955_v42 = vunpack.c.l.b16 %v2827_v20 }
 0x4bb   :  { %v2956_v35 = vunpack.c.l.b16 %v2828_v41  ;;  %v2835_v55 = vpack.c.bf16 %v2771_v10, %v2771_v10  ;;  %v2836_v47 = vpack.c.bf16 %v2772_v54, %v2772_v54  ;;  %v2837_v1 = vpack.c.bf16 %v2773_v28, %v2773_v28 }
 0x4bc   :  { %v2838_v51 = vpack.c.bf16 %v2774_v0, %v2774_v0  ;;  %v2957_v33 = vunpack.c.l.b16 %v2829_v11  ;;  %v2958_v4 = vunpack.c.l.b16 %v2830_v30  ;;  %v3363_v57 = vsel %vm11076_vm7, %v3051_v52, 0 }
 0x4bd   :  { %4954 = vmatmul.bf16.gmra.mxu3 %v11167_v50  ;;  %v3058_v26 = vrot.slane %v3056_v3, 7  ;;  %v2959_v59 = vunpack.c.l.b16 %v2831_v8  ;;  %v2960_v61 = vunpack.c.l.b16 %v2832_v5  ;;  %v2961_v38 = vunpack.c.l.b16 %v2833_v37 }
 0x4be   :  { %v3435_v56 = vrot.slane %v3433_v24, 1  ;;  %v2962_v34 = vunpack.c.l.b16 %v2834_v21  ;;  %v3869_v63 = vrot.slane %v11176_v32, 1  ;;  %v3059_v48 = vshll.u32 %v2998_v39, 16 }
 0x4bf   :  { %v11195_v7 = vpack.c.b16 %v2956_v35, %v2955_v42  ;;  %v2963_v22 = vunpack.c.l.b16 %v2835_v55  ;;  %v2964_v46 = vunpack.c.l.b16 %v2836_v47  ;;  %v3431_v31 = vshrl.u32 %v11176_v32, 16 }
 0x4c0   :  { %4785 = vmatmul.bf16.gmra.mxu2 %v11182_v58  ;;  %v3438_v40 = vshll.u32 %v3363_v57, 16  ;;  %v2965_v25 = vunpack.c.l.b16 %v2837_v1  ;;  %v2966_v52 = vunpack.c.l.b16 %v2838_v51  ;;  %v3870_v20 = vrot.slane %v3363_v57, 1 }
 0x4c1   :  { %v3061_v41 = vor.u32 %v3059_v48, %v3058_v26  ;;  %v3436_v10 = vor.u32 %v3435_v56, %v3431_v31  ;;  %v11202_v28 = vpack.c.b16 %v2958_v4, %v2957_v33  ;;  %v11205_v27 = vpack.c.b16 %v2960_v61, %v2959_v59 }
 0x4c2   :  { %v11200_v54 = vsel %vm3859_vm8, %v3869_v63, %v3870_v20  ;;  %v3440_v39 = vrot.slane %v3438_v40, 1  ;;  %v11207_v0 = vpack.c.b16 %v2962_v34, %v2961_v38  ;;  %v11209_v11 = vpack.c.b16 %v2964_v46, %v2963_v22 }
 0x4c3   :  { %v2775_v30 = vmax.f32 %v10921_v43, 0.0  ;;  %v11214_v3 = vsel %vm11076_vm7, 0, %v3061_v41  ;;  %v11216_v8 = vpack.c.b16 %v2966_v52, %v2965_v25  ;;  %v2776_v5 = vmax.f32 %v10925_v23, 0.0 }
 0x4c4   :  { %4621 = vmatmul.bf16.gmra.mxu1 %v11176_v32  ;;  %v2777_v37 = vmax.f32 %v10929_v12, 0.0  ;;  %v2778_v24 = vmax.f32 %v10933_v18, 0.0  ;;  %v11222_v21 = vsel %vm3393_vm9, %v3436_v10, %v3440_v39  ;;  %v2779_v42 = vmax.f32 %v10937_v60, 0.0 }
 0x4c5   :  { %5123 = vmatmul.bf16.gmra.mxu0 %v11176_v32  ;;  %v2780_v43 = vmax.f32 %v10941_v6, 0.0  ;;  %v2839_v35 = vpack.c.bf16 %v2775_v30, %v2775_v30  ;;  %v3063_v55 = vshrl.u32 %v11084_v16, 16  ;;  %v2840_v47 = vpack.c.bf16 %v2776_v5, %v2776_v5 }
 0x4c6   :  { %v2841_v23 = vpack.c.bf16 %v2777_v37, %v2777_v37  ;;  %v2842_v1 = vpack.c.bf16 %v2778_v24, %v2778_v24  ;;  %v3445_v12 = vshll.u32 %v11214_v3, 16  ;;  %v2843_v18 = vpack.c.bf16 %v2779_v42, %v2779_v42  ;;  %v14125_v24 = vld [vmem:[#allocation33_spill] sm:$0xff] }
 0x4c7   :  { %v2844_v51 = vpack.c.bf16 %v2780_v43, %v2780_v43  ;;  %v2967_v33 = vunpack.c.l.b16 %v2839_v35  ;;  %v3364_v4 = vsel %vm11076_vm7, %v3058_v26, 0  ;;  %v3065_v57 = vrot.slane %v3063_v55, 7  ;;  %v14126_v43 = vld [vmem:[#allocation34_spill] sm:$0xff] }
 0x4c8   :  { %v2968_v60 = vunpack.c.l.b16 %v2840_v47  ;;  %v2969_v59 = vunpack.c.l.b16 %v2841_v23  ;;  %v2970_v6 = vunpack.c.l.b16 %v2842_v1  ;;  %v3447_v61 = vrot.slane %v3445_v12, 1  ;;  %v14127_v55 = vld [vmem:[#allocation50_spill] sm:$0xff] }
 0x4c9   :  { %v2971_v38 = vunpack.c.l.b16 %v2843_v18  ;;  %v2972_v56 = vunpack.c.l.b16 %v2844_v51  ;;  %v3872_v34 = vrot.slane %v11214_v3, 1  ;;  %v3066_v63 = vshll.u32 %v11084_v16, 16 }
 0x4ca   :  { %v3443_v48 = vshrl.u32 %v11214_v3, 16  ;;  %v3450_v22 = vshll.u32 %v3364_v4, 16  ;;  %v3873_v46 = vrot.slane %v3364_v4, 1  ;;  %v11236_v26 = vpack.c.b16 %v2968_v60, %v2967_v33 }
 0x4cb   :  { %v3068_v31 = vor.u32 %v3066_v63, %v3065_v57  ;;  %v11241_v52 = vpack.c.b16 %v2970_v6, %v2969_v59  ;;  %v11243_v20 = vpack.c.b16 %v2972_v56, %v2971_v38  ;;  %v2781_v41 = vmax.f32 %v10945_v53, 0.0 }
 0x4cc   :  { %v3448_v40 = vor.u32 %v3447_v61, %v3443_v48  ;;  %v11239_v25 = vsel %vm3859_vm8, %v3872_v34, %v3873_v46  ;;  %v3452_v16 = vrot.slane %v3450_v22, 1  ;;  %v2782_v39 = vmax.f32 %v10949_v15, 0.0 }
 0x4cd   :  { %4959 = vmatmul.bf16.gmra.mxu3 %v11200_v54  ;;  %v11249_v10 = vsel %vm11076_vm7, 0, %v3068_v31  ;;  %v2783_v30 = vmax.f32 %v10953_v62, 0.0  ;;  %v2784_v5 = vmax.f32 %v10957_v45, 0.0  ;;  %v2785_v42 = vmax.f32 %v14125_v24, 0.0 }
 0x4ce   :  { %v11255_v37 = vsel %vm3393_vm9, %v3448_v40, %v3452_v16  ;;  %v2786_v35 = vmax.f32 %v14126_v43, 0.0  ;;  %v2845_v53 = vpack.c.bf16 %v2781_v41, %v2781_v41  ;;  %v3070_v47 = vshrl.u32 %v14127_v55, 16  ;;  %v14128_v16 = vld [vmem:[#allocation35_spill] sm:$0xff]  ;;  %v14130_v43 = vld [vmem:[#allocation37_spill] sm:$0xff] }
 0x4cf   :  { %v2846_v23 = vpack.c.bf16 %v2782_v39, %v2782_v39  ;;  %v2847_v15 = vpack.c.bf16 %v2783_v30, %v2783_v30  ;;  %v2848_v1 = vpack.c.bf16 %v2784_v5, %v2784_v5  ;;  %v3457_v62 = vshll.u32 %v11249_v10, 16  ;;  %v14129_v39 = vld [vmem:[#allocation36_spill] sm:$0xff] }
 0x4d0   :  { %4790 = vmatmul.bf16.gmra.mxu2 %v11222_v21  ;;  %v2849_v45 = vpack.c.bf16 %v2785_v42, %v2785_v42  ;;  %v2850_v12 = vpack.c.bf16 %v2786_v35, %v2786_v35  ;;  %v2973_v18 = vunpack.c.l.b16 %v2845_v53  ;;  %v3365_v51 = vsel %vm11076_vm7, %v3065_v57, 0  ;;  %v14131_v53 = vld [vmem:[#allocation38_spill] sm:$0xff] }
 0x4d1   :  { %v3072_v33 = vrot.slane %v3070_v47, 7  ;;  %v2974_v4 = vunpack.c.l.b16 %v2846_v23  ;;  %v2975_v60 = vunpack.c.l.b16 %v2847_v15  ;;  %v2976_v59 = vunpack.c.l.b16 %v2848_v1  ;;  %v14132_v23 = vld [vmem:[#allocation39_spill] sm:$0xff]  ;;  %v14133_v1 = vld [vmem:[#allocation40_spill] sm:$0xff] }
 0x4d2   :  { %v3459_v6 = vrot.slane %v3457_v62, 1  ;;  %v2977_v61 = vunpack.c.l.b16 %v2849_v45  ;;  %v2978_v38 = vunpack.c.l.b16 %v2850_v12  ;;  %v3875_v56 = vrot.slane %v11249_v10, 1 }
 0x4d3   :  { %v3073_v34 = vshll.u32 %v14127_v55, 16  ;;  %v3455_v63 = vshrl.u32 %v11249_v10, 16  ;;  %v3462_v48 = vshll.u32 %v3365_v51, 16  ;;  %v3876_v22 = vrot.slane %v3365_v51, 1 }
 0x4d4   :  { %4626 = vmatmul.bf16.gmra.mxu1 %v11214_v3  ;;  %v11269_v57 = vpack.c.b16 %v2974_v4, %v2973_v18  ;;  %v11271_v40 = vpack.c.b16 %v2976_v59, %v2975_v60  ;;  %v2787_v41 = vmax.f32 %v14128_v16, 0.0  ;;  %v2788_v30 = vmax.f32 %v14129_v39, 0.0  ;;  %v14134_v59 = vld [vmem:[#allocation41_spill] sm:$0xff] }
 0x4d5   :  { %5128 = vmatmul.bf16.gmra.mxu0 %v11214_v3  ;;  %v3075_v46 = vor.u32 %v3073_v34, %v3072_v33  ;;  %v3460_v31 = vor.u32 %v3459_v6, %v3455_v63  ;;  %v11276_v5 = vsel %vm3859_vm8, %v3875_v56, %v3876_v22  ;;  %v11278_v24 = vpack.c.b16 %v2978_v38, %v2977_v61  ;;  %v14135_v34 = vld [vmem:[#allocation42_spill] sm:$0xff] }
 0x4d6   :  { %v3464_v42 = vrot.slane %v3462_v48, 1  ;;  %v2789_v35 = vmax.f32 %v14130_v43, 0.0  ;;  %v2790_v55 = vmax.f32 %v14131_v53, 0.0  ;;  %v2791_v15 = vmax.f32 %v14132_v23, 0.0 }
 0x4d7   :  { %v11285_v47 = vsel %vm11076_vm7, 0, %v3075_v46  ;;  %v2792_v62 = vmax.f32 %v14133_v1, 0.0  ;;  %v2851_v12 = vpack.c.bf16 %v2787_v41, %v2787_v41  ;;  %v2852_v18 = vpack.c.bf16 %v2788_v30, %v2788_v30 }
 0x4d8   :  { %v11290_v45 = vsel %vm3393_vm9, %v3460_v31, %v3464_v42  ;;  %v2853_v51 = vpack.c.bf16 %v2789_v35, %v2789_v35  ;;  %v2854_v4 = vpack.c.bf16 %v2790_v55, %v2790_v55  ;;  %v3077_v60 = vshrl.u32 %v11127_v13, 16 }
 0x4d9   :  { %v2793_v6 = vmax.f32 %v14134_v59, 0.0  ;;  %v2855_v61 = vpack.c.bf16 %v2791_v15, %v2791_v15  ;;  %v2856_v38 = vpack.c.bf16 %v2792_v62, %v2792_v62  ;;  %v3469_v56 = vshll.u32 %v11285_v47, 16 }
 0x4da   :  { %v2794_v63 = vmax.f32 %v14135_v34, 0.0  ;;  %v2979_v48 = vunpack.c.l.b16 %v2851_v12  ;;  %v2980_v22 = vunpack.c.l.b16 %v2852_v18  ;;  %v2981_v46 = vunpack.c.l.b16 %v2853_v51 }
 0x4db   :  { %v2982_v31 = vunpack.c.l.b16 %v2854_v4  ;;  %v3366_v16 = vsel %vm11076_vm7, %v3072_v33, 0  ;;  %v3079_v41 = vrot.slane %v3077_v60, 7  ;;  %v2857_v39 = vpack.c.bf16 %v2793_v6, %v2793_v6  ;;  %v14136_v4 = vld [vmem:[#allocation43_spill] sm:$0xff] }
 0x4dc   :  { %v2983_v30 = vunpack.c.l.b16 %v2855_v61  ;;  %v2984_v42 = vunpack.c.l.b16 %v2856_v38  ;;  %v3471_v43 = vrot.slane %v3469_v56, 1  ;;  %v2858_v35 = vpack.c.bf16 %v2794_v63, %v2794_v63  ;;  %v14138_v61 = vld [vmem:[#allocation44_spill] sm:$0xff]  ;;  %v14139_v56 = vld [vmem:[#allocation45_spill] sm:$0xff]  ;;  %v14140_v63 = vld [vmem:[#allocation46_spill] sm:$0xff] }
 0x4dd   :  { %4964 = vmatmul.bf16.gmra.mxu3 %v11239_v25  ;;  %v3878_v53 = vrot.slane %v11285_v47, 1  ;;  %v3080_v55 = vshll.u32 %v11127_v13, 16  ;;  %v11302_v23 = vpack.c.b16 %v2980_v22, %v2979_v48  ;;  %v3467_v15 = vshrl.u32 %v11285_v47, 16 }
 0x4de   :  { %v3474_v1 = vshll.u32 %v3366_v16, 16  ;;  %v3879_v62 = vrot.slane %v3366_v16, 1  ;;  %v11306_v33 = vpack.c.b16 %v2982_v31, %v2981_v46  ;;  %v11308_v51 = vpack.c.b16 %v2984_v42, %v2983_v30  ;;  %v14141_v46 = vld [vmem:[#allocation47_spill] sm:$0xff]  ;;  %v14142_v16 = vld [vmem:[#allocation48_spill] sm:$0xff] }
 0x4df   :  { %v3082_v12 = vor.u32 %v3080_v55, %v3079_v41  ;;  %v3472_v18 = vor.u32 %v3471_v43, %v3467_v15  ;;  %v2795_v60 = vmax.f32 %v14136_v4, 0.0  ;;  %v2985_v59 = vunpack.c.l.b16 %v2857_v39 }
 0x4e0   :  { %4795 = vmatmul.bf16.gmra.mxu2 %v11255_v37  ;;  %v2986_v6 = vunpack.c.l.b16 %v2858_v35  ;;  %v11312_v13 = vsel %vm3859_vm8, %v3878_v53, %v3879_v62  ;;  %v2796_v38 = vmax.f32 %v14138_v61, 0.0  ;;  %v2797_v34 = vmax.f32 %v14139_v56, 0.0 }
 0x4e1   :  { %14137 = vst [vmem:[#allocation32_spill] sm:$0xff] %v11312_v13  ;;  %v2798_v48 = vmax.f32 %v14140_v63, 0.0  ;;  %v3476_v22 = vrot.slane %v3474_v1, 1  ;;  %v2799_v31 = vmax.f32 %v14141_v46, 0.0  ;;  %v2800_v30 = vmax.f32 %v14142_v16, 0.0 }
 0x4e2   :  { %v11322_v39 = vsel %vm11076_vm7, 0, %v3082_v12  ;;  %v11329_v43 = vpack.c.b16 %v2986_v6, %v2985_v59  ;;  %v2859_v35 = vpack.c.bf16 %v2795_v60, %v2795_v60  ;;  %v2860_v53 = vpack.c.bf16 %v2796_v38, %v2796_v38  ;;  %v14143_v38 = vld [vmem:[#allocation30_spill] sm:$0xff] }
 0x4e3   :  { %v11325_v42 = vsel %vm3393_vm9, %v3472_v18, %v3476_v22  ;;  %v2861_v55 = vpack.c.bf16 %v2797_v34, %v2797_v34  ;;  %v2862_v15 = vpack.c.bf16 %v2798_v48, %v2798_v48  ;;  %v2863_v1 = vpack.c.bf16 %v2799_v31, %v2799_v31 }
 0x4e4   :  { %4631 = vmatmul.bf16.gmra.mxu1 %v11249_v10  ;;  %v2864_v62 = vpack.c.bf16 %v2800_v30, %v2800_v30  ;;  %v3084_v4 = vshrl.u32 %v11129_v2, 16  ;;  %v3481_v12 = vshll.u32 %v11322_v39, 16  ;;  %v2987_v61 = vunpack.c.l.b16 %v2859_v35 }
 0x4e5   :  { %5133 = vmatmul.bf16.gmra.mxu0 %v11249_v10  ;;  %v2988_v56 = vunpack.c.l.b16 %v2860_v53  ;;  %v2989_v18 = vunpack.c.l.b16 %v2861_v55  ;;  %v2990_v63 = vunpack.c.l.b16 %v2862_v15  ;;  %v2991_v22 = vunpack.c.l.b16 %v2863_v1  ;;  %v14144_v55 = vld [vmem:[#allocation49_spill] sm:$0xff] }
 0x4e6   :  { %v2992_v46 = vunpack.c.l.b16 %v2864_v62  ;;  %v3367_v59 = vsel %vm11076_vm7, %v3079_v41, 0  ;;  %v3086_v6 = vrot.slane %v3084_v4, 7  ;;  %v3483_v60 = vrot.slane %v3481_v12, 1 }
 0x4e7   :  { %v2802_v34 = vmax.f32 %v14143_v38, 0.0  ;;  %v3881_v48 = vrot.slane %v11322_v39, 1  ;;  %v3087_v31 = vshll.u32 %v11129_v2, 16  ;;  %v3479_v16 = vshrl.u32 %v11322_v39, 16 }
 0x4e8   :  { %v3486_v30 = vshll.u32 %v3367_v59, 16  ;;  %v11340_v35 = vpack.c.b16 %v2988_v56, %v2987_v61  ;;  %v11342_v53 = vpack.c.b16 %v2990_v63, %v2989_v18  ;;  %v2801_v15 = vmax.f32 %v14144_v55, 0.0  ;;  %v8209_v56 = vld [vmem:[%s13729_s4 + $0x128] sm:$0xff] }
 0x4e9   :  { %v3882_v41 = vrot.slane %v3367_v59, 1  ;;  %v3089_v1 = vor.u32 %v3087_v31, %v3086_v6  ;;  %v11345_v62 = vpack.c.b16 %v2992_v46, %v2991_v22  ;;  %v3484_v4 = vor.u32 %v3483_v60, %v3479_v16  ;;  %5276 = vmatpush.bf16.msra.mxu1 %v8209_v56 }
 0x4ea   :  { %v3488_v2 = vrot.slane %v3486_v30, 1  ;;  %v2866_v38 = vpack.c.bf16 %v2802_v34, %v2802_v34  ;;  %v3091_v46 = vshrl.u32 %v11150_v44, 16  ;;  %v3368_v34 = vsel %vm11076_vm7, %v3086_v6, 0 }
 0x4eb   :  { %v11348_v12 = vsel %vm3859_vm8, %v3881_v48, %v3882_v41  ;;  %v11353_v61 = vsel %vm11076_vm7, 0, %v3089_v1  ;;  %v3094_v55 = vshll.u32 %v11150_v44, 16  ;;  %v3885_v41 = vrot.slane %v3368_v34, 1 }
 0x4ec   :  { %14145 = vst [vmem:[#allocation14_spill] sm:$0xff] %v11348_v12  ;;  %v11359_v18 = vsel %vm3393_vm9, %v3484_v4, %v3488_v2  ;;  %v2994_v63 = vunpack.c.l.b16 %v2866_v38  ;;  %v3493_v59 = vshll.u32 %v11353_v61, 16  ;;  %v3093_v48 = vrot.slane %v3091_v46, 7 }
 0x4ed   :  { %4969 = vmatmul.bf16.gmra.mxu3 %v11276_v5  ;;  %14146 = vst [vmem:[#allocation19_spill] sm:$0xff] %v11353_v61  ;;  %v3884_v30 = vrot.slane %v11353_v61, 1  ;;  %v3098_v46 = vshrl.u32 %v11160_v49, 16 }
 0x4ee   :  { %14147 = vst [vmem:[#allocation21_spill] sm:$0xff] %v11359_v18  ;;  %v3495_v16 = vrot.slane %v3493_v59, 1  ;;  %v3096_v1 = vor.u32 %v3094_v55, %v3093_v48 }
 0x4ef   :  { %v11374_v2 = vsel %vm3859_vm8, %v3884_v30, %v3885_v41  ;;  %v3100_v41 = vrot.slane %v3098_v46, 7 }
 0x4f0   :  { %4800 = vmatmul.bf16.gmra.mxu2 %v11290_v45  ;;  %14148 = vst [vmem:[#allocation22_spill] sm:$0xff] %v11374_v2 }
 0x4f4   :  { %4636 = vmatmul.bf16.gmra.mxu1 %v11285_v47 }
 0x4f5   :  { %5138 = vmatmul.bf16.gmra.mxu0 %v11285_v47 }
 0x4fd   :  { %4974 = vmatmul.bf16.gmra.mxu3 %v11312_v13  ;;  %v2865_v13 = vpack.c.bf16 %v2801_v15, %v2801_v15  ;;  %v3498_v15 = vshll.u32 %v3368_v34, 16 }
 0x4ff   :  { %v2993_v22 = vunpack.c.l.b16 %v2865_v13  ;;  %v3491_v13 = vshrl.u32 %v11353_v61, 16  ;;  %v3500_v38 = vrot.slane %v3498_v15, 1  ;;  %v3369_v15 = vsel %vm11076_vm7, %v3093_v48, 0 }
 0x500   :  { %4805 = vmatmul.bf16.gmra.mxu2 %v11325_v42 }
 0x501   :  { %v11367_v31 = vpack.c.b16 %v2994_v63, %v2993_v22  ;;  %v3496_v4 = vor.u32 %v3495_v16, %v3491_v13  ;;  %v11379_v63 = vsel %vm11076_vm7, 0, %v3096_v1 }
 0x502   :  { %v3505_v34 = vshll.u32 %v11379_v63, 16 }
 0x503   :  { %v11382_v44 = vsel %vm3393_vm9, %v3496_v4, %v3500_v38 }
 0x504   :  { %4641 = vmatmul.bf16.gmra.mxu1 %v11322_v39  ;;  %14149 = vst [vmem:[#allocation23_spill] sm:$0xff] %v11382_v44  ;;  %v3507_v1 = vrot.slane %v3505_v34, 1 }
 0x505   :  { %5143 = vmatmul.bf16.gmra.mxu0 %v11322_v39 }
 0x50d   :  { %4979 = vmatmul.bf16.gmra.mxu3 %v11348_v12  ;;  %v3101_v12 = vshll.u32 %v11160_v49, 16 }
 0x510   :  { %4810 = vmatmul.bf16.gmra.mxu2 %v11359_v18 }
 0x511   :  { %v4607_v60 = vpop.f32.mrf.mxu1 }
 0x514   :  { %4646 = vmatmul.bf16.gmra.mxu1 %v11353_v61 }
 0x515   :  { %5148 = vmatmul.bf16.gmra.mxu0 %v11353_v61 }
 0x519   :  { %v4609_v56 = vpop.f32.mrf.mxu1 }
 0x51d   :  { %4984 = vmatmul.bf16.gmra.mxu3 %v11374_v2  ;;  %v3887_v2 = vrot.slane %v11379_v63, 1 }
 0x520   :  { %v4945_v22 = vpop.f32.mrf.mxu3  ;;  %4815 = vmatmul.bf16.gmra.mxu2 %v11382_v44  ;;  %v3503_v44 = vshrl.u32 %v11379_v63, 16 }
 0x521   :  { %v4612_v13 = vpop.f32.mrf.mxu1 }
 0x522   :  { %v5114_v6 = vpop.f32.mrf.mxu0  ;;  %v3508_v61 = vor.u32 %v3507_v1, %v3503_v44 }
 0x523   :  { %v4776_v59 = vpop.f32.mrf.mxu2 }
 0x524   :  { %v4777_v16 = vadd.f32 %v4776_v59, %v4607_v60  ;;  %4651 = vmatmul.bf16.gmra.mxu1 %v11379_v63  ;;  %v3510_v60 = vshll.u32 %v3369_v15, 16  ;;  %v3888_v59 = vrot.slane %v3369_v15, 1 }
 0x525   :  { %5153 = vmatmul.bf16.gmra.mxu0 %v11379_v63 }
 0x526   :  { %v4946_v55 = vadd.f32 %v4945_v22, %v4777_v16  ;;  %v3103_v22 = vor.u32 %v3101_v12, %v3100_v41  ;;  %v11397_v48 = vsel %vm3859_vm8, %v3887_v2, %v3888_v59  ;;  %v3105_v2 = vshrl.u32 %v11162_v19, 16 }
 0x527   :  { %14151 = vst [vmem:[#allocation25_spill] sm:$0xff] %v11397_v48 }
 0x528   :  { %v4947_v4 = vpop.f32.mrf.mxu3  ;;  %v11390_v38 = vadd.f32 %v5114_v6, %v4946_v55  ;;  %v3512_v6 = vrot.slane %v3510_v60, 1  ;;  %v11402_v49 = vsel %vm11076_vm7, 0, %v3103_v22  ;;  %v3107_v59 = vrot.slane %v3105_v2, 7 }
 0x529   :  { %v4614_v55 = vpop.f32.mrf.mxu1  ;;  %14152 = vst [vmem:[#allocation26_spill] sm:$0xff] %v11402_v49 }
 0x52a   :  { %v5116_v30 = vpop.f32.mrf.mxu0  ;;  %14150 = vst [vmem:[#allocation24_spill] sm:$0xff] %v11390_v38  ;;  %v11405_v38 = vsel %vm3393_vm9, %v3508_v61, %v3512_v6  ;;  %v3370_v61 = vsel %vm11076_vm7, %v3100_v41, 0  ;;  %v3890_v6 = vrot.slane %v11402_v49, 1 }
 0x52b   :  { %v4778_v16 = vpop.f32.mrf.mxu2 }
 0x52c   :  { %v4779_v18 = vadd.f32 %v4778_v16, %v4609_v56 }
 0x52d   :  { %4989 = vmatmul.bf16.gmra.mxu3 %v11397_v48  ;;  %v3515_v48 = vshrl.u32 %v11402_v49, 16 }
 0x52e   :  { %v4948_v34 = vadd.f32 %v4947_v4, %v4779_v18  ;;  %v3517_v18 = vshll.u32 %v11402_v49, 16 }
 0x530   :  { %v11408_v12 = vadd.f32 %v5116_v30, %v4948_v34  ;;  %v4950_v56 = vpop.f32.mrf.mxu3  ;;  %4820 = vmatmul.bf16.gmra.mxu2 %v11405_v38  ;;  %v3519_v22 = vrot.slane %v3517_v18, 1  ;;  %v3108_v34 = vshll.u32 %v11162_v19, 16 }
 0x531   :  { %v4617_v4 = vpop.f32.mrf.mxu1 }
 0x532   :  { %v5119_v46 = vpop.f32.mrf.mxu0  ;;  %14153 = vst [vmem:[#allocation27_spill] sm:$0xff] %v11408_v12  ;;  %v3110_v41 = vor.u32 %v3108_v34, %v3107_v59  ;;  %v3520_v18 = vor.u32 %v3519_v22, %v3515_v48  ;;  %v3112_v22 = vshrl.u32 %v11169_v36, 16 }
 0x533   :  { %v4781_v44 = vpop.f32.mrf.mxu2 }
 0x534   :  { %v4782_v15 = vadd.f32 %v4781_v44, %v4612_v13  ;;  %4656 = vmatmul.bf16.gmra.mxu1 %v11402_v49  ;;  %v3522_v13 = vshll.u32 %v3370_v61, 16  ;;  %v3891_v44 = vrot.slane %v3370_v61, 1 }
 0x535   :  { %5158 = vmatmul.bf16.gmra.mxu0 %v11402_v49  ;;  %v11430_v49 = vsel %vm11076_vm7, 0, %v3110_v41  ;;  %v3371_v41 = vsel %vm11076_vm7, %v3107_v59, 0 }
 0x536   :  { %v4951_v60 = vadd.f32 %v4950_v56, %v4782_v15  ;;  %v8208_v56 = vld [vmem:[%s13729_s4 + $0x120] sm:$0xff]  ;;  %v11425_v15 = vsel %vm3859_vm8, %v3890_v6, %v3891_v44  ;;  %v3524_v19 = vrot.slane %v3522_v13, 1  ;;  %v3529_v34 = vshll.u32 %v11430_v49, 16 }
 0x537   :  { %5277 = vmatpush.bf16.msra.mxu1 %v8208_v56  ;;  %14155 = vst [vmem:[#allocation20_spill] sm:$0xff] %v11425_v15 }
 0x538   :  { %v11415_v16 = vadd.f32 %v5119_v46, %v4951_v60  ;;  %v4952_v30 = vpop.f32.mrf.mxu3  ;;  %v11433_v61 = vsel %vm3393_vm9, %v3520_v18, %v3524_v19  ;;  %v3531_v18 = vrot.slane %v3529_v34, 1  ;;  %v3115_v19 = vshll.u32 %v11169_v36, 16 }
 0x539   :  { %14156 = vst [vmem:[#allocation9_spill] sm:$0xff] %v11433_v61 }
 0x53a   :  { %v5121_v1 = vpop.f32.mrf.mxu0  ;;  %14154 = vst [vmem:[#allocation18_spill] sm:$0xff] %v11415_v16  ;;  %v4619_v16 = vpop.f32.mrf.mxu1 }
 0x53b   :  { %v4783_v2 = vpop.f32.mrf.mxu2 }
 0x53c   :  { %v4784_v46 = vadd.f32 %v4783_v2, %v4614_v55  ;;  %v3114_v2 = vrot.slane %v3112_v22, 7 }
 0x53d   :  { %4994 = vmatmul.bf16.gmra.mxu3 %v11425_v15  ;;  %v3527_v15 = vshrl.u32 %v11430_v49, 16 }
 0x53e   :  { %v4953_v12 = vadd.f32 %v4952_v30, %v4784_v46 }
 0x540   :  { %v11436_v48 = vadd.f32 %v5121_v1, %v4953_v12  ;;  %v4955_v55 = vpop.f32.mrf.mxu3  ;;  %4825 = vmatmul.bf16.gmra.mxu2 %v11433_v61  ;;  %v3893_v1 = vrot.slane %v11430_v49, 1 }
 0x542   :  { %v5124_v60 = vpop.f32.mrf.mxu0  ;;  %14157 = vst [vmem:[#allocation11_spill] sm:$0xff] %v11436_v48  ;;  %v4622_v56 = vpop.f32.mrf.mxu1  ;;  %v3117_v48 = vor.u32 %v3115_v19, %v3114_v2 }
 0x543   :  { %v4786_v6 = vpop.f32.mrf.mxu2 }
 0x544   :  { %v4787_v30 = vadd.f32 %v4786_v6, %v4617_v4  ;;  %4661 = vmatmul.bf16.gmra.mxu1 %v11430_v49  ;;  %v3534_v4 = vshll.u32 %v3371_v41, 16  ;;  %v3894_v6 = vrot.slane %v3371_v41, 1  ;;  %v11455_v36 = vsel %vm11076_vm7, 0, %v3117_v48 }
 0x545   :  { %5163 = vmatmul.bf16.gmra.mxu0 %v11430_v49  ;;  %v3119_v41 = vshrl.u32 %v11195_v7, 16 }
 0x546   :  { %v4956_v44 = vadd.f32 %v4955_v55, %v4787_v30  ;;  %v3532_v30 = vor.u32 %v3531_v18, %v3527_v15  ;;  %v11450_v59 = vsel %vm3859_vm8, %v3893_v1, %v3894_v6  ;;  %v3536_v22 = vrot.slane %v3534_v4, 1 }
 0x547   :  { %14159 = vst [vmem:[#allocation13_spill] sm:$0xff] %v11450_v59  ;;  %v3541_v1 = vshll.u32 %v11455_v36, 16  ;;  %v3372_v4 = vsel %vm11076_vm7, %v3114_v2, 0  ;;  %v3121_v6 = vrot.slane %v3119_v41, 7 }
 0x548   :  { %v11443_v46 = vadd.f32 %v5124_v60, %v4956_v44  ;;  %v4957_v12 = vpop.f32.mrf.mxu3 }
 0x54a   :  { %v5126_v13 = vpop.f32.mrf.mxu0  ;;  %14158 = vst [vmem:[#allocation29_spill] sm:$0xff] %v11443_v46  ;;  %v4624_v34 = vpop.f32.mrf.mxu1  ;;  %v11458_v46 = vsel %vm3393_vm9, %v3532_v30, %v3536_v22  ;;  %v3896_v22 = vrot.slane %v11455_v36, 1 }
 0x54b   :  { %v4788_v55 = vpop.f32.mrf.mxu2  ;;  %14160 = vst [vmem:[#allocation28_spill] sm:$0xff] %v11458_v46 }
 0x54c   :  { %v4789_v61 = vadd.f32 %v4788_v55, %v4619_v16  ;;  %v3543_v55 = vrot.slane %v3541_v1, 1 }
 0x54d   :  { %4999 = vmatmul.bf16.gmra.mxu3 %v11450_v59  ;;  %v3539_v59 = vshrl.u32 %v11455_v36, 16 }
 0x54e   :  { %v4958_v44 = vadd.f32 %v4957_v12, %v4789_v61 }
 0x550   :  { %v11461_v15 = vadd.f32 %v5126_v13, %v4958_v44  ;;  %v4960_v16 = vpop.f32.mrf.mxu3  ;;  %4830 = vmatmul.bf16.gmra.mxu2 %v11458_v46  ;;  %v3122_v44 = vshll.u32 %v11195_v7, 16 }
 0x552   :  { %v5129_v60 = vpop.f32.mrf.mxu0  ;;  %14161 = vst [vmem:[#allocation52_spill] sm:$0xff] %v11461_v15  ;;  %v4627_v19 = vpop.f32.mrf.mxu1  ;;  %v3124_v15 = vor.u32 %v3122_v44, %v3121_v6 }
 0x553   :  { %v4791_v18 = vpop.f32.mrf.mxu2 }
 0x554   :  { %v4792_v61 = vadd.f32 %v4791_v18, %v4622_v56  ;;  %4666 = vmatmul.bf16.gmra.mxu1 %v11455_v36  ;;  %v3546_v56 = vshll.u32 %v3372_v4, 16  ;;  %v3897_v18 = vrot.slane %v3372_v4, 1  ;;  %v11480_v7 = vsel %vm11076_vm7, 0, %v3124_v15 }
 0x555   :  { %5168 = vmatmul.bf16.gmra.mxu0 %v11455_v36  ;;  %v3126_v4 = vshrl.u32 %v11202_v28, 16 }
 0x556   :  { %v4961_v48 = vadd.f32 %v4960_v16, %v4792_v61  ;;  %v3544_v61 = vor.u32 %v3543_v55, %v3539_v59  ;;  %v11475_v2 = vsel %vm3859_vm8, %v3896_v22, %v3897_v18  ;;  %v3548_v41 = vrot.slane %v3546_v56, 1 }
 0x557   :  { %14163 = vst [vmem:[#allocation15_spill] sm:$0xff] %v11475_v2  ;;  %v3553_v22 = vshll.u32 %v11480_v7, 16  ;;  %v3373_v56 = vsel %vm11076_vm7, %v3121_v6, 0  ;;  %v3128_v18 = vrot.slane %v3126_v4, 7 }
 0x558   :  { %v11468_v30 = vadd.f32 %v5129_v60, %v4961_v48  ;;  %v4962_v13 = vpop.f32.mrf.mxu3 }
 0x55a   :  { %v5131_v12 = vpop.f32.mrf.mxu0  ;;  %14162 = vst [vmem:[#allocation8_spill] sm:$0xff] %v11468_v30  ;;  %v4629_v1 = vpop.f32.mrf.mxu1  ;;  %v11483_v30 = vsel %vm3393_vm9, %v3544_v61, %v3548_v41  ;;  %v3899_v41 = vrot.slane %v11480_v7, 1 }
 0x55b   :  { %v4793_v16 = vpop.f32.mrf.mxu2  ;;  %14164 = vst [vmem:[#allocation10_spill] sm:$0xff] %v11483_v30 }
 0x55c   :  { %v4794_v46 = vadd.f32 %v4793_v16, %v4624_v34  ;;  %v3555_v16 = vrot.slane %v3553_v22, 1 }
 0x55d   :  { %5004 = vmatmul.bf16.gmra.mxu3 %v11475_v2  ;;  %v3551_v2 = vshrl.u32 %v11480_v7, 16 }
 0x55e   :  { %v4963_v48 = vadd.f32 %v4962_v13, %v4794_v46 }
 0x560   :  { %v11486_v59 = vadd.f32 %v5131_v12, %v4963_v48  ;;  %v4965_v34 = vpop.f32.mrf.mxu3  ;;  %4835 = vmatmul.bf16.gmra.mxu2 %v11483_v30  ;;  %v3129_v48 = vshll.u32 %v11202_v28, 16 }
 0x562   :  { %v5134_v60 = vpop.f32.mrf.mxu0  ;;  %14165 = vst [vmem:[#allocation12_spill] sm:$0xff] %v11486_v59  ;;  %v4632_v44 = vpop.f32.mrf.mxu1  ;;  %v3131_v59 = vor.u32 %v3129_v48, %v3128_v18 }
 0x563   :  { %v4796_v55 = vpop.f32.mrf.mxu2 }
 0x564   :  { %v4797_v46 = vadd.f32 %v4796_v55, %v4627_v19  ;;  %4671 = vmatmul.bf16.gmra.mxu1 %v11480_v7  ;;  %v3558_v19 = vshll.u32 %v3373_v56, 16  ;;  %v3900_v55 = vrot.slane %v3373_v56, 1  ;;  %v11505_v28 = vsel %vm11076_vm7, 0, %v3131_v59 }
 0x565   :  { %5173 = vmatmul.bf16.gmra.mxu0 %v11480_v7  ;;  %14168 = vst [vmem:[#allocation31_spill] sm:$0xff] %v11505_v28  ;;  %v3133_v56 = vshrl.u32 %v11205_v27, 16 }
 0x566   :  { %v4966_v15 = vadd.f32 %v4965_v34, %v4797_v46  ;;  %v3556_v46 = vor.u32 %v3555_v16, %v3551_v2  ;;  %v11500_v6 = vsel %vm3859_vm8, %v3899_v41, %v3900_v55  ;;  %v3560_v4 = vrot.slane %v3558_v19, 1 }
 0x567   :  { %14167 = vst [vmem:[#allocation51_spill] sm:$0xff] %v11500_v6  ;;  %v3565_v41 = vshll.u32 %v11505_v28, 16  ;;  %v3374_v19 = vsel %vm11076_vm7, %v3128_v18, 0  ;;  %v3135_v55 = vrot.slane %v3133_v56, 7 }
 0x568   :  { %v11493_v61 = vadd.f32 %v5134_v60, %v4966_v15  ;;  %v4967_v12 = vpop.f32.mrf.mxu3 }
 0x56a   :  { %v5136_v13 = vpop.f32.mrf.mxu0  ;;  %14166 = vst [vmem:[#allocation17_spill] sm:$0xff] %v11493_v61  ;;  %v4634_v22 = vpop.f32.mrf.mxu1  ;;  %v11508_v61 = vsel %vm3393_vm9, %v3556_v46, %v3560_v4  ;;  %v3902_v4 = vrot.slane %v11505_v28, 1 }
 0x56b   :  { %v4798_v34 = vpop.f32.mrf.mxu2 }
 0x56c   :  { %v4799_v30 = vadd.f32 %v4798_v34, %v4629_v1  ;;  %v3567_v34 = vrot.slane %v3565_v41, 1 }
 0x56d   :  { %5009 = vmatmul.bf16.gmra.mxu3 %v11500_v6  ;;  %v3563_v6 = vshrl.u32 %v11505_v28, 16 }
 0x56e   :  { %v4968_v15 = vadd.f32 %v4967_v12, %v4799_v30 }
 0x56f   :  { %v3568_v41 = vor.u32 %v3567_v34, %v3563_v6  ;;  %v3140_v34 = vshrl.u32 %v11207_v0, 16 }
 0x570   :  { %v11511_v2 = vadd.f32 %v5136_v13, %v4968_v15  ;;  %v4970_v1 = vpop.f32.mrf.mxu3  ;;  %4840 = vmatmul.bf16.gmra.mxu2 %v11508_v61  ;;  %v3136_v15 = vshll.u32 %v11205_v27, 16 }
 0x572   :  { %v5139_v60 = vpop.f32.mrf.mxu0  ;;  %14169 = vst [vmem:[#allocation33_spill] sm:$0xff] %v11511_v2  ;;  %v4637_v48 = vpop.f32.mrf.mxu1  ;;  %v3138_v18 = vor.u32 %v3136_v15, %v3135_v55 }
 0x573   :  { %v4801_v16 = vpop.f32.mrf.mxu2 }
 0x574   :  { %v4802_v30 = vadd.f32 %v4801_v16, %v4632_v44  ;;  %4676 = vmatmul.bf16.gmra.mxu1 %v11505_v28  ;;  %v3570_v44 = vshll.u32 %v3374_v19, 16  ;;  %v3903_v16 = vrot.slane %v3374_v19, 1 }
 0x575   :  { %5178 = vmatmul.bf16.gmra.mxu0 %v11505_v28  ;;  %v11533_v28 = vsel %vm11076_vm7, 0, %v3138_v18  ;;  %v3375_v18 = vsel %vm11076_vm7, %v3135_v55, 0 }
 0x576   :  { %v4971_v59 = vadd.f32 %v4970_v1, %v4802_v30  ;;  %v8207_v1 = vld [vmem:[%s13729_s4 + $0x118] sm:$0xff]  ;;  %v11528_v30 = vsel %vm3859_vm8, %v3902_v4, %v3903_v16  ;;  %v3572_v27 = vrot.slane %v3570_v44, 1  ;;  %14172 = vst [vmem:[#allocation35_spill] sm:$0xff] %v11533_v28  ;;  %v3577_v15 = vshll.u32 %v11533_v28, 16 }
 0x577   :  { %5278 = vmatpush.bf16.msra.mxu1 %v8207_v1  ;;  %14171 = vst [vmem:[#allocation50_spill] sm:$0xff] %v11528_v30 }
 0x578   :  { %v11518_v46 = vadd.f32 %v5139_v60, %v4971_v59  ;;  %v4972_v13 = vpop.f32.mrf.mxu3  ;;  %v11536_v19 = vsel %vm3393_vm9, %v3568_v41, %v3572_v27  ;;  %v3579_v41 = vrot.slane %v3577_v15, 1  ;;  %v3143_v27 = vshll.u32 %v11207_v0, 16 }
 0x579   :  { %14173 = vst [vmem:[#allocation36_spill] sm:$0xff] %v11536_v19 }
 0x57a   :  { %v5141_v12 = vpop.f32.mrf.mxu0  ;;  %14170 = vst [vmem:[#allocation34_spill] sm:$0xff] %v11518_v46  ;;  %v4639_v46 = vpop.f32.mrf.mxu1 }
 0x57b   :  { %v4803_v56 = vpop.f32.mrf.mxu2 }
 0x57c   :  { %v4804_v60 = vadd.f32 %v4803_v56, %v4634_v22  ;;  %v11546_v56 = vrot.slane %v3140_v34, 7 }
 0x57d   :  { %5014 = vmatmul.bf16.gmra.mxu3 %v11528_v30  ;;  %v3906_v30 = vrot.slane %v3375_v18, 1 }
 0x57e   :  { %v4973_v2 = vadd.f32 %v4972_v13, %v4804_v60  ;;  %14175 = vst [vmem:[#allocation38_spill] sm:$0xff] %v11546_v56  ;;  %v3905_v60 = vrot.slane %v11533_v28, 1 }
 0x580   :  { %v11539_v6 = vadd.f32 %v5141_v12, %v4973_v2  ;;  %v4975_v22 = vpop.f32.mrf.mxu3  ;;  %4845 = vmatmul.bf16.gmra.mxu2 %v11536_v19  ;;  %v11556_v15 = vsel %vm3859_vm8, %v3905_v60, %v3906_v30  ;;  %v3147_v30 = vshrl.u32 %v11209_v11, 16 }
 0x581   :  { %14177 = vst [vmem:[#allocation40_spill] sm:$0xff] %v11556_v15 }
 0x582   :  { %v5144_v59 = vpop.f32.mrf.mxu0  ;;  %14174 = vst [vmem:[#allocation37_spill] sm:$0xff] %v11539_v6  ;;  %v4642_v1 = vpop.f32.mrf.mxu1 }
 0x583   :  { %v4806_v4 = vpop.f32.mrf.mxu2 }
 0x584   :  { %v4807_v13 = vadd.f32 %v4806_v4, %v4637_v48  ;;  %4681 = vmatmul.bf16.gmra.mxu1 %v11533_v28  ;;  %v3575_v48 = vshrl.u32 %v11533_v28, 16  ;;  %v3582_v4 = vshll.u32 %v3375_v18, 16 }
 0x585   :  { %5183 = vmatmul.bf16.gmra.mxu0 %v11533_v28 }
 0x586   :  { %v4976_v16 = vadd.f32 %v4975_v22, %v4807_v13  ;;  %v3145_v22 = vor.u32 %v3143_v27, %v11546_v56  ;;  %v3580_v55 = vor.u32 %v3579_v41, %v3575_v48  ;;  %v14183_v56 = vld [vmem:[#allocation6_spill] sm:$0xff] }
 0x588   :  { %v11548_v2 = vadd.f32 %v5144_v59, %v4976_v16  ;;  %v4977_v12 = vpop.f32.mrf.mxu3  ;;  %v3584_v16 = vrot.slane %v3582_v4, 1  ;;  %v11561_v6 = vsel %vm11076_vm7, 0, %v3145_v22 }
 0x589   :  { %14178 = vst [vmem:[#allocation41_spill] sm:$0xff] %v11561_v6 }
 0x58a   :  { %v5146_v44 = vpop.f32.mrf.mxu0  ;;  %14176 = vst [vmem:[#allocation39_spill] sm:$0xff] %v11548_v2  ;;  %v4644_v2 = vpop.f32.mrf.mxu1  ;;  %v11564_v18 = vsel %vm3393_vm9, %v3580_v55, %v3584_v16  ;;  %v3150_v55 = vshll.u32 %v11209_v11, 16  ;;  %v14182_v16 = vld [vmem:[#allocation5_spill] sm:$0xff]  ;;  %v3154_v11 = vshrl.u32 %v11216_v8, 16 }
 0x58b   :  { %v4808_v13 = vpop.f32.mrf.mxu2  ;;  %14179 = vst [vmem:[#allocation42_spill] sm:$0xff] %v11564_v18 }
 0x58c   :  { %v4809_v34 = vadd.f32 %v4808_v13, %v4639_v46  ;;  %v3149_v13 = vrot.slane %v3147_v30, 7  ;;  %v14185_v30 = vld [vmem:[#allocation7_spill] sm:$0xff] }
 0x58d   :  { %5019 = vmatmul.bf16.gmra.mxu3 %v11556_v15 }
 0x58e   :  { %v4978_v0 = vadd.f32 %v4977_v12, %v4809_v34 }
 0x590   :  { %v11567_v41 = vadd.f32 %v5146_v44, %v4978_v0  ;;  %v4980_v46 = vpop.f32.mrf.mxu3  ;;  %4850 = vmatmul.bf16.gmra.mxu2 %v11564_v18  ;;  %v3152_v44 = vor.u32 %v3150_v55, %v3149_v13 }
 0x592   :  { %v5149_v59 = vpop.f32.mrf.mxu0  ;;  %14180 = vst [vmem:[#allocation43_spill] sm:$0xff] %v11567_v41  ;;  %v4647_v12 = vpop.f32.mrf.mxu1 }
 0x593   :  { %v4811_v60 = vpop.f32.mrf.mxu2 }
 0x594   :  { %v4812_v27 = vadd.f32 %v4811_v60, %v4642_v1  ;;  %4686 = vmatmul.bf16.gmra.mxu1 %v14182_v16  ;;  %v3344_v1 = vsel %vm11076_vm7, 0, %v3152_v44 }
 0x595   :  { %5188 = vmatmul.bf16.gmra.mxu0 %v11561_v6 }
 0x596   :  { %v4981_v4 = vadd.f32 %v4980_v46, %v4812_v27  ;;  %v3589_v27 = vshll.u32 %v3344_v1, 16 }
 0x598   :  { %v11571_v22 = vadd.f32 %v5149_v59, %v4981_v4  ;;  %v4982_v34 = vpop.f32.mrf.mxu3 }
 0x59a   :  { %v5151_v48 = vpop.f32.mrf.mxu0  ;;  %14181 = vst [vmem:[#allocation44_spill] sm:$0xff] %v11571_v22  ;;  %v4649_v6 = vpop.f32.mrf.mxu1 }
 0x59b   :  { %v4813_v0 = vpop.f32.mrf.mxu2 }
 0x59c   :  { %v4814_v15 = vadd.f32 %v4813_v0, %v4644_v2 }
 0x59d   :  { %5024 = vmatmul.bf16.gmra.mxu3 %v14183_v56  ;;  %v3591_v56 = vrot.slane %v3589_v27, 1 }
 0x59e   :  { %v4983_v18 = vadd.f32 %v4982_v34, %v4814_v15  ;;  %v3377_v15 = vsel %vm11076_vm7, %v3149_v13, 0  ;;  %v3156_v34 = vrot.slane %v3154_v11, 7 }
 0x59f   :  { %v3594_v16 = vshll.u32 %v3377_v15, 16  ;;  %v3909_v22 = vrot.slane %v3377_v15, 1 }
 0x5a0   :  { %v11578_v46 = vadd.f32 %v5151_v48, %v4983_v18  ;;  %v4985_v59 = vpop.f32.mrf.mxu3  ;;  %4855 = vmatmul.bf16.gmra.mxu2 %v14185_v30  ;;  %v3908_v48 = vrot.slane %v3344_v1, 1  ;;  %v3587_v30 = vshrl.u32 %v3344_v1, 16 }
 0x5a2   :  { %v5154_v41 = vpop.f32.mrf.mxu0  ;;  %14184 = vst [vmem:[#allocation45_spill] sm:$0xff] %v11578_v46  ;;  %v4652_v55 = vpop.f32.mrf.mxu1  ;;  %v3157_v46 = vshll.u32 %v11216_v8, 16 }
 0x5a3   :  { %v4816_v60 = vpop.f32.mrf.mxu2 }
 0x5a4   :  { %v4817_v4 = vadd.f32 %v4816_v60, %v4647_v12  ;;  %4691 = vmatmul.bf16.gmra.mxu1 %v3344_v1  ;;  %v3159_v28 = vor.u32 %v3157_v46, %v3156_v34  ;;  %v3592_v60 = vor.u32 %v3591_v56, %v3587_v30 }
 0x5a5   :  { %5193 = vmatmul.bf16.gmra.mxu0 %v3344_v1 }
 0x5a6   :  { %v4986_v0 = vadd.f32 %v4985_v59, %v4817_v4  ;;  %v11588_v59 = vsel %vm3859_vm8, %v3908_v48, %v3909_v22  ;;  %v11593_v8 = vsel %vm11076_vm7, 0, %v3159_v28  ;;  %v3161_v22 = vshrl.u32 %v11236_v26, 16 }
 0x5a7   :  { %14186 = vst [vmem:[#allocation46_spill] sm:$0xff] %v11588_v59 }
 0x5a8   :  { %v11584_v44 = vadd.f32 %v5154_v41, %v4986_v0  ;;  %v4987_v18 = vpop.f32.mrf.mxu3  ;;  %v3596_v41 = vrot.slane %v3594_v16, 1  ;;  %v3601_v16 = vshll.u32 %v11593_v8, 16  ;;  %v3378_v0 = vsel %vm11076_vm7, %v3156_v34, 0 }
 0x5a9   :  { %v3163_v15 = vrot.slane %v3161_v22, 7 }
 0x5aa   :  { %v5156_v2 = vpop.f32.mrf.mxu0  ;;  %v4654_v11 = vpop.f32.mrf.mxu1  ;;  %v11596_v1 = vsel %vm3393_vm9, %v3592_v60, %v3596_v41  ;;  %v3164_v60 = vshll.u32 %v11236_v26, 16  ;;  %v3599_v41 = vshrl.u32 %v11593_v8, 16 }
 0x5ab   :  { %v4818_v12 = vpop.f32.mrf.mxu2 }
 0x5ac   :  { %v4819_v19 = vadd.f32 %v4818_v12, %v4649_v6  ;;  %v3911_v12 = vrot.slane %v11593_v8, 1  ;;  %v3166_v34 = vor.u32 %v3164_v60, %v3163_v15 }
 0x5ad   :  { %5029 = vmatmul.bf16.gmra.mxu3 %v11588_v59 }
 0x5ae   :  { %v4988_v27 = vadd.f32 %v4987_v18, %v4819_v19  ;;  %v3603_v18 = vrot.slane %v3601_v16, 1  ;;  %v11621_v59 = vsel %vm11076_vm7, 0, %v3166_v34  ;;  %v3379_v34 = vsel %vm11076_vm7, %v3163_v15, 0 }
 0x5b0   :  { %v11599_v56 = vadd.f32 %v5156_v2, %v4988_v27  ;;  %v4990_v6 = vpop.f32.mrf.mxu3  ;;  %4860 = vmatmul.bf16.gmra.mxu2 %v11596_v1  ;;  %v8206_v27 = vld [vmem:[%s13729_s4 + $0x110] sm:$0xff] }
 0x5b1   :  { %5279 = vmatpush.bf16.msra.mxu1 %v8206_v27 }
 0x5b2   :  { %v5159_v13 = vpop.f32.mrf.mxu0  ;;  %v4657_v4 = vpop.f32.mrf.mxu1 }
 0x5b3   :  { %v4821_v46 = vpop.f32.mrf.mxu2 }
 0x5b4   :  { %v4822_v19 = vadd.f32 %v4821_v46, %v4652_v55  ;;  %4696 = vmatmul.bf16.gmra.mxu1 %v11593_v8  ;;  %v3606_v55 = vshll.u32 %v3378_v0, 16  ;;  %v3604_v46 = vor.u32 %v3603_v18, %v3599_v41  ;;  %v3613_v41 = vshll.u32 %v11621_v59, 16 }
 0x5b5   :  { %5198 = vmatmul.bf16.gmra.mxu0 %v11593_v8 }
 0x5b6   :  { %v4991_v28 = vadd.f32 %v4990_v6, %v4822_v19  ;;  %v3912_v6 = vrot.slane %v3378_v0, 1  ;;  %v3608_v26 = vrot.slane %v3606_v55, 1 }
 0x5b8   :  { %v11606_v48 = vadd.f32 %v5159_v13, %v4991_v28  ;;  %v4992_v2 = vpop.f32.mrf.mxu3  ;;  %v11616_v16 = vsel %vm3859_vm8, %v3911_v12, %v3912_v6  ;;  %v11624_v0 = vsel %vm3393_vm9, %v3604_v46, %v3608_v26  ;;  %v3168_v12 = vshrl.u32 %v11241_v52, 16 }
 0x5b9   :  { %14188 = vst [vmem:[#allocation48_spill] sm:$0xff] %v11616_v16  ;;  %v3615_v46 = vrot.slane %v3613_v41, 1  ;;  %v3171_v26 = vshll.u32 %v11241_v52, 16 }
 0x5ba   :  { %v5161_v30 = vpop.f32.mrf.mxu0  ;;  %14187 = vst [vmem:[#allocation47_spill] sm:$0xff] %v11606_v48  ;;  %v4659_v28 = vpop.f32.mrf.mxu1 }
 0x5bb   :  { %v4823_v22 = vpop.f32.mrf.mxu2  ;;  %14189 = vst [vmem:[#allocation30_spill] sm:$0xff] %v11624_v0 }
 0x5bc   :  { %v4824_v13 = vadd.f32 %v4823_v22, %v4654_v11  ;;  %v3170_v22 = vrot.slane %v3168_v12, 7 }
 0x5bd   :  { %5034 = vmatmul.bf16.gmra.mxu3 %v11616_v16  ;;  %v3611_v16 = vshrl.u32 %v11621_v59, 16 }
 0x5be   :  { %v4993_v48 = vadd.f32 %v4992_v2, %v4824_v13 }
 0x5c0   :  { %v11627_v18 = vadd.f32 %v5161_v30, %v4993_v48  ;;  %v4995_v11 = vpop.f32.mrf.mxu3  ;;  %4865 = vmatmul.bf16.gmra.mxu2 %v11624_v0  ;;  %v3914_v48 = vrot.slane %v11621_v59, 1 }
 0x5c2   :  { %v5164_v19 = vpop.f32.mrf.mxu0  ;;  %14190 = vst [vmem:[#allocation49_spill] sm:$0xff] %v11627_v18  ;;  %v4662_v27 = vpop.f32.mrf.mxu1  ;;  %v3173_v18 = vor.u32 %v3171_v26, %v3170_v22 }
 0x5c3   :  { %v4826_v60 = vpop.f32.mrf.mxu2 }
 0x5c4   :  { %v4827_v2 = vadd.f32 %v4826_v60, %v4657_v4  ;;  %4701 = vmatmul.bf16.gmra.mxu1 %v11621_v59  ;;  %v3618_v4 = vshll.u32 %v3379_v34, 16  ;;  %v3915_v60 = vrot.slane %v3379_v34, 1  ;;  %v11646_v52 = vsel %vm11076_vm7, 0, %v3173_v18 }
 0x5c5   :  { %5203 = vmatmul.bf16.gmra.mxu0 %v11621_v59  ;;  %v3175_v34 = vshrl.u32 %v11243_v20, 16 }
 0x5c6   :  { %v4996_v6 = vadd.f32 %v4995_v11, %v4827_v2  ;;  %v3616_v2 = vor.u32 %v3615_v46, %v3611_v16  ;;  %v11641_v15 = vsel %vm3859_vm8, %v3914_v48, %v3915_v60  ;;  %v3620_v12 = vrot.slane %v3618_v4, 1 }
 0x5c7   :  { %14192 = vst [vmem:[#allocation54_spill] sm:$0xff] %v11641_v15  ;;  %v3625_v48 = vshll.u32 %v11646_v52, 16  ;;  %v3380_v4 = vsel %vm11076_vm7, %v3170_v22, 0  ;;  %v3177_v60 = vrot.slane %v3175_v34, 7 }
 0x5c8   :  { %v11634_v13 = vadd.f32 %v5164_v19, %v4996_v6  ;;  %v4997_v30 = vpop.f32.mrf.mxu3 }
 0x5ca   :  { %v5166_v55 = vpop.f32.mrf.mxu0  ;;  %14191 = vst [vmem:[#allocation53_spill] sm:$0xff] %v11634_v13  ;;  %v4664_v41 = vpop.f32.mrf.mxu1  ;;  %v11649_v13 = vsel %vm3393_vm9, %v3616_v2, %v3620_v12  ;;  %v3917_v12 = vrot.slane %v11646_v52, 1 }
 0x5cb   :  { %v4828_v11 = vpop.f32.mrf.mxu2  ;;  %14193 = vst [vmem:[#allocation55_spill] sm:$0xff] %v11649_v13 }
 0x5cc   :  { %v4829_v0 = vadd.f32 %v4828_v11, %v4659_v28  ;;  %v3627_v11 = vrot.slane %v3625_v48, 1 }
 0x5cd   :  { %5039 = vmatmul.bf16.gmra.mxu3 %v11641_v15  ;;  %v3623_v15 = vshrl.u32 %v11646_v52, 16 }
 0x5ce   :  { %v4998_v6 = vadd.f32 %v4997_v30, %v4829_v0 }
 0x5d0   :  { %v11652_v16 = vadd.f32 %v5166_v55, %v4998_v6  ;;  %v5000_v28 = vpop.f32.mrf.mxu3  ;;  %4870 = vmatmul.bf16.gmra.mxu2 %v11649_v13  ;;  %v3178_v6 = vshll.u32 %v11243_v20, 16 }
 0x5d2   :  { %v5169_v19 = vpop.f32.mrf.mxu0  ;;  %14194 = vst [vmem:[#allocation56_spill] sm:$0xff] %v11652_v16  ;;  %v4667_v26 = vpop.f32.mrf.mxu1  ;;  %v3180_v16 = vor.u32 %v3178_v6, %v3177_v60 }
 0x5d3   :  { %v4831_v46 = vpop.f32.mrf.mxu2 }
 0x5d4   :  { %v4832_v0 = vadd.f32 %v4831_v46, %v4662_v27  ;;  %4706 = vmatmul.bf16.gmra.mxu1 %v11646_v52  ;;  %v3630_v27 = vshll.u32 %v3380_v4, 16  ;;  %v3918_v46 = vrot.slane %v3380_v4, 1  ;;  %v11671_v20 = vsel %vm11076_vm7, 0, %v3180_v16 }
 0x5d5   :  { %5208 = vmatmul.bf16.gmra.mxu0 %v11646_v52  ;;  %v3182_v4 = vshrl.u32 %v11269_v57, 16 }
 0x5d6   :  { %v5001_v18 = vadd.f32 %v5000_v28, %v4832_v0  ;;  %v3628_v0 = vor.u32 %v3627_v11, %v3623_v15  ;;  %v11666_v22 = vsel %vm3859_vm8, %v3917_v12, %v3918_v46  ;;  %v3632_v34 = vrot.slane %v3630_v27, 1 }
 0x5d7   :  { %14196 = vst [vmem:[#allocation58_spill] sm:$0xff] %v11666_v22  ;;  %v3637_v12 = vshll.u32 %v11671_v20, 16  ;;  %v3381_v27 = vsel %vm11076_vm7, %v3177_v60, 0  ;;  %v3184_v46 = vrot.slane %v3182_v4, 7 }
 0x5d8   :  { %v11659_v2 = vadd.f32 %v5169_v19, %v5001_v18  ;;  %v5002_v55 = vpop.f32.mrf.mxu3 }
 0x5da   :  { %v5171_v30 = vpop.f32.mrf.mxu0  ;;  %14195 = vst [vmem:[#allocation57_spill] sm:$0xff] %v11659_v2  ;;  %v4669_v48 = vpop.f32.mrf.mxu1  ;;  %v11674_v2 = vsel %vm3393_vm9, %v3628_v0, %v3632_v34  ;;  %v3920_v34 = vrot.slane %v11671_v20, 1 }
 0x5db   :  { %v4833_v28 = vpop.f32.mrf.mxu2  ;;  %14197 = vst [vmem:[#allocation59_spill] sm:$0xff] %v11674_v2 }
 0x5dc   :  { %v4834_v13 = vadd.f32 %v4833_v28, %v4664_v41  ;;  %v3639_v28 = vrot.slane %v3637_v12, 1 }
 0x5dd   :  { %5044 = vmatmul.bf16.gmra.mxu3 %v11666_v22  ;;  %v3635_v22 = vshrl.u32 %v11671_v20, 16 }
 0x5de   :  { %v5003_v18 = vadd.f32 %v5002_v55, %v4834_v13 }
 0x5e0   :  { %v11677_v15 = vadd.f32 %v5171_v30, %v5003_v18  ;;  %v5005_v41 = vpop.f32.mrf.mxu3  ;;  %4875 = vmatmul.bf16.gmra.mxu2 %v11674_v2  ;;  %v3185_v18 = vshll.u32 %v11269_v57, 16 }
 0x5e2   :  { %v5174_v19 = vpop.f32.mrf.mxu0  ;;  %14198 = vst [vmem:[#allocation60_spill] sm:$0xff] %v11677_v15  ;;  %v4672_v6 = vpop.f32.mrf.mxu1  ;;  %v3187_v15 = vor.u32 %v3185_v18, %v3184_v46 }
 0x5e3   :  { %v4836_v11 = vpop.f32.mrf.mxu2 }
 0x5e4   :  { %v4837_v13 = vadd.f32 %v4836_v11, %v4667_v26  ;;  %4711 = vmatmul.bf16.gmra.mxu1 %v11671_v20  ;;  %v3642_v26 = vshll.u32 %v3381_v27, 16  ;;  %v3921_v11 = vrot.slane %v3381_v27, 1  ;;  %v11696_v57 = vsel %vm11076_vm7, 0, %v3187_v15 }
 0x5e5   :  { %5213 = vmatmul.bf16.gmra.mxu0 %v11671_v20  ;;  %14201 = vst [vmem:[#allocation63_spill] sm:$0xff] %v11696_v57  ;;  %v3189_v27 = vshrl.u32 %v11271_v40, 16 }
 0x5e6   :  { %v5006_v16 = vadd.f32 %v5005_v41, %v4837_v13  ;;  %v3640_v13 = vor.u32 %v3639_v28, %v3635_v22  ;;  %v11691_v60 = vsel %vm3859_vm8, %v3920_v34, %v3921_v11  ;;  %v3644_v4 = vrot.slane %v3642_v26, 1 }
 0x5e7   :  { %14200 = vst [vmem:[#allocation62_spill] sm:$0xff] %v11691_v60  ;;  %v3649_v34 = vshll.u32 %v11696_v57, 16  ;;  %v3382_v26 = vsel %vm11076_vm7, %v3184_v46, 0  ;;  %v3191_v11 = vrot.slane %v3189_v27, 7 }
 0x5e8   :  { %v11684_v0 = vadd.f32 %v5174_v19, %v5006_v16  ;;  %v5007_v30 = vpop.f32.mrf.mxu3 }
 0x5ea   :  { %v5176_v55 = vpop.f32.mrf.mxu0  ;;  %14199 = vst [vmem:[#allocation61_spill] sm:$0xff] %v11684_v0  ;;  %v4674_v12 = vpop.f32.mrf.mxu1  ;;  %v11699_v0 = vsel %vm3393_vm9, %v3640_v13, %v3644_v4  ;;  %v3923_v4 = vrot.slane %v11696_v57, 1 }
 0x5eb   :  { %v4838_v41 = vpop.f32.mrf.mxu2 }
 0x5ec   :  { %v4839_v2 = vadd.f32 %v4838_v41, %v4669_v48  ;;  %v3651_v41 = vrot.slane %v3649_v34, 1 }
 0x5ed   :  { %5049 = vmatmul.bf16.gmra.mxu3 %v11691_v60  ;;  %v3647_v60 = vshrl.u32 %v11696_v57, 16 }
 0x5ee   :  { %v5008_v16 = vadd.f32 %v5007_v30, %v4839_v2 }
 0x5ef   :  { %v3652_v34 = vor.u32 %v3651_v41, %v3647_v60  ;;  %v3196_v41 = vshrl.u32 %v11278_v24, 16 }
 0x5f0   :  { %v11702_v22 = vadd.f32 %v5176_v55, %v5008_v16  ;;  %v5010_v48 = vpop.f32.mrf.mxu3  ;;  %4880 = vmatmul.bf16.gmra.mxu2 %v11699_v0  ;;  %v3192_v16 = vshll.u32 %v11271_v40, 16 }
 0x5f2   :  { %v5179_v19 = vpop.f32.mrf.mxu0  ;;  %14202 = vst [vmem:[#allocation64_spill] sm:$0xff] %v11702_v22  ;;  %v4677_v18 = vpop.f32.mrf.mxu1  ;;  %v3194_v46 = vor.u32 %v3192_v16, %v3191_v11 }
 0x5f3   :  { %v4841_v28 = vpop.f32.mrf.mxu2 }
 0x5f4   :  { %v4842_v2 = vadd.f32 %v4841_v28, %v4672_v6  ;;  %4716 = vmatmul.bf16.gmra.mxu1 %v11696_v57  ;;  %v3654_v6 = vshll.u32 %v3382_v26, 16  ;;  %v3924_v28 = vrot.slane %v3382_v26, 1 }
 0x5f5   :  { %5218 = vmatmul.bf16.gmra.mxu0 %v11696_v57  ;;  %v11724_v57 = vsel %vm11076_vm7, 0, %v3194_v46  ;;  %v3383_v46 = vsel %vm11076_vm7, %v3191_v11, 0 }
 0x5f6   :  { %v5011_v15 = vadd.f32 %v5010_v48, %v4842_v2  ;;  %v8205_v48 = vld [vmem:[%s13729_s4 + $0x108] sm:$0xff]  ;;  %v11719_v2 = vsel %vm3859_vm8, %v3923_v4, %v3924_v28  ;;  %v3656_v40 = vrot.slane %v3654_v6, 1  ;;  %v3661_v16 = vshll.u32 %v11724_v57, 16 }
 0x5f7   :  { %5280 = vmatpush.bf16.msra.mxu1 %v8205_v48  ;;  %14204 = vst [vmem:[#allocation66_spill] sm:$0xff] %v11719_v2 }
 0x5f8   :  { %v11709_v13 = vadd.f32 %v5179_v19, %v5011_v15  ;;  %v5012_v55 = vpop.f32.mrf.mxu3  ;;  %v11727_v26 = vsel %vm3393_vm9, %v3652_v34, %v3656_v40  ;;  %v3663_v34 = vrot.slane %v3661_v16, 1  ;;  %v3199_v40 = vshll.u32 %v11278_v24, 16 }
 0x5f9   :  { %14205 = vst [vmem:[#allocation67_spill] sm:$0xff] %v11727_v26 }
 0x5fa   :  { %v5181_v30 = vpop.f32.mrf.mxu0  ;;  %14203 = vst [vmem:[#allocation65_spill] sm:$0xff] %v11709_v13  ;;  %v4679_v13 = vpop.f32.mrf.mxu1 }
 0x5fb   :  { %v4843_v27 = vpop.f32.mrf.mxu2 }
 0x5fc   :  { %v4844_v19 = vadd.f32 %v4843_v27, %v4674_v12  ;;  %v3198_v27 = vrot.slane %v3196_v41, 7 }
 0x5fd   :  { %5054 = vmatmul.bf16.gmra.mxu3 %v11719_v2  ;;  %v3659_v2 = vshrl.u32 %v11724_v57, 16 }
 0x5fe   :  { %v5013_v22 = vadd.f32 %v5012_v55, %v4844_v19 }
 0x600   :  { %v11730_v60 = vadd.f32 %v5181_v30, %v5013_v22  ;;  %v5015_v12 = vpop.f32.mrf.mxu3  ;;  %4885 = vmatmul.bf16.gmra.mxu2 %v11727_v26  ;;  %v3926_v30 = vrot.slane %v11724_v57, 1 }
 0x602   :  { %v5184_v15 = vpop.f32.mrf.mxu0  ;;  %14206 = vst [vmem:[#allocation68_spill] sm:$0xff] %v11730_v60  ;;  %v4682_v48 = vpop.f32.mrf.mxu1  ;;  %v3201_v60 = vor.u32 %v3199_v40, %v3198_v27 }
 0x603   :  { %v4846_v4 = vpop.f32.mrf.mxu2 }
 0x604   :  { %v4847_v55 = vadd.f32 %v4846_v4, %v4677_v18  ;;  %4721 = vmatmul.bf16.gmra.mxu1 %v11724_v57  ;;  %v3666_v18 = vshll.u32 %v3383_v46, 16  ;;  %v3927_v4 = vrot.slane %v3383_v46, 1  ;;  %v11749_v24 = vsel %vm11076_vm7, 0, %v3201_v60 }
 0x605   :  { %5223 = vmatmul.bf16.gmra.mxu0 %v11724_v57  ;;  %v3203_v46 = vshrl.u32 %v11302_v23, 16 }
 0x606   :  { %v5016_v28 = vadd.f32 %v5015_v12, %v4847_v55  ;;  %v3664_v55 = vor.u32 %v3663_v34, %v3659_v2  ;;  %v11744_v11 = vsel %vm3859_vm8, %v3926_v30, %v3927_v4  ;;  %v3668_v41 = vrot.slane %v3666_v18, 1 }
 0x607   :  { %14208 = vst [vmem:[#allocation70_spill] sm:$0xff] %v11744_v11  ;;  %v3673_v30 = vshll.u32 %v11749_v24, 16  ;;  %v3384_v18 = vsel %vm11076_vm7, %v3198_v27, 0  ;;  %v3205_v4 = vrot.slane %v3203_v46, 7 }
 0x608   :  { %v11737_v19 = vadd.f32 %v5184_v15, %v5016_v28  ;;  %v5017_v22 = vpop.f32.mrf.mxu3 }
 0x60a   :  { %v5186_v6 = vpop.f32.mrf.mxu0  ;;  %14207 = vst [vmem:[#allocation69_spill] sm:$0xff] %v11737_v19  ;;  %v4684_v16 = vpop.f32.mrf.mxu1  ;;  %v11752_v19 = vsel %vm3393_vm9, %v3664_v55, %v3668_v41  ;;  %v3929_v41 = vrot.slane %v11749_v24, 1 }
 0x60b   :  { %v4848_v12 = vpop.f32.mrf.mxu2  ;;  %14209 = vst [vmem:[#allocation71_spill] sm:$0xff] %v11752_v19 }
 0x60c   :  { %v4849_v26 = vadd.f32 %v4848_v12, %v4679_v13  ;;  %v3675_v12 = vrot.slane %v3673_v30, 1 }
 0x60d   :  { %5059 = vmatmul.bf16.gmra.mxu3 %v11744_v11  ;;  %v3671_v11 = vshrl.u32 %v11749_v24, 16 }
 0x60e   :  { %v5018_v28 = vadd.f32 %v5017_v22, %v4849_v26 }
 0x610   :  { %v11755_v2 = vadd.f32 %v5186_v6, %v5018_v28  ;;  %v5020_v13 = vpop.f32.mrf.mxu3  ;;  %4890 = vmatmul.bf16.gmra.mxu2 %v11752_v19  ;;  %v3206_v28 = vshll.u32 %v11302_v23, 16 }
 0x612   :  { %v5189_v15 = vpop.f32.mrf.mxu0  ;;  %14210 = vst [vmem:[#allocation72_spill] sm:$0xff] %v11755_v2  ;;  %v4687_v40 = vpop.f32.mrf.mxu1  ;;  %v3208_v2 = vor.u32 %v3206_v28, %v3205_v4 }
 0x613   :  { %v4851_v34 = vpop.f32.mrf.mxu2 }
 0x614   :  { %v4852_v26 = vadd.f32 %v4851_v34, %v4682_v48  ;;  %4726 = vmatmul.bf16.gmra.mxu1 %v11749_v24  ;;  %v3678_v48 = vshll.u32 %v3384_v18, 16  ;;  %v3930_v34 = vrot.slane %v3384_v18, 1  ;;  %v11774_v23 = vsel %vm11076_vm7, 0, %v3208_v2 }
 0x615   :  { %5228 = vmatmul.bf16.gmra.mxu0 %v11749_v24  ;;  %v3210_v18 = vshrl.u32 %v11306_v33, 16 }
 0x616   :  { %v5021_v60 = vadd.f32 %v5020_v13, %v4852_v26  ;;  %v3676_v26 = vor.u32 %v3675_v12, %v3671_v11  ;;  %v11769_v27 = vsel %vm3859_vm8, %v3929_v41, %v3930_v34  ;;  %v3680_v46 = vrot.slane %v3678_v48, 1 }
 0x617   :  { %14212 = vst [vmem:[#allocation74_spill] sm:$0xff] %v11769_v27  ;;  %v3685_v41 = vshll.u32 %v11774_v23, 16  ;;  %v3385_v48 = vsel %vm11076_vm7, %v3205_v4, 0  ;;  %v3212_v34 = vrot.slane %v3210_v18, 7 }
 0x618   :  { %v11762_v55 = vadd.f32 %v5189_v15, %v5021_v60  ;;  %v5022_v6 = vpop.f32.mrf.mxu3 }
 0x61a   :  { %v5191_v22 = vpop.f32.mrf.mxu0  ;;  %14211 = vst [vmem:[#allocation73_spill] sm:$0xff] %v11762_v55  ;;  %v4689_v30 = vpop.f32.mrf.mxu1  ;;  %v11777_v55 = vsel %vm3393_vm9, %v3676_v26, %v3680_v46  ;;  %v3932_v46 = vrot.slane %v11774_v23, 1 }
 0x61b   :  { %v4853_v13 = vpop.f32.mrf.mxu2  ;;  %14213 = vst [vmem:[#allocation75_spill] sm:$0xff] %v11777_v55 }
 0x61c   :  { %v4854_v19 = vadd.f32 %v4853_v13, %v4684_v16  ;;  %v3687_v13 = vrot.slane %v3685_v41, 1 }
 0x61d   :  { %5064 = vmatmul.bf16.gmra.mxu3 %v11769_v27  ;;  %v3683_v27 = vshrl.u32 %v11774_v23, 16 }
 0x61e   :  { %v5023_v60 = vadd.f32 %v5022_v6, %v4854_v19 }
 0x620   :  { %v11780_v11 = vadd.f32 %v5191_v22, %v5023_v60  ;;  %v5025_v16 = vpop.f32.mrf.mxu3  ;;  %4895 = vmatmul.bf16.gmra.mxu2 %v11777_v55  ;;  %v3213_v60 = vshll.u32 %v11306_v33, 16 }
 0x622   :  { %v5194_v15 = vpop.f32.mrf.mxu0  ;;  %14214 = vst [vmem:[#allocation76_spill] sm:$0xff] %v11780_v11  ;;  %v4692_v28 = vpop.f32.mrf.mxu1  ;;  %v3215_v11 = vor.u32 %v3213_v60, %v3212_v34 }
 0x623   :  { %v4856_v12 = vpop.f32.mrf.mxu2 }
 0x624   :  { %v4857_v19 = vadd.f32 %v4856_v12, %v4687_v40  ;;  %4731 = vmatmul.bf16.gmra.mxu1 %v11774_v23  ;;  %v3690_v40 = vshll.u32 %v3385_v48, 16  ;;  %v3933_v12 = vrot.slane %v3385_v48, 1  ;;  %v11799_v33 = vsel %vm11076_vm7, 0, %v3215_v11 }
 0x625   :  { %5233 = vmatmul.bf16.gmra.mxu0 %v11774_v23  ;;  %14217 = vst [vmem:[#allocation79_spill] sm:$0xff] %v11799_v33  ;;  %v3217_v48 = vshrl.u32 %v11308_v51, 16 }
 0x626   :  { %v5026_v2 = vadd.f32 %v5025_v16, %v4857_v19  ;;  %v3688_v19 = vor.u32 %v3687_v13, %v3683_v27  ;;  %v11794_v4 = vsel %vm3859_vm8, %v3932_v46, %v3933_v12  ;;  %v3692_v18 = vrot.slane %v3690_v40, 1 }
 0x627   :  { %14216 = vst [vmem:[#allocation78_spill] sm:$0xff] %v11794_v4  ;;  %v3697_v46 = vshll.u32 %v11799_v33, 16  ;;  %v3386_v40 = vsel %vm11076_vm7, %v3212_v34, 0  ;;  %v3219_v12 = vrot.slane %v3217_v48, 7 }
 0x628   :  { %v11787_v26 = vadd.f32 %v5194_v15, %v5026_v2  ;;  %v5027_v22 = vpop.f32.mrf.mxu3 }
 0x62a   :  { %v5196_v6 = vpop.f32.mrf.mxu0  ;;  %14215 = vst [vmem:[#allocation77_spill] sm:$0xff] %v11787_v26  ;;  %v4694_v41 = vpop.f32.mrf.mxu1  ;;  %v11802_v26 = vsel %vm3393_vm9, %v3688_v19, %v3692_v18  ;;  %v3935_v18 = vrot.slane %v11799_v33, 1 }
 0x62b   :  { %v4858_v16 = vpop.f32.mrf.mxu2 }
 0x62c   :  { %v4859_v55 = vadd.f32 %v4858_v16, %v4689_v30  ;;  %v3699_v16 = vrot.slane %v3697_v46, 1 }
 0x62d   :  { %5069 = vmatmul.bf16.gmra.mxu3 %v11794_v4  ;;  %v3695_v4 = vshrl.u32 %v11799_v33, 16 }
 0x62e   :  { %v5028_v2 = vadd.f32 %v5027_v22, %v4859_v55 }
 0x62f   :  { %v3700_v46 = vor.u32 %v3699_v16, %v3695_v4  ;;  %v3224_v16 = vshrl.u32 %v11329_v43, 16 }
 0x630   :  { %v11805_v27 = vadd.f32 %v5196_v6, %v5028_v2  ;;  %v5030_v30 = vpop.f32.mrf.mxu3  ;;  %4900 = vmatmul.bf16.gmra.mxu2 %v11802_v26  ;;  %v3220_v2 = vshll.u32 %v11308_v51, 16 }
 0x632   :  { %v5199_v15 = vpop.f32.mrf.mxu0  ;;  %14218 = vst [vmem:[#allocation80_spill] sm:$0xff] %v11805_v27  ;;  %v4697_v60 = vpop.f32.mrf.mxu1  ;;  %v3222_v34 = vor.u32 %v3220_v2, %v3219_v12 }
 0x633   :  { %v4861_v13 = vpop.f32.mrf.mxu2 }
 0x634   :  { %v4862_v55 = vadd.f32 %v4861_v13, %v4692_v28  ;;  %4736 = vmatmul.bf16.gmra.mxu1 %v11799_v33  ;;  %v3702_v28 = vshll.u32 %v3386_v40, 16  ;;  %v3936_v13 = vrot.slane %v3386_v40, 1 }
 0x635   :  { %5238 = vmatmul.bf16.gmra.mxu0 %v11799_v33  ;;  %v11827_v33 = vsel %vm11076_vm7, 0, %v3222_v34  ;;  %v3387_v34 = vsel %vm11076_vm7, %v3219_v12, 0 }
 0x636   :  { %v5031_v11 = vadd.f32 %v5030_v30, %v4862_v55  ;;  %v8204_v30 = vld [vmem:[%s13729_s4 + $0x100] sm:$0xff]  ;;  %v11822_v55 = vsel %vm3859_vm8, %v3935_v18, %v3936_v13  ;;  %v3704_v51 = vrot.slane %v3702_v28, 1  ;;  %v3709_v2 = vshll.u32 %v11827_v33, 16 }
 0x637   :  { %5281 = vmatpush.bf16.msra.mxu1 %v8204_v30  ;;  %14220 = vst [vmem:[#allocation82_spill] sm:$0xff] %v11822_v55 }
 0x638   :  { %v11812_v19 = vadd.f32 %v5199_v15, %v5031_v11  ;;  %v5032_v6 = vpop.f32.mrf.mxu3  ;;  %v11830_v40 = vsel %vm3393_vm9, %v3700_v46, %v3704_v51  ;;  %v3711_v46 = vrot.slane %v3709_v2, 1  ;;  %v3227_v51 = vshll.u32 %v11329_v43, 16 }
 0x639   :  { %14221 = vst [vmem:[#allocation83_spill] sm:$0xff] %v11830_v40 }
 0x63a   :  { %v5201_v22 = vpop.f32.mrf.mxu0  ;;  %14219 = vst [vmem:[#allocation81_spill] sm:$0xff] %v11812_v19  ;;  %v4699_v19 = vpop.f32.mrf.mxu1 }
 0x63b   :  { %v4863_v48 = vpop.f32.mrf.mxu2 }
 0x63c   :  { %v4864_v15 = vadd.f32 %v4863_v48, %v4694_v41  ;;  %v3226_v48 = vrot.slane %v3224_v16, 7 }
 0x63d   :  { %5074 = vmatmul.bf16.gmra.mxu3 %v11822_v55  ;;  %v3707_v55 = vshrl.u32 %v11827_v33, 16 }
 0x63e   :  { %v5033_v27 = vadd.f32 %v5032_v6, %v4864_v15 }
 0x640   :  { %v11833_v4 = vadd.f32 %v5201_v22, %v5033_v27  ;;  %v5035_v41 = vpop.f32.mrf.mxu3  ;;  %4905 = vmatmul.bf16.gmra.mxu2 %v11830_v40  ;;  %v3938_v22 = vrot.slane %v11827_v33, 1 }
 0x642   :  { %v5204_v11 = vpop.f32.mrf.mxu0  ;;  %14222 = vst [vmem:[#allocation84_spill] sm:$0xff] %v11833_v4  ;;  %v4702_v30 = vpop.f32.mrf.mxu1  ;;  %v3229_v4 = vor.u32 %v3227_v51, %v3226_v48 }
 0x643   :  { %v4866_v18 = vpop.f32.mrf.mxu2 }
 0x644   :  { %v4867_v6 = vadd.f32 %v4866_v18, %v4697_v60  ;;  %4741 = vmatmul.bf16.gmra.mxu1 %v11827_v33  ;;  %v3714_v60 = vshll.u32 %v3387_v34, 16  ;;  %v3939_v18 = vrot.slane %v3387_v34, 1  ;;  %v11852_v43 = vsel %vm11076_vm7, 0, %v3229_v4 }
 0x645   :  { %5243 = vmatmul.bf16.gmra.mxu0 %v11827_v33  ;;  %v3231_v34 = vshrl.u32 %v11340_v35, 16 }
 0x646   :  { %v5036_v13 = vadd.f32 %v5035_v41, %v4867_v6  ;;  %v3712_v6 = vor.u32 %v3711_v46, %v3707_v55  ;;  %v11847_v12 = vsel %vm3859_vm8, %v3938_v22, %v3939_v18  ;;  %v3716_v16 = vrot.slane %v3714_v60, 1 }
 0x647   :  { %14224 = vst [vmem:[#allocation86_spill] sm:$0xff] %v11847_v12  ;;  %v3721_v22 = vshll.u32 %v11852_v43, 16  ;;  %v3388_v60 = vsel %vm11076_vm7, %v3226_v48, 0  ;;  %v3233_v18 = vrot.slane %v3231_v34, 7 }
 0x648   :  { %v11840_v15 = vadd.f32 %v5204_v11, %v5036_v13  ;;  %v5037_v27 = vpop.f32.mrf.mxu3 }
 0x64a   :  { %v5206_v28 = vpop.f32.mrf.mxu0  ;;  %14223 = vst [vmem:[#allocation85_spill] sm:$0xff] %v11840_v15  ;;  %v4704_v2 = vpop.f32.mrf.mxu1  ;;  %v11855_v15 = vsel %vm3393_vm9, %v3712_v6, %v3716_v16  ;;  %v3941_v16 = vrot.slane %v11852_v43, 1 }
 0x64b   :  { %v4868_v41 = vpop.f32.mrf.mxu2  ;;  %14225 = vst [vmem:[#allocation87_spill] sm:$0xff] %v11855_v15 }
 0x64c   :  { %v4869_v40 = vadd.f32 %v4868_v41, %v4699_v19  ;;  %v3723_v41 = vrot.slane %v3721_v22, 1 }
 0x64d   :  { %5079 = vmatmul.bf16.gmra.mxu3 %v11847_v12  ;;  %v3719_v12 = vshrl.u32 %v11852_v43, 16 }
 0x64e   :  { %v5038_v13 = vadd.f32 %v5037_v27, %v4869_v40 }
 0x650   :  { %v11858_v55 = vadd.f32 %v5206_v28, %v5038_v13  ;;  %v5040_v19 = vpop.f32.mrf.mxu3  ;;  %4910 = vmatmul.bf16.gmra.mxu2 %v11855_v15  ;;  %v3234_v13 = vshll.u32 %v11340_v35, 16  ;;  %v8227_v35 = vld [vmem:[%s13729_s4 + $0x1b8] sm:$0xff] }
 0x651   :  { %5612 = vmatpush.bf16.msrb.mxu3 %v8227_v35  ;;  %v3389_v35 = vsel %vm11076_vm7, %v3233_v18, 0 }
 0x652   :  { %v5209_v11 = vpop.f32.mrf.mxu0  ;;  %14226 = vst [vmem:[#allocation88_spill] sm:$0xff] %v11858_v55  ;;  %v4707_v51 = vpop.f32.mrf.mxu1  ;;  %v3236_v55 = vor.u32 %v3234_v13, %v3233_v18  ;;  %v8217_v18 = vld [vmem:[%s13729_s4 + $0x168] sm:$0xff] }
 0x653   :  { %v4871_v46 = vpop.f32.mrf.mxu2 }
 0x654   :  { %v4872_v40 = vadd.f32 %v4871_v46, %v4702_v30  ;;  %4746 = vmatmul.bf16.gmra.mxu1 %v11852_v43  ;;  %v3726_v30 = vshll.u32 %v3388_v60, 16  ;;  %v3942_v46 = vrot.slane %v3388_v60, 1  ;;  %v11880_v60 = vsel %vm11076_vm7, 0, %v3236_v55 }
 0x655   :  { %5248 = vmatmul.bf16.gmra.mxu0 %v11852_v43  ;;  %14229 = vst [vmem:[#allocation91_spill] sm:$0xff] %v11880_v60  ;;  %v3238_v55 = vshrl.u32 %v11342_v53, 16  ;;  %v3733_v13 = vshll.u32 %v11880_v60, 16 }
 0x656   :  { %v5041_v4 = vadd.f32 %v5040_v19, %v4872_v40  ;;  %v3724_v40 = vor.u32 %v3723_v41, %v3719_v12  ;;  %v11872_v48 = vsel %vm3859_vm8, %v3941_v16, %v3942_v46  ;;  %v3728_v34 = vrot.slane %v3726_v30, 1  ;;  %v8219_v16 = vld [vmem:[%s13729_s4 + $0x178] sm:$0xff]  ;;  %v8218_v46 = vld [vmem:[%s13729_s4 + $0x170] sm:$0xff] }
 0x657   :  { %14228 = vst [vmem:[#allocation90_spill] sm:$0xff] %v11872_v48  ;;  %5443 = vmatpush.bf16.msrb.mxu2 %v8219_v16  ;;  %v3735_v16 = vrot.slane %v3733_v13, 1 }
 0x658   :  { %v11865_v6 = vadd.f32 %v5209_v11, %v5041_v4  ;;  %v5042_v28 = vpop.f32.mrf.mxu3  ;;  %v11883_v12 = vsel %vm3393_vm9, %v3724_v40, %v3728_v34 }
 0x65a   :  { %v5211_v27 = vpop.f32.mrf.mxu0  ;;  %14227 = vst [vmem:[#allocation89_spill] sm:$0xff] %v11865_v6  ;;  %v4709_v22 = vpop.f32.mrf.mxu1  ;;  %v3738_v6 = vshll.u32 %v3389_v35, 16 }
 0x65b   :  { %v4873_v19 = vpop.f32.mrf.mxu2  ;;  %5444 = vmatpush.bf16.msrb.mxu2 %v8218_v46 }
 0x65c   :  { %v4874_v15 = vadd.f32 %v4873_v19, %v4704_v2  ;;  %v8225_v19 = vld [vmem:[%s13729_s4 + $0x1a8] sm:$0xff] }
 0x65d   :  { %5084 = vmatmul.bf16.gmra.mxu3 %v11872_v48  ;;  %v3241_v48 = vshll.u32 %v11342_v53, 16 }
 0x65e   :  { %v5043_v4 = vadd.f32 %v5042_v28, %v4874_v15  ;;  %v8226_v15 = vld [vmem:[%s13729_s4 + $0x1b0] sm:$0xff] }
 0x65f   :  { %5613 = vmatpush.bf16.msrb.mxu3 %v8226_v15  ;;  %5445 = vmatpush.bf16.msrb.mxu2 %v8217_v18  ;;  %v8215_v18 = vld [vmem:[%s13729_s4 + $0x158] sm:$0xff] }
 0x660   :  { %v11886_v2 = vadd.f32 %v5211_v27, %v5043_v4  ;;  %v5045_v41 = vpop.f32.mrf.mxu3  ;;  %4915 = vmatmul.bf16.gmra.mxu2 %v11883_v12  ;;  %v3240_v4 = vrot.slane %v3238_v55, 7  ;;  %v3945_v55 = vrot.slane %v3389_v35, 1 }
 0x662   :  { %v5214_v11 = vpop.f32.mrf.mxu0  ;;  %14230 = vst [vmem:[#allocation92_spill] sm:$0xff] %v11886_v2  ;;  %v4712_v40 = vpop.f32.mrf.mxu1  ;;  %v3731_v2 = vshrl.u32 %v11880_v60, 16  ;;  %v3243_v13 = vor.u32 %v3241_v48, %v3240_v4  ;;  %v8223_v48 = vld [vmem:[%s13729_s4 + $0x198] sm:$0xff] }
 0x663   :  { %v4876_v28 = vpop.f32.mrf.mxu2  ;;  %5614 = vmatpush.bf16.msrb.mxu3 %v8225_v19 }
 0x664   :  { %v4877_v27 = vadd.f32 %v4876_v28, %v4707_v51  ;;  %v3944_v28 = vrot.slane %v11880_v60, 1  ;;  %4751 = vmatmul.bf16.gmra.mxu1 %v11880_v60 }
 0x665   :  { %5253 = vmatmul.bf16.gmra.mxu0 %v11880_v60  ;;  %v8216_v60 = vld [vmem:[%s13729_s4 + $0x160] sm:$0xff] }
 0x666   :  { %v5046_v34 = vadd.f32 %v5045_v41, %v4877_v27  ;;  %v8224_v41 = vld [vmem:[%s13729_s4 + $0x1a0] sm:$0xff]  ;;  %v3736_v27 = vor.u32 %v3735_v16, %v3731_v2  ;;  %v11921_v19 = vsel %vm3859_vm8, %v3944_v28, %v3945_v55  ;;  %5446 = vmatpush.bf16.msrb.mxu2 %v8216_v60  ;;  %v3245_v60 = vshrl.u32 %v11345_v62, 16 }
 0x667   :  { %5615 = vmatpush.bf16.msrb.mxu3 %v8224_v41  ;;  %14232 = vst [vmem:[#allocation94_spill] sm:$0xff] %v11921_v19 }
 0x668   :  { %v11905_v15 = vadd.f32 %v5214_v11, %v5046_v34  ;;  %v5047_v51 = vpop.f32.mrf.mxu3  ;;  %v8235_v11 = vld [vmem:[%s13729_s4 + $0x1f8] sm:$0xff] }
 0x669   :  { %5781 = vmatpush.bf16.msrb.mxu0 %v8235_v11 }
 0x66a   :  { %v5216_v30 = vpop.f32.mrf.mxu0  ;;  %14231 = vst [vmem:[#allocation93_spill] sm:$0xff] %v11905_v15  ;;  %v3740_v15 = vrot.slane %v3738_v6, 1  ;;  %v4714_v2 = vpop.f32.mrf.mxu1  ;;  %5447 = vmatpush.bf16.msrb.mxu2 %v8215_v18 }
 0x66b   :  { %v4878_v53 = vpop.f32.mrf.mxu2  ;;  %5616 = vmatpush.bf16.msrb.mxu3 %v8223_v48 }
 0x66c   :  { %v4879_v46 = vadd.f32 %v4878_v53, %v4709_v22  ;;  %v11932_v22 = vsel %vm11076_vm7, 0, %v3243_v13  ;;  %v11935_v16 = vsel %vm3393_vm9, %v3736_v27, %v3740_v15  ;;  %v8222_v15 = vld [vmem:[%s13729_s4 + $0x190] sm:$0xff]  ;;  %v8221_v27 = vld [vmem:[%s13729_s4 + $0x188] sm:$0xff] }
 0x66d   :  { %5089 = vmatmul.bf16.gmra.mxu3 %v11921_v19  ;;  %14233 = vst [vmem:[#allocation95_spill] sm:$0xff] %v11932_v22  ;;  %v3745_v11 = vshll.u32 %v11932_v22, 16  ;;  %v8214_v53 = vld [vmem:[%s13729_s4 + $0x150] sm:$0xff] }
 0x66e   :  { %v5048_v35 = vadd.f32 %v5047_v51, %v4879_v46  ;;  %14234 = vst [vmem:[#allocation96_spill] sm:$0xff] %v11935_v16  ;;  %v8234_v51 = vld [vmem:[%s13729_s4 + $0x1f0] sm:$0xff]  ;;  %5448 = vmatpush.bf16.msrb.mxu2 %v8214_v53 }
 0x66f   :  { %5782 = vmatpush.bf16.msrb.mxu0 %v8234_v51  ;;  %5617 = vmatpush.bf16.msrb.mxu3 %v8222_v15  ;;  %v3247_v51 = vrot.slane %v3245_v60, 7  ;;  %v3747_v19 = vrot.slane %v3745_v11, 1  ;;  %v3947_v15 = vrot.slane %v11932_v22, 1  ;;  %v8220_v60 = vld [vmem:[%s13729_s4 + $0x180] sm:$0xff] }
 0x670   :  { %v11938_v6 = vadd.f32 %v5216_v30, %v5048_v35  ;;  %v5050_v28 = vpop.f32.mrf.mxu3  ;;  %4920 = vmatmul.bf16.gmra.mxu2 %v11935_v16  ;;  %v8233_v30 = vld [vmem:[%s13729_s4 + $0x1e8] sm:$0xff]  ;;  %v3390_v35 = vsel %vm11076_vm7, %v3240_v4, 0  ;;  %v3743_v4 = vshrl.u32 %v11932_v22, 16 }
 0x672   :  { %v5219_v34 = vpop.f32.mrf.mxu0  ;;  %14235 = vst [vmem:[#allocation97_spill] sm:$0xff] %v11938_v6  ;;  %v4717_v46 = vpop.f32.mrf.mxu1  ;;  %v8232_v6 = vld [vmem:[%s13729_s4 + $0x1e0] sm:$0xff] }
 0x673   :  { %v4881_v41 = vpop.f32.mrf.mxu2  ;;  %5783 = vmatpush.bf16.msrb.mxu0 %v8233_v30  ;;  %5618 = vmatpush.bf16.msrb.mxu3 %v8221_v27  ;;  %v3948_v30 = vrot.slane %v3390_v35, 1  ;;  %v3748_v27 = vor.u32 %v3747_v19, %v3743_v4 }
 0x674   :  { %v4882_v55 = vadd.f32 %v4881_v41, %v4712_v40  ;;  %v3248_v41 = vshll.u32 %v11345_v62, 16  ;;  %4756 = vmatmul.bf16.gmra.mxu1 %v11932_v22  ;;  %v8243_v62 = vld [vmem:[%s13729_s4 + $0x238] sm:$0xff] }
 0x675   :  { %5258 = vmatmul.bf16.gmra.mxu0 %v11932_v22  ;;  %5950 = vmatpush.bf16.msrb.mxu1 %v8243_v62 }
 0x676   :  { %v5051_v48 = vadd.f32 %v5050_v28, %v4882_v55  ;;  %v3750_v28 = vshll.u32 %v3390_v35, 16  ;;  %v3250_v11 = vor.u32 %v3248_v41, %v3247_v51  ;;  %v8231_v55 = vld [vmem:[%s13729_s4 + $0x1d8] sm:$0xff] }
 0x677   :  { %5784 = vmatpush.bf16.msrb.mxu0 %v8232_v6  ;;  %5619 = vmatpush.bf16.msrb.mxu3 %v8220_v60  ;;  %v8212_v6 = vld [vmem:[%s13729_s4 + $0x140] sm:$0xff] }
 0x678   :  { %v11963_v40 = vadd.f32 %v5219_v34, %v5051_v48  ;;  %v5052_v18 = vpop.f32.mrf.mxu3  ;;  %v8213_v34 = vld [vmem:[%s13729_s4 + $0x148] sm:$0xff]  ;;  %v3752_v16 = vrot.slane %v3750_v28, 1  ;;  %v11993_v19 = vsel %vm11076_vm7, 0, %v3250_v11  ;;  %v3252_v28 = vshrl.u32 %v11367_v31, 16 }
 0x679   :  { %5449 = vmatpush.bf16.msrb.mxu2 %v8213_v34  ;;  %v3757_v60 = vshll.u32 %v11993_v19, 16 }
 0x67a   :  { %v5221_v13 = vpop.f32.mrf.mxu0  ;;  %14236 = vst [vmem:[#allocation98_spill] sm:$0xff] %v11963_v40  ;;  %v11985_v40 = vsel %vm3859_vm8, %v3947_v15, %v3948_v30  ;;  %v4719_v35 = vpop.f32.mrf.mxu1 }
 0x67b   :  { %v4883_v53 = vpop.f32.mrf.mxu2  ;;  %14237 = vst [vmem:[#allocation99_spill] sm:$0xff] %v11985_v40  ;;  %5785 = vmatpush.bf16.msrb.mxu0 %v8231_v55  ;;  %v3391_v55 = vsel %vm11076_vm7, %v3247_v51, 0 }
 0x67c   :  { %v4884_v48 = vadd.f32 %v4883_v53, %v4714_v2  ;;  %v11996_v2 = vsel %vm3393_vm9, %v3748_v27, %v3752_v16  ;;  %v8229_v16 = vld [vmem:[%s13729_s4 + $0x1c8] sm:$0xff]  ;;  %v12012_v53 = vrot.slane %v3252_v28, 7  ;;  %v3759_v27 = vrot.slane %v3757_v60, 1 }
 0x67d   :  { %5094 = vmatmul.bf16.gmra.mxu3 %v11985_v40  ;;  %5450 = vmatpush.bf16.msrb.mxu2 %v8212_v6  ;;  %v3762_v51 = vshll.u32 %v3391_v55, 16  ;;  %v3951_v28 = vrot.slane %v3391_v55, 1 }
 0x67e   :  { %v5053_v41 = vadd.f32 %v5052_v18, %v4884_v48  ;;  %v8230_v18 = vld [vmem:[%s13729_s4 + $0x1d0] sm:$0xff] }
 0x67f   :  { %5786 = vmatpush.bf16.msrb.mxu0 %v8230_v18  ;;  %v3255_v18 = vshll.u32 %v11367_v31, 16 }
 0x680   :  { %v11999_v15 = vadd.f32 %v5221_v13, %v5053_v41  ;;  %v5055_v4 = vpop.f32.mrf.mxu3  ;;  %4925 = vmatmul.bf16.gmra.mxu2 %v11996_v2  ;;  %v3950_v41 = vrot.slane %v11993_v19, 1 }
 0x682   :  { %v5224_v22 = vpop.f32.mrf.mxu0  ;;  %14238 = vst [vmem:[#allocation100_spill] sm:$0xff] %v11999_v15  ;;  %v4722_v30 = vpop.f32.mrf.mxu1 }
 0x683   :  { %v4886_v34 = vpop.f32.mrf.mxu2  ;;  %5787 = vmatpush.bf16.msrb.mxu0 %v8229_v16  ;;  %v3257_v16 = vor.u32 %v3255_v18, %v12012_v53 }
 0x684   :  { %v4887_v62 = vadd.f32 %v4886_v34, %v4717_v46  ;;  %v8228_v46 = vld [vmem:[%s13729_s4 + $0x1c0] sm:$0xff]  ;;  %4761 = vmatmul.bf16.gmra.mxu1 %v11993_v19 }
 0x685   :  { %5263 = vmatmul.bf16.gmra.mxu0 %v11993_v19  ;;  %v12030_v15 = vsel %vm11076_vm7, 0, %v3257_v16 }
 0x686   :  { %v5056_v11 = vadd.f32 %v5055_v4, %v4887_v62  ;;  %v3755_v4 = vshrl.u32 %v11993_v19, 16  ;;  %v12025_v62 = vsel %vm3859_vm8, %v3950_v41, %v3951_v28 }
 0x687   :  { %5788 = vmatpush.bf16.msrb.mxu0 %v8228_v46 }
 0x688   :  { %v12014_v48 = vadd.f32 %v5224_v22, %v5056_v11  ;;  %v5057_v6 = vpop.f32.mrf.mxu3  ;;  %v3760_v34 = vor.u32 %v3759_v27, %v3755_v4  ;;  %v3764_v11 = vrot.slane %v3762_v51, 1 }
 0x68a   :  { %v5226_v13 = vpop.f32.mrf.mxu0  ;;  %14239 = vst [vmem:[#allocation101_spill] sm:$0xff] %v12014_v48  ;;  %v4724_v48 = vpop.f32.mrf.mxu1  ;;  %v12033_v55 = vsel %vm3393_vm9, %v3760_v34, %v3764_v11 }
 0x68b   :  { %v4888_v22 = vpop.f32.mrf.mxu2 }
 0x68c   :  { %v4889_v60 = vadd.f32 %v4888_v22, %v4719_v35 }
 0x68d   :  { %5099 = vmatmul.bf16.gmra.mxu3 %v12025_v62 }
 0x68e   :  { %v5058_v40 = vadd.f32 %v5057_v6, %v4889_v60 }
 0x690   :  { %v12036_v27 = vadd.f32 %v5226_v13, %v5058_v40  ;;  %v5060_v35 = vpop.f32.mrf.mxu3  ;;  %4930 = vmatmul.bf16.gmra.mxu2 %v12033_v55 }
 0x692   :  { %v5229_v31 = vpop.f32.mrf.mxu0  ;;  %v4727_v4 = vpop.f32.mrf.mxu1 }
 0x693   :  { %v4891_v41 = vpop.f32.mrf.mxu2 }
 0x694   :  { %v4892_v18 = vadd.f32 %v4891_v41, %v4722_v30  ;;  %5282 = vmatmul.bf16.vlgmr.msra.gmra.mxu1 %v11135_v17 }
 0x695   :  { %5268 = vmatmul.bf16.gmra.mxu0 %v12030_v15 }
 0x696   :  { %v5061_v51 = vadd.f32 %v5060_v35, %v4892_v18 }
 0x698   :  { %v12039_v6 = vadd.f32 %v5229_v31, %v5061_v51  ;;  %v5062_v28 = vpop.f32.mrf.mxu3 }
 0x69a   :  { %v5231_v46 = vpop.f32.mrf.mxu0  ;;  %v4729_v40 = vpop.f32.mrf.mxu1 }
 0x69b   :  { %v4893_v16 = vpop.f32.mrf.mxu2 }
 0x69c   :  { %v4894_v22 = vadd.f32 %v4893_v16, %v4724_v48 }
 0x69d   :  { %5620 = vmatmul.bf16.vlgmr.msrb.gmra.mxu3 %v11141_v29 }
 0x69e   :  { %v5063_v13 = vadd.f32 %v5062_v28, %v4894_v22 }
 0x6a0   :  { %v12044_v60 = vadd.f32 %v5231_v46, %v5063_v13  ;;  %v5065_v30 = vpop.f32.mrf.mxu3  ;;  %5451 = vmatmul.bf16.vlgmr.msrb.gmra.mxu2 %v11125_v14 }
 0x6a2   :  { %v5234_v34 = vpop.f32.mrf.mxu0  ;;  %v4732_v41 = vpop.f32.mrf.mxu1 }
 0x6a3   :  { %v4896_v11 = vpop.f32.mrf.mxu2 }
 0x6a4   :  { %v4897_v31 = vadd.f32 %v4896_v11, %v4727_v4  ;;  %5287 = vmatmul.bf16.gmra.mxu1 %v11182_v58 }
 0x6a5   :  { %5789 = vmatmul.bf16.vlgmr.msrb.gmra.mxu0 %v11182_v58 }
 0x6a6   :  { %v5066_v18 = vadd.f32 %v5065_v30, %v4897_v31 }
 0x6a8   :  { %v12047_v17 = vadd.f32 %v5234_v34, %v5066_v18  ;;  %v5067_v48 = vpop.f32.mrf.mxu3 }
 0x6aa   :  { %v5236_v35 = vpop.f32.mrf.mxu0  ;;  %v4734_v46 = vpop.f32.mrf.mxu1 }
 0x6ab   :  { %v4898_v29 = vpop.f32.mrf.mxu2 }
 0x6ac   :  { %v4899_v51 = vadd.f32 %v4898_v29, %v4729_v40 }
 0x6ad   :  { %5625 = vmatmul.bf16.gmra.mxu3 %v11176_v32  ;;  %v8242_v32 = vld [vmem:[%s13729_s4 + $0x230] sm:$0xff] }
 0x6ae   :  { %v5068_v16 = vadd.f32 %v5067_v48, %v4899_v51  ;;  %5951 = vmatpush.bf16.msrb.mxu1 %v8242_v32 }
 0x6b0   :  { %v12052_v14 = vadd.f32 %v5236_v35, %v5068_v16  ;;  %v5070_v4 = vpop.f32.mrf.mxu3  ;;  %5456 = vmatmul.bf16.gmra.mxu2 %v11167_v50 }
 0x6b2   :  { %v5239_v28 = vpop.f32.mrf.mxu0  ;;  %v4737_v30 = vpop.f32.mrf.mxu1 }
 0x6b3   :  { %v4901_v22 = vpop.f32.mrf.mxu2 }
 0x6b4   :  { %v4902_v34 = vadd.f32 %v4901_v22, %v4732_v41  ;;  %5292 = vmatmul.bf16.gmra.mxu1 %v11222_v21 }
 0x6b5   :  { %5794 = vmatmul.bf16.gmra.mxu0 %v11222_v21 }
 0x6b6   :  { %v5071_v11 = vadd.f32 %v5070_v4, %v4902_v34 }
 0x6b8   :  { %v12055_v58 = vadd.f32 %v5239_v28, %v5071_v11  ;;  %v5072_v40 = vpop.f32.mrf.mxu3 }
 0x6ba   :  { %v5241_v13 = vpop.f32.mrf.mxu0  ;;  %v4739_v48 = vpop.f32.mrf.mxu1 }
 0x6bb   :  { %v4903_v31 = vpop.f32.mrf.mxu2 }
 0x6bc   :  { %v4904_v35 = vadd.f32 %v4903_v31, %v4734_v46 }
 0x6bd   :  { %5630 = vmatmul.bf16.gmra.mxu3 %v11214_v3 }
 0x6be   :  { %v5073_v41 = vadd.f32 %v5072_v40, %v4904_v35 }
 0x6c0   :  { %v12063_v29 = vadd.f32 %v5241_v13, %v5073_v41  ;;  %v5075_v51 = vpop.f32.mrf.mxu3  ;;  %5461 = vmatmul.bf16.gmra.mxu2 %v11200_v54 }
 0x6c2   :  { %v5244_v18 = vpop.f32.mrf.mxu0  ;;  %v4742_v4 = vpop.f32.mrf.mxu1 }
 0x6c3   :  { %v4906_v21 = vpop.f32.mrf.mxu2 }
 0x6c4   :  { %v4907_v28 = vadd.f32 %v4906_v21, %v4737_v30  ;;  %5297 = vmatmul.bf16.gmra.mxu1 %v11255_v37 }
 0x6c5   :  { %5799 = vmatmul.bf16.gmra.mxu0 %v11255_v37 }
 0x6c6   :  { %v5076_v22 = vadd.f32 %v5075_v51, %v4907_v28 }
 0x6c8   :  { %v12066_v34 = vadd.f32 %v5244_v18, %v5076_v22  ;;  %v5077_v46 = vpop.f32.mrf.mxu3 }
 0x6ca   :  { %v5246_v16 = vpop.f32.mrf.mxu0  ;;  %v4744_v13 = vpop.f32.mrf.mxu1 }
 0x6cb   :  { %v4908_v3 = vpop.f32.mrf.mxu2 }
 0x6cc   :  { %v4909_v11 = vadd.f32 %v4908_v3, %v4739_v48 }
 0x6cd   :  { %5635 = vmatmul.bf16.gmra.mxu3 %v11249_v10 }
 0x6ce   :  { %v5078_v32 = vadd.f32 %v5077_v46, %v4909_v11 }
 0x6d0   :  { %v12071_v31 = vadd.f32 %v5246_v16, %v5078_v32  ;;  %v5080_v30 = vpop.f32.mrf.mxu3  ;;  %5466 = vmatmul.bf16.gmra.mxu2 %v11239_v25 }
 0x6d2   :  { %v5249_v40 = vpop.f32.mrf.mxu0  ;;  %v4747_v51 = vpop.f32.mrf.mxu1 }
 0x6d3   :  { %v4911_v35 = vpop.f32.mrf.mxu2 }
 0x6d4   :  { %v4912_v18 = vadd.f32 %v4911_v35, %v4742_v4  ;;  %5302 = vmatmul.bf16.gmra.mxu1 %v11290_v45 }
 0x6d5   :  { %5804 = vmatmul.bf16.gmra.mxu0 %v11290_v45 }
 0x6d6   :  { %v5081_v21 = vadd.f32 %v5080_v30, %v4912_v18 }
 0x6d8   :  { %v12074_v37 = vadd.f32 %v5249_v40, %v5081_v21  ;;  %v5082_v48 = vpop.f32.mrf.mxu3 }
 0x6da   :  { %v5251_v41 = vpop.f32.mrf.mxu0  ;;  %v4749_v16 = vpop.f32.mrf.mxu1 }
 0x6db   :  { %v4913_v10 = vpop.f32.mrf.mxu2 }
 0x6dc   :  { %v4914_v28 = vadd.f32 %v4913_v10, %v4744_v13  ;;  %v14241_v10 = vld [vmem:[#allocation21_spill] sm:$0xff] }
 0x6dd   :  { %5640 = vmatmul.bf16.gmra.mxu3 %v11285_v47 }
 0x6de   :  { %v5083_v46 = vadd.f32 %v5082_v48, %v4914_v28 }
 0x6e0   :  { %v12079_v3 = vadd.f32 %v5251_v41, %v5083_v46  ;;  %v5085_v4 = vpop.f32.mrf.mxu3  ;;  %5471 = vmatmul.bf16.gmra.mxu2 %v11276_v5  ;;  %v14243_v46 = vld [vmem:[#allocation32_spill] sm:$0xff] }
 0x6e2   :  { %v5254_v22 = vpop.f32.mrf.mxu0  ;;  %v4752_v30 = vpop.f32.mrf.mxu1 }
 0x6e3   :  { %v4916_v11 = vpop.f32.mrf.mxu2 }
 0x6e4   :  { %v4917_v40 = vadd.f32 %v4916_v11, %v4747_v51  ;;  %5307 = vmatmul.bf16.gmra.mxu1 %v11325_v42 }
 0x6e5   :  { %5809 = vmatmul.bf16.gmra.mxu0 %v11325_v42 }
 0x6e6   :  { %v5086_v35 = vadd.f32 %v5085_v4, %v4917_v40 }
 0x6e8   :  { %v12082_v45 = vadd.f32 %v5254_v22, %v5086_v35  ;;  %v5087_v13 = vpop.f32.mrf.mxu3 }
 0x6ea   :  { %v5256_v32 = vpop.f32.mrf.mxu0  ;;  %14240 = vst [vmem:[#allocation102_spill] sm:$0xff] %v12082_v45  ;;  %v4754_v41 = vpop.f32.mrf.mxu1 }
 0x6eb   :  { %v4918_v47 = vpop.f32.mrf.mxu2 }
 0x6ec   :  { %v4919_v18 = vadd.f32 %v4918_v47, %v4749_v16 }
 0x6ed   :  { %5645 = vmatmul.bf16.gmra.mxu3 %v11322_v39  ;;  %v8241_v39 = vld [vmem:[%s13729_s4 + $0x228] sm:$0xff] }
 0x6ee   :  { %v5088_v48 = vadd.f32 %v5087_v13, %v4919_v18  ;;  %5952 = vmatpush.bf16.msrb.mxu1 %v8241_v39  ;;  %v14245_v18 = vld [vmem:[#allocation19_spill] sm:$0xff] }
 0x6f0   :  { %v12087_v28 = vadd.f32 %v5256_v32, %v5088_v48  ;;  %v5090_v51 = vpop.f32.mrf.mxu3  ;;  %5476 = vmatmul.bf16.gmra.mxu2 %v14243_v46 }
 0x6f2   :  { %v5259_v21 = vpop.f32.mrf.mxu0  ;;  %14242 = vst [vmem:[#allocation21_spill] sm:$0xff] %v12087_v28  ;;  %v4757_v40 = vpop.f32.mrf.mxu1 }
 0x6f3   :  { %v4921_v4 = vpop.f32.mrf.mxu2 }
 0x6f4   :  { %v4922_v22 = vadd.f32 %v4921_v4, %v4752_v30  ;;  %5312 = vmatmul.bf16.gmra.mxu1 %v14241_v10  ;;  %v14246_v4 = vld [vmem:[#allocation23_spill] sm:$0xff] }
 0x6f5   :  { %5814 = vmatmul.bf16.gmra.mxu0 %v14241_v10 }
 0x6f6   :  { %v5091_v35 = vadd.f32 %v5090_v51, %v4922_v22  ;;  %v14248_v22 = vld [vmem:[#allocation14_spill] sm:$0xff] }
 0x6f8   :  { %v12090_v42 = vadd.f32 %v5259_v21, %v5091_v35  ;;  %v5092_v16 = vpop.f32.mrf.mxu3 }
 0x6fa   :  { %v5261_v11 = vpop.f32.mrf.mxu0  ;;  %14244 = vst [vmem:[#allocation103_spill] sm:$0xff] %v12090_v42  ;;  %v4759_v48 = vpop.f32.mrf.mxu1 }
 0x6fb   :  { %v4923_v13 = vpop.f32.mrf.mxu2 }
 0x6fc   :  { %v4924_v32 = vadd.f32 %v4923_v13, %v4754_v41 }
 0x6fd   :  { %5650 = vmatmul.bf16.gmra.mxu3 %v14245_v18 }
 0x6fe   :  { %v5093_v30 = vadd.f32 %v5092_v16, %v4924_v32 }
 0x700   :  { %v12098_v51 = vadd.f32 %v5261_v11, %v5093_v30  ;;  %v5095_v21 = vpop.f32.mrf.mxu3  ;;  %5481 = vmatmul.bf16.gmra.mxu2 %v14248_v22  ;;  %v14251_v30 = vld [vmem:[#allocation22_spill] sm:$0xff] }
 0x702   :  { %v5264_v47 = vpop.f32.mrf.mxu0  ;;  %14247 = vst [vmem:[#allocation19_spill] sm:$0xff] %v12098_v51  ;;  %v4762_v28 = vpop.f32.mrf.mxu1 }
 0x703   :  { %v4926_v10 = vpop.f32.mrf.mxu2 }
 0x704   :  { %v4927_v35 = vadd.f32 %v4926_v10, %v4757_v40  ;;  %5317 = vmatmul.bf16.gmra.mxu1 %v14246_v4 }
 0x705   :  { %5819 = vmatmul.bf16.gmra.mxu0 %v14246_v4  ;;  %v14252_v4 = vld [vmem:[#allocation24_spill] sm:$0xff] }
 0x706   :  { %v5096_v46 = vadd.f32 %v5095_v21, %v4927_v35 }
 0x708   :  { %v12101_v45 = vadd.f32 %v5264_v47, %v5096_v46  ;;  %v5097_v41 = vpop.f32.mrf.mxu3 }
 0x70a   :  { %v5266_v42 = vpop.f32.mrf.mxu0  ;;  %14249 = vst [vmem:[#allocation23_spill] sm:$0xff] %v12101_v45  ;;  %v4764_v11 = vpop.f32.mrf.mxu1 }
 0x70b   :  { %v4928_v39 = vpop.f32.mrf.mxu2 }
 0x70c   :  { %v4929_v13 = vadd.f32 %v4928_v39, %v4759_v48 }
 0x70d   :  { %5655 = vmatmul.bf16.gmra.mxu3 %v11379_v63 }
 0x70e   :  { %v5098_v32 = vadd.f32 %v5097_v41, %v4929_v13 }
 0x710   :  { %v12106_v18 = vadd.f32 %v5266_v42, %v5098_v32  ;;  %v5100_v40 = vpop.f32.mrf.mxu3  ;;  %5486 = vmatmul.bf16.gmra.mxu2 %v14251_v30  ;;  %v14254_v42 = vld [vmem:[#allocation26_spill] sm:$0xff]  ;;  %v14255_v30 = vld [vmem:[#allocation27_spill] sm:$0xff] }
 0x712   :  { %v5269_v16 = vpop.f32.mrf.mxu0  ;;  %14250 = vst [vmem:[#allocation14_spill] sm:$0xff] %v12106_v18  ;;  %v5283_v35 = vpop.f32.mrf.mxu1 }
 0x713   :  { %v4931_v21 = vpop.f32.mrf.mxu2  ;;  %v5284_v45 = vadd.f32 %v5283_v35, %v14252_v4 }
 0x714   :  { %v4932_v46 = vadd.f32 %v4931_v21, %v4762_v28  ;;  %5322 = vmatmul.bf16.gmra.mxu1 %v11405_v38  ;;  %v14256_v28 = vld [vmem:[#allocation9_spill] sm:$0xff] }
 0x715   :  { %5824 = vmatmul.bf16.gmra.mxu0 %v11405_v38 }
 0x716   :  { %v5101_v10 = vadd.f32 %v5100_v40, %v4932_v46  ;;  %v14258_v46 = vld [vmem:[#allocation25_spill] sm:$0xff] }
 0x718   :  { %v12110_v48 = vadd.f32 %v5269_v16, %v5101_v10  ;;  %v5102_v39 = vpop.f32.mrf.mxu3 }
 0x71a   :  { %v5271_v47 = vpop.f32.mrf.mxu0  ;;  %14253 = vst [vmem:[#allocation24_spill] sm:$0xff] %v12110_v48  ;;  %v5285_v18 = vpop.f32.mrf.mxu1 }
 0x71b   :  { %v4933_v63 = vpop.f32.mrf.mxu2  ;;  %v5286_v51 = vadd.f32 %v5285_v18, %v14255_v30 }
 0x71c   :  { %v4934_v41 = vadd.f32 %v4933_v63, %v4764_v11  ;;  %v14259_v11 = vld [vmem:[#allocation18_spill] sm:$0xff] }
 0x71d   :  { %5660 = vmatmul.bf16.gmra.mxu3 %v14254_v42 }
 0x71e   :  { %v5103_v32 = vadd.f32 %v5102_v39, %v4934_v41 }
 0x720   :  { %v12116_v40 = vadd.f32 %v5271_v47, %v5103_v32  ;;  %v5621_v21 = vpop.f32.mrf.mxu3  ;;  %5491 = vmatmul.bf16.gmra.mxu2 %v14258_v46  ;;  %v14261_v32 = vld [vmem:[#allocation11_spill] sm:$0xff] }
 0x722   :  { %v5790_v13 = vpop.f32.mrf.mxu0  ;;  %14257 = vst [vmem:[#allocation26_spill] sm:$0xff] %v12116_v40  ;;  %v5288_v38 = vpop.f32.mrf.mxu1 }
 0x723   :  { %v5452_v16 = vpop.f32.mrf.mxu2  ;;  %v5289_v63 = vadd.f32 %v5288_v38, %v14259_v11 }
 0x724   :  { %v5453_v10 = vadd.f32 %v5452_v16, %v5284_v45  ;;  %5327 = vmatmul.bf16.gmra.mxu1 %v14256_v28  ;;  %v14262_v45 = vld [vmem:[#allocation28_spill] sm:$0xff] }
 0x725   :  { %5829 = vmatmul.bf16.gmra.mxu0 %v14256_v28 }
 0x726   :  { %v5622_v4 = vadd.f32 %v5621_v21, %v5453_v10  ;;  %v14264_v10 = vld [vmem:[#allocation20_spill] sm:$0xff] }
 0x728   :  { %v12120_v48 = vadd.f32 %v5790_v13, %v5622_v4  ;;  %v5623_v39 = vpop.f32.mrf.mxu3 }
 0x72a   :  { %v5792_v35 = vpop.f32.mrf.mxu0  ;;  %14260 = vst [vmem:[#allocation27_spill] sm:$0xff] %v12120_v48  ;;  %v5290_v47 = vpop.f32.mrf.mxu1 }
 0x72b   :  { %v5454_v18 = vpop.f32.mrf.mxu2  ;;  %v5291_v40 = vadd.f32 %v5290_v47, %v14261_v32  ;;  %v14267_v32 = vld [vmem:[#allocation52_spill] sm:$0xff] }
 0x72c   :  { %v5455_v30 = vadd.f32 %v5454_v18, %v5286_v51  ;;  %v14265_v51 = vld [vmem:[#allocation29_spill] sm:$0xff] }
 0x72d   :  { %5665 = vmatmul.bf16.gmra.mxu3 %v11430_v49 }
 0x72e   :  { %v5624_v42 = vadd.f32 %v5623_v39, %v5455_v30 }
 0x730   :  { %v12126_v16 = vadd.f32 %v5792_v35, %v5624_v42  ;;  %v5626_v21 = vpop.f32.mrf.mxu3  ;;  %5496 = vmatmul.bf16.gmra.mxu2 %v14264_v10  ;;  %v8240_v35 = vld [vmem:[%s13729_s4 + $0x220] sm:$0xff] }
 0x731   :  { %5953 = vmatpush.bf16.msrb.mxu1 %v8240_v35 }
 0x732   :  { %v5795_v41 = vpop.f32.mrf.mxu0  ;;  %14263 = vst [vmem:[#allocation9_spill] sm:$0xff] %v12126_v16  ;;  %v5293_v28 = vpop.f32.mrf.mxu1 }
 0x733   :  { %v5457_v13 = vpop.f32.mrf.mxu2  ;;  %v5294_v18 = vadd.f32 %v5293_v28, %v14265_v51 }
 0x734   :  { %v5458_v38 = vadd.f32 %v5457_v13, %v5289_v63  ;;  %5332 = vmatmul.bf16.gmra.mxu1 %v14262_v45  ;;  %v14268_v13 = vld [vmem:[#allocation10_spill] sm:$0xff] }
 0x735   :  { %5834 = vmatmul.bf16.gmra.mxu0 %v14262_v45  ;;  %v14270_v45 = vld [vmem:[#allocation13_spill] sm:$0xff] }
 0x736   :  { %v5627_v11 = vadd.f32 %v5626_v21, %v5458_v38 }
 0x738   :  { %v12130_v48 = vadd.f32 %v5795_v41, %v5627_v11  ;;  %v5628_v49 = vpop.f32.mrf.mxu3 }
 0x73a   :  { %v5797_v4 = vpop.f32.mrf.mxu0  ;;  %14266 = vst [vmem:[#allocation25_spill] sm:$0xff] %v12130_v48  ;;  %v5295_v63 = vpop.f32.mrf.mxu1 }
 0x73b   :  { %v5459_v39 = vpop.f32.mrf.mxu2  ;;  %v5296_v21 = vadd.f32 %v5295_v63, %v14267_v32  ;;  %v14273_v32 = vld [vmem:[#allocation12_spill] sm:$0xff] }
 0x73c   :  { %v5460_v30 = vadd.f32 %v5459_v39, %v5291_v40  ;;  %v14271_v40 = vld [vmem:[#allocation8_spill] sm:$0xff] }
 0x73d   :  { %5670 = vmatmul.bf16.gmra.mxu3 %v11455_v36 }
 0x73e   :  { %v5629_v42 = vadd.f32 %v5628_v49, %v5460_v30 }
 0x740   :  { %v12139_v41 = vadd.f32 %v5797_v4, %v5629_v42  ;;  %v5631_v38 = vpop.f32.mrf.mxu3  ;;  %5501 = vmatmul.bf16.gmra.mxu2 %v14270_v45 }
 0x742   :  { %v5800_v47 = vpop.f32.mrf.mxu0  ;;  %14269 = vst [vmem:[#allocation18_spill] sm:$0xff] %v12139_v41  ;;  %v5298_v48 = vpop.f32.mrf.mxu1 }
 0x743   :  { %v5462_v28 = vpop.f32.mrf.mxu2  ;;  %v5299_v39 = vadd.f32 %v5298_v48, %v14271_v40  ;;  %v14275_v48 = vld [vmem:[#allocation15_spill] sm:$0xff] }
 0x744   :  { %v5463_v11 = vadd.f32 %v5462_v28, %v5294_v18  ;;  %5337 = vmatmul.bf16.gmra.mxu1 %v14268_v13 }
 0x745   :  { %5839 = vmatmul.bf16.gmra.mxu0 %v14268_v13 }
 0x746   :  { %v5632_v35 = vadd.f32 %v5631_v38, %v5463_v11 }
 0x748   :  { %v12143_v16 = vadd.f32 %v5800_v47, %v5632_v35  ;;  %v5633_v36 = vpop.f32.mrf.mxu3 }
 0x74a   :  { %v5802_v51 = vpop.f32.mrf.mxu0  ;;  %14272 = vst [vmem:[#allocation11_spill] sm:$0xff] %v12143_v16  ;;  %v5300_v4 = vpop.f32.mrf.mxu1  ;;  %v14296_v16 = vld [vmem:[#allocation40_spill] sm:$0xff] }
 0x74b   :  { %v5464_v49 = vpop.f32.mrf.mxu2  ;;  %v5301_v41 = vadd.f32 %v5300_v4, %v14273_v32 }
 0x74c   :  { %v5465_v30 = vadd.f32 %v5464_v49, %v5296_v21  ;;  %v14276_v21 = vld [vmem:[#allocation17_spill] sm:$0xff] }
 0x74d   :  { %5675 = vmatmul.bf16.gmra.mxu3 %v11480_v7 }
 0x74e   :  { %v5634_v42 = vadd.f32 %v5633_v36, %v5465_v30 }
 0x750   :  { %v12149_v18 = vadd.f32 %v5802_v51, %v5634_v42  ;;  %v5636_v38 = vpop.f32.mrf.mxu3  ;;  %5506 = vmatmul.bf16.gmra.mxu2 %v14275_v48  ;;  %v14278_v51 = vld [vmem:[#allocation31_spill] sm:$0xff] }
 0x752   :  { %v5805_v63 = vpop.f32.mrf.mxu0  ;;  %14274 = vst [vmem:[#allocation28_spill] sm:$0xff] %v12149_v18  ;;  %v5303_v13 = vpop.f32.mrf.mxu1  ;;  %v14279_v18 = vld [vmem:[#allocation33_spill] sm:$0xff] }
 0x753   :  { %v5467_v47 = vpop.f32.mrf.mxu2  ;;  %v5304_v40 = vadd.f32 %v5303_v13, %v14276_v21 }
 0x754   :  { %v5468_v28 = vadd.f32 %v5467_v47, %v5299_v39  ;;  %5342 = vmatmul.bf16.gmra.mxu1 %v11508_v61  ;;  %v14280_v39 = vld [vmem:[#allocation36_spill] sm:$0xff] }
 0x755   :  { %5844 = vmatmul.bf16.gmra.mxu0 %v11508_v61 }
 0x756   :  { %v5637_v35 = vadd.f32 %v5636_v38, %v5468_v28  ;;  %v14282_v28 = vld [vmem:[#allocation51_spill] sm:$0xff] }
 0x758   :  { %v12153_v49 = vadd.f32 %v5805_v63, %v5637_v35  ;;  %v5638_v7 = vpop.f32.mrf.mxu3 }
 0x75a   :  { %v5807_v11 = vpop.f32.mrf.mxu0  ;;  %14277 = vst [vmem:[#allocation29_spill] sm:$0xff] %v12153_v49  ;;  %v5305_v42 = vpop.f32.mrf.mxu1 }
 0x75b   :  { %v5469_v36 = vpop.f32.mrf.mxu2  ;;  %v5306_v48 = vadd.f32 %v5305_v42, %v14279_v18 }
 0x75c   :  { %v5470_v30 = vadd.f32 %v5469_v36, %v5301_v41  ;;  %v14283_v41 = vld [vmem:[#allocation34_spill] sm:$0xff] }
 0x75d   :  { %5680 = vmatmul.bf16.gmra.mxu3 %v14278_v51 }
 0x75e   :  { %v5639_v32 = vadd.f32 %v5638_v7, %v5470_v30 }
 0x760   :  { %v12159_v47 = vadd.f32 %v5807_v11, %v5639_v32  ;;  %v5641_v38 = vpop.f32.mrf.mxu3  ;;  %5511 = vmatmul.bf16.gmra.mxu2 %v14282_v28  ;;  %v14285_v11 = vld [vmem:[#allocation35_spill] sm:$0xff] }
 0x762   :  { %v5810_v4 = vpop.f32.mrf.mxu0  ;;  %14281 = vst [vmem:[#allocation52_spill] sm:$0xff] %v12159_v47  ;;  %v5308_v61 = vpop.f32.mrf.mxu1  ;;  %v14286_v47 = vld [vmem:[#allocation37_spill] sm:$0xff] }
 0x763   :  { %v5472_v63 = vpop.f32.mrf.mxu2  ;;  %v5309_v36 = vadd.f32 %v5308_v61, %v14283_v41 }
 0x764   :  { %v5473_v13 = vadd.f32 %v5472_v63, %v5304_v40  ;;  %5347 = vmatmul.bf16.gmra.mxu1 %v14280_v39  ;;  %v14287_v40 = vld [vmem:[#allocation42_spill] sm:$0xff] }
 0x765   :  { %5849 = vmatmul.bf16.gmra.mxu0 %v14280_v39 }
 0x766   :  { %v5642_v21 = vadd.f32 %v5641_v38, %v5473_v13  ;;  %v14289_v13 = vld [vmem:[#allocation50_spill] sm:$0xff] }
 0x768   :  { %v12163_v49 = vadd.f32 %v5810_v4, %v5642_v21  ;;  %v5643_v51 = vpop.f32.mrf.mxu3  ;;  %v14290_v4 = vld [vmem:[#allocation41_spill] sm:$0xff] }
 0x769   :  { %v3987_v61 = vshll.u32 %v14290_v4, 16 }
 0x76a   :  { %v5812_v35 = vpop.f32.mrf.mxu0  ;;  %14284 = vst [vmem:[#allocation10_spill] sm:$0xff] %v12163_v49  ;;  %v5310_v42 = vpop.f32.mrf.mxu1 }
 0x76b   :  { %v5474_v18 = vpop.f32.mrf.mxu2  ;;  %v5311_v28 = vadd.f32 %v5310_v42, %v14286_v47  ;;  %v14292_v47 = vld [vmem:[#allocation39_spill] sm:$0xff] }
 0x76c   :  { %v5475_v7 = vadd.f32 %v5474_v18, %v5306_v48  ;;  %v14291_v48 = vld [vmem:[#allocation38_spill] sm:$0xff] }
 0x76d   :  { %5685 = vmatmul.bf16.gmra.mxu3 %v14285_v11  ;;  %v3376_v18 = vsel %vm11076_vm7, %v14291_v48, 0 }
 0x76e   :  { %v5644_v32 = vadd.f32 %v5643_v51, %v5475_v7  ;;  %v3989_v7 = vrot.slane %v3987_v61, 1 }
 0x770   :  { %v12169_v63 = vadd.f32 %v5812_v35, %v5644_v32  ;;  %v5646_v38 = vpop.f32.mrf.mxu3  ;;  %5516 = vmatmul.bf16.gmra.mxu2 %v14289_v13  ;;  %v3985_v32 = vshrl.u32 %v14290_v4, 16 }
 0x772   :  { %v5815_v30 = vpop.f32.mrf.mxu0  ;;  %14288 = vst [vmem:[#allocation8_spill] sm:$0xff] %v12169_v63  ;;  %v5313_v11 = vpop.f32.mrf.mxu1  ;;  %v3992_v63 = vshll.u32 %v3376_v18, 16 }
 0x773   :  { %v5477_v21 = vpop.f32.mrf.mxu2  ;;  %v5314_v42 = vadd.f32 %v5313_v11, %v14292_v47 }
 0x774   :  { %v5478_v39 = vadd.f32 %v5477_v21, %v5309_v36  ;;  %5352 = vmatmul.bf16.gmra.mxu1 %v14287_v40  ;;  %v8239_v36 = vld [vmem:[%s13729_s4 + $0x218] sm:$0xff]  ;;  %v3990_v21 = vor.u32 %v3989_v7, %v3985_v32  ;;  %v3994_v61 = vrot.slane %v3992_v63, 1 }
 0x775   :  { %5854 = vmatmul.bf16.gmra.mxu0 %v14287_v40  ;;  %5954 = vmatpush.bf16.msrb.mxu1 %v8239_v36  ;;  %v14297_v63 = vld [vmem:[#allocation44_spill] sm:$0xff] }
 0x776   :  { %v5647_v51 = vadd.f32 %v5646_v38, %v5478_v39  ;;  %v3995_v11 = vsel %vm3393_vm9, %v3990_v21, %v3994_v61 }
 0x778   :  { %v12177_v49 = vadd.f32 %v5815_v30, %v5647_v51  ;;  %v5648_v35 = vpop.f32.mrf.mxu3  ;;  %v14294_v51 = vld [vmem:[#allocation43_spill] sm:$0xff] }
 0x77a   :  { %v5817_v41 = vpop.f32.mrf.mxu0  ;;  %14293 = vst [vmem:[#allocation12_spill] sm:$0xff] %v12177_v49  ;;  %v5315_v30 = vpop.f32.mrf.mxu1 }
 0x77b   :  { %v5479_v13 = vpop.f32.mrf.mxu2  ;;  %v5316_v47 = vadd.f32 %v5315_v30, %v14294_v51  ;;  %v14298_v30 = vld [vmem:[#allocation5_spill] sm:$0xff] }
 0x77c   :  { %v5480_v48 = vadd.f32 %v5479_v13, %v5311_v28 }
 0x77d   :  { %5690 = vmatmul.bf16.gmra.mxu3 %v14290_v4 }
 0x77e   :  { %v5649_v39 = vadd.f32 %v5648_v35, %v5480_v48  ;;  %v4014_v48 = vrot.slane %v14290_v4, 1 }
 0x780   :  { %v12187_v40 = vadd.f32 %v5817_v41, %v5649_v39  ;;  %v5651_v49 = vpop.f32.mrf.mxu3  ;;  %5521 = vmatmul.bf16.gmra.mxu2 %v14296_v16  ;;  %v4015_v39 = vrot.slane %v3376_v18, 1 }
 0x782   :  { %v5820_v38 = vpop.f32.mrf.mxu0  ;;  %14295 = vst [vmem:[#allocation17_spill] sm:$0xff] %v12187_v40  ;;  %v5318_v28 = vpop.f32.mrf.mxu1 }
 0x783   :  { %v5482_v7 = vpop.f32.mrf.mxu2  ;;  %v5319_v45 = vadd.f32 %v5318_v28, %v14297_v63 }
 0x784   :  { %v5483_v32 = vadd.f32 %v5482_v7, %v5314_v42  ;;  %5357 = vmatmul.bf16.gmra.mxu1 %v3995_v11  ;;  %v14299_v42 = vld [vmem:[#allocation45_spill] sm:$0xff] }
 0x785   :  { %5859 = vmatmul.bf16.gmra.mxu0 %v3995_v11 }
 0x786   :  { %v5652_v13 = vadd.f32 %v5651_v49, %v5483_v32  ;;  %v12197_v49 = vsel %vm3859_vm8, %v4014_v48, %v4015_v39  ;;  %v14300_v32 = vld [vmem:[#allocation7_spill] sm:$0xff] }
 0x788   :  { %v12191_v10 = vadd.f32 %v5820_v38, %v5652_v13  ;;  %v5653_v35 = vpop.f32.mrf.mxu3 }
 0x78a   :  { %v5822_v36 = vpop.f32.mrf.mxu0  ;;  %v5320_v51 = vpop.f32.mrf.mxu1 }
 0x78b   :  { %v5484_v21 = vpop.f32.mrf.mxu2  ;;  %v5321_v7 = vadd.f32 %v5320_v51, %v14299_v42 }
 0x78c   :  { %v5485_v61 = vadd.f32 %v5484_v21, %v5316_v47 }
 0x78d   :  { %5695 = vmatmul.bf16.gmra.mxu3 %v14298_v30 }
 0x78e   :  { %v5654_v40 = vadd.f32 %v5653_v35, %v5485_v61 }
 0x790   :  { %v12200_v38 = vadd.f32 %v5822_v36, %v5654_v40  ;;  %v5656_v11 = vpop.f32.mrf.mxu3  ;;  %5526 = vmatmul.bf16.gmra.mxu2 %v12197_v49 }
 0x792   :  { %v5825_v41 = vpop.f32.mrf.mxu0  ;;  %v5323_v13 = vpop.f32.mrf.mxu1 }
 0x793   :  { %v5487_v4 = vpop.f32.mrf.mxu2  ;;  %v5324_v18 = vadd.f32 %v5323_v13, %v11584_v44  ;;  %v14302_v44 = vld [vmem:[#allocation46_spill] sm:$0xff] }
 0x794   :  { %v5488_v47 = vadd.f32 %v5487_v4, %v5319_v45  ;;  %5362 = vmatmul.bf16.gmra.mxu1 %v11596_v1  ;;  %v14301_v45 = vld [vmem:[#allocation30_spill] sm:$0xff] }
 0x795   :  { %5864 = vmatmul.bf16.gmra.mxu0 %v14300_v32 }
 0x796   :  { %v5657_v63 = vadd.f32 %v5656_v11, %v5488_v47 }
 0x798   :  { %v12204_v35 = vadd.f32 %v5825_v41, %v5657_v63  ;;  %v5658_v21 = vpop.f32.mrf.mxu3 }
 0x79a   :  { %v5827_v28 = vpop.f32.mrf.mxu0  ;;  %v5325_v40 = vpop.f32.mrf.mxu1 }
 0x79b   :  { %v5489_v48 = vpop.f32.mrf.mxu2  ;;  %v5326_v51 = vadd.f32 %v5325_v40, %v11599_v56 }
 0x79c   :  { %v5490_v61 = vadd.f32 %v5489_v48, %v5321_v7  ;;  %v14303_v7 = vld [vmem:[#allocation47_spill] sm:$0xff] }
 0x79d   :  { %5700 = vmatmul.bf16.gmra.mxu3 %v11593_v8 }
 0x79e   :  { %v5659_v36 = vadd.f32 %v5658_v21, %v5490_v61 }
 0x7a0   :  { %v12210_v42 = vadd.f32 %v5827_v28, %v5659_v36  ;;  %v5661_v11 = vpop.f32.mrf.mxu3  ;;  %5531 = vmatmul.bf16.gmra.mxu2 %v14302_v44  ;;  %v14305_v36 = vld [vmem:[#allocation49_spill] sm:$0xff] }
 0x7a2   :  { %v5830_v39 = vpop.f32.mrf.mxu0  ;;  %v5328_v1 = vpop.f32.mrf.mxu1 }
 0x7a3   :  { %v5492_v41 = vpop.f32.mrf.mxu2  ;;  %v5329_v63 = vadd.f32 %v5328_v1, %v14303_v7 }
 0x7a4   :  { %v5493_v4 = vadd.f32 %v5492_v41, %v5324_v18  ;;  %5367 = vmatmul.bf16.gmra.mxu1 %v14301_v45  ;;  %v14306_v18 = vld [vmem:[#allocation55_spill] sm:$0xff] }
 0x7a5   :  { %5869 = vmatmul.bf16.gmra.mxu0 %v14301_v45 }
 0x7a6   :  { %v5662_v13 = vadd.f32 %v5661_v11, %v5493_v4  ;;  %v14308_v4 = vld [vmem:[#allocation48_spill] sm:$0xff] }
 0x7a8   :  { %v12214_v48 = vadd.f32 %v5830_v39, %v5662_v13  ;;  %v5663_v8 = vpop.f32.mrf.mxu3 }
 0x7aa   :  { %v5832_v47 = vpop.f32.mrf.mxu0  ;;  %14304 = vst [vmem:[#allocation31_spill] sm:$0xff] %v12214_v48  ;;  %v5330_v28 = vpop.f32.mrf.mxu1 }
 0x7ab   :  { %v5494_v56 = vpop.f32.mrf.mxu2  ;;  %v5331_v44 = vadd.f32 %v5330_v28, %v14305_v36  ;;  %v14311_v36 = vld [vmem:[#allocation56_spill] sm:$0xff] }
 0x7ac   :  { %v5495_v21 = vadd.f32 %v5494_v56, %v5326_v51  ;;  %v14309_v51 = vld [vmem:[#allocation53_spill] sm:$0xff] }
 0x7ad   :  { %5705 = vmatmul.bf16.gmra.mxu3 %v11621_v59 }
 0x7ae   :  { %v5664_v40 = vadd.f32 %v5663_v8, %v5495_v21 }
 0x7b0   :  { %v12220_v41 = vadd.f32 %v5832_v47, %v5664_v40  ;;  %v5666_v11 = vpop.f32.mrf.mxu3  ;;  %5536 = vmatmul.bf16.gmra.mxu2 %v14308_v4  ;;  %v8238_v47 = vld [vmem:[%s13729_s4 + $0x210] sm:$0xff] }
 0x7b1   :  { %5955 = vmatpush.bf16.msrb.mxu1 %v8238_v47 }
 0x7b2   :  { %v5835_v61 = vpop.f32.mrf.mxu0  ;;  %14307 = vst [vmem:[#allocation33_spill] sm:$0xff] %v12220_v41  ;;  %v5333_v45 = vpop.f32.mrf.mxu1 }
 0x7b3   :  { %v5497_v39 = vpop.f32.mrf.mxu2  ;;  %v5334_v56 = vadd.f32 %v5333_v45, %v14309_v51 }
 0x7b4   :  { %v5498_v1 = vadd.f32 %v5497_v39, %v5329_v63  ;;  %5372 = vmatmul.bf16.gmra.mxu1 %v14306_v18  ;;  %v14312_v39 = vld [vmem:[#allocation59_spill] sm:$0xff] }
 0x7b5   :  { %5874 = vmatmul.bf16.gmra.mxu0 %v14306_v18  ;;  %v14314_v18 = vld [vmem:[#allocation54_spill] sm:$0xff] }
 0x7b6   :  { %v5667_v7 = vadd.f32 %v5666_v11, %v5498_v1 }
 0x7b8   :  { %v12224_v48 = vadd.f32 %v5835_v61, %v5667_v7  ;;  %v5668_v59 = vpop.f32.mrf.mxu3 }
 0x7ba   :  { %v5837_v13 = vpop.f32.mrf.mxu0  ;;  %14310 = vst [vmem:[#allocation36_spill] sm:$0xff] %v12224_v48  ;;  %v5335_v63 = vpop.f32.mrf.mxu1 }
 0x7bb   :  { %v5499_v8 = vpop.f32.mrf.mxu2  ;;  %v5336_v11 = vadd.f32 %v5335_v63, %v14311_v36  ;;  %v14316_v36 = vld [vmem:[#allocation60_spill] sm:$0xff] }
 0x7bc   :  { %v5500_v21 = vadd.f32 %v5499_v8, %v5331_v44  ;;  %v14315_v44 = vld [vmem:[#allocation57_spill] sm:$0xff] }
 0x7bd   :  { %5710 = vmatmul.bf16.gmra.mxu3 %v11646_v52 }
 0x7be   :  { %v5669_v40 = vadd.f32 %v5668_v59, %v5500_v21 }
 0x7c0   :  { %v12233_v61 = vadd.f32 %v5837_v13, %v5669_v40  ;;  %v5671_v1 = vpop.f32.mrf.mxu3  ;;  %5541 = vmatmul.bf16.gmra.mxu2 %v14314_v18 }
 0x7c2   :  { %v5840_v28 = vpop.f32.mrf.mxu0  ;;  %14313 = vst [vmem:[#allocation34_spill] sm:$0xff] %v12233_v61  ;;  %v5338_v48 = vpop.f32.mrf.mxu1 }
 0x7c3   :  { %v5502_v45 = vpop.f32.mrf.mxu2  ;;  %v5339_v8 = vadd.f32 %v5338_v48, %v14315_v44  ;;  %v14318_v48 = vld [vmem:[#allocation58_spill] sm:$0xff] }
 0x7c4   :  { %v5503_v7 = vadd.f32 %v5502_v45, %v5334_v56  ;;  %5377 = vmatmul.bf16.gmra.mxu1 %v14312_v39 }
 0x7c5   :  { %5879 = vmatmul.bf16.gmra.mxu0 %v14312_v39 }
 0x7c6   :  { %v5672_v47 = vadd.f32 %v5671_v1, %v5503_v7 }
 0x7c8   :  { %v12237_v41 = vadd.f32 %v5840_v28, %v5672_v47  ;;  %v5673_v52 = vpop.f32.mrf.mxu3 }
 0x7ca   :  { %v5842_v51 = vpop.f32.mrf.mxu0  ;;  %v5340_v13 = vpop.f32.mrf.mxu1 }
 0x7cb   :  { %v5504_v59 = vpop.f32.mrf.mxu2  ;;  %v5341_v61 = vadd.f32 %v5340_v13, %v14316_v36 }
 0x7cc   :  { %v5505_v21 = vadd.f32 %v5504_v59, %v5336_v11  ;;  %v14319_v11 = vld [vmem:[#allocation61_spill] sm:$0xff] }
 0x7cd   :  { %5715 = vmatmul.bf16.gmra.mxu3 %v11671_v20 }
 0x7ce   :  { %v5674_v40 = vadd.f32 %v5673_v52, %v5505_v21 }
 0x7d0   :  { %v12243_v56 = vadd.f32 %v5842_v51, %v5674_v40  ;;  %v5676_v1 = vpop.f32.mrf.mxu3  ;;  %5546 = vmatmul.bf16.gmra.mxu2 %v14318_v48  ;;  %v14321_v51 = vld [vmem:[#allocation63_spill] sm:$0xff] }
 0x7d2   :  { %v5845_v63 = vpop.f32.mrf.mxu0  ;;  %14317 = vst [vmem:[#allocation35_spill] sm:$0xff] %v12243_v56  ;;  %v5343_v39 = vpop.f32.mrf.mxu1  ;;  %v14322_v56 = vld [vmem:[#allocation64_spill] sm:$0xff] }
 0x7d3   :  { %v5507_v28 = vpop.f32.mrf.mxu2  ;;  %v5344_v44 = vadd.f32 %v5343_v39, %v14319_v11 }
 0x7d4   :  { %v5508_v45 = vadd.f32 %v5507_v28, %v5339_v8  ;;  %5382 = vmatmul.bf16.gmra.mxu1 %v11699_v0  ;;  %v14323_v8 = vld [vmem:[#allocation67_spill] sm:$0xff] }
 0x7d5   :  { %5884 = vmatmul.bf16.gmra.mxu0 %v11699_v0 }
 0x7d6   :  { %v5677_v47 = vadd.f32 %v5676_v1, %v5508_v45  ;;  %v14325_v45 = vld [vmem:[#allocation62_spill] sm:$0xff] }
 0x7d8   :  { %v12247_v59 = vadd.f32 %v5845_v63, %v5677_v47  ;;  %v5678_v20 = vpop.f32.mrf.mxu3 }
 0x7da   :  { %v5847_v7 = vpop.f32.mrf.mxu0  ;;  %14320 = vst [vmem:[#allocation37_spill] sm:$0xff] %v12247_v59  ;;  %v5345_v40 = vpop.f32.mrf.mxu1 }
 0x7db   :  { %v5509_v52 = vpop.f32.mrf.mxu2  ;;  %v5346_v48 = vadd.f32 %v5345_v40, %v14322_v56 }
 0x7dc   :  { %v5510_v21 = vadd.f32 %v5509_v52, %v5341_v61  ;;  %v14326_v61 = vld [vmem:[#allocation65_spill] sm:$0xff] }
 0x7dd   :  { %5720 = vmatmul.bf16.gmra.mxu3 %v14321_v51 }
 0x7de   :  { %v5679_v36 = vadd.f32 %v5678_v20, %v5510_v21 }
 0x7e0   :  { %v12253_v28 = vadd.f32 %v5847_v7, %v5679_v36  ;;  %v5681_v1 = vpop.f32.mrf.mxu3  ;;  %5551 = vmatmul.bf16.gmra.mxu2 %v14325_v45  ;;  %v14328_v36 = vld [vmem:[#allocation68_spill] sm:$0xff] }
 0x7e2   :  { %v5850_v13 = vpop.f32.mrf.mxu0  ;;  %14324 = vst [vmem:[#allocation42_spill] sm:$0xff] %v12253_v28  ;;  %v5348_v0 = vpop.f32.mrf.mxu1 }
 0x7e3   :  { %v5512_v63 = vpop.f32.mrf.mxu2  ;;  %v5349_v52 = vadd.f32 %v5348_v0, %v14326_v61 }
 0x7e4   :  { %v5513_v39 = vadd.f32 %v5512_v63, %v5344_v44  ;;  %5387 = vmatmul.bf16.gmra.mxu1 %v14323_v8  ;;  %v14329_v44 = vld [vmem:[#allocation71_spill] sm:$0xff] }
 0x7e5   :  { %5889 = vmatmul.bf16.gmra.mxu0 %v14323_v8 }
 0x7e6   :  { %v5682_v11 = vadd.f32 %v5681_v1, %v5513_v39  ;;  %v14331_v39 = vld [vmem:[#allocation66_spill] sm:$0xff] }
 0x7e8   :  { %v12257_v59 = vadd.f32 %v5850_v13, %v5682_v11  ;;  %v5683_v51 = vpop.f32.mrf.mxu3 }
 0x7ea   :  { %v5852_v47 = vpop.f32.mrf.mxu0  ;;  %14327 = vst [vmem:[#allocation41_spill] sm:$0xff] %v12257_v59  ;;  %v5350_v7 = vpop.f32.mrf.mxu1 }
 0x7eb   :  { %v5514_v56 = vpop.f32.mrf.mxu2  ;;  %v5351_v28 = vadd.f32 %v5350_v7, %v14328_v36  ;;  %v14334_v36 = vld [vmem:[#allocation72_spill] sm:$0xff] }
 0x7ec   :  { %v5515_v20 = vadd.f32 %v5514_v56, %v5346_v48  ;;  %v14332_v48 = vld [vmem:[#allocation69_spill] sm:$0xff] }
 0x7ed   :  { %5725 = vmatmul.bf16.gmra.mxu3 %v11724_v57 }
 0x7ee   :  { %v5684_v40 = vadd.f32 %v5683_v51, %v5515_v20 }
 0x7f0   :  { %v12263_v63 = vadd.f32 %v5852_v47, %v5684_v40  ;;  %v5686_v1 = vpop.f32.mrf.mxu3  ;;  %5556 = vmatmul.bf16.gmra.mxu2 %v14331_v39  ;;  %v8237_v47 = vld [vmem:[%s13729_s4 + $0x208] sm:$0xff] }
 0x7f1   :  { %5956 = vmatpush.bf16.msrb.mxu1 %v8237_v47 }
 0x7f2   :  { %v5855_v21 = vpop.f32.mrf.mxu0  ;;  %14330 = vst [vmem:[#allocation38_spill] sm:$0xff] %v12263_v63  ;;  %v5353_v8 = vpop.f32.mrf.mxu1 }
 0x7f3   :  { %v5517_v13 = vpop.f32.mrf.mxu2  ;;  %v5354_v56 = vadd.f32 %v5353_v8, %v14332_v48 }
 0x7f4   :  { %v5518_v0 = vadd.f32 %v5517_v13, %v5349_v52  ;;  %5392 = vmatmul.bf16.gmra.mxu1 %v14329_v44  ;;  %v14335_v13 = vld [vmem:[#allocation75_spill] sm:$0xff] }
 0x7f5   :  { %5894 = vmatmul.bf16.gmra.mxu0 %v14329_v44  ;;  %v14337_v44 = vld [vmem:[#allocation70_spill] sm:$0xff] }
 0x7f6   :  { %v5687_v61 = vadd.f32 %v5686_v1, %v5518_v0 }
 0x7f8   :  { %v12267_v59 = vadd.f32 %v5855_v21, %v5687_v61  ;;  %v5688_v57 = vpop.f32.mrf.mxu3 }
 0x7fa   :  { %v5857_v11 = vpop.f32.mrf.mxu0  ;;  %14333 = vst [vmem:[#allocation39_spill] sm:$0xff] %v12267_v59  ;;  %v5355_v52 = vpop.f32.mrf.mxu1 }
 0x7fb   :  { %v5519_v51 = vpop.f32.mrf.mxu2  ;;  %v5356_v1 = vadd.f32 %v5355_v52, %v14334_v36  ;;  %v14339_v36 = vld [vmem:[#allocation76_spill] sm:$0xff] }
 0x7fc   :  { %v5520_v20 = vadd.f32 %v5519_v51, %v5351_v28  ;;  %v14338_v28 = vld [vmem:[#allocation73_spill] sm:$0xff] }
 0x7fd   :  { %5730 = vmatmul.bf16.gmra.mxu3 %v11749_v24 }
 0x7fe   :  { %v5689_v40 = vadd.f32 %v5688_v57, %v5520_v20 }
 0x800   :  { %v12276_v21 = vadd.f32 %v5857_v11, %v5689_v40  ;;  %v5691_v0 = vpop.f32.mrf.mxu3  ;;  %5561 = vmatmul.bf16.gmra.mxu2 %v14337_v44 }
 0x802   :  { %v5860_v7 = vpop.f32.mrf.mxu0  ;;  %14336 = vst [vmem:[#allocation43_spill] sm:$0xff] %v12276_v21  ;;  %v5358_v59 = vpop.f32.mrf.mxu1 }
 0x803   :  { %v5522_v8 = vpop.f32.mrf.mxu2  ;;  %v5359_v51 = vadd.f32 %v5358_v59, %v14338_v28  ;;  %v14341_v59 = vld [vmem:[#allocation74_spill] sm:$0xff] }
 0x804   :  { %v5523_v61 = vadd.f32 %v5522_v8, %v5354_v56  ;;  %5397 = vmatmul.bf16.gmra.mxu1 %v14335_v13 }
 0x805   :  { %5899 = vmatmul.bf16.gmra.mxu0 %v14335_v13 }
 0x806   :  { %v5692_v47 = vadd.f32 %v5691_v0, %v5523_v61 }
 0x808   :  { %v12280_v63 = vadd.f32 %v5860_v7, %v5692_v47  ;;  %v5693_v24 = vpop.f32.mrf.mxu3 }
 0x80a   :  { %v5862_v48 = vpop.f32.mrf.mxu0  ;;  %v5360_v11 = vpop.f32.mrf.mxu1 }
 0x80b   :  { %v5524_v57 = vpop.f32.mrf.mxu2  ;;  %v5361_v21 = vadd.f32 %v5360_v11, %v14339_v36 }
 0x80c   :  { %v5525_v20 = vadd.f32 %v5524_v57, %v5356_v1  ;;  %v14342_v1 = vld [vmem:[#allocation77_spill] sm:$0xff] }
 0x80d   :  { %5735 = vmatmul.bf16.gmra.mxu3 %v11774_v23 }
 0x80e   :  { %v5694_v40 = vadd.f32 %v5693_v24, %v5525_v20 }
 0x810   :  { %v12286_v56 = vadd.f32 %v5862_v48, %v5694_v40  ;;  %v5696_v0 = vpop.f32.mrf.mxu3  ;;  %5566 = vmatmul.bf16.gmra.mxu2 %v14341_v59  ;;  %v14344_v48 = vld [vmem:[#allocation79_spill] sm:$0xff] }
 0x812   :  { %v5865_v52 = vpop.f32.mrf.mxu0  ;;  %14340 = vst [vmem:[#allocation40_spill] sm:$0xff] %v12286_v56  ;;  %v5363_v13 = vpop.f32.mrf.mxu1  ;;  %v14345_v56 = vld [vmem:[#allocation80_spill] sm:$0xff] }
 0x813   :  { %v5527_v7 = vpop.f32.mrf.mxu2  ;;  %v5364_v28 = vadd.f32 %v5363_v13, %v14342_v1 }
 0x814   :  { %v5528_v8 = vadd.f32 %v5527_v7, %v5359_v51  ;;  %5402 = vmatmul.bf16.gmra.mxu1 %v11802_v26  ;;  %v14346_v51 = vld [vmem:[#allocation83_spill] sm:$0xff] }
 0x815   :  { %5904 = vmatmul.bf16.gmra.mxu0 %v11802_v26 }
 0x816   :  { %v5697_v47 = vadd.f32 %v5696_v0, %v5528_v8  ;;  %v14348_v8 = vld [vmem:[#allocation78_spill] sm:$0xff] }
 0x818   :  { %v12290_v57 = vadd.f32 %v5865_v52, %v5697_v47  ;;  %v5698_v23 = vpop.f32.mrf.mxu3 }
 0x81a   :  { %v5867_v61 = vpop.f32.mrf.mxu0  ;;  %14343 = vst [vmem:[#allocation44_spill] sm:$0xff] %v12290_v57  ;;  %v5365_v40 = vpop.f32.mrf.mxu1 }
 0x81b   :  { %v5529_v24 = vpop.f32.mrf.mxu2  ;;  %v5366_v59 = vadd.f32 %v5365_v40, %v14345_v56 }
 0x81c   :  { %v5530_v20 = vadd.f32 %v5529_v24, %v5361_v21  ;;  %v14349_v21 = vld [vmem:[#allocation81_spill] sm:$0xff] }
 0x81d   :  { %5740 = vmatmul.bf16.gmra.mxu3 %v14344_v48 }
 0x81e   :  { %v5699_v36 = vadd.f32 %v5698_v23, %v5530_v20 }
 0x820   :  { %v12296_v7 = vadd.f32 %v5867_v61, %v5699_v36  ;;  %v5701_v0 = vpop.f32.mrf.mxu3  ;;  %5571 = vmatmul.bf16.gmra.mxu2 %v14348_v8  ;;  %v14351_v36 = vld [vmem:[#allocation84_spill] sm:$0xff] }
 0x822   :  { %v5870_v11 = vpop.f32.mrf.mxu0  ;;  %14347 = vst [vmem:[#allocation5_spill] sm:$0xff] %v12296_v7  ;;  %v5368_v26 = vpop.f32.mrf.mxu1 }
 0x823   :  { %v5532_v52 = vpop.f32.mrf.mxu2  ;;  %v5369_v24 = vadd.f32 %v5368_v26, %v14349_v21 }
 0x824   :  { %v5533_v13 = vadd.f32 %v5532_v52, %v5364_v28  ;;  %5407 = vmatmul.bf16.gmra.mxu1 %v14346_v51  ;;  %v14352_v28 = vld [vmem:[#allocation87_spill] sm:$0xff] }
 0x825   :  { %5909 = vmatmul.bf16.gmra.mxu0 %v14346_v51 }
 0x826   :  { %v5702_v1 = vadd.f32 %v5701_v0, %v5533_v13  ;;  %v14353_v13 = vld [vmem:[#allocation82_spill] sm:$0xff] }
 0x828   :  { %v12300_v57 = vadd.f32 %v5870_v11, %v5702_v1  ;;  %v5703_v48 = vpop.f32.mrf.mxu3 }
 0x82a   :  { %v5872_v47 = vpop.f32.mrf.mxu0  ;;  %14350 = vst [vmem:[#allocation45_spill] sm:$0xff] %v12300_v57  ;;  %v5370_v61 = vpop.f32.mrf.mxu1 }
 0x82b   :  { %v5534_v56 = vpop.f32.mrf.mxu2  ;;  %v5371_v7 = vadd.f32 %v5370_v61, %v14351_v36  ;;  %v14356_v36 = vld [vmem:[#allocation88_spill] sm:$0xff] }
 0x82c   :  { %v5535_v23 = vadd.f32 %v5534_v56, %v5366_v59  ;;  %v14354_v59 = vld [vmem:[#allocation85_spill] sm:$0xff] }
 0x82d   :  { %5745 = vmatmul.bf16.gmra.mxu3 %v11827_v33 }
 0x82e   :  { %v5704_v40 = vadd.f32 %v5703_v48, %v5535_v23 }
 0x830   :  { %v12306_v52 = vadd.f32 %v5872_v47, %v5704_v40  ;;  %v5706_v0 = vpop.f32.mrf.mxu3  ;;  %5576 = vmatmul.bf16.gmra.mxu2 %v14353_v13  ;;  %v8236_v47 = vld [vmem:[%s13729_s4 + $0x200] sm:$0xff] }
 0x831   :  { %5957 = vmatpush.bf16.msrb.mxu1 %v8236_v47 }
 0x832   :  { %v5875_v20 = vpop.f32.mrf.mxu0  ;;  %v5373_v51 = vpop.f32.mrf.mxu1 }
 0x833   :  { %v5537_v11 = vpop.f32.mrf.mxu2  ;;  %v5374_v56 = vadd.f32 %v5373_v51, %v14354_v59 }
 0x834   :  { %v5538_v26 = vadd.f32 %v5537_v11, %v5369_v24  ;;  %5412 = vmatmul.bf16.gmra.mxu1 %v14352_v28 }
 0x835   :  { %5914 = vmatmul.bf16.gmra.mxu0 %v14352_v28  ;;  %v14358_v28 = vld [vmem:[#allocation86_spill] sm:$0xff] }
 0x836   :  { %v5707_v21 = vadd.f32 %v5706_v0, %v5538_v26 }
 0x838   :  { %v12310_v57 = vadd.f32 %v5875_v20, %v5707_v21  ;;  %v5708_v33 = vpop.f32.mrf.mxu3 }
 0x83a   :  { %v5877_v1 = vpop.f32.mrf.mxu0  ;;  %14355 = vst [vmem:[#allocation7_spill] sm:$0xff] %v12310_v57  ;;  %v5375_v24 = vpop.f32.mrf.mxu1 }
 0x83b   :  { %v5539_v48 = vpop.f32.mrf.mxu2  ;;  %v5376_v0 = vadd.f32 %v5375_v24, %v14356_v36 }
 0x83c   :  { %v5540_v23 = vadd.f32 %v5539_v48, %v5371_v7  ;;  %v14359_v7 = vld [vmem:[#allocation89_spill] sm:$0xff] }
 0x83d   :  { %5750 = vmatmul.bf16.gmra.mxu3 %v11852_v43 }
 0x83e   :  { %v5709_v40 = vadd.f32 %v5708_v33, %v5540_v23 }
 0x840   :  { %v12319_v20 = vadd.f32 %v5877_v1, %v5709_v40  ;;  %v5711_v11 = vpop.f32.mrf.mxu3  ;;  %5581 = vmatmul.bf16.gmra.mxu2 %v14358_v28  ;;  %v14361_v1 = vld [vmem:[#allocation91_spill] sm:$0xff] }
 0x842   :  { %v5880_v61 = vpop.f32.mrf.mxu0  ;;  %14357 = vst [vmem:[#allocation30_spill] sm:$0xff] %v12319_v20  ;;  %v5378_v59 = vpop.f32.mrf.mxu1  ;;  %v14362_v20 = vld [vmem:[#allocation92_spill] sm:$0xff] }
 0x843   :  { %v5542_v26 = vpop.f32.mrf.mxu2  ;;  %v5379_v48 = vadd.f32 %v5378_v59, %v14359_v7 }
 0x844   :  { %v5543_v51 = vadd.f32 %v5542_v26, %v5374_v56  ;;  %5417 = vmatmul.bf16.gmra.mxu1 %v11883_v12  ;;  %v14363_v56 = vld [vmem:[#allocation96_spill] sm:$0xff] }
 0x845   :  { %5919 = vmatmul.bf16.gmra.mxu0 %v11883_v12 }
 0x846   :  { %v5712_v47 = vadd.f32 %v5711_v11, %v5543_v51  ;;  %v14365_v51 = vld [vmem:[#allocation90_spill] sm:$0xff] }
 0x848   :  { %v12323_v57 = vadd.f32 %v5880_v61, %v5712_v47  ;;  %v5713_v43 = vpop.f32.mrf.mxu3 }
 0x84a   :  { %v5882_v21 = vpop.f32.mrf.mxu0  ;;  %14360 = vst [vmem:[#allocation46_spill] sm:$0xff] %v12323_v57  ;;  %v5380_v40 = vpop.f32.mrf.mxu1 }
 0x84b   :  { %v5544_v33 = vpop.f32.mrf.mxu2  ;;  %v5381_v28 = vadd.f32 %v5380_v40, %v14362_v20 }
 0x84c   :  { %v5545_v23 = vadd.f32 %v5544_v33, %v5376_v0  ;;  %v14366_v0 = vld [vmem:[#allocation93_spill] sm:$0xff] }
 0x84d   :  { %5755 = vmatmul.bf16.gmra.mxu3 %v14361_v1 }
 0x84e   :  { %v5714_v36 = vadd.f32 %v5713_v43, %v5545_v23 }
 0x850   :  { %v12329_v26 = vadd.f32 %v5882_v21, %v5714_v36  ;;  %v5716_v11 = vpop.f32.mrf.mxu3  ;;  %5586 = vmatmul.bf16.gmra.mxu2 %v14365_v51  ;;  %v14367_v21 = vld [vmem:[#allocation95_spill] sm:$0xff] }
 0x852   :  { %v5885_v24 = vpop.f32.mrf.mxu0  ;;  %14364 = vst [vmem:[#allocation47_spill] sm:$0xff] %v12329_v26  ;;  %v5383_v12 = vpop.f32.mrf.mxu1  ;;  %v14368_v26 = vld [vmem:[#allocation97_spill] sm:$0xff] }
 0x853   :  { %v5547_v61 = vpop.f32.mrf.mxu2  ;;  %v5384_v33 = vadd.f32 %v5383_v12, %v14366_v0 }
 0x854   :  { %v5548_v59 = vadd.f32 %v5547_v61, %v5379_v48  ;;  %5422 = vmatmul.bf16.gmra.mxu1 %v14363_v56  ;;  %v14370_v61 = vld [vmem:[#allocation94_spill] sm:$0xff] }
 0x855   :  { %5924 = vmatmul.bf16.gmra.mxu0 %v14363_v56 }
 0x856   :  { %v5717_v7 = vadd.f32 %v5716_v11, %v5548_v59 }
 0x858   :  { %v12333_v57 = vadd.f32 %v5885_v24, %v5717_v7  ;;  %v5718_v1 = vpop.f32.mrf.mxu3 }
 0x85a   :  { %v5887_v47 = vpop.f32.mrf.mxu0  ;;  %v5385_v40 = vpop.f32.mrf.mxu1 }
 0x85b   :  { %v5549_v20 = vpop.f32.mrf.mxu2  ;;  %v5386_v51 = vadd.f32 %v5385_v40, %v14368_v26 }
 0x85c   :  { %v5550_v43 = vadd.f32 %v5549_v20, %v5381_v28  ;;  %v14371_v28 = vld [vmem:[#allocation98_spill] sm:$0xff] }
 0x85d   :  { %5760 = vmatmul.bf16.gmra.mxu3 %v14367_v21 }
 0x85e   :  { %v5719_v36 = vadd.f32 %v5718_v1, %v5550_v43 }
 0x860   :  { %v12339_v48 = vadd.f32 %v5887_v47, %v5719_v36  ;;  %v5721_v11 = vpop.f32.mrf.mxu3  ;;  %5591 = vmatmul.bf16.gmra.mxu2 %v14370_v61  ;;  %v14372_v36 = vld [vmem:[#allocation100_spill] sm:$0xff] }
 0x862   :  { %v5890_v23 = vpop.f32.mrf.mxu0  ;;  %14369 = vst [vmem:[#allocation49_spill] sm:$0xff] %v12339_v48  ;;  %v5388_v56 = vpop.f32.mrf.mxu1 }
 0x863   :  { %v5552_v24 = vpop.f32.mrf.mxu2  ;;  %v5389_v0 = vadd.f32 %v5388_v56, %v14371_v28 }
 0x864   :  { %v5553_v59 = vadd.f32 %v5552_v24, %v5384_v33  ;;  %5427 = vmatmul.bf16.gmra.mxu1 %v11996_v2  ;;  %v14374_v24 = vld [vmem:[#allocation99_spill] sm:$0xff] }
 0x865   :  { %5929 = vmatmul.bf16.gmra.mxu0 %v11996_v2 }
 0x866   :  { %v5722_v7 = vadd.f32 %v5721_v11, %v5553_v59 }
 0x868   :  { %v12343_v20 = vadd.f32 %v5890_v23, %v5722_v7  ;;  %v5723_v21 = vpop.f32.mrf.mxu3  ;;  %v3999_v23 = vshll.u32 %v12030_v15, 16 }
 0x86a   :  { %v5892_v12 = vpop.f32.mrf.mxu0  ;;  %v5390_v47 = vpop.f32.mrf.mxu1  ;;  %v4001_v28 = vrot.slane %v3999_v23, 1 }
 0x86b   :  { %v5554_v26 = vpop.f32.mrf.mxu2  ;;  %v5391_v48 = vadd.f32 %v5390_v47, %v14372_v36  ;;  %v3997_v47 = vshrl.u32 %v12030_v15, 16 }
 0x86c   :  { %v5555_v1 = vadd.f32 %v5554_v26, %v5386_v51 }
 0x86d   :  { %5765 = vmatmul.bf16.gmra.mxu3 %v11993_v19  ;;  %v3392_v19 = vsel %vm11076_vm7, %v12012_v53, 0  ;;  %v4002_v36 = vor.u32 %v4001_v28, %v3997_v47 }
 0x86e   :  { %v5724_v40 = vadd.f32 %v5723_v21, %v5555_v1  ;;  %v14375_v21 = vld [vmem:[#allocation101_spill] sm:$0xff] }
 0x870   :  { %v12349_v33 = vadd.f32 %v5892_v12, %v5724_v40  ;;  %v5726_v11 = vpop.f32.mrf.mxu3  ;;  %5596 = vmatmul.bf16.gmra.mxu2 %v14374_v24  ;;  %v4004_v40 = vshll.u32 %v3392_v19, 16 }
 0x872   :  { %v5895_v43 = vpop.f32.mrf.mxu0  ;;  %14373 = vst [vmem:[#allocation55_spill] sm:$0xff] %v12349_v33  ;;  %v5393_v51 = vpop.f32.mrf.mxu1  ;;  %v4006_v24 = vrot.slane %v4004_v40, 1 }
 0x873   :  { %v5557_v59 = vpop.f32.mrf.mxu2  ;;  %v5394_v26 = vadd.f32 %v5393_v51, %v14375_v21 }
 0x874   :  { %v5558_v2 = vadd.f32 %v5557_v59, %v5389_v0  ;;  %5432 = vmatmul.bf16.gmra.mxu1 %v12033_v55 }
 0x875   :  { %5934 = vmatmul.bf16.gmra.mxu0 %v12033_v55 }
 0x876   :  { %v5727_v7 = vadd.f32 %v5726_v11, %v5558_v2  ;;  %v4007_v11 = vsel %vm3393_vm9, %v4002_v36, %v4006_v24  ;;  %v4018_v36 = vrot.slane %v3392_v19, 1 }
 0x878   :  { %v12357_v1 = vadd.f32 %v5895_v43, %v5727_v7  ;;  %v5728_v12 = vpop.f32.mrf.mxu3 }
 0x87a   :  { %v5897_v56 = vpop.f32.mrf.mxu0  ;;  %v5395_v9 = vpop.f32.mrf.mxu1 }
 0x87b   :  { %v5559_v0 = vpop.f32.mrf.mxu2  ;;  %v5396_v43 = vadd.f32 %v5395_v9, %v12036_v27  ;;  %v4017_v27 = vrot.slane %v12030_v15, 1 }
 0x87c   :  { %v5560_v59 = vadd.f32 %v5559_v0, %v5391_v48 }
 0x87d   :  { %5770 = vmatmul.bf16.gmra.mxu3 %v12030_v15  ;;  %v12374_v9 = vsel %vm3859_vm8, %v4017_v27, %v4018_v36 }
 0x87e   :  { %v5729_v53 = vadd.f32 %v5728_v12, %v5560_v59 }
 0x880   :  { %v12364_v23 = vadd.f32 %v5897_v56, %v5729_v53  ;;  %v5731_v2 = vpop.f32.mrf.mxu3  ;;  %5601 = vmatmul.bf16.gmra.mxu2 %v12025_v62 }
 0x882   :  { %v5900_v33 = vpop.f32.mrf.mxu0  ;;  %v5398_v48 = vpop.f32.mrf.mxu1 }
 0x883   :  { %v5562_v55 = vpop.f32.mrf.mxu2  ;;  %v5399_v21 = vadd.f32 %v5398_v48, %v12039_v6 }
 0x884   :  { %v5563_v51 = vadd.f32 %v5562_v55, %v5394_v26  ;;  %5437 = vmatmul.bf16.gmra.mxu1 %v4007_v11 }
 0x885   :  { %5939 = vmatmul.bf16.gmra.mxu0 %v4007_v11 }
 0x886   :  { %v5732_v28 = vadd.f32 %v5731_v2, %v5563_v51 }
 0x888   :  { %v12368_v47 = vadd.f32 %v5900_v33, %v5732_v28  ;;  %v5733_v12 = vpop.f32.mrf.mxu3 }
 0x88a   :  { %v5902_v7 = vpop.f32.mrf.mxu0  ;;  %v5400_v0 = vpop.f32.mrf.mxu1 }
 0x88b   :  { %v5564_v24 = vpop.f32.mrf.mxu2  ;;  %v5401_v26 = vadd.f32 %v5400_v0, %v12044_v60 }
 0x88c   :  { %v5565_v40 = vadd.f32 %v5564_v24, %v5396_v43 }
 0x88d   :  { %5775 = vmatmul.bf16.gmra.mxu3 %v14298_v30 }
 0x88e   :  { %v5734_v59 = vadd.f32 %v5733_v12, %v5565_v40 }
 0x890   :  { %v12377_v6 = vadd.f32 %v5902_v7, %v5734_v59  ;;  %v5736_v33 = vpop.f32.mrf.mxu3  ;;  %5606 = vmatmul.bf16.gmra.mxu2 %v12374_v9 }
 0x892   :  { %v5905_v56 = vpop.f32.mrf.mxu0  ;;  %v5403_v19 = vpop.f32.mrf.mxu1 }
 0x893   :  { %v5567_v15 = vpop.f32.mrf.mxu2  ;;  %v5404_v30 = vadd.f32 %v5403_v19, %v12047_v17 }
 0x894   :  { %v5568_v53 = vadd.f32 %v5567_v15, %v5399_v21  ;;  %5958 = vmatmul.bf16.vlgmr.msrb.gmra.mxu1 %v11167_v50 }
 0x895   :  { %5944 = vmatmul.bf16.gmra.mxu0 %v14300_v32 }
 0x896   :  { %v5737_v43 = vadd.f32 %v5736_v33, %v5568_v53 }
 0x898   :  { %v12381_v2 = vadd.f32 %v5905_v56, %v5737_v43  ;;  %v5738_v60 = vpop.f32.mrf.mxu3 }
 0x89a   :  { %v5907_v11 = vpop.f32.mrf.mxu0  ;;  %v5405_v7 = vpop.f32.mrf.mxu1 }
 0x89b   :  { %v5569_v55 = vpop.f32.mrf.mxu2  ;;  %v5406_v28 = vadd.f32 %v5405_v7, %v12052_v14 }
 0x89c   :  { %v5570_v51 = vadd.f32 %v5569_v55, %v5401_v26 }
 0x89e   :  { %v5739_v48 = vadd.f32 %v5738_v60, %v5570_v51 }
 0x8a0   :  { %v12385_v12 = vadd.f32 %v5907_v11, %v5739_v48  ;;  %v5741_v21 = vpop.f32.mrf.mxu3 }
 0x8a2   :  { %v5910_v32 = vpop.f32.mrf.mxu0  ;;  %v5408_v40 = vpop.f32.mrf.mxu1 }
 0x8a3   :  { %v5572_v24 = vpop.f32.mrf.mxu2  ;;  %v5409_v56 = vadd.f32 %v5408_v40, %v12055_v58 }
 0x8a4   :  { %v5573_v27 = vadd.f32 %v5572_v24, %v5404_v30  ;;  %5963 = vmatmul.bf16.gmra.mxu1 %v11200_v54 }
 0x8a6   :  { %v5742_v36 = vadd.f32 %v5741_v21, %v5573_v27 }
 0x8a8   :  { %v12388_v0 = vadd.f32 %v5910_v32, %v5742_v36  ;;  %v5743_v50 = vpop.f32.mrf.mxu3 }
 0x8aa   :  { %v5912_v17 = vpop.f32.mrf.mxu0  ;;  %v5410_v33 = vpop.f32.mrf.mxu1 }
 0x8ab   :  { %v5574_v59 = vpop.f32.mrf.mxu2  ;;  %v5411_v14 = vadd.f32 %v5410_v33, %v12063_v29  ;;  %v14379_v33 = vld [vmem:[#allocation102_spill] sm:$0xff] }
 0x8ac   :  { %v5575_v26 = vadd.f32 %v5574_v59, %v5406_v28 }
 0x8ae   :  { %v5744_v15 = vadd.f32 %v5743_v50, %v5575_v26 }
 0x8b0   :  { %v12392_v53 = vadd.f32 %v5912_v17, %v5744_v15  ;;  %v5746_v19 = vpop.f32.mrf.mxu3 }
 0x8b2   :  { %v5915_v11 = vpop.f32.mrf.mxu0  ;;  %v5413_v60 = vpop.f32.mrf.mxu1 }
 0x8b3   :  { %v5577_v43 = vpop.f32.mrf.mxu2  ;;  %v5414_v58 = vadd.f32 %v5413_v60, %v12066_v34 }
 0x8b4   :  { %v5578_v30 = vadd.f32 %v5577_v43, %v5409_v56  ;;  %5968 = vmatmul.bf16.gmra.mxu1 %v11239_v25 }
 0x8b6   :  { %v5747_v55 = vadd.f32 %v5746_v19, %v5578_v30  ;;  %v14382_v19 = vld [vmem:[#allocation21_spill] sm:$0xff]  ;;  %v14384_v30 = vld [vmem:[#allocation103_spill] sm:$0xff] }
 0x8b8   :  { %v12395_v51 = vadd.f32 %v5915_v11, %v5747_v55  ;;  %v5748_v32 = vpop.f32.mrf.mxu3  ;;  %v14386_v55 = vld [vmem:[#allocation19_spill] sm:$0xff] }
 0x8ba   :  { %v5917_v54 = vpop.f32.mrf.mxu0  ;;  %v5415_v28 = vpop.f32.mrf.mxu1 }
 0x8bb   :  { %v5579_v7 = vpop.f32.mrf.mxu2  ;;  %v12399_v21 = vadd.f32 %v5415_v28, %v12071_v31  ;;  %v14391_v28 = vld [vmem:[#allocation14_spill] sm:$0xff] }
 0x8bc   :  { %v5580_v48 = vadd.f32 %v5579_v7, %v5411_v14  ;;  %v14381_v14 = vld [vmem:[#allocation32_spill] sm:$0xff]  ;;  %v14390_v7 = vld [vmem:[#allocation22_spill] sm:$0xff] }
 0x8bd   :  { %14376 = vst [vmem:[#allocation48_spill] sm:$0xff] %v12399_v21  ;;  %v14454_v21 = vld [vmem:[#allocation30_spill] sm:$0xff] }
 0x8be   :  { %v5749_v29 = vadd.f32 %v5748_v32, %v5580_v48 }
 0x8c0   :  { %v12401_v24 = vadd.f32 %v5917_v54, %v5749_v29  ;;  %v5751_v36 = vpop.f32.mrf.mxu3  ;;  %v14388_v54 = vld [vmem:[#allocation23_spill] sm:$0xff] }
 0x8c2   :  { %v5920_v17 = vpop.f32.mrf.mxu0  ;;  %v5418_v34 = vpop.f32.mrf.mxu1 }
 0x8c3   :  { %v5582_v27 = vpop.f32.mrf.mxu2  ;;  %v12404_v50 = vadd.f32 %v5418_v34, %v12074_v37 }
 0x8c4   :  { %v5583_v40 = vadd.f32 %v5582_v27, %v5414_v58  ;;  %5973 = vmatmul.bf16.gmra.mxu1 %v11276_v5 }
 0x8c5   :  { %14377 = vst [vmem:[#allocation53_spill] sm:$0xff] %v12404_v50  ;;  %v14448_v50 = vld [vmem:[#allocation45_spill] sm:$0xff] }
 0x8c6   :  { %v5752_v56 = vadd.f32 %v5751_v36, %v5583_v40  ;;  %v14393_v40 = vld [vmem:[#allocation24_spill] sm:$0xff] }
 0x8c8   :  { %v12406_v25 = vadd.f32 %v5920_v17, %v5752_v56  ;;  %v14395_v17 = vld [vmem:[#allocation26_spill] sm:$0xff] }
 0x8ca   :  { %v5420_v59 = vpop.f32.mrf.mxu1 }
 0x8cb   :  { %v12410_v26 = vadd.f32 %v5420_v59, %v12079_v3  ;;  %v14397_v59 = vld [vmem:[#allocation27_spill] sm:$0xff] }
 0x8cd   :  { %14378 = vst [vmem:[#allocation56_spill] sm:$0xff] %v12410_v26  ;;  %v14444_v26 = vld [vmem:[#allocation44_spill] sm:$0xff] }
 0x8d2   :  { %v5423_v31 = vpop.f32.mrf.mxu1 }
 0x8d3   :  { %v12413_v15 = vadd.f32 %v5423_v31, %v14379_v33  ;;  %v14398_v33 = vld [vmem:[#allocation20_spill] sm:$0xff] }
 0x8d4   :  { %5978 = vmatmul.bf16.gmra.mxu1 %v14381_v14 }
 0x8d5   :  { %14380 = vst [vmem:[#allocation59_spill] sm:$0xff] %v12413_v15  ;;  %v14442_v15 = vld [vmem:[#allocation40_spill] sm:$0xff] }
 0x8da   :  { %v5425_v11 = vpop.f32.mrf.mxu1 }
 0x8db   :  { %v12417_v43 = vadd.f32 %v5425_v11, %v14382_v19  ;;  %v14399_v11 = vld [vmem:[#allocation9_spill] sm:$0xff] }
 0x8dd   :  { %14383 = vst [vmem:[#allocation54_spill] sm:$0xff] %v12417_v43  ;;  %v14436_v43 = vld [vmem:[#allocation39_spill] sm:$0xff] }
 0x8e2   :  { %v5428_v37 = vpop.f32.mrf.mxu1 }
 0x8e3   :  { %v12420_v60 = vadd.f32 %v5428_v37, %v14384_v30  ;;  %v14400_v30 = vld [vmem:[#allocation25_spill] sm:$0xff] }
 0x8e4   :  { %5983 = vmatmul.bf16.gmra.mxu1 %v14248_v22 }
 0x8e5   :  { %14385 = vst [vmem:[#allocation57_spill] sm:$0xff] %v12420_v60  ;;  %v14432_v60 = vld [vmem:[#allocation41_spill] sm:$0xff] }
 0x8ea   :  { %v5430_v5 = vpop.f32.mrf.mxu1 }
 0x8eb   :  { %v12424_v3 = vadd.f32 %v5430_v5, %v14386_v55  ;;  %v14401_v55 = vld [vmem:[#allocation13_spill] sm:$0xff] }
 0x8ed   :  { %14387 = vst [vmem:[#allocation60_spill] sm:$0xff] %v12424_v3  ;;  %v14428_v3 = vld [vmem:[#allocation37_spill] sm:$0xff] }
 0x8f2   :  { %v5433_v58 = vpop.f32.mrf.mxu1 }
 0x8f3   :  { %v12427_v32 = vadd.f32 %v5433_v58, %v14388_v54  ;;  %v14402_v58 = vld [vmem:[#allocation18_spill] sm:$0xff] }
 0x8f4   :  { %5988 = vmatmul.bf16.gmra.mxu1 %v14390_v7 }
 0x8f5   :  { %14389 = vst [vmem:[#allocation61_spill] sm:$0xff] %v12427_v32  ;;  %v14426_v32 = vld [vmem:[#allocation35_spill] sm:$0xff] }
 0x8fa   :  { %v5435_v48 = vpop.f32.mrf.mxu1 }
 0x8fb   :  { %v12431_v29 = vadd.f32 %v5435_v48, %v14391_v28  ;;  %v14403_v48 = vld [vmem:[#allocation11_spill] sm:$0xff] }
 0x8fd   :  { %14392 = vst [vmem:[#allocation63_spill] sm:$0xff] %v12431_v29  ;;  %v14422_v29 = vld [vmem:[#allocation34_spill] sm:$0xff] }
 0x902   :  { %v5438_v27 = vpop.f32.mrf.mxu1 }
 0x903   :  { %v12434_v36 = vadd.f32 %v5438_v27, %v14393_v40  ;;  %v14404_v27 = vld [vmem:[#allocation15_spill] sm:$0xff] }
 0x904   :  { %5993 = vmatmul.bf16.gmra.mxu1 %v14258_v46 }
 0x905   :  { %14394 = vst [vmem:[#allocation64_spill] sm:$0xff] %v12434_v36  ;;  %v14420_v36 = vld [vmem:[#allocation36_spill] sm:$0xff] }
 0x90a   :  { %v5440_v22 = vpop.f32.mrf.mxu1 }
 0x90b   :  { %v12438_v34 = vadd.f32 %v5440_v22, %v14395_v17  ;;  %v14405_v22 = vld [vmem:[#allocation28_spill] sm:$0xff] }
 0x90d   :  { %14396 = vst [vmem:[#allocation67_spill] sm:$0xff] %v12438_v34  ;;  %v14412_v34 = vld [vmem:[#allocation12_spill] sm:$0xff] }
 0x912   :  { %v5959_v56 = vpop.f32.mrf.mxu1 }
 0x913   :  { %v12441_v31 = vadd.f32 %v5959_v56, %v14397_v59  ;;  %v14406_v59 = vld [vmem:[#allocation29_spill] sm:$0xff] }
 0x914   :  { %5998 = vmatmul.bf16.gmra.mxu1 %v14398_v33 }
 0x91a   :  { %v5961_v14 = vpop.f32.mrf.mxu1 }
 0x91b   :  { %v12445_v19 = vadd.f32 %v5961_v14, %v14399_v11  ;;  %v14407_v14 = vld [vmem:[#allocation51_spill] sm:$0xff] }
 0x922   :  { %v5964_v37 = vpop.f32.mrf.mxu1 }
 0x923   :  { %v12448_v5 = vadd.f32 %v5964_v37, %v14400_v30  ;;  %v14408_v37 = vld [vmem:[#allocation52_spill] sm:$0xff] }
 0x924   :  { %6003 = vmatmul.bf16.gmra.mxu1 %v14401_v55 }
 0x92a   :  { %v5966_v46 = vpop.f32.mrf.mxu1 }
 0x92b   :  { %v12452_v54 = vadd.f32 %v5966_v46, %v14402_v58  ;;  %v14409_v46 = vld [vmem:[#allocation10_spill] sm:$0xff] }
 0x932   :  { %v5969_v7 = vpop.f32.mrf.mxu1 }
 0x933   :  { %v12455_v28 = vadd.f32 %v5969_v7, %v14403_v48  ;;  %v14410_v7 = vld [vmem:[#allocation50_spill] sm:$0xff] }
 0x934   :  { %6008 = vmatmul.bf16.gmra.mxu1 %v14404_v27  ;;  %v14411_v27 = vld [vmem:[#allocation8_spill] sm:$0xff] }
 0x93a   :  { %v5971_v40 = vpop.f32.mrf.mxu1 }
 0x93b   :  { %v12459_v17 = vadd.f32 %v5971_v40, %v14405_v22 }
 0x942   :  { %v5974_v56 = vpop.f32.mrf.mxu1 }
 0x943   :  { %v12462_v33 = vadd.f32 %v5974_v56, %v14406_v59 }
 0x944   :  { %6013 = vmatmul.bf16.gmra.mxu1 %v14407_v14  ;;  %v14413_v14 = vld [vmem:[#allocation17_spill] sm:$0xff] }
 0x94a   :  { %v5976_v11 = vpop.f32.mrf.mxu1 }
 0x94b   :  { %v12466_v30 = vadd.f32 %v5976_v11, %v14408_v37 }
 0x952   :  { %v5979_v55 = vpop.f32.mrf.mxu1 }
 0x953   :  { %v12469_v58 = vadd.f32 %v5979_v55, %v14409_v46 }
 0x954   :  { %6018 = vmatmul.bf16.gmra.mxu1 %v14410_v7 }
 0x95a   :  { %v5981_v48 = vpop.f32.mrf.mxu1 }
 0x95b   :  { %v12473_v40 = vadd.f32 %v5981_v48, %v14411_v27  ;;  %v14414_v27 = vld [vmem:[#allocation6_spill] sm:$0xff] }
 0x962   :  { %v5984_v22 = vpop.f32.mrf.mxu1 }
 0x963   :  { %v12476_v56 = vadd.f32 %v5984_v22, %v14412_v34 }
 0x964   :  { %6023 = vmatmul.bf16.gmra.mxu1 %v14296_v16 }
 0x96a   :  { %v5986_v59 = vpop.f32.mrf.mxu1 }
 0x96b   :  { %v12480_v11 = vadd.f32 %v5986_v59, %v14413_v14  ;;  %v14416_v14 = vld [vmem:[#allocation31_spill] sm:$0xff] }
 0x972   :  { %v5989_v37 = vpop.f32.mrf.mxu1 }
 0x973   :  { %v12483_v55 = vadd.f32 %v5989_v37, %v12191_v10  ;;  %v14418_v37 = vld [vmem:[#allocation33_spill] sm:$0xff] }
 0x974   :  { %6028 = vmatmul.bf16.gmra.mxu1 %v12197_v49 }
 0x97a   :  { %v5991_v46 = vpop.f32.mrf.mxu1 }
 0x97b   :  { %v12487_v7 = vadd.f32 %v5991_v46, %v12200_v38 }
 0x982   :  { %v5994_v48 = vpop.f32.mrf.mxu1 }
 0x983   :  { %v12490_v34 = vadd.f32 %v5994_v48, %v12204_v35 }
 0x984   :  { %6033 = vmatmul.bf16.gmra.mxu1 %v14414_v27 }
 0x98a   :  { %v5996_v16 = vpop.f32.mrf.mxu1 }
 0x98b   :  { %v12494_v22 = vadd.f32 %v5996_v16, %v12210_v42 }
 0x98d   :  { %14415 = vst [vmem:[#allocation62_spill] sm:$0xff] %v12494_v22 }
 0x992   :  { %v5999_v59 = vpop.f32.mrf.mxu1 }
 0x993   :  { %v12497_v10 = vadd.f32 %v5999_v59, %v14416_v14  ;;  %v14425_v14 = vld [vmem:[#allocation58_spill] sm:$0xff] }
 0x994   :  { %6038 = vmatmul.bf16.gmra.mxu1 %v14308_v4 }
 0x995   :  { %14417 = vst [vmem:[#allocation65_spill] sm:$0xff] %v12497_v10 }
 0x99a   :  { %v6001_v49 = vpop.f32.mrf.mxu1 }
 0x99b   :  { %v12501_v38 = vadd.f32 %v6001_v49, %v14418_v37 }
 0x99d   :  { %14419 = vst [vmem:[#allocation68_spill] sm:$0xff] %v12501_v38 }
 0x9a2   :  { %v6004_v46 = vpop.f32.mrf.mxu1 }
 0x9a3   :  { %v12504_v35 = vadd.f32 %v6004_v46, %v14420_v36  ;;  %v14430_v46 = vld [vmem:[#allocation42_spill] sm:$0xff] }
 0x9a4   :  { %6043 = vmatmul.bf16.gmra.mxu1 %v14314_v18 }
 0x9a5   :  { %14421 = vst [vmem:[#allocation71_spill] sm:$0xff] %v12504_v35 }
 0x9aa   :  { %v6006_v48 = vpop.f32.mrf.mxu1 }
 0x9ab   :  { %v12508_v42 = vadd.f32 %v6006_v48, %v14422_v29 }
 0x9ad   :  { %14423 = vst [vmem:[#allocation66_spill] sm:$0xff] %v12508_v42 }
 0x9b2   :  { %v6009_v16 = vpop.f32.mrf.mxu1 }
 0x9b3   :  { %v12511_v59 = vadd.f32 %v6009_v16, %v12237_v41 }
 0x9b4   :  { %6048 = vmatmul.bf16.gmra.mxu1 %v14425_v14  ;;  %v14434_v14 = vld [vmem:[#allocation38_spill] sm:$0xff] }
 0x9b5   :  { %14424 = vst [vmem:[#allocation69_spill] sm:$0xff] %v12511_v59 }
 0x9ba   :  { %v6011_v4 = vpop.f32.mrf.mxu1 }
 0x9bb   :  { %v12515_v49 = vadd.f32 %v6011_v4, %v14426_v32 }
 0x9bd   :  { %14427 = vst [vmem:[#allocation72_spill] sm:$0xff] %v12515_v49 }
 0x9c2   :  { %v6014_v37 = vpop.f32.mrf.mxu1 }
 0x9c3   :  { %v12518_v36 = vadd.f32 %v6014_v37, %v14428_v3  ;;  %v14438_v37 = vld [vmem:[#allocation43_spill] sm:$0xff] }
 0x9c4   :  { %6053 = vmatmul.bf16.gmra.mxu1 %v14325_v45 }
 0x9c5   :  { %14429 = vst [vmem:[#allocation75_spill] sm:$0xff] %v12518_v36 }
 0x9ca   :  { %v6016_v18 = vpop.f32.mrf.mxu1 }
 0x9cb   :  { %v12522_v29 = vadd.f32 %v6016_v18, %v14430_v46 }
 0x9cd   :  { %14431 = vst [vmem:[#allocation70_spill] sm:$0xff] %v12522_v29 }
 0x9d2   :  { %v6019_v48 = vpop.f32.mrf.mxu1 }
 0x9d3   :  { %v12525_v41 = vadd.f32 %v6019_v48, %v14432_v60  ;;  %v14441_v48 = vld [vmem:[#allocation74_spill] sm:$0xff] }
 0x9d4   :  { %6058 = vmatmul.bf16.gmra.mxu1 %v14331_v39 }
 0x9d5   :  { %14433 = vst [vmem:[#allocation73_spill] sm:$0xff] %v12525_v41 }
 0x9da   :  { %v6021_v16 = vpop.f32.mrf.mxu1 }
 0x9db   :  { %v12529_v32 = vadd.f32 %v6021_v16, %v14434_v14 }
 0x9dd   :  { %14435 = vst [vmem:[#allocation76_spill] sm:$0xff] %v12529_v32 }
 0x9e2   :  { %v6024_v4 = vpop.f32.mrf.mxu1 }
 0x9e3   :  { %v12532_v3 = vadd.f32 %v6024_v4, %v14436_v43  ;;  %v14446_v4 = vld [vmem:[#allocation5_spill] sm:$0xff] }
 0x9e4   :  { %6063 = vmatmul.bf16.gmra.mxu1 %v14337_v44 }
 0x9e5   :  { %14437 = vst [vmem:[#allocation77_spill] sm:$0xff] %v12532_v3 }
 0x9ea   :  { %v6026_v45 = vpop.f32.mrf.mxu1 }
 0x9eb   :  { %v12536_v18 = vadd.f32 %v6026_v45, %v14438_v37 }
 0x9ed   :  { %14439 = vst [vmem:[#allocation79_spill] sm:$0xff] %v12536_v18 }
 0x9f2   :  { %v6029_v46 = vpop.f32.mrf.mxu1 }
 0x9f3   :  { %v12539_v60 = vadd.f32 %v6029_v46, %v12280_v63 }
 0x9f4   :  { %6068 = vmatmul.bf16.gmra.mxu1 %v14441_v48 }
 0x9f5   :  { %14440 = vst [vmem:[#allocation80_spill] sm:$0xff] %v12539_v60 }
 0x9fa   :  { %v6031_v39 = vpop.f32.mrf.mxu1 }
 0x9fb   :  { %v12543_v16 = vadd.f32 %v6031_v39, %v14442_v15  ;;  %v14451_v39 = vld [vmem:[#allocation7_spill] sm:$0xff] }
 0x9fd   :  { %14443 = vst [vmem:[#allocation83_spill] sm:$0xff] %v12543_v16 }
 0xa02   :  { %v6034_v14 = vpop.f32.mrf.mxu1 }
 0xa03   :  { %v12546_v43 = vadd.f32 %v6034_v14, %v14444_v26  ;;  %v14453_v14 = vld [vmem:[#allocation86_spill] sm:$0xff] }
 0xa04   :  { %6073 = vmatmul.bf16.gmra.mxu1 %v14348_v8 }
 0xa05   :  { %14445 = vst [vmem:[#allocation78_spill] sm:$0xff] %v12546_v43 }
 0xa0a   :  { %v6036_v44 = vpop.f32.mrf.mxu1 }
 0xa0b   :  { %v12550_v45 = vadd.f32 %v6036_v44, %v14446_v4 }
 0xa0d   :  { %14447 = vst [vmem:[#allocation81_spill] sm:$0xff] %v12550_v45  ;;  %v14456_v45 = vld [vmem:[#allocation46_spill] sm:$0xff] }
 0xa12   :  { %v6039_v37 = vpop.f32.mrf.mxu1 }
 0xa13   :  { %v12553_v63 = vadd.f32 %v6039_v37, %v14448_v50  ;;  %v14458_v37 = vld [vmem:[#allocation90_spill] sm:$0xff] }
 0xa14   :  { %6078 = vmatmul.bf16.gmra.mxu1 %v14353_v13 }
 0xa15   :  { %14449 = vst [vmem:[#allocation84_spill] sm:$0xff] %v12553_v63  ;;  %v14459_v63 = vld [vmem:[#allocation47_spill] sm:$0xff] }
 0xa1a   :  { %v6041_v46 = vpop.f32.mrf.mxu1 }
 0xa1b   :  { %v12557_v15 = vadd.f32 %v6041_v46, %v12306_v52 }
 0xa1d   :  { %14450 = vst [vmem:[#allocation87_spill] sm:$0xff] %v12557_v15 }
 0xa22   :  { %v6044_v48 = vpop.f32.mrf.mxu1 }
 0xa23   :  { %v12560_v26 = vadd.f32 %v6044_v48, %v14451_v39 }
 0xa24   :  { %6083 = vmatmul.bf16.gmra.mxu1 %v14453_v14  ;;  %v14462_v14 = vld [vmem:[#allocation49_spill] sm:$0xff] }
 0xa25   :  { %14452 = vst [vmem:[#allocation82_spill] sm:$0xff] %v12560_v26 }
 0xa2a   :  { %v6046_v8 = vpop.f32.mrf.mxu1 }
 0xa2b   :  { %v12564_v44 = vadd.f32 %v6046_v8, %v14454_v21 }
 0xa2d   :  { %14455 = vst [vmem:[#allocation85_spill] sm:$0xff] %v12564_v44 }
 0xa32   :  { %v6049_v4 = vpop.f32.mrf.mxu1 }
 0xa33   :  { %v12567_v50 = vadd.f32 %v6049_v4, %v14456_v45  ;;  %v14465_v4 = vld [vmem:[#allocation99_spill] sm:$0xff] }
 0xa34   :  { %6088 = vmatmul.bf16.gmra.mxu1 %v14458_v37 }
 0xa35   :  { %14457 = vst [vmem:[#allocation88_spill] sm:$0xff] %v12567_v50  ;;  %v14466_v50 = vld [vmem:[#allocation55_spill] sm:$0xff] }
 0xa3a   :  { %v6051_v13 = vpop.f32.mrf.mxu1 }
 0xa3b   :  { %v12571_v52 = vadd.f32 %v6051_v13, %v14459_v63 }
 0xa3d   :  { %14460 = vst [vmem:[#allocation89_spill] sm:$0xff] %v12571_v52 }
 0xa42   :  { %v6054_v46 = vpop.f32.mrf.mxu1 }
 0xa43   :  { %v12574_v48 = vadd.f32 %v6054_v46, %v12333_v57 }
 0xa44   :  { %6093 = vmatmul.bf16.gmra.mxu1 %v14370_v61 }
 0xa45   :  { %14461 = vst [vmem:[#allocation91_spill] sm:$0xff] %v12574_v48 }
 0xa4a   :  { %v6056_v39 = vpop.f32.mrf.mxu1 }
 0xa4b   :  { %v12578_v21 = vadd.f32 %v6056_v39, %v14462_v14 }
 0xa4d   :  { %14463 = vst [vmem:[#allocation92_spill] sm:$0xff] %v12578_v21 }
 0xa52   :  { %v6059_v8 = vpop.f32.mrf.mxu1 }
 0xa53   :  { %v12581_v45 = vadd.f32 %v6059_v8, %v12343_v20 }
 0xa54   :  { %6098 = vmatmul.bf16.gmra.mxu1 %v14465_v4 }
 0xa55   :  { %14464 = vst [vmem:[#allocation96_spill] sm:$0xff] %v12581_v45 }
 0xa5a   :  { %v6061_v37 = vpop.f32.mrf.mxu1 }
 0xa5b   :  { %v12585_v63 = vadd.f32 %v6061_v37, %v14466_v50 }
 0xa5d   :  { %14467 = vst [vmem:[#allocation93_spill] sm:$0xff] %v12585_v63 }
 0xa62   :  { %v6064_v13 = vpop.f32.mrf.mxu1 }
 0xa63   :  { %v12588_v57 = vadd.f32 %v6064_v13, %v12357_v1  ;;  %v6121_v1 = vadd.f32 %v12445_v19, %v12441_v31 }
 0xa64   :  { %6103 = vmatmul.bf16.gmra.mxu1 %v12025_v62 }
 0xa65   :  { %14468 = vst [vmem:[#allocation95_spill] sm:$0xff] %v12588_v57  ;;  %v6122_v8 = vadd.f32 %v6121_v1, %v12448_v5 }
 0xa67   :  { %v6123_v4 = vadd.f32 %v6122_v8, %v12452_v54 }
 0xa6a   :  { %v6066_v61 = vpop.f32.mrf.mxu1 }
 0xa6b   :  { %v12592_v46 = vadd.f32 %v6066_v61, %v12364_v23 }
 0xa6d   :  { %14469 = vst [vmem:[#allocation97_spill] sm:$0xff] %v12592_v46 }
 0xa72   :  { %v6069_v39 = vpop.f32.mrf.mxu1 }
 0xa73   :  { %v12595_v20 = vadd.f32 %v6069_v39, %v12368_v47  ;;  %v6124_v47 = vadd.f32 %v6123_v4, %v12455_v28 }
 0xa74   :  { %6108 = vmatmul.bf16.gmra.mxu1 %v12374_v9 }
 0xa75   :  { %14470 = vst [vmem:[#allocation94_spill] sm:$0xff] %v12595_v20  ;;  %v6125_v9 = vadd.f32 %v6124_v47, %v12459_v17 }
 0xa7a   :  { %v6071_v14 = vpop.f32.mrf.mxu1 }
 0xa7b   :  { %v12599_v50 = vadd.f32 %v6071_v14, %v12377_v6  ;;  %v6126_v6 = vadd.f32 %v6125_v9, %v12462_v33 }
 0xa7d   :  { %v6127_v13 = vadd.f32 %v6126_v6, %v12466_v30 }
 0xa7f   :  { %v6128_v39 = vadd.f32 %v6127_v13, %v12469_v58 }
 0xa81   :  { %v6129_v14 = vadd.f32 %v6128_v39, %v12473_v40 }
 0xa82   :  { %v6074_v62 = vpop.f32.mrf.mxu1 }
 0xa83   :  { %v12606_v23 = vadd.f32 %v6074_v62, %v12381_v2  ;;  %v6130_v2 = vadd.f32 %v6129_v14, %v12476_v56  ;;  %v5753_v14 = vpop.f32.mrf.mxu3 }
 0xa84   :  { %6113 = vmatmul.bf16.gmra.mxu1 %v14414_v27 }
 0xa85   :  { %v6131_v8 = vadd.f32 %v6130_v2, %v12480_v11  ;;  %v12633_v2 = vpop.f32.mrf.mxu0 }
 0xa87   :  { %v6132_v62 = vadd.f32 %v6131_v8, %v12483_v55 }
 0xa89   :  { %v6133_v4 = vadd.f32 %v6132_v62, %v12487_v7 }
 0xa8a   :  { %v6076_v37 = vpop.f32.mrf.mxu1 }
 0xa8b   :  { %v12614_v61 = vadd.f32 %v6076_v37, %v12385_v12  ;;  %v6134_v47 = vadd.f32 %v6133_v4, %v12490_v34  ;;  %v5584_v12 = vpop.f32.mrf.mxu2 }
 0xa8d   :  { %14471 = vst [vmem:[#allocation98_spill] sm:$0xff] %v12614_v61  ;;  %v6135_v6 = vadd.f32 %v6134_v47, %v12494_v22 }
 0xa8f   :  { %v6136_v13 = vadd.f32 %v6135_v6, %v12497_v10  ;;  %v5756_v6 = vpop.f32.mrf.mxu3 }
 0xa91   :  { %v6137_v39 = vadd.f32 %v6136_v13, %v12501_v38 }
 0xa92   :  { %v6079_v1 = vpop.f32.mrf.mxu1 }
 0xa93   :  { %v12621_v27 = vadd.f32 %v6079_v1, %v12388_v0  ;;  %v6138_v0 = vadd.f32 %v6137_v39, %v12504_v35  ;;  %v5587_v4 = vpop.f32.mrf.mxu2  ;;  %v5925_v35 = vpop.f32.mrf.mxu0 }
 0xa95   :  { %v6139_v8 = vadd.f32 %v6138_v0, %v12508_v42 }
 0xa97   :  { %v6140_v47 = vadd.f32 %v6139_v8, %v12511_v59 }
 0xa9a   :  { %v6081_v9 = vpop.f32.mrf.mxu1 }
 0xa9b   :  { %v12628_v37 = vadd.f32 %v6081_v9, %v12392_v53  ;;  %v6141_v53 = vadd.f32 %v6140_v47, %v12515_v49  ;;  %v5589_v42 = vpop.f32.mrf.mxu2  ;;  %v14472_v49 = vld [vmem:[#allocation81_spill] sm:$0xff] }
 0xa9d   :  { %v6142_v9 = vadd.f32 %v6141_v53, %v12518_v36  ;;  %v5758_v36 = vpop.f32.mrf.mxu3 }
 0xa9f   :  { %v6143_v38 = vadd.f32 %v6142_v9, %v12522_v29  ;;  %v5927_v29 = vpop.f32.mrf.mxu0 }
 0xaa1   :  { %v6144_v0 = vadd.f32 %v6143_v38, %v12525_v41 }
 0xaa2   :  { %v6084_v1 = vpop.f32.mrf.mxu1 }
 0xaa3   :  { %v12637_v62 = vadd.f32 %v6084_v1, %v12395_v51  ;;  %v6145_v51 = vadd.f32 %v6144_v0, %v12529_v32  ;;  %v14473_v32 = vld [vmem:[#allocation84_spill] sm:$0xff] }
 0xaa5   :  { %v6146_v1 = vadd.f32 %v6145_v51, %v12532_v3  ;;  %v5761_v3 = vpop.f32.mrf.mxu3 }
 0xaa7   :  { %v6147_v47 = vadd.f32 %v6146_v1, %v12536_v18  ;;  %v5930_v18 = vpop.f32.mrf.mxu0 }
 0xaa9   :  { %v6148_v9 = vadd.f32 %v6147_v47, %v12539_v60  ;;  %v14474_v60 = vld [vmem:[#allocation88_spill] sm:$0xff] }
 0xaaa   :  { %v6086_v13 = vpop.f32.mrf.mxu1 }
 0xaab   :  { %v12644_v39 = vadd.f32 %v6086_v13, %v12401_v24  ;;  %v6149_v24 = vadd.f32 %v6148_v9, %v12543_v16  ;;  %v5592_v13 = vpop.f32.mrf.mxu2 }
 0xaad   :  { %v6150_v38 = vadd.f32 %v6149_v24, %v12546_v43  ;;  %v5763_v24 = vpop.f32.mrf.mxu3 }
 0xaaf   :  { %v6151_v0 = vadd.f32 %v6150_v38, %v14472_v49  ;;  %v5932_v38 = vpop.f32.mrf.mxu0 }
 0xab1   :  { %v6152_v51 = vadd.f32 %v6151_v0, %v14473_v32 }
 0xab2   :  { %v6089_v8 = vpop.f32.mrf.mxu1 }
 0xab3   :  { %v12651_v53 = vadd.f32 %v6089_v8, %v12406_v25  ;;  %v6153_v1 = vadd.f32 %v6152_v51, %v12557_v15  ;;  %v5594_v8 = vpop.f32.mrf.mxu2 }
 0xab5   :  { %v6154_v25 = vadd.f32 %v6153_v1, %v12560_v26  ;;  %v5766_v15 = vpop.f32.mrf.mxu3 }
 0xab7   :  { %v6155_v47 = vadd.f32 %v6154_v25, %v12564_v44 }
 0xab9   :  { %v6156_v9 = vadd.f32 %v6155_v47, %v14474_v60  ;;  %v5935_v60 = vpop.f32.mrf.mxu0 }
 0xaba   :  { %v6091_v41 = vpop.f32.mrf.mxu1 }
 0xabb   :  { %v6157_v16 = vadd.f32 %v6156_v9, %v12571_v52  ;;  %v5597_v32 = vpop.f32.mrf.mxu2 }
 0xabd   :  { %v6158_v43 = vadd.f32 %v6157_v16, %v12574_v48  ;;  %v14475_v48 = vld [vmem:[#allocation48_spill] sm:$0xff] }
 0xabe   :  { %v5585_v44 = vadd.f32 %v5584_v12, %v14475_v48  ;;  %v14479_v48 = vld [vmem:[#allocation54_spill] sm:$0xff] }
 0xabf   :  { %v6159_v0 = vadd.f32 %v6158_v43, %v12578_v21  ;;  %v14476_v21 = vld [vmem:[#allocation53_spill] sm:$0xff]  ;;  %v5595_v12 = vadd.f32 %v5594_v8, %v14479_v48 }
 0xac1   :  { %v6160_v51 = vadd.f32 %v6159_v0, %v12581_v45  ;;  %v5588_v0 = vadd.f32 %v5587_v4, %v14476_v21 }
 0xac2   :  { %v6094_v59 = vpop.f32.mrf.mxu1 }
 0xac3   :  { %v6161_v1 = vadd.f32 %v6160_v51, %v12585_v63  ;;  %v5599_v52 = vpop.f32.mrf.mxu2  ;;  %v14477_v63 = vld [vmem:[#allocation56_spill] sm:$0xff] }
 0xac4   :  { %v5590_v10 = vadd.f32 %v5589_v42, %v14477_v63  ;;  %v14480_v42 = vld [vmem:[#allocation57_spill] sm:$0xff] }
 0xac5   :  { %v6162_v26 = vadd.f32 %v6161_v1, %v12588_v57  ;;  %v5768_v1 = vpop.f32.mrf.mxu3  ;;  %v5754_v57 = vadd.f32 %v5753_v14, %v5585_v44  ;;  %v5598_v63 = vadd.f32 %v5597_v32, %v14480_v42 }
 0xac6   :  { %v5759_v4 = vadd.f32 %v5758_v36, %v5590_v10 }
 0xac7   :  { %v6163_v47 = vadd.f32 %v6162_v26, %v12592_v46  ;;  %v5757_v46 = vadd.f32 %v5756_v6, %v5588_v0  ;;  %v5923_v21 = vadd.f32 %v12633_v2, %v5754_v57  ;;  %v5767_v57 = vadd.f32 %v5766_v15, %v5598_v63 }
 0xac9   :  { %v6164_v9 = vadd.f32 %v6163_v47, %v12595_v20  ;;  %v5937_v47 = vpop.f32.mrf.mxu0  ;;  %v14478_v20 = vld [vmem:[#allocation59_spill] sm:$0xff]  ;;  %v12684_v0 = vadd.f32 %v6091_v41, %v5923_v21  ;;  %v14482_v41 = vld [vmem:[#allocation61_spill] sm:$0xff] }
 0xaca   :  { %v6096_v49 = vpop.f32.mrf.mxu1  ;;  %v5593_v22 = vadd.f32 %v5592_v13, %v14478_v20  ;;  %v5764_v20 = vadd.f32 %v5763_v24, %v5595_v12  ;;  %v5928_v13 = vadd.f32 %v5927_v29, %v5759_v4 }
 0xacb   :  { %v6165_v16 = vadd.f32 %v6164_v9, %v12599_v50 }
 0xacc   :  { %v5762_v14 = vadd.f32 %v5761_v3, %v5593_v22  ;;  %v12691_v22 = vadd.f32 %v6096_v49, %v5928_v13  ;;  %v5933_v32 = vadd.f32 %v5932_v38, %v5764_v20 }
 0xacd   :  { %v6166_v43 = vadd.f32 %v6165_v16, %v12606_v23  ;;  %v5602_v16 = vpop.f32.mrf.mxu2  ;;  %v5771_v10 = vpop.f32.mrf.mxu3 }
 0xace   :  { %v5931_v36 = vadd.f32 %v5930_v18, %v5762_v14  ;;  %v5603_v2 = vadd.f32 %v5602_v16, %v14482_v41 }
 0xacf   :  { %v6167_v51 = vadd.f32 %v6166_v43, %v12614_v61  ;;  %v5926_v61 = vadd.f32 %v5925_v35, %v5757_v46 }
 0xad0   :  { %v5772_v12 = vadd.f32 %v5771_v10, %v5603_v2 }
 0xad1   :  { %v6168_v26 = vadd.f32 %v6167_v51, %v12621_v27  ;;  %v14481_v51 = vld [vmem:[#allocation60_spill] sm:$0xff]  ;;  %v12688_v48 = vadd.f32 %v6094_v59, %v5926_v61  ;;  %v5940_v3 = vpop.f32.mrf.mxu0  ;;  %v5936_v59 = vadd.f32 %v5935_v60, %v5767_v57 }
 0xad2   :  { %v6099_v25 = vpop.f32.mrf.mxu1  ;;  %v5941_v4 = vadd.f32 %v5940_v3, %v5772_v12 }
 0xad3   :  { %v6169_v9 = vadd.f32 %v6168_v26, %v12628_v37  ;;  %v5600_v26 = vadd.f32 %v5599_v52, %v14481_v51  ;;  %v12695_v24 = vadd.f32 %v6099_v25, %v5931_v36  ;;  %v14483_v25 = vld [vmem:[#allocation63_spill] sm:$0xff] }
 0xad5   :  { %v6170_v43 = vadd.f32 %v6169_v9, %v12637_v62  ;;  %v5769_v46 = vadd.f32 %v5768_v1, %v5600_v26  ;;  %v5604_v52 = vpop.f32.mrf.mxu2  ;;  %v5773_v21 = vpop.f32.mrf.mxu3 }
 0xad7   :  { %v6171_v6 = vadd.f32 %v6170_v43, %v12644_v39  ;;  %v5938_v15 = vadd.f32 %v5937_v47, %v5769_v46  ;;  %v5605_v43 = vadd.f32 %v5604_v52, %v14483_v25  ;;  %v14485_v46 = vld [vmem:[#allocation67_spill] sm:$0xff] }
 0xad9   :  { %v6172_v8 = vadd.f32 %v6171_v6, %v12651_v53  ;;  %v5942_v60 = vpop.f32.mrf.mxu0  ;;  %v5774_v47 = vadd.f32 %v5773_v21, %v5605_v43 }
 0xada   :  { %v6101_v45 = vpop.f32.mrf.mxu1 }
 0xadb   :  { %v6173_v35 = vadd.f32 %v6172_v8, %v12684_v0  ;;  %v12698_v18 = vadd.f32 %v6101_v45, %v5933_v32  ;;  %v5943_v51 = vadd.f32 %v5942_v60, %v5774_v47 }
 0xadd   :  { %v6174_v29 = vadd.f32 %v6173_v35, %v12688_v48  ;;  %v5607_v6 = vpop.f32.mrf.mxu2  ;;  %v5776_v13 = vpop.f32.mrf.mxu3 }
 0xadf   :  { %v6175_v61 = vadd.f32 %v6174_v29, %v12691_v22 }
 0xae1   :  { %v6176_v49 = vadd.f32 %v6175_v61, %v12695_v24  ;;  %v5945_v36 = vpop.f32.mrf.mxu0 }
 0xae2   :  { %v6104_v44 = vpop.f32.mrf.mxu1 }
 0xae3   :  { %v12701_v38 = vadd.f32 %v6104_v44, %v5936_v59  ;;  %v6177_v1 = vadd.f32 %v6176_v49, %v12698_v18  ;;  %v14484_v44 = vld [vmem:[#allocation64_spill] sm:$0xff] }
 0xae4   :  { %v5608_v26 = vadd.f32 %v5607_v6, %v14484_v44 }
 0xae5   :  { %v6178_v14 = vadd.f32 %v6177_v1, %v12701_v38  ;;  %v5609_v32 = vpop.f32.mrf.mxu2  ;;  %v5778_v2 = vpop.f32.mrf.mxu3 }
 0xae6   :  { %v5777_v57 = vadd.f32 %v5776_v13, %v5608_v26  ;;  %v5610_v41 = vadd.f32 %v5609_v32, %v14485_v46 }
 0xae8   :  { %v5946_v3 = vadd.f32 %v5945_v36, %v5777_v57 }
 0xae9   :  { %v5947_v61 = vpop.f32.mrf.mxu0 }
 0xaea   :  { %v6106_v9 = vpop.f32.mrf.mxu1 }
 0xaeb   :  { %v6107_v16 = vadd.f32 %v6106_v9, %v5938_v15  ;;  %v5779_v9 = vadd.f32 %v5778_v2, %v5610_v41 }
 0xaed   :  { %v6179_v63 = vadd.f32 %v6178_v14, %v6107_v16  ;;  %v5948_v15 = vadd.f32 %v5947_v61, %v5779_v9 }
 0xaf2   :  { %v6109_v42 = vpop.f32.mrf.mxu1 }
 0xaf3   :  { %v6110_v45 = vadd.f32 %v6109_v42, %v5941_v4  ;;  %v14486_v42 = vld [vmem:[#allocation16_spill] sm:$0xff] }
 0xaf5   :  { %v6180_v20 = vadd.f32 %v6179_v63, %v6110_v45 }
 0xafa   :  { %v6111_v8 = vpop.f32.mrf.mxu1 }
 0xafb   :  { %v6112_v10 = vadd.f32 %v6111_v8, %v5943_v51 }
 0xafd   :  { %v6181_v35 = vadd.f32 %v6180_v20, %v6112_v10 }
 0xb02   :  { %v6114_v29 = vpop.f32.mrf.mxu1 }
 0xb03   :  { %v6115_v52 = vadd.f32 %v6114_v29, %v5946_v3 }
 0xb05   :  { %v6182_v59 = vadd.f32 %v6181_v35, %v6115_v52 }
 0xb0a   :  { %v6116_v12 = vpop.f32.mrf.mxu1 }
 0xb0b   :  { %v6117_v49 = vadd.f32 %v6116_v12, %v5948_v15 }
 0xb0d   :  { %v6183_v1 = vadd.f32 %v6182_v59, %v6117_v49 }
 0xb0f   :  { %v6184_v21 = vrot.slane %v6183_v1, 4 }
 0xb11   :  { %v6185_v4 = vadd.f32 %v6184_v21, %v6183_v1 }
 0xb13   :  { %v6186_v25 = vrot.slane %v6185_v4, 2 }
 0xb15   :  { %v6187_v43 = vadd.f32 %v6186_v25, %v6185_v4 }
 0xb17   :  { %v6188_v14 = vrot.slane %v6187_v43, 1 }
 0xb19   :  { %v6189_v60 = vadd.f32 %v6188_v14, %v6187_v43  ;;  %v14498_v43 = vld [vmem:[#allocation62_spill] sm:$0xff] }
 0xb1b   :  { %v12709_v63 = vmul.f32 %v6189_v60, %v14486_v42 }
 0xb1d   :  { %v12712_v6 = vsub.f32 %v6107_v16, %v12709_v63  ;;  %v12715_v47 = vsub.f32 %v6110_v45, %v12709_v63  ;;  %v12718_v20 = vsub.f32 %v6112_v10, %v12709_v63  ;;  %v12721_v13 = vsub.f32 %v6115_v52, %v12709_v63 }
 0xb1e   :  { %v12724_v51 = vsub.f32 %v6117_v49, %v12709_v63  ;;  %v12728_v44 = vsub.f32 %v12441_v31, %v12709_v63  ;;  %v12732_v16 = vsub.f32 %v12445_v19, %v12709_v63  ;;  %v12736_v45 = vsub.f32 %v12448_v5, %v12709_v63 }
 0xb1f   :  { %14487 = vst [vmem:[#allocation100_spill] sm:$0xff] %v12712_v6  ;;  %v12744_v10 = vsub.f32 %v12452_v54, %v12709_v63  ;;  %v12748_v31 = vsub.f32 %v12455_v28, %v12709_v63  ;;  %v12754_v5 = vsub.f32 %v12459_v17, %v12709_v63  ;;  %v12760_v54 = vsub.f32 %v12462_v33, %v12709_v63 }
 0xb20   :  { %14488 = vst [vmem:[#allocation101_spill] sm:$0xff] %v12715_v47  ;;  %v6255_v26 = vmul.f32 %v12728_v44, %v12728_v44  ;;  %v6256_v8 = vmul.f32 %v12732_v16, %v12732_v16  ;;  %v6257_v19 = vmul.f32 %v12736_v45, %v12736_v45  ;;  %v12766_v3 = vsub.f32 %v12466_v30, %v12709_v63 }
 0xb21   :  { %14489 = vst [vmem:[#allocation102_spill] sm:$0xff] %v12718_v20  ;;  %v6258_v57 = vmul.f32 %v12744_v10, %v12744_v10  ;;  %v6259_v28 = vmul.f32 %v12748_v31, %v12748_v31  ;;  %v6260_v17 = vmul.f32 %v12754_v5, %v12754_v5  ;;  %v12772_v41 = vsub.f32 %v12469_v58, %v12709_v63 }
 0xb22   :  { %14490 = vst [vmem:[#allocation32_spill] sm:$0xff] %v12721_v13  ;;  %v6319_v36 = vadd.f32 %v6256_v8, %v6255_v26  ;;  %v6261_v33 = vmul.f32 %v12760_v54, %v12760_v54  ;;  %v12778_v29 = vsub.f32 %v12473_v40, %v12709_v63  ;;  %v6262_v30 = vmul.f32 %v12766_v3, %v12766_v3  ;;  %v14499_v26 = vld [vmem:[#allocation65_spill] sm:$0xff] }
 0xb23   :  { %14491 = vst [vmem:[#allocation21_spill] sm:$0xff] %v12728_v44  ;;  %v12784_v9 = vsub.f32 %v12476_v56, %v12709_v63  ;;  %v6263_v58 = vmul.f32 %v12772_v41, %v12772_v41  ;;  %v12790_v61 = vsub.f32 %v12480_v11, %v12709_v63  ;;  %v12796_v12 = vsub.f32 %v12483_v55, %v12709_v63 }
 0xb24   :  { %14492 = vst [vmem:[#allocation103_spill] sm:$0xff] %v12732_v16  ;;  %v6320_v35 = vadd.f32 %v6319_v36, %v6257_v19  ;;  %v6264_v40 = vmul.f32 %v12778_v29, %v12778_v29  ;;  %v12802_v1 = vsub.f32 %v12487_v7, %v12709_v63  ;;  %v12808_v4 = vsub.f32 %v12490_v34, %v12709_v63  ;;  %v14500_v36 = vld [vmem:[#allocation68_spill] sm:$0xff] }
 0xb25   :  { %14493 = vst [vmem:[#allocation19_spill] sm:$0xff] %v12736_v45  ;;  %v6265_v56 = vmul.f32 %v12784_v9, %v12784_v9  ;;  %v6266_v11 = vmul.f32 %v12790_v61, %v12790_v61  ;;  %v6267_v55 = vmul.f32 %v12796_v12, %v12796_v12  ;;  %v12814_v14 = vsub.f32 %v14498_v43, %v12709_v63 }
 0xb26   :  { %14494 = vst [vmem:[#allocation23_spill] sm:$0xff] %v12744_v10  ;;  %v6321_v32 = vadd.f32 %v6320_v35, %v6258_v57  ;;  %v6268_v7 = vmul.f32 %v12802_v1, %v12802_v1  ;;  %v12820_v8 = vsub.f32 %v14499_v26, %v12709_v63  ;;  %v6269_v34 = vmul.f32 %v12808_v4, %v12808_v4  ;;  %v14506_v26 = vld [vmem:[#allocation70_spill] sm:$0xff] }
 0xb27   :  { %14495 = vst [vmem:[#allocation22_spill] sm:$0xff] %v12748_v31  ;;  %v12826_v57 = vsub.f32 %v14500_v36, %v12709_v63  ;;  %v6270_v35 = vmul.f32 %v12814_v14, %v12814_v14 }
 0xb28   :  { %14496 = vst [vmem:[#allocation14_spill] sm:$0xff] %v12754_v5  ;;  %v6322_v46 = vadd.f32 %v6321_v32, %v6259_v28  ;;  %v14501_v32 = vld [vmem:[#allocation71_spill] sm:$0xff] }
 0xb29   :  { %14497 = vst [vmem:[#allocation24_spill] sm:$0xff] %v12760_v54 }
 0xb2a   :  { %v6323_v2 = vadd.f32 %v6322_v46, %v6260_v17  ;;  %v12832_v17 = vsub.f32 %v14501_v32, %v12709_v63  ;;  %v6271_v46 = vmul.f32 %v12820_v8, %v12820_v8 }
 0xb2c   :  { %v6324_v52 = vadd.f32 %v6323_v2, %v6261_v33  ;;  %v14502_v2 = vld [vmem:[#allocation66_spill] sm:$0xff] }
 0xb2e   :  { %v6325_v59 = vadd.f32 %v6324_v52, %v6262_v30  ;;  %v12838_v30 = vsub.f32 %v14502_v2, %v12709_v63  ;;  %v6272_v52 = vmul.f32 %v12826_v57, %v12826_v57 }
 0xb30   :  { %v6326_v15 = vadd.f32 %v6325_v59, %v6263_v58  ;;  %v14503_v59 = vld [vmem:[#allocation69_spill] sm:$0xff] }
 0xb32   :  { %v6327_v49 = vadd.f32 %v6326_v15, %v6264_v40  ;;  %v12844_v40 = vsub.f32 %v14503_v59, %v12709_v63  ;;  %v6273_v15 = vmul.f32 %v12832_v17, %v12832_v17  ;;  %v14509_v59 = vld [vmem:[#allocation77_spill] sm:$0xff] }
 0xb34   :  { %v6328_v21 = vadd.f32 %v6327_v49, %v6265_v56  ;;  %v14504_v49 = vld [vmem:[#allocation72_spill] sm:$0xff] }
 0xb36   :  { %v6329_v25 = vadd.f32 %v6328_v21, %v6266_v11  ;;  %v12850_v11 = vsub.f32 %v14504_v49, %v12709_v63  ;;  %v6274_v21 = vmul.f32 %v12838_v30, %v12838_v30 }
 0xb38   :  { %v6330_v60 = vadd.f32 %v6329_v25, %v6267_v55  ;;  %v14505_v25 = vld [vmem:[#allocation75_spill] sm:$0xff] }
 0xb39   :  { %v12856_v43 = vsub.f32 %v14505_v25, %v12709_v63 }
 0xb3a   :  { %v6331_v19 = vadd.f32 %v6330_v60, %v6268_v7  ;;  %v6275_v7 = vmul.f32 %v12844_v40, %v12844_v40 }
 0xb3b   :  { %v6277_v32 = vmul.f32 %v12856_v43, %v12856_v43 }
 0xb3c   :  { %v6332_v28 = vadd.f32 %v6331_v19, %v6269_v34  ;;  %v12862_v34 = vsub.f32 %v14506_v26, %v12709_v63  ;;  %v6276_v19 = vmul.f32 %v12850_v11, %v12850_v11 }
 0xb3e   :  { %v6333_v33 = vadd.f32 %v6332_v28, %v6270_v35  ;;  %v14507_v35 = vld [vmem:[#allocation73_spill] sm:$0xff] }
 0xb3f   :  { %v12868_v28 = vsub.f32 %v14507_v35, %v12709_v63  ;;  %v14512_v35 = vld [vmem:[#allocation83_spill] sm:$0xff] }
 0xb40   :  { %v6334_v58 = vadd.f32 %v6333_v33, %v6271_v46  ;;  %v14508_v33 = vld [vmem:[#allocation76_spill] sm:$0xff] }
 0xb41   :  { %v12874_v2 = vsub.f32 %v14508_v33, %v12709_v63 }
 0xb42   :  { %v6335_v56 = vadd.f32 %v6334_v58, %v6272_v52  ;;  %v6278_v52 = vmul.f32 %v12862_v34, %v12862_v34 }
 0xb43   :  { %v6280_v25 = vmul.f32 %v12874_v2, %v12874_v2 }
 0xb44   :  { %v6336_v55 = vadd.f32 %v6335_v56, %v6273_v15  ;;  %v12880_v15 = vsub.f32 %v14509_v59, %v12709_v63  ;;  %v6279_v56 = vmul.f32 %v12868_v28, %v12868_v28 }
 0xb46   :  { %v6337_v60 = vadd.f32 %v6336_v55, %v6274_v21  ;;  %v14510_v21 = vld [vmem:[#allocation79_spill] sm:$0xff] }
 0xb47   :  { %v12886_v55 = vsub.f32 %v14510_v21, %v12709_v63 }
 0xb48   :  { %v6338_v36 = vadd.f32 %v6337_v60, %v6275_v7  ;;  %v14511_v60 = vld [vmem:[#allocation80_spill] sm:$0xff] }
 0xb49   :  { %v12892_v26 = vsub.f32 %v14511_v60, %v12709_v63  ;;  %v14515_v60 = vld [vmem:[#allocation84_spill] sm:$0xff] }
 0xb4a   :  { %v6339_v46 = vadd.f32 %v6338_v36, %v6276_v19  ;;  %v6281_v19 = vmul.f32 %v12880_v15, %v12880_v15 }
 0xb4b   :  { %v6283_v59 = vmul.f32 %v12892_v26, %v12892_v26 }
 0xb4c   :  { %v6340_v58 = vadd.f32 %v6339_v46, %v6277_v32  ;;  %v12898_v32 = vsub.f32 %v14512_v35, %v12709_v63  ;;  %v6282_v46 = vmul.f32 %v12886_v55, %v12886_v55  ;;  %v12916_v35 = vsub.f32 %v14515_v60, %v12709_v63  ;;  %v14518_v60 = vld [vmem:[#allocation85_spill] sm:$0xff] }
 0xb4d   :  { %v12934_v31 = vsub.f32 %v14518_v60, %v12709_v63  ;;  %v14524_v60 = vld [vmem:[#allocation91_spill] sm:$0xff] }
 0xb4e   :  { %v6341_v49 = vadd.f32 %v6340_v58, %v6278_v52  ;;  %v14513_v52 = vld [vmem:[#allocation78_spill] sm:$0xff]  ;;  %v12952_v16 = vsub.f32 %v14524_v60, %v12709_v63  ;;  %v14529_v60 = vld [vmem:[#allocation93_spill] sm:$0xff] }
 0xb4f   :  { %v12904_v58 = vsub.f32 %v14513_v52, %v12709_v63  ;;  %v14516_v52 = vld [vmem:[#allocation87_spill] sm:$0xff]  ;;  %14519 = vst [vmem:[#allocation26_spill] sm:$0xff] %v12934_v31 }
 0xb50   :  { %v6342_v7 = vadd.f32 %v6341_v49, %v6279_v56  ;;  %v14514_v49 = vld [vmem:[#allocation81_spill] sm:$0xff]  ;;  %v12922_v54 = vsub.f32 %v14516_v52, %v12709_v63  ;;  %v14520_v52 = vld [vmem:[#allocation88_spill] sm:$0xff]  ;;  %14525 = vst [vmem:[#allocation9_spill] sm:$0xff] %v12952_v16 }
 0xb51   :  { %v12910_v21 = vsub.f32 %v14514_v49, %v12709_v63  ;;  %v14517_v49 = vld [vmem:[#allocation82_spill] sm:$0xff]  ;;  %v12940_v10 = vsub.f32 %v14520_v52, %v12709_v63  ;;  %v14526_v52 = vld [vmem:[#allocation92_spill] sm:$0xff] }
 0xb52   :  { %v6343_v36 = vadd.f32 %v6342_v7, %v6280_v25  ;;  %v6284_v25 = vmul.f32 %v12898_v32, %v12898_v32  ;;  %v12928_v5 = vsub.f32 %v14517_v49, %v12709_v63  ;;  %v14522_v49 = vld [vmem:[#allocation89_spill] sm:$0xff]  ;;  %v12958_v44 = vsub.f32 %v14526_v52, %v12709_v63  ;;  %v14530_v52 = vld [vmem:[#allocation95_spill] sm:$0xff] }
 0xb53   :  { %14521 = vst [vmem:[#allocation27_spill] sm:$0xff] %v12940_v10  ;;  %v12946_v45 = vsub.f32 %v14522_v49, %v12709_v63  ;;  %v14528_v49 = vld [vmem:[#allocation96_spill] sm:$0xff] }
 0xb54   :  { %v6344_v33 = vadd.f32 %v6343_v36, %v6281_v19  ;;  %v6285_v19 = vmul.f32 %v12904_v58, %v12904_v58  ;;  %14527 = vst [vmem:[#allocation25_spill] sm:$0xff] %v12958_v44 }
 0xb55   :  { %14523 = vst [vmem:[#allocation20_spill] sm:$0xff] %v12946_v45 }
 0xb56   :  { %v6345_v56 = vadd.f32 %v6344_v33, %v6282_v46  ;;  %v6286_v46 = vmul.f32 %v12910_v21, %v12910_v21 }
 0xb58   :  { %v6346_v7 = vadd.f32 %v6345_v56, %v6283_v59  ;;  %v6287_v59 = vmul.f32 %v12916_v35, %v12916_v35 }
 0xb5a   :  { %v6347_v36 = vadd.f32 %v6346_v7, %v6284_v25  ;;  %v6288_v25 = vmul.f32 %v12922_v54, %v12922_v54 }
 0xb5c   :  { %v6348_v33 = vadd.f32 %v6347_v36, %v6285_v19  ;;  %v6289_v19 = vmul.f32 %v12928_v5, %v12928_v5 }
 0xb5e   :  { %v6349_v56 = vadd.f32 %v6348_v33, %v6286_v46  ;;  %v6290_v46 = vmul.f32 %v12934_v31, %v12934_v31  ;;  %v12964_v31 = vsub.f32 %v14528_v49, %v12709_v63  ;;  %v14532_v49 = vld [vmem:[#allocation97_spill] sm:$0xff] }
 0xb60   :  { %v6350_v7 = vadd.f32 %v6349_v56, %v6287_v59  ;;  %v6291_v59 = vmul.f32 %v12940_v10, %v12940_v10  ;;  %v12970_v10 = vsub.f32 %v14529_v60, %v12709_v63  ;;  %v14533_v60 = vld [vmem:[#allocation94_spill] sm:$0xff] }
 0xb62   :  { %v6351_v36 = vadd.f32 %v6350_v7, %v6288_v25  ;;  %v6292_v25 = vmul.f32 %v12946_v45, %v12946_v45  ;;  %v12976_v45 = vsub.f32 %v14530_v52, %v12709_v63  ;;  %v12994_v52 = vsub.f32 %v12599_v50, %v12709_v63 }
 0xb64   :  { %v6352_v33 = vadd.f32 %v6351_v36, %v6289_v19  ;;  %v6293_v19 = vmul.f32 %v12952_v16, %v12952_v16  ;;  %14531 = vst [vmem:[#allocation13_spill] sm:$0xff] %v12976_v45  ;;  %v12982_v16 = vsub.f32 %v14532_v49, %v12709_v63  ;;  %v13000_v49 = vsub.f32 %v12606_v23, %v12709_v63 }
 0xb65   :  { %v6300_v50 = vmul.f32 %v12994_v52, %v12994_v52 }
 0xb66   :  { %v6353_v56 = vadd.f32 %v6352_v33, %v6290_v46  ;;  %v6294_v46 = vmul.f32 %v12958_v44, %v12958_v44  ;;  %v12988_v44 = vsub.f32 %v14533_v60, %v12709_v63  ;;  %v14534_v60 = vld [vmem:[#allocation98_spill] sm:$0xff]  ;;  %v6301_v23 = vmul.f32 %v13000_v49, %v13000_v49 }
 0xb68   :  { %v6354_v7 = vadd.f32 %v6353_v56, %v6291_v59  ;;  %v6295_v59 = vmul.f32 %v12964_v31, %v12964_v31 }
 0xb6a   :  { %v6355_v36 = vadd.f32 %v6354_v7, %v6292_v25  ;;  %v6296_v25 = vmul.f32 %v12970_v10, %v12970_v10 }
 0xb6c   :  { %v6356_v33 = vadd.f32 %v6355_v36, %v6293_v19  ;;  %v6297_v19 = vmul.f32 %v12976_v45, %v12976_v45  ;;  %v13006_v45 = vsub.f32 %v14534_v60, %v12709_v63  ;;  %v13024_v60 = vsub.f32 %v12637_v62, %v12709_v63 }
 0xb6e   :  { %v6357_v56 = vadd.f32 %v6356_v33, %v6294_v46  ;;  %v6298_v46 = vmul.f32 %v12982_v16, %v12982_v16  ;;  %v6305_v62 = vmul.f32 %v13024_v60, %v13024_v60 }
 0xb70   :  { %v6358_v7 = vadd.f32 %v6357_v56, %v6295_v59  ;;  %v6299_v59 = vmul.f32 %v12988_v44, %v12988_v44 }
 0xb72   :  { %v6359_v36 = vadd.f32 %v6358_v7, %v6296_v25  ;;  %v13012_v7 = vsub.f32 %v12621_v27, %v12709_v63 }
 0xb74   :  { %v6360_v33 = vadd.f32 %v6359_v36, %v6297_v19  ;;  %v13018_v36 = vsub.f32 %v12628_v37, %v12709_v63  ;;  %v6303_v27 = vmul.f32 %v13012_v7, %v13012_v7 }
 0xb76   :  { %v6361_v56 = vadd.f32 %v6360_v33, %v6298_v46  ;;  %v6302_v46 = vmul.f32 %v13006_v45, %v13006_v45  ;;  %v6304_v37 = vmul.f32 %v13018_v36, %v13018_v36 }
 0xb78   :  { %v6362_v25 = vadd.f32 %v6361_v56, %v6299_v59  ;;  %v13030_v56 = vsub.f32 %v12644_v39, %v12709_v63 }
 0xb7a   :  { %v6363_v19 = vadd.f32 %v6362_v25, %v6300_v50  ;;  %v13036_v25 = vsub.f32 %v12651_v53, %v12709_v63  ;;  %v6306_v39 = vmul.f32 %v13030_v56, %v13030_v56 }
 0xb7c   :  { %v6364_v33 = vadd.f32 %v6363_v19, %v6301_v23  ;;  %v13042_v19 = vsub.f32 %v12684_v0, %v12709_v63  ;;  %v6307_v53 = vmul.f32 %v13036_v25, %v13036_v25 }
 0xb7e   :  { %v6365_v59 = vadd.f32 %v6364_v33, %v6302_v46  ;;  %v13048_v33 = vsub.f32 %v12688_v48, %v12709_v63  ;;  %v6308_v0 = vmul.f32 %v13042_v19, %v13042_v19 }
 0xb80   :  { %v6366_v50 = vadd.f32 %v6365_v59, %v6303_v27  ;;  %v13054_v59 = vsub.f32 %v12691_v22, %v12709_v63  ;;  %v6309_v48 = vmul.f32 %v13048_v33, %v13048_v33 }
 0xb82   :  { %v6367_v23 = vadd.f32 %v6366_v50, %v6304_v37  ;;  %14535 = vst [vmem:[#allocation18_spill] sm:$0xff] %v13054_v59  ;;  %v13060_v50 = vsub.f32 %v12695_v24, %v12709_v63  ;;  %v6310_v22 = vmul.f32 %v13054_v59, %v13054_v59  ;;  %v6314_v59 = vmul.f32 %v12712_v6, %v12712_v6 }
 0xb84   :  { %v6368_v46 = vadd.f32 %v6367_v23, %v6305_v62  ;;  %v13066_v23 = vsub.f32 %v12698_v18, %v12709_v63  ;;  %v6311_v24 = vmul.f32 %v13060_v50, %v13060_v50 }
 0xb86   :  { %v6369_v27 = vadd.f32 %v6368_v46, %v6306_v39  ;;  %14536 = vst [vmem:[#allocation11_spill] sm:$0xff] %v13066_v23  ;;  %v13072_v46 = vsub.f32 %v12701_v38, %v12709_v63  ;;  %v6315_v38 = vmul.f32 %v12715_v47, %v12715_v47 }
 0xb88   :  { %v6370_v37 = vadd.f32 %v6369_v27, %v6307_v53  ;;  %14537 = vst [vmem:[#allocation15_spill] sm:$0xff] %v13072_v46  ;;  %v6312_v27 = vmul.f32 %v13066_v23, %v13066_v23  ;;  %v6313_v18 = vmul.f32 %v13072_v46, %v13072_v46 }
 0xb8a   :  { %v6371_v62 = vadd.f32 %v6370_v37, %v6308_v0 }
 0xb8c   :  { %v6372_v39 = vadd.f32 %v6371_v62, %v6309_v48  ;;  %v6316_v62 = vmul.f32 %v12718_v20, %v12718_v20 }
 0xb8e   :  { %v6373_v53 = vadd.f32 %v6372_v39, %v6310_v22  ;;  %v6317_v39 = vmul.f32 %v12721_v13, %v12721_v13 }
 0xb90   :  { %v6374_v0 = vadd.f32 %v6373_v53, %v6311_v24  ;;  %v6318_v53 = vmul.f32 %v12724_v51, %v12724_v51 }
 0xb92   :  { %v6375_v37 = vadd.f32 %v6374_v0, %v6312_v27 }
 0xb94   :  { %v6376_v48 = vadd.f32 %v6375_v37, %v6313_v18 }
 0xb96   :  { %v6377_v63 = vadd.f32 %v6376_v48, %v6314_v59 }
 0xb98   :  { %v6378_v22 = vadd.f32 %v6377_v63, %v6315_v38 }
 0xb9a   :  { %v6379_v24 = vadd.f32 %v6378_v22, %v6316_v62 }
 0xb9c   :  { %v6380_v27 = vadd.f32 %v6379_v24, %v6317_v39 }
 0xb9e   :  { %v6381_v0 = vadd.f32 %v6380_v27, %v6318_v53 }
 0xba0   :  { %v6382_v46 = vrot.slane %v6381_v0, 4 }
 0xba2   :  { %v6383_v6 = vadd.f32 %v6382_v46, %v6381_v0  ;;  %v13094_v46 = vld [vmem:[%s13730_s5] ss:$0 sm:$0xff] }
 0xba3   :  { %14538 = vst [vmem:[#allocation28_spill] sm:$0xff] %v13094_v46 }
 0xba4   :  { %v6384_v18 = vrot.slane %v6383_v6, 2 }
 0xba6   :  { %v6385_v37 = vadd.f32 %v6384_v18, %v6383_v6 }
 0xba8   :  { %v6386_v23 = vrot.slane %v6385_v37, 1 }
 0xbaa   :  { %v6387_v47 = vadd.f32 %v6386_v23, %v6385_v37 }
 0xbac   :  { %v6388_v59 = vmul.f32 %v6387_v47, %v14486_v42  ;;  %v13101_v42 = vld [vmem:[%s13731_s6] ss:$0 sm:$0xff] }
 0xbad   :  { %14540 = vst [vmem:[#allocation51_spill] sm:$0xff] %v13101_v42 }
 0xbae   :  { %v6389_v48 = vadd.f32 1e-05, %v6388_v59 }
 0xbb0   :  { %8273 = vrsqrt.f32 %v6389_v48  ;;  %vm6396_vm11 = vweird.f32 %v6389_v48 }
 0xbb6   :  { %v8274_v38 = vpop.eup %8273 }
 0xbb7   :  { %v6391_v63 = vmul.f32 %v8274_v38, %v6389_v48  ;;  %vm6397_vm10 = vweird.f32 %v8274_v38  ;;  %v14541_v48 = vld [vmem:[#allocation26_spill] sm:$0xff] }
 0xbb8   :  { %vm6398_vm12 = vmor %vm6396_vm11, %vm6397_vm10 }
 0xbb9   :  { %v6392_v20 = vmul.f32 %v8274_v38, %v6391_v63  ;;  %v14543_v63 = vld [vmem:[#allocation20_spill] sm:$0xff] }
 0xbbb   :  { %v6393_v13 = vmul.f32 0.5, %v6392_v20 }
 0xbbd   :  { %v6394_v62 = vsub.f32 1.5, %v6393_v13  ;;  %v6661_v13 = vld [vmem:[%s13732_s7 + $0x1f8] sm:$0xff] }
 0xbbf   :  { %v6395_v22 = vmul.f32 %v8274_v38, %v6394_v62  ;;  %v14544_v62 = vld [vmem:[#allocation9_spill] sm:$0xff] }
 0xbc1   :  { %v13096_v6 = vsel %vm6398_vm12, %v8274_v38, %v6395_v22  ;;  %v14542_v38 = vld [vmem:[#allocation27_spill] sm:$0xff]  ;;  %v14545_v22 = vld [vmem:[#allocation25_spill] sm:$0xff] }
 0xbc2   :  { %14539 = vst [vmem:[#allocation29_spill] sm:$0xff] %v13096_v6  ;;  %v6463_v47 = vmul.f32 %v13096_v6, %v12724_v51  ;;  %v6407_v39 = vmul.f32 %v13096_v6, %v12766_v3  ;;  %v6408_v24 = vmul.f32 %v13096_v6, %v12772_v41  ;;  %v6409_v53 = vmul.f32 %v13096_v6, %v12778_v29 }
 0xbc3   :  { %v6410_v51 = vmul.f32 %v13096_v6, %v12784_v9  ;;  %v6411_v27 = vmul.f32 %v13096_v6, %v12790_v61  ;;  %v6412_v0 = vmul.f32 %v13096_v6, %v12796_v12  ;;  %v6413_v18 = vmul.f32 %v13096_v6, %v12802_v1 }
 0xbc4   :  { %v6530_v20 = vmul.f32 %v13094_v46, %v6463_v47  ;;  %v6414_v3 = vmul.f32 %v13096_v6, %v12808_v4  ;;  %v6415_v41 = vmul.f32 %v13096_v6, %v12814_v14  ;;  %v6416_v29 = vmul.f32 %v13096_v6, %v12820_v8  ;;  %v14546_v47 = vld [vmem:[#allocation13_spill] sm:$0xff]  ;;  %v14553_v46 = vld [vmem:[#allocation32_spill] sm:$0xff] }
 0xbc5   :  { %v6417_v9 = vmul.f32 %v13096_v6, %v12826_v57  ;;  %v6418_v61 = vmul.f32 %v13096_v6, %v12832_v17  ;;  %v6419_v12 = vmul.f32 %v13096_v6, %v12838_v30  ;;  %v6420_v1 = vmul.f32 %v13096_v6, %v12844_v40 }
 0xbc6   :  { %v6597_v23 = vadd.f32 %v13101_v42, %v6530_v20  ;;  %v6421_v4 = vmul.f32 %v13096_v6, %v12850_v11  ;;  %v6422_v14 = vmul.f32 %v13096_v6, %v12856_v43  ;;  %v6423_v8 = vmul.f32 %v13096_v6, %v12862_v34  ;;  %v14552_v42 = vld [vmem:[#allocation102_spill] sm:$0xff] }
 0xbc7   :  { %v6424_v57 = vmul.f32 %v13096_v6, %v12868_v28  ;;  %v6425_v17 = vmul.f32 %v13096_v6, %v12874_v2  ;;  %v6426_v30 = vmul.f32 %v13096_v6, %v12880_v15  ;;  %v6427_v40 = vmul.f32 %v13096_v6, %v12886_v55 }
 0xbc8   :  { %v6725_v37 = vadd.f32 %v6661_v13, %v6597_v23  ;;  %v6428_v11 = vmul.f32 %v13096_v6, %v12892_v26  ;;  %v6429_v43 = vmul.f32 %v13096_v6, %v12898_v32  ;;  %v6430_v34 = vmul.f32 %v13096_v6, %v12904_v58 }
 0xbc9   :  { %v6431_v28 = vmul.f32 %v13096_v6, %v12910_v21  ;;  %v6432_v2 = vmul.f32 %v13096_v6, %v12916_v35  ;;  %v6433_v15 = vmul.f32 %v13096_v6, %v12922_v54  ;;  %v6434_v55 = vmul.f32 %v13096_v6, %v12928_v5 }
 0xbca   :  { %v6789_v59 = vmax.f32 %v6725_v37, 0.0  ;;  %v6435_v26 = vmul.f32 %v13096_v6, %v14541_v48  ;;  %v6436_v32 = vmul.f32 %v13096_v6, %v14542_v38  ;;  %v6437_v58 = vmul.f32 %v13096_v6, %v14543_v63  ;;  %v14547_v38 = vld [vmem:[#allocation18_spill] sm:$0xff]  ;;  %v14548_v63 = vld [vmem:[#allocation11_spill] sm:$0xff] }
 0xbcb   :  { %v6438_v21 = vmul.f32 %v13096_v6, %v14544_v62  ;;  %v6439_v35 = vmul.f32 %v13096_v6, %v14545_v22  ;;  %v6440_v54 = vmul.f32 %v13096_v6, %v12964_v31  ;;  %v6441_v5 = vmul.f32 %v13096_v6, %v12970_v10  ;;  %v14549_v62 = vld [vmem:[#allocation15_spill] sm:$0xff]  ;;  %v14550_v22 = vld [vmem:[#allocation100_spill] sm:$0xff] }
 0xbcc   :  { %6853 = vst [vmem:[#allocation2 + $0x1f8] sm:$0xff] %v6789_v59  ;;  %v6442_v20 = vmul.f32 %v13096_v6, %v14546_v47  ;;  %v6443_v13 = vmul.f32 %v13096_v6, %v12982_v16  ;;  %v6444_v23 = vmul.f32 %v13096_v6, %v12988_v44  ;;  %v6445_v37 = vmul.f32 %v13096_v6, %v12994_v52  ;;  %v14551_v47 = vld [vmem:[#allocation101_spill] sm:$0xff] }
 0xbcd   :  { %v6446_v59 = vmul.f32 %v13096_v6, %v13000_v49  ;;  %v6447_v31 = vmul.f32 %v13096_v6, %v13006_v45  ;;  %v6448_v10 = vmul.f32 %v13096_v6, %v13012_v7  ;;  %v6449_v48 = vmul.f32 %v13096_v6, %v13018_v36 }
 0xbce   :  { %v6450_v16 = vmul.f32 %v13096_v6, %v13024_v60  ;;  %v6451_v44 = vmul.f32 %v13096_v6, %v13030_v56  ;;  %v6452_v52 = vmul.f32 %v13096_v6, %v13036_v25  ;;  %v6453_v49 = vmul.f32 %v13096_v6, %v13042_v19 }
 0xbcf   :  { %v6454_v45 = vmul.f32 %v13096_v6, %v13048_v33  ;;  %v6455_v7 = vmul.f32 %v13096_v6, %v14547_v38  ;;  %v6456_v36 = vmul.f32 %v13096_v6, %v13060_v50  ;;  %v6457_v60 = vmul.f32 %v13096_v6, %v14548_v63  ;;  %v14554_v50 = vld [vmem:[#allocation28_spill] sm:$0xff] }
 0xbd0   :  { %v6458_v56 = vmul.f32 %v13096_v6, %v14549_v62  ;;  %v6459_v25 = vmul.f32 %v13096_v6, %v14550_v22  ;;  %v6460_v19 = vmul.f32 %v13096_v6, %v14551_v47  ;;  %v6461_v33 = vmul.f32 %v13096_v6, %v14552_v42 }
 0xbd1   :  { %v6462_v38 = vmul.f32 %v13096_v6, %v14553_v46  ;;  %v6474_v63 = vmul.f32 %v14554_v50, %v6407_v39  ;;  %v6475_v62 = vmul.f32 %v14554_v50, %v6408_v24  ;;  %v6476_v22 = vmul.f32 %v14554_v50, %v6409_v53 }
 0xbd2   :  { %v6477_v47 = vmul.f32 %v14554_v50, %v6410_v51  ;;  %v6478_v42 = vmul.f32 %v14554_v50, %v6411_v27  ;;  %v6479_v6 = vmul.f32 %v14554_v50, %v6412_v0  ;;  %v6480_v46 = vmul.f32 %v14554_v50, %v6413_v18 }
 0xbd3   :  { %v6481_v39 = vmul.f32 %v14554_v50, %v6414_v3  ;;  %v6482_v24 = vmul.f32 %v14554_v50, %v6415_v41  ;;  %v6483_v53 = vmul.f32 %v14554_v50, %v6416_v29  ;;  %v6484_v51 = vmul.f32 %v14554_v50, %v6417_v9 }
 0xbd4   :  { %v6485_v27 = vmul.f32 %v14554_v50, %v6418_v61  ;;  %v6486_v0 = vmul.f32 %v14554_v50, %v6419_v12  ;;  %v6487_v18 = vmul.f32 %v14554_v50, %v6420_v1  ;;  %v6488_v3 = vmul.f32 %v14554_v50, %v6421_v4 }
 0xbd5   :  { %v6489_v41 = vmul.f32 %v14554_v50, %v6422_v14  ;;  %v6490_v29 = vmul.f32 %v14554_v50, %v6423_v8  ;;  %v6491_v9 = vmul.f32 %v14554_v50, %v6424_v57  ;;  %v6492_v61 = vmul.f32 %v14554_v50, %v6425_v17 }
 0xbd6   :  { %v6493_v12 = vmul.f32 %v14554_v50, %v6426_v30  ;;  %v6494_v1 = vmul.f32 %v14554_v50, %v6427_v40  ;;  %v6495_v4 = vmul.f32 %v14554_v50, %v6428_v11  ;;  %v6496_v14 = vmul.f32 %v14554_v50, %v6429_v43 }
 0xbd7   :  { %v6497_v8 = vmul.f32 %v14554_v50, %v6430_v34  ;;  %v6498_v57 = vmul.f32 %v14554_v50, %v6431_v28  ;;  %v6499_v17 = vmul.f32 %v14554_v50, %v6432_v2  ;;  %v6500_v30 = vmul.f32 %v14554_v50, %v6433_v15 }
 0xbd8   :  { %v6501_v40 = vmul.f32 %v14554_v50, %v6434_v55  ;;  %v6502_v11 = vmul.f32 %v14554_v50, %v6435_v26  ;;  %v6503_v43 = vmul.f32 %v14554_v50, %v6436_v32  ;;  %v6504_v34 = vmul.f32 %v14554_v50, %v6437_v58 }
 0xbd9   :  { %v6505_v28 = vmul.f32 %v14554_v50, %v6438_v21  ;;  %v6506_v2 = vmul.f32 %v14554_v50, %v6439_v35  ;;  %v6507_v15 = vmul.f32 %v14554_v50, %v6440_v54  ;;  %v6508_v55 = vmul.f32 %v14554_v50, %v6441_v5 }
 0xbda   :  { %v6509_v26 = vmul.f32 %v14554_v50, %v6442_v20  ;;  %v6510_v32 = vmul.f32 %v14554_v50, %v6443_v13  ;;  %v6511_v58 = vmul.f32 %v14554_v50, %v6444_v23  ;;  %v6512_v21 = vmul.f32 %v14554_v50, %v6445_v37 }
 0xbdb   :  { %v6513_v35 = vmul.f32 %v14554_v50, %v6446_v59  ;;  %v6514_v54 = vmul.f32 %v14554_v50, %v6447_v31  ;;  %v6515_v5 = vmul.f32 %v14554_v50, %v6448_v10  ;;  %v6516_v20 = vmul.f32 %v14554_v50, %v6449_v48 }
 0xbdc   :  { %v6517_v13 = vmul.f32 %v14554_v50, %v6450_v16  ;;  %v6518_v23 = vmul.f32 %v14554_v50, %v6451_v44  ;;  %v6519_v37 = vmul.f32 %v14554_v50, %v6452_v52  ;;  %v6520_v59 = vmul.f32 %v14554_v50, %v6453_v49 }
 0xbdd   :  { %v6521_v31 = vmul.f32 %v14554_v50, %v6454_v45  ;;  %v6522_v10 = vmul.f32 %v14554_v50, %v6455_v7  ;;  %v6523_v48 = vmul.f32 %v14554_v50, %v6456_v36  ;;  %v6524_v16 = vmul.f32 %v14554_v50, %v6457_v60  ;;  %v14555_v36 = vld [vmem:[#allocation21_spill] sm:$0xff] }
 0xbde   :  { %v6525_v44 = vmul.f32 %v14554_v50, %v6458_v56  ;;  %v6526_v52 = vmul.f32 %v14554_v50, %v6459_v25  ;;  %v6527_v49 = vmul.f32 %v14554_v50, %v6460_v19  ;;  %v6528_v45 = vmul.f32 %v14554_v50, %v6461_v33  ;;  %v14556_v60 = vld [vmem:[#allocation29_spill] sm:$0xff]  ;;  %v14558_v25 = vld [vmem:[#allocation51_spill] sm:$0xff] }
 0xbdf   :  { %v6529_v7 = vmul.f32 %v14554_v50, %v6462_v38  ;;  %v13280_v56 = vmul.f32 %v14556_v60, %v14555_v36  ;;  %v13283_v19 = vadd.f32 %v14558_v25, %v6474_v63  ;;  %v13286_v33 = vadd.f32 %v14558_v25, %v6475_v62 }
 0xbe0   :  { %v13289_v38 = vadd.f32 %v14558_v25, %v6476_v22  ;;  %v13292_v50 = vadd.f32 %v14558_v25, %v6477_v47  ;;  %v13295_v36 = vadd.f32 %v14558_v25, %v6478_v42  ;;  %v13298_v60 = vadd.f32 %v14558_v25, %v6479_v6 }
 0xbe1   :  { %14557 = vst [vmem:[#allocation52_spill] sm:$0xff] %v13280_v56  ;;  %v13301_v56 = vadd.f32 %v14558_v25, %v6480_v46  ;;  %v13304_v63 = vadd.f32 %v14558_v25, %v6481_v39  ;;  %v13307_v62 = vadd.f32 %v14558_v25, %v6482_v24  ;;  %v13310_v22 = vadd.f32 %v14558_v25, %v6483_v53 }
 0xbe2   :  { %v13313_v47 = vadd.f32 %v14558_v25, %v6484_v51  ;;  %v13316_v42 = vadd.f32 %v14558_v25, %v6485_v27  ;;  %v13319_v6 = vadd.f32 %v14558_v25, %v6486_v0  ;;  %v13322_v46 = vadd.f32 %v14558_v25, %v6487_v18 }
 0xbe3   :  { %v13325_v39 = vadd.f32 %v14558_v25, %v6488_v3  ;;  %v13328_v24 = vadd.f32 %v14558_v25, %v6489_v41  ;;  %v13331_v53 = vadd.f32 %v14558_v25, %v6490_v29  ;;  %v13334_v51 = vadd.f32 %v14558_v25, %v6491_v9 }
 0xbe4   :  { %v13337_v27 = vadd.f32 %v14558_v25, %v6492_v61  ;;  %v13340_v0 = vadd.f32 %v14558_v25, %v6493_v12  ;;  %v13343_v18 = vadd.f32 %v14558_v25, %v6494_v1  ;;  %v13346_v3 = vadd.f32 %v14558_v25, %v6495_v4 }
 0xbe5   :  { %v13349_v41 = vadd.f32 %v14558_v25, %v6496_v14  ;;  %v13352_v29 = vadd.f32 %v14558_v25, %v6497_v8  ;;  %v13355_v9 = vadd.f32 %v14558_v25, %v6498_v57  ;;  %v13358_v61 = vadd.f32 %v14558_v25, %v6499_v17 }
 0xbe6   :  { %v13361_v12 = vadd.f32 %v14558_v25, %v6500_v30  ;;  %v13364_v1 = vadd.f32 %v14558_v25, %v6501_v40  ;;  %v13367_v4 = vadd.f32 %v14558_v25, %v6502_v11  ;;  %v13370_v14 = vadd.f32 %v14558_v25, %v6503_v43 }
 0xbe7   :  { %v13373_v8 = vadd.f32 %v14558_v25, %v6504_v34  ;;  %v13376_v57 = vadd.f32 %v14558_v25, %v6505_v28  ;;  %v13379_v17 = vadd.f32 %v14558_v25, %v6506_v2  ;;  %v13382_v30 = vadd.f32 %v14558_v25, %v6507_v15 }
 0xbe8   :  { %v13385_v40 = vadd.f32 %v14558_v25, %v6508_v55  ;;  %v13388_v11 = vadd.f32 %v14558_v25, %v6509_v26  ;;  %v13391_v43 = vadd.f32 %v14558_v25, %v6510_v32  ;;  %v13394_v34 = vadd.f32 %v14558_v25, %v6511_v58 }
 0xbe9   :  { %v13397_v28 = vadd.f32 %v14558_v25, %v6512_v21  ;;  %v13400_v2 = vadd.f32 %v14558_v25, %v6513_v35  ;;  %v13403_v15 = vadd.f32 %v14558_v25, %v6514_v54  ;;  %v13406_v55 = vadd.f32 %v14558_v25, %v6515_v5 }
 0xbea   :  { %v13409_v26 = vadd.f32 %v14558_v25, %v6516_v20  ;;  %v13412_v32 = vadd.f32 %v14558_v25, %v6517_v13  ;;  %v13415_v58 = vadd.f32 %v14558_v25, %v6518_v23  ;;  %v13418_v21 = vadd.f32 %v14558_v25, %v6519_v37 }
 0xbeb   :  { %14559 = vst [vmem:[#allocation10_spill] sm:$0xff] %v13403_v15  ;;  %v13421_v35 = vadd.f32 %v14558_v25, %v6520_v59  ;;  %v13424_v54 = vadd.f32 %v14558_v25, %v6521_v31  ;;  %v13427_v5 = vadd.f32 %v14558_v25, %v6522_v10  ;;  %v13430_v20 = vadd.f32 %v14558_v25, %v6523_v48  ;;  %v14573_v31 = vld [vmem:[#allocation103_spill] sm:$0xff] }
 0xbec   :  { %14560 = vst [vmem:[#allocation50_spill] sm:$0xff] %v13406_v55  ;;  %v13433_v13 = vadd.f32 %v14558_v25, %v6524_v16  ;;  %v13436_v23 = vadd.f32 %v14558_v25, %v6525_v44  ;;  %v13439_v37 = vadd.f32 %v14558_v25, %v6526_v52  ;;  %v13442_v59 = vadd.f32 %v14558_v25, %v6527_v49  ;;  %v14575_v10 = vld [vmem:[#allocation19_spill] sm:$0xff]  ;;  %v14579_v52 = vld [vmem:[#allocation22_spill] sm:$0xff] }
 0xbed   :  { %14561 = vst [vmem:[#allocation8_spill] sm:$0xff] %v13409_v26  ;;  %v13449_v48 = vadd.f32 %v14558_v25, %v6528_v45  ;;  %v13452_v16 = vadd.f32 %v14558_v25, %v6529_v7  ;;  %v14578_v44 = vld [vmem:[#allocation23_spill] sm:$0xff]  ;;  %v14580_v49 = vld [vmem:[#allocation14_spill] sm:$0xff]  ;;  %v6605_v26 = vld [vmem:[%s13732_s7 + $0x38] sm:$0xff] }
 0xbee   :  { %14562 = vst [vmem:[#allocation12_spill] sm:$0xff] %v13412_v32  ;;  %v6604_v32 = vld [vmem:[%s13732_s7 + $0x30] sm:$0xff] }
 0xbef   :  { %14563 = vst [vmem:[#allocation17_spill] sm:$0xff] %v13415_v58 }
 0xbf0   :  { %14564 = vst [vmem:[#allocation6_spill] sm:$0xff] %v13418_v21 }
 0xbf1   :  { %14565 = vst [vmem:[#allocation31_spill] sm:$0xff] %v13421_v35 }
 0xbf2   :  { %14566 = vst [vmem:[#allocation33_spill] sm:$0xff] %v13424_v54  ;;  %v14574_v54 = vld [vmem:[#allocation29_spill] sm:$0xff] }
 0xbf3   :  { %14567 = vst [vmem:[#allocation36_spill] sm:$0xff] %v13427_v5  ;;  %v6401_v35 = vmul.f32 %v14574_v54, %v14573_v31  ;;  %v6402_v5 = vmul.f32 %v14574_v54, %v14575_v10  ;;  %v14583_v10 = vld [vmem:[#allocation28_spill] sm:$0xff] }
 0xbf4   :  { %14568 = vst [vmem:[#allocation34_spill] sm:$0xff] %v13430_v20  ;;  %v14582_v20 = vld [vmem:[#allocation52_spill] sm:$0xff] }
 0xbf5   :  { %14569 = vst [vmem:[#allocation58_spill] sm:$0xff] %v13433_v13  ;;  %v14581_v13 = vld [vmem:[#allocation24_spill] sm:$0xff]  ;;  %v6467_v21 = vmul.f32 %v14583_v10, %v14582_v20  ;;  %v6468_v45 = vmul.f32 %v14583_v10, %v6401_v35  ;;  %v6469_v7 = vmul.f32 %v14583_v10, %v6402_v5  ;;  %v6598_v35 = vld [vmem:[%s13732_s7] sm:$0xff]  ;;  %v6599_v5 = vld [vmem:[%s13732_s7 + $0x8] sm:$0xff] }
 0xbf6   :  { %14570 = vst [vmem:[#allocation35_spill] sm:$0xff] %v13436_v23  ;;  %v6403_v23 = vmul.f32 %v14574_v54, %v14578_v44  ;;  %v6406_v31 = vmul.f32 %v14574_v54, %v14581_v13  ;;  %v6600_v20 = vld [vmem:[%s13732_s7 + $0x10] sm:$0xff] }
 0xbf7   :  { %14571 = vst [vmem:[#allocation37_spill] sm:$0xff] %v13439_v37  ;;  %v6404_v37 = vmul.f32 %v14574_v54, %v14579_v52  ;;  %v6535_v58 = vadd.f32 %v14558_v25, %v6468_v45 }
 0xbf8   :  { %14572 = vst [vmem:[#allocation42_spill] sm:$0xff] %v13442_v59  ;;  %v6405_v59 = vmul.f32 %v14574_v54, %v14580_v49  ;;  %v6473_v52 = vmul.f32 %v14583_v10, %v6406_v31  ;;  %v6534_v49 = vadd.f32 %v14558_v25, %v6467_v21  ;;  %v6536_v54 = vadd.f32 %v14558_v25, %v6469_v7  ;;  %v6601_v21 = vld [vmem:[%s13732_s7 + $0x18] sm:$0xff]  ;;  %v6603_v31 = vld [vmem:[%s13732_s7 + $0x28] sm:$0xff] }
 0xbf9   :  { %14576 = vst [vmem:[#allocation41_spill] sm:$0xff] %v13449_v48  ;;  %v6471_v44 = vmul.f32 %v14583_v10, %v6404_v37  ;;  %v6602_v37 = vld [vmem:[%s13732_s7 + $0x20] sm:$0xff] }
 0xbfa   :  { %14577 = vst [vmem:[#allocation38_spill] sm:$0xff] %v13452_v16  ;;  %v6470_v16 = vmul.f32 %v14583_v10, %v6403_v23  ;;  %v6472_v48 = vmul.f32 %v14583_v10, %v6405_v59  ;;  %v6540_v10 = vadd.f32 %v14558_v25, %v6473_v52  ;;  %v6662_v45 = vadd.f32 %v6598_v35, %v6534_v49  ;;  %v6608_v35 = vld [vmem:[%s13732_s7 + $0x50] sm:$0xff] }
 0xbfb   :  { %v6538_v23 = vadd.f32 %v14558_v25, %v6471_v44  ;;  %v6664_v7 = vadd.f32 %v6600_v20, %v6536_v54 }
 0xbfc   :  { %v6537_v13 = vadd.f32 %v14558_v25, %v6470_v16  ;;  %v6539_v59 = vadd.f32 %v14558_v25, %v6472_v48  ;;  %v6663_v16 = vadd.f32 %v6599_v5, %v6535_v58  ;;  %v6606_v48 = vld [vmem:[%s13732_s7 + $0x40] sm:$0xff]  ;;  %v6607_v25 = vld [vmem:[%s13732_s7 + $0x48] sm:$0xff]  ;;  %v6668_v58 = vadd.f32 %v6604_v32, %v6540_v10 }
 0xbfd   :  { %v6666_v55 = vadd.f32 %v6602_v37, %v6538_v23  ;;  %v6726_v52 = vmax.f32 %v6662_v45, 0.0  ;;  %v6728_v54 = vmax.f32 %v6664_v7, 0.0  ;;  %v6669_v5 = vadd.f32 %v6605_v26, %v13283_v19  ;;  %v6610_v32 = vld [vmem:[%s13732_s7 + $0x60] sm:$0xff]  ;;  %v6611_v19 = vld [vmem:[%s13732_s7 + $0x68] sm:$0xff] }
 0xbfe   :  { %v6665_v44 = vadd.f32 %v6601_v21, %v6537_v13  ;;  %v6667_v15 = vadd.f32 %v6603_v31, %v6539_v59  ;;  %v6727_v49 = vmax.f32 %v6663_v16, 0.0  ;;  %v6609_v13 = vld [vmem:[%s13732_s7 + $0x58] sm:$0xff]  ;;  %v6670_v21 = vadd.f32 %v6606_v48, %v13286_v33  ;;  %v6612_v33 = vld [vmem:[%s13732_s7 + $0x70] sm:$0xff] }
 0xbff   :  { %v6730_v23 = vmax.f32 %v6666_v55, 0.0  ;;  %6790 = vst [vmem:[#allocation2] sm:$0xff] %v6726_v52  ;;  %v6671_v37 = vadd.f32 %v6607_v25, %v13289_v38  ;;  %v6672_v26 = vadd.f32 %v6608_v35, %v13292_v50  ;;  %v6732_v31 = vmax.f32 %v6668_v58, 0.0  ;;  %v6613_v38 = vld [vmem:[%s13732_s7 + $0x78] sm:$0xff]  ;;  %v6614_v50 = vld [vmem:[%s13732_s7 + $0x80] sm:$0xff] }
 0xc00   :  { %v6729_v20 = vmax.f32 %v6665_v44, 0.0  ;;  %v6731_v59 = vmax.f32 %v6667_v15, 0.0  ;;  %6791 = vst [vmem:[#allocation2 + $0x8] sm:$0xff] %v6727_v49  ;;  %v6673_v55 = vadd.f32 %v6609_v13, %v13295_v36  ;;  %v6733_v10 = vmax.f32 %v6669_v5, 0.0  ;;  %v6615_v36 = vld [vmem:[%s13732_s7 + $0x88] sm:$0xff] }
 0xc01   :  { %6792 = vst [vmem:[#allocation2 + $0x10] sm:$0xff] %v6728_v54  ;;  %v6674_v15 = vadd.f32 %v6610_v32, %v13298_v60  ;;  %v6734_v45 = vmax.f32 %v6670_v21, 0.0  ;;  %v6675_v16 = vadd.f32 %v6611_v19, %v13301_v56  ;;  %v6735_v7 = vmax.f32 %v6671_v37, 0.0  ;;  %v6616_v60 = vld [vmem:[%s13732_s7 + $0x90] sm:$0xff]  ;;  %v6617_v56 = vld [vmem:[%s13732_s7 + $0x98] sm:$0xff] }
 0xc02   :  { %6793 = vst [vmem:[#allocation2 + $0x18] sm:$0xff] %v6729_v20  ;;  %v6676_v44 = vadd.f32 %v6612_v33, %v13304_v63  ;;  %v6736_v48 = vmax.f32 %v6672_v26, 0.0  ;;  %v6677_v25 = vadd.f32 %v6613_v38, %v13307_v62  ;;  %v6737_v58 = vmax.f32 %v6673_v55, 0.0  ;;  %v6618_v63 = vld [vmem:[%s13732_s7 + $0xa0] sm:$0xff]  ;;  %v6619_v62 = vld [vmem:[%s13732_s7 + $0xa8] sm:$0xff] }
 0xc03   :  { %6794 = vst [vmem:[#allocation2 + $0x20] sm:$0xff] %v6730_v23  ;;  %v6678_v52 = vadd.f32 %v6614_v50, %v13310_v22  ;;  %v6738_v49 = vmax.f32 %v6674_v15, 0.0  ;;  %v6679_v54 = vadd.f32 %v6615_v36, %v13313_v47  ;;  %v6739_v35 = vmax.f32 %v6675_v16, 0.0  ;;  %v6620_v22 = vld [vmem:[%s13732_s7 + $0xb0] sm:$0xff]  ;;  %v6621_v47 = vld [vmem:[%s13732_s7 + $0xb8] sm:$0xff] }
 0xc04   :  { %6795 = vst [vmem:[#allocation2 + $0x28] sm:$0xff] %v6731_v59  ;;  %v6680_v5 = vadd.f32 %v6616_v60, %v13316_v42  ;;  %v6740_v20 = vmax.f32 %v6676_v44, 0.0  ;;  %v6681_v13 = vadd.f32 %v6617_v56, %v13319_v6  ;;  %v6741_v21 = vmax.f32 %v6677_v25, 0.0  ;;  %v6622_v42 = vld [vmem:[%s13732_s7 + $0xc0] sm:$0xff]  ;;  %v6623_v6 = vld [vmem:[%s13732_s7 + $0xc8] sm:$0xff] }
 0xc05   :  { %6796 = vst [vmem:[#allocation2 + $0x30] sm:$0xff] %v6732_v31  ;;  %v6682_v23 = vadd.f32 %v6618_v63, %v13322_v46  ;;  %v6742_v32 = vmax.f32 %v6678_v52, 0.0  ;;  %v6683_v37 = vadd.f32 %v6619_v62, %v13325_v39  ;;  %v6743_v59 = vmax.f32 %v6679_v54, 0.0  ;;  %v6624_v46 = vld [vmem:[%s13732_s7 + $0xd0] sm:$0xff]  ;;  %v6625_v39 = vld [vmem:[%s13732_s7 + $0xd8] sm:$0xff] }
 0xc06   :  { %6797 = vst [vmem:[#allocation2 + $0x38] sm:$0xff] %v6733_v10  ;;  %v6684_v19 = vadd.f32 %v6620_v22, %v13328_v24  ;;  %v6744_v26 = vmax.f32 %v6680_v5, 0.0  ;;  %v6685_v31 = vadd.f32 %v6621_v47, %v13331_v53  ;;  %v6745_v33 = vmax.f32 %v6681_v13, 0.0  ;;  %v6626_v24 = vld [vmem:[%s13732_s7 + $0xe0] sm:$0xff]  ;;  %v6627_v53 = vld [vmem:[%s13732_s7 + $0xe8] sm:$0xff] }
 0xc07   :  { %6798 = vst [vmem:[#allocation2 + $0x40] sm:$0xff] %v6734_v45  ;;  %v6686_v55 = vadd.f32 %v6622_v42, %v13334_v51  ;;  %v6746_v10 = vmax.f32 %v6682_v23, 0.0  ;;  %v6687_v38 = vadd.f32 %v6623_v6, %v13337_v27  ;;  %v6747_v15 = vmax.f32 %v6683_v37, 0.0  ;;  %v6628_v51 = vld [vmem:[%s13732_s7 + $0xf0] sm:$0xff]  ;;  %v6629_v27 = vld [vmem:[%s13732_s7 + $0xf8] sm:$0xff] }
 0xc08   :  { %6799 = vst [vmem:[#allocation2 + $0x48] sm:$0xff] %v6735_v7  ;;  %v6688_v45 = vadd.f32 %v6624_v46, %v13340_v0  ;;  %v6748_v50 = vmax.f32 %v6684_v19, 0.0  ;;  %v6689_v16 = vadd.f32 %v6625_v39, %v13343_v18  ;;  %v6749_v7 = vmax.f32 %v6685_v31, 0.0  ;;  %v6630_v0 = vld [vmem:[%s13732_s7 + $0x100] sm:$0xff]  ;;  %v6631_v18 = vld [vmem:[%s13732_s7 + $0x108] sm:$0xff] }
 0xc09   :  { %6800 = vst [vmem:[#allocation2 + $0x50] sm:$0xff] %v6736_v48  ;;  %v6690_v36 = vadd.f32 %v6626_v24, %v13346_v3  ;;  %v6750_v44 = vmax.f32 %v6686_v55, 0.0  ;;  %v6691_v48 = vadd.f32 %v6627_v53, %v13349_v41  ;;  %v6751_v60 = vmax.f32 %v6687_v38, 0.0  ;;  %v6632_v3 = vld [vmem:[%s13732_s7 + $0x110] sm:$0xff]  ;;  %v6633_v41 = vld [vmem:[%s13732_s7 + $0x118] sm:$0xff] }
 0xc0a   :  { %6801 = vst [vmem:[#allocation2 + $0x58] sm:$0xff] %v6737_v58  ;;  %v6692_v25 = vadd.f32 %v6628_v51, %v13352_v29  ;;  %v6752_v58 = vmax.f32 %v6688_v45, 0.0  ;;  %v6693_v56 = vadd.f32 %v6629_v27, %v13355_v9  ;;  %v6753_v52 = vmax.f32 %v6689_v16, 0.0  ;;  %v6634_v29 = vld [vmem:[%s13732_s7 + $0x120] sm:$0xff]  ;;  %v6635_v9 = vld [vmem:[%s13732_s7 + $0x128] sm:$0xff] }
 0xc0b   :  { %6802 = vst [vmem:[#allocation2 + $0x60] sm:$0xff] %v6738_v49  ;;  %v6694_v49 = vadd.f32 %v6630_v0, %v13358_v61  ;;  %v6754_v63 = vmax.f32 %v6690_v36, 0.0  ;;  %v6695_v54 = vadd.f32 %v6631_v18, %v13361_v12  ;;  %v6696_v62 = vadd.f32 %v6632_v3, %v13364_v1  ;;  %v6636_v61 = vld [vmem:[%s13732_s7 + $0x130] sm:$0xff]  ;;  %v6637_v12 = vld [vmem:[%s13732_s7 + $0x138] sm:$0xff]  ;;  %v6638_v1 = vld [vmem:[%s13732_s7 + $0x140] sm:$0xff] }
 0xc0c   :  { %6803 = vst [vmem:[#allocation2 + $0x68] sm:$0xff] %v6739_v35  ;;  %v6755_v35 = vmax.f32 %v6691_v48, 0.0  ;;  %v6756_v5 = vmax.f32 %v6692_v25, 0.0  ;;  %v6757_v22 = vmax.f32 %v6693_v56, 0.0  ;;  %v6698_v13 = vadd.f32 %v6634_v29, %v13370_v14  ;;  %v6640_v14 = vld [vmem:[%s13732_s7 + $0x150] sm:$0xff]  ;;  %v14587_v18 = vld [vmem:[#allocation12_spill] sm:$0xff] }
 0xc0d   :  { %6804 = vst [vmem:[#allocation2 + $0x70] sm:$0xff] %v6740_v20  ;;  %v6697_v20 = vadd.f32 %v6633_v41, %v13367_v4  ;;  %v6699_v47 = vadd.f32 %v6635_v9, %v13373_v8  ;;  %v6759_v23 = vmax.f32 %v6695_v54, 0.0  ;;  %v6639_v4 = vld [vmem:[%s13732_s7 + $0x148] sm:$0xff]  ;;  %v6760_v42 = vmax.f32 %v6696_v62, 0.0  ;;  %v6641_v8 = vld [vmem:[%s13732_s7 + $0x158] sm:$0xff]  ;;  %v6652_v3 = vld [vmem:[%s13732_s7 + $0x1b0] sm:$0xff] }
 0xc0e   :  { %6805 = vst [vmem:[#allocation2 + $0x78] sm:$0xff] %v6741_v21  ;;  %v6758_v21 = vmax.f32 %v6694_v49, 0.0  ;;  %v6701_v37 = vadd.f32 %v6637_v12, %v13379_v17  ;;  %v6702_v6 = vadd.f32 %v6638_v1, %v13382_v30  ;;  %v6762_v19 = vmax.f32 %v6698_v13, 0.0  ;;  %v6643_v17 = vld [vmem:[%s13732_s7 + $0x168] sm:$0xff]  ;;  %v6644_v30 = vld [vmem:[%s13732_s7 + $0x170] sm:$0xff]  ;;  %v14588_v56 = vld [vmem:[#allocation17_spill] sm:$0xff] }
 0xc0f   :  { %6806 = vst [vmem:[#allocation2 + $0x80] sm:$0xff] %v6742_v32  ;;  %v6700_v32 = vadd.f32 %v6636_v61, %v13376_v57  ;;  %v6642_v57 = vld [vmem:[%s13732_s7 + $0x160] sm:$0xff]  ;;  %v6763_v46 = vmax.f32 %v6699_v47, 0.0  ;;  %v6704_v31 = vadd.f32 %v6640_v14, %v13388_v11  ;;  %v6705_v39 = vadd.f32 %v6641_v8, %v13391_v43  ;;  %v6647_v43 = vld [vmem:[%s13732_s7 + $0x188] sm:$0xff]  ;;  %v6653_v49 = vld [vmem:[%s13732_s7 + $0x1b8] sm:$0xff] }
 0xc10   :  { %6807 = vst [vmem:[#allocation2 + $0x88] sm:$0xff] %v6743_v59  ;;  %v6761_v59 = vmax.f32 %v6697_v20, 0.0  ;;  %v6765_v55 = vmax.f32 %v6701_v37, 0.0  ;;  %v6766_v24 = vmax.f32 %v6702_v6, 0.0  ;;  %v6646_v11 = vld [vmem:[%s13732_s7 + $0x180] sm:$0xff]  ;;  %v6707_v38 = vadd.f32 %v6643_v17, %v13397_v28  ;;  %v6649_v28 = vld [vmem:[%s13732_s7 + $0x198] sm:$0xff] }
 0xc11   :  { %6808 = vst [vmem:[#allocation2 + $0x90] sm:$0xff] %v6744_v26  ;;  %v6703_v26 = vadd.f32 %v6639_v4, %v13385_v40  ;;  %v6645_v40 = vld [vmem:[%s13732_s7 + $0x178] sm:$0xff]  ;;  %v6708_v53 = vadd.f32 %v6644_v30, %v13400_v2  ;;  %v6768_v45 = vmax.f32 %v6704_v31, 0.0  ;;  %v6769_v16 = vmax.f32 %v6705_v39, 0.0  ;;  %v6650_v2 = vld [vmem:[%s13732_s7 + $0x1a0] sm:$0xff]  ;;  %v14590_v9 = vld [vmem:[#allocation31_spill] sm:$0xff] }
 0xc12   :  { %6809 = vst [vmem:[#allocation2 + $0x98] sm:$0xff] %v6745_v33  ;;  %v6764_v33 = vmax.f32 %v6700_v32, 0.0  ;;  %v6771_v48 = vmax.f32 %v6707_v38, 0.0  ;;  %v6655_v61 = vld [vmem:[%s13732_s7 + $0x1c8] sm:$0xff]  ;;  %v14591_v20 = vld [vmem:[#allocation33_spill] sm:$0xff]  ;;  %v6656_v13 = vld [vmem:[%s13732_s7 + $0x1d0] sm:$0xff] }
 0xc13   :  { %6810 = vst [vmem:[#allocation2 + $0xa0] sm:$0xff] %v6746_v10  ;;  %v6706_v10 = vadd.f32 %v6642_v57, %v13394_v34  ;;  %v6648_v34 = vld [vmem:[%s13732_s7 + $0x190] sm:$0xff]  ;;  %v14593_v4 = vld [vmem:[#allocation34_spill] sm:$0xff]  ;;  %v6658_v14 = vld [vmem:[%s13732_s7 + $0x1e0] sm:$0xff] }
 0xc14   :  { %6811 = vst [vmem:[#allocation2 + $0xa8] sm:$0xff] %v6747_v15  ;;  %v6767_v15 = vmax.f32 %v6703_v26, 0.0  ;;  %v6712_v25 = vadd.f32 %v6648_v34, %v14587_v18  ;;  %v14594_v37 = vld [vmem:[#allocation58_spill] sm:$0xff]  ;;  %v14596_v17 = vld [vmem:[#allocation37_spill] sm:$0xff] }
 0xc15   :  { %6812 = vst [vmem:[#allocation2 + $0xb0] sm:$0xff] %v6748_v50  ;;  %v14584_v50 = vld [vmem:[#allocation10_spill] sm:$0xff]  ;;  %v6770_v36 = vmax.f32 %v6706_v10, 0.0 }
 0xc16   :  { %6813 = vst [vmem:[#allocation2 + $0xb8] sm:$0xff] %v6749_v7  ;;  %v6709_v51 = vadd.f32 %v6645_v40, %v14584_v50  ;;  %v14585_v7 = vld [vmem:[#allocation50_spill] sm:$0xff]  ;;  %v6776_v12 = vmax.f32 %v6712_v25, 0.0  ;;  %v14598_v40 = vld [vmem:[#allocation41_spill] sm:$0xff] }
 0xc17   :  { %6814 = vst [vmem:[#allocation2 + $0xc0] sm:$0xff] %v6750_v44  ;;  %v6710_v27 = vadd.f32 %v6646_v11, %v14585_v7  ;;  %v14586_v44 = vld [vmem:[#allocation8_spill] sm:$0xff]  ;;  %v6659_v6 = vld [vmem:[%s13732_s7 + $0x1e8] sm:$0xff] }
 0xc18   :  { %6815 = vst [vmem:[#allocation2 + $0xc8] sm:$0xff] %v6751_v60  ;;  %v6711_v0 = vadd.f32 %v6647_v43, %v14586_v44  ;;  %v6651_v60 = vld [vmem:[%s13732_s7 + $0x1a8] sm:$0xff]  ;;  %v6773_v41 = vmax.f32 %v6709_v51, 0.0  ;;  %v6723_v10 = vadd.f32 %v6659_v6, %v14598_v40 }
 0xc19   :  { %6816 = vst [vmem:[#allocation2 + $0xd0] sm:$0xff] %v6752_v58  ;;  %v6772_v58 = vmax.f32 %v6708_v53, 0.0  ;;  %v6774_v54 = vmax.f32 %v6710_v27, 0.0  ;;  %v6715_v62 = vadd.f32 %v6651_v60, %v14590_v9  ;;  %v14597_v30 = vld [vmem:[#allocation42_spill] sm:$0xff] }
 0xc1a   :  { %6817 = vst [vmem:[#allocation2 + $0xd8] sm:$0xff] %v6753_v52  ;;  %v6713_v52 = vadd.f32 %v6649_v28, %v14588_v56  ;;  %v6722_v39 = vadd.f32 %v6658_v14, %v14597_v30  ;;  %v14599_v11 = vld [vmem:[#allocation38_spill] sm:$0xff] }
 0xc1b   :  { %6818 = vst [vmem:[#allocation2 + $0xe0] sm:$0xff] %v6754_v63  ;;  %v14589_v63 = vld [vmem:[#allocation6_spill] sm:$0xff]  ;;  %v6779_v8 = vmax.f32 %v6715_v62, 0.0 }
 0xc1c   :  { %6819 = vst [vmem:[#allocation2 + $0xe8] sm:$0xff] %v6755_v35  ;;  %v6714_v29 = vadd.f32 %v6650_v2, %v14589_v63  ;;  %v6654_v35 = vld [vmem:[%s13732_s7 + $0x1c0] sm:$0xff]  ;;  %v6777_v47 = vmax.f32 %v6713_v52, 0.0  ;;  %v6786_v53 = vmax.f32 %v6722_v39, 0.0 }
 0xc1d   :  { %6820 = vst [vmem:[#allocation2 + $0xf0] sm:$0xff] %v6756_v5  ;;  %v6775_v5 = vmax.f32 %v6711_v0, 0.0  ;;  %v6718_v32 = vadd.f32 %v6654_v35, %v14593_v4 }
 0xc1e   :  { %6821 = vst [vmem:[#allocation2 + $0xf8] sm:$0xff] %v6757_v22  ;;  %v6716_v22 = vadd.f32 %v6652_v3, %v14591_v20 }
 0xc1f   :  { %6822 = vst [vmem:[#allocation2 + $0x100] sm:$0xff] %v6758_v21  ;;  %v14592_v21 = vld [vmem:[#allocation36_spill] sm:$0xff] }
 0xc20   :  { %6823 = vst [vmem:[#allocation2 + $0x108] sm:$0xff] %v6759_v23  ;;  %v6717_v1 = vadd.f32 %v6653_v49, %v14592_v21  ;;  %v6657_v23 = vld [vmem:[%s13732_s7 + $0x1d8] sm:$0xff]  ;;  %v6780_v26 = vmax.f32 %v6716_v22, 0.0 }
 0xc21   :  { %6824 = vst [vmem:[#allocation2 + $0x110] sm:$0xff] %v6760_v42  ;;  %v6778_v42 = vmax.f32 %v6714_v29, 0.0  ;;  %v6721_v31 = vadd.f32 %v6657_v23, %v14596_v17 }
 0xc22   :  { %6825 = vst [vmem:[#allocation2 + $0x118] sm:$0xff] %v6761_v59  ;;  %v6719_v59 = vadd.f32 %v6655_v61, %v14594_v37 }
 0xc23   :  { %6826 = vst [vmem:[#allocation2 + $0x120] sm:$0xff] %v6762_v19  ;;  %v14595_v19 = vld [vmem:[#allocation35_spill] sm:$0xff]  ;;  %v6785_v43 = vmax.f32 %v6721_v31, 0.0 }
 0xc24   :  { %6827 = vst [vmem:[#allocation2 + $0x128] sm:$0xff] %v6763_v46  ;;  %v6720_v57 = vadd.f32 %v6656_v13, %v14595_v19  ;;  %v6660_v46 = vld [vmem:[%s13732_s7 + $0x1f0] sm:$0xff]  ;;  %s8303_s7 = smov [#allocation2]  }
 0xc25   :  { %6828 = vst [vmem:[#allocation2 + $0x130] sm:$0xff] %v6764_v33  ;;  %v6781_v33 = vmax.f32 %v6717_v1, 0.0  ;;  %v6724_v38 = vadd.f32 %v6660_v46, %v14599_v11  ;;  %s6858_s20 = sshll.u32 %s8303_s7, 4  ;;  %s6859_s20 = int_to_ptr.vmem [resolvable:$true] %s6858_s20 }
 0xc26   :  { %6829 = vst [vmem:[#allocation2 + $0x138] sm:$0xff] %v6765_v55  ;;  %v6782_v55 = vmax.f32 %v6718_v32, 0.0 }
 0xc27   :  { %6830 = vst [vmem:[#allocation2 + $0x140] sm:$0xff] %v6766_v24  ;;  %v6783_v24 = vmax.f32 %v6719_v59, 0.0  ;;  %v6788_v34 = vmax.f32 %v6724_v38, 0.0 }
 0xc28   :  { %6831 = vst [vmem:[#allocation2 + $0x148] sm:$0xff] %v6767_v15  ;;  %v6784_v15 = vmax.f32 %v6720_v57, 0.0 }
 0xc29   :  { %6832 = vst [vmem:[#allocation2 + $0x150] sm:$0xff] %v6768_v45  ;;  %v6787_v45 = vmax.f32 %v6723_v10, 0.0 }
 0xc2a   :  { %6833 = vst [vmem:[#allocation2 + $0x158] sm:$0xff] %v6769_v16 }
 0xc2b   :  { %6834 = vst [vmem:[#allocation2 + $0x160] sm:$0xff] %v6770_v36 }
 0xc2c   :  { %6835 = vst [vmem:[#allocation2 + $0x168] sm:$0xff] %v6771_v48 }
 0xc2d   :  { %6836 = vst [vmem:[#allocation2 + $0x170] sm:$0xff] %v6772_v58 }
 0xc2e   :  { %6837 = vst [vmem:[#allocation2 + $0x178] sm:$0xff] %v6773_v41 }
 0xc2f   :  { %6838 = vst [vmem:[#allocation2 + $0x180] sm:$0xff] %v6774_v54 }
 0xc30   :  { %6839 = vst [vmem:[#allocation2 + $0x188] sm:$0xff] %v6775_v5 }
 0xc31   :  { %6840 = vst [vmem:[#allocation2 + $0x190] sm:$0xff] %v6776_v12 }
 0xc32   :  { %6841 = vst [vmem:[#allocation2 + $0x198] sm:$0xff] %v6777_v47 }
 0xc33   :  { %6842 = vst [vmem:[#allocation2 + $0x1a0] sm:$0xff] %v6778_v42 }
 0xc34   :  { %6843 = vst [vmem:[#allocation2 + $0x1a8] sm:$0xff] %v6779_v8 }
 0xc35   :  { %6844 = vst [vmem:[#allocation2 + $0x1b0] sm:$0xff] %v6780_v26 }
 0xc36   :  { %6845 = vst [vmem:[#allocation2 + $0x1b8] sm:$0xff] %v6781_v33 }
 0xc37   :  { %6846 = vst [vmem:[#allocation2 + $0x1c0] sm:$0xff] %v6782_v55 }
 0xc38   :  { %6847 = vst [vmem:[#allocation2 + $0x1c8] sm:$0xff] %v6783_v24 }
 0xc39   :  { %6848 = vst [vmem:[#allocation2 + $0x1d0] sm:$0xff] %v6784_v15 }
 0xc3a   :  { %6849 = vst [vmem:[#allocation2 + $0x1d8] sm:$0xff] %v6785_v43 }
 0xc3b   :  { %6850 = vst [vmem:[#allocation2 + $0x1e0] sm:$0xff] %v6786_v53 }
 0xc3c   :  { %6851 = vst [vmem:[#allocation2 + $0x1e8] sm:$0xff] %v6787_v45 }
 0xc3d   :  { %6852 = vst [vmem:[#allocation2 + $0x1f0] sm:$0xff] %v6788_v34 }
 0xc3e   :  { %6866 = dma.vmem_to_hbm [thread:$0]  %s6859_s20, 8192, %s6861_s2, [#allocation3], %s8304_s3, %s8304_s3, %s8305_s23  }
 0xc3f   :  { %8299 = dma.done.wait [#allocation3], 8192  }
 0xc40   :  { %8300 = vsyncadd [#allocation3], 4294959104 }
 0xc41   :  { %6871 = vsyncpa [#allocation3], 1 }

</bundles_post_ra>
